<compile_context>
chip_gen: v5e
topology: v5e:2x2
jax: 0.10.0
libtpu: 0.0.40
codegen_flags: <defaults>
</compile_context>

<pallas_src>
import functools
import math

import jax
import jax.numpy as jnp
from jax.experimental import pallas as pl
from jax.experimental.pallas import tpu as pltpu


# ----------------------------- tiling / config -------------------------------


@functools.lru_cache(maxsize=None)
def _tpu_config():
    """Per-generation tile sizes / VMEM budget (conservative fallback if query fails)."""
    try:
        vmem = pltpu.get_tpu_info().vmem_capacity_bytes
    except Exception:
        vmem = 64 * 1024 * 1024                      # assume v7x-sized VMEM
    if vmem >= 100 * 1024 * 1024:                    # v5e / v6e: 128 MiB
        return {"tm": 512, "tn": 1024, "tk": 512, "ts": 1024,
                "vmem_limit": 96 * 1024 * 1024}
    return {"tm": 256, "tn": 512, "tk": 512, "ts": 512,   # v7x: 64 MiB physical / 32 scoped
            "vmem_limit": 40 * 1024 * 1024}


def _sublane_align(dtype):
    """Sublane pack: 8 rows for f32, 16 for bf16, 32 for int8."""
    return 8 * max(1, 4 // jnp.dtype(dtype).itemsize)


def _fit_tile(dim, pref, align):
    """Largest multiple of `align` <= pref that divides dim; else the full dim.

    Keeps every block either aligned or equal to the full array dim so BlockSpecs always
    satisfy the TPU tiling constraint.
    """
    if dim <= pref:
        return dim
    pref = (pref // align) * align
    for cand in range(pref, align - 1, -align):
        if dim % cand == 0:
            return cand
    return dim   # TODO(synk): pathological dims fall back to a full-dim block (may blow VMEM).


# ------------------------------- GEMM kernels ---------------------------------


def _make_linear_kernel(activation, has_residual):
    """Tiled matmul y = act(x @ w + b) [+ residual]; K reduction with f32 VMEM accumulator."""

    def kernel(x_ref, w_ref, bias_ref, *rest):
        if has_residual:
            res_ref, o_ref, acc_ref = rest
        else:
            o_ref, acc_ref = rest
            res_ref = None

        k = pl.program_id(2)

        @pl.when(k == 0)
        def _():
            acc_ref[...] = jnp.zeros_like(acc_ref)

        # Operands stay in native dtype; MXU accumulates in f32.
        acc_ref[...] += jnp.dot(x_ref[...], w_ref[...],
                                preferred_element_type=jnp.float32)

        @pl.when(k == pl.num_programs(2) - 1)
        def _():
            y = acc_ref[...] + bias_ref[...].astype(jnp.float32)
            if activation == "relu":
                y = jnp.maximum(y, 0.0)
            if res_ref is not None:
                y = y + res_ref[...].astype(jnp.float32)
            o_ref[...] = y.astype(o_ref.dtype)

    return kernel


def linear(x, w, bias, activation=None, residual=None, tm=None, tn=None, tk=None):
    """x: (M, K), w: (K, N), bias: (N,) -> (M, N). Optional fused ReLU / residual add."""
    cfg = _tpu_config()
    M, K = x.shape
    N = w.shape[1]
    tm = _fit_tile(M, tm or cfg["tm"], _sublane_align(x.dtype))
    tn = _fit_tile(N, tn or cfg["tn"], 128)
    tk = _fit_tile(K, tk or cfg["tk"], 128)
    grid = (M // tm, N // tn, K // tk)

    has_res = residual is not None
    kernel = _make_linear_kernel(activation, has_res)

    in_specs = [
        pl.BlockSpec((tm, tk), lambda i, j, k: (i, k)),
        pl.BlockSpec((tk, tn), lambda i, j, k: (k, j)),
        pl.BlockSpec((1, tn), lambda i, j, k: (0, j)),
    ]
    args = [x, w, bias.reshape(1, N)]
    if has_res:
        in_specs.append(pl.BlockSpec((tm, tn), lambda i, j, k: (i, j)))
        args.append(residual)

    return pl.pallas_call(
        kernel,
        out_shape=jax.ShapeDtypeStruct((M, N), x.dtype),
        grid=grid,
        in_specs=in_specs,
        out_specs=pl.BlockSpec((tm, tn), lambda i, j, k: (i, j)),
        scratch_shapes=[pltpu.VMEM((tm, tn), jnp.float32)],
        compiler_params=pltpu.CompilerParams(
            dimension_semantics=("parallel", "parallel", "arbitrary"),
            vmem_limit_bytes=cfg["vmem_limit"]),
    )(*args)


def _ln_linear_kernel(x_ref, g_ref, b_ref, w_ref, bias_ref, o_ref, xn_ref, acc_ref,
                      *, eps, activation, tk, nk):
    """Fused LayerNorm(x) @ w + bias (+ ReLU).

    LN stats / normalize run ONCE per row tile (at j==0, k==0) and the normalized rows are
    cached in VMEM scratch (chunked along K), then reused for every N tile and K tile.
    """
    j = pl.program_id(1)
    k = pl.program_id(2)

    @pl.when((j == 0) & (k == 0))
    def _():
        x = x_ref[...].astype(jnp.float32)                               # (tm, K)
        mean = jnp.mean(x, axis=-1, keepdims=True)
        var = jnp.mean(jnp.square(x - mean), axis=-1, keepdims=True)     # biased, matches torch
        xn = (x - mean) * jax.lax.rsqrt(var + eps)
        xn = xn * g_ref[...].astype(jnp.float32) + b_ref[...].astype(jnp.float32)
        xn = xn.astype(xn_ref.dtype)
        for kk in range(nk):                                             # static chunked store
            xn_ref[kk] = xn[:, kk * tk:(kk + 1) * tk]

    @pl.when(k == 0)
    def _():
        acc_ref[...] = jnp.zeros_like(acc_ref)

    acc_ref[...] += jnp.dot(xn_ref[k], w_ref[...],
                            preferred_element_type=jnp.float32)

    @pl.when(k == nk - 1)
    def _():
        y = acc_ref[...] + bias_ref[...].astype(jnp.float32)
        if activation == "relu":
            y = jnp.maximum(y, 0.0)
        o_ref[...] = y.astype(o_ref.dtype)


def ln_linear(x, gamma, beta, w, bias, activation=None, eps=1e-5, tm=None, tn=None, tk=None):
    """LayerNorm over the last dim of x (M, K) fused with projection w: (K, N) -> (M, N)."""
    cfg = _tpu_config()
    M, K = x.shape
    N = w.shape[1]
    tm = _fit_tile(M, tm or cfg["tm"], _sublane_align(x.dtype))
    tn = _fit_tile(N, tn or cfg["tn"], 128)
    tk = _fit_tile(K, tk or cfg["tk"], 128)
    nk = K // tk
    grid = (M // tm, N // tn, nk)

    kernel = functools.partial(_ln_linear_kernel, eps=eps, activation=activation, tk=tk, nk=nk)
    return pl.pallas_call(
        kernel,
        out_shape=jax.ShapeDtypeStruct((M, N), x.dtype),
        grid=grid,
        in_specs=[
            pl.BlockSpec((tm, K), lambda i, j, k: (i, 0)),    # full row needed for LN stats
            pl.BlockSpec((1, K), lambda i, j, k: (0, 0)),
            pl.BlockSpec((1, K), lambda i, j, k: (0, 0)),
            pl.BlockSpec((tk, tn), lambda i, j, k: (k, j)),
            pl.BlockSpec((1, tn), lambda i, j, k: (0, j)),
        ],
        out_specs=pl.BlockSpec((tm, tn), lambda i, j, k: (i, j)),
        scratch_shapes=[pltpu.VMEM((nk, tm, tk), x.dtype),    # cached normalized rows
                        pltpu.VMEM((tm, tn), jnp.float32)],   # f32 accumulator
        compiler_params=pltpu.CompilerParams(
            dimension_semantics=("parallel", "arbitrary", "arbitrary"),
            vmem_limit_bytes=cfg["vmem_limit"]),
    )(x, gamma.reshape(1, K), beta.reshape(1, K), w, bias.reshape(1, N))


# ------------------------------ attention kernel ------------------------------


def _attn_kernel(q_ref, k_ref, v_ref, o_ref, m_sc, l_sc, acc_sc, *, num_heads):
    """One (batch, query-tile) x one KV-tile step of head-batched online-softmax attention.

    q_ref: (tl, D), k_ref/v_ref: (ts, D), o_ref: (tl, D).
    Scratch m_sc/l_sc: (H, tl, 1) f32, acc_sc: (H, tl, hd) f32 persist over the KV grid axis.
    """
    s_idx = pl.program_id(2)

    @pl.when(s_idx == 0)
    def _():
        m_sc[...] = jnp.full_like(m_sc, -jnp.inf)
        l_sc[...] = jnp.zeros_like(l_sc)
        acc_sc[...] = jnp.zeros_like(acc_sc)

    tl, d_model = q_ref.shape
    ts = k_ref.shape[0]
    hd = d_model // num_heads

    # Head-batched matmuls: single dot_general with an H batch dim (no per-head unroll).
    # The 1/sqrt(hd) scale is already folded into the Q projection weights.
    q = q_ref[...].reshape(tl, num_heads, hd)
    k = k_ref[...].reshape(ts, num_heads, hd)
    v = v_ref[...].reshape(ts, num_heads, hd)
    s = jnp.einsum("qhd,khd->hqk", q, k, preferred_element_type=jnp.float32)  # (H, tl, ts)

    m_prev = m_sc[...]
    m_new = jnp.maximum(m_prev, jnp.max(s, axis=-1, keepdims=True))
    alpha = jnp.exp(m_prev - m_new)
    p = jnp.exp(s - m_new)
    l_sc[...] = alpha * l_sc[...] + jnp.sum(p, axis=-1, keepdims=True)
    acc_sc[...] = alpha * acc_sc[...] + jnp.einsum(
        "hqk,khd->hqd", p.astype(v.dtype), v, preferred_element_type=jnp.float32)
    m_sc[...] = m_new

    @pl.when(s_idx == pl.num_programs(2) - 1)
    def _():
        inv_l = pl.reciprocal(l_sc[...], approx=True)                   # EUP slot
        heads = [(acc_sc[h] * inv_l[h]).astype(o_ref.dtype) for h in range(num_heads)]
        o_ref[...] = jnp.concatenate(heads, axis=-1)                    # lane-dense (tl, D) store


def attention(q_src, k_src, v_src, *, num_heads, d_model, q_blk, k_blk, v_blk,
              tl=None, ts=None):
    """q_src: (B, Lq, *), k_src/v_src: (B, S, *) fused-projection slabs (batch-major).

    *_blk select which d_model-wide block of each slab's last dim holds Q / K / V, so only
    the needed columns are DMA'd into VMEM.
    """
    cfg = _tpu_config()
    B, L, _ = q_src.shape
    S = k_src.shape[1]
    hd = d_model // num_heads
    align = _sublane_align(q_src.dtype)
    tl = _fit_tile(L, tl or min(cfg["tm"], 256), align)
    ts = _fit_tile(S, ts or cfg["ts"], align)
    grid = (B, L // tl, S // ts)

    kernel = functools.partial(_attn_kernel, num_heads=num_heads)
    return pl.pallas_call(
        kernel,
        out_shape=jax.ShapeDtypeStruct((B, L, d_model), q_src.dtype),
        grid=grid,
        in_specs=[
            pl.BlockSpec((None, tl, d_model), lambda b, l, s: (b, l, q_blk)),
            pl.BlockSpec((None, ts, d_model), lambda b, l, s: (b, s, k_blk)),
            pl.BlockSpec((None, ts, d_model), lambda b, l, s: (b, s, v_blk)),
        ],
        out_specs=pl.BlockSpec((None, tl, d_model), lambda b, l, s: (b, l, 0)),
        scratch_shapes=[
            pltpu.VMEM((num_heads, tl, 1), jnp.float32),    # running max
            pltpu.VMEM((num_heads, tl, 1), jnp.float32),    # running sum
            pltpu.VMEM((num_heads, tl, hd), jnp.float32),   # running weighted-V accumulator
        ],
        compiler_params=pltpu.CompilerParams(
            dimension_semantics=("parallel", "parallel", "arbitrary"),
            vmem_limit_bytes=cfg["vmem_limit"]),
    )(q_src, k_src, v_src)


def _mha(q_slab, kv_slab, *, q_blk, k_blk, v_blk, num_heads, d_model):
    """Dispatch attention on fused projection slabs; fall back to XLA slicing if d_model is
    not lane-aligned (a d_model-wide last-dim block must be a multiple of 128 or the full dim)."""
    if d_model % 128 == 0:
        return attention(q_slab, kv_slab, kv_slab, num_heads=num_heads, d_model=d_model,
                         q_blk=q_blk, k_blk=k_blk, v_blk=v_blk)
    # TODO(synk): unaligned d_model -> split the fused slab with XLA slices (one extra HBM pass).
    def blk(a, i):
        return jax.lax.slice_in_dim(a, i * d_model, (i + 1) * d_model, axis=-1)
    return attention(blk(q_slab, q_blk), blk(kv_slab, k_blk), blk(kv_slab, v_blk),
                     num_heads=num_heads, d_model=d_model, q_blk=0, k_blk=0, v_blk=0)


# ---------------------------- module composition -----------------------------


def transformer_decoder_layer(tgt, memory, params, *, num_heads):
    """Pre-norm TransformerDecoderLayer forward; dropout = identity (eval mode).

    TODO(synk): tgt_mask / memory_mask / key_padding_mask paths not implemented (None only).
    """
    T, B, D = tgt.shape
    S = memory.shape[0]

    # Internal batch-major layout: (B, seq, D) -> sublane-dense per-batch attention tiles.
    x = jnp.transpose(tgt, (1, 0, 2)).reshape(B * T, D)
    mem = jnp.transpose(memory, (1, 0, 2)).reshape(B * S, D)

    # --- self-attention block: norm1 fused into the fused-QKV projection ---
    sa = params["self_attn"]
    qkv = ln_linear(x, params["norm1_g"], params["norm1_b"], sa["w_qkv"], sa["b_qkv"])
    qkv3 = qkv.reshape(B, T, 3 * D)
    attn = _mha(qkv3, qkv3, q_blk=0, k_blk=1, v_blk=2, num_heads=num_heads, d_model=D)
    x = linear(attn.reshape(B * T, D), sa["w_out"], sa["b_out"], residual=x)

    # --- cross-attention block: norm2 fused into Q projection, fused K/V over memory ---
    ca = params["cross_attn"]
    q = ln_linear(x, params["norm2_g"], params["norm2_b"], ca["w_q"], ca["b_q"])
    kv = linear(mem, ca["w_kv"], ca["b_kv"])
    attn = _mha(q.reshape(B, T, D), kv.reshape(B, S, 2 * D),
                q_blk=0, k_blk=0, v_blk=1, num_heads=num_heads, d_model=D)
    x = linear(attn.reshape(B * T, D), ca["w_out"], ca["b_out"], residual=x)

    # --- feed-forward block: norm3 + lin1 + ReLU fused; lin2 + residual fused ---
    h = ln_linear(x, params["norm3_g"], params["norm3_b"],
                  params["w_lin1"], params["b_lin1"], activation="relu")
    x = linear(h, params["w_lin2"], params["b_lin2"], residual=x)

    return jnp.transpose(x.reshape(B, T, D), (1, 0, 2))


# --------------------------------- param init --------------------------------


def init_params(key, d_model, num_heads, dim_ff, dtype=jnp.float32):
    """Weights pre-transposed to (Din, Dout) and pre-fused (QKV / KV).

    The 1/sqrt(head_dim) attention scale is folded into the Q-projection weights/biases, so
    the attention kernel does no per-tile scaling. (Apply the same fold when porting PyTorch
    MultiheadAttention weights.)
    """
    ks = jax.random.split(key, 7)
    std = 0.02
    scale = 1.0 / math.sqrt(d_model // num_heads)

    def normal(k, shape):
        return (std * jax.random.normal(k, shape, jnp.float32)).astype(dtype)

    w_qkv = normal(ks[0], (d_model, 3 * d_model))
    w_qkv = w_qkv.at[:, :d_model].multiply(scale)           # fold attn scale into Q columns
    w_q = normal(ks[2], (d_model, d_model)) * scale          # cross-attn Q projection, scaled

    return {
        "self_attn": {
            "w_qkv": w_qkv,                                  # == in_proj_weight.T (Q cols scaled)
            "b_qkv": jnp.zeros((3 * d_model,), dtype),       # Q part would be scaled too
            "w_out": normal(ks[1], (d_model, d_model)),      # == out_proj.weight.T
            "b_out": jnp.zeros((d_model,), dtype),
        },
        "cross_attn": {
            "w_q": w_q,
            "b_q": jnp.zeros((d_model,), dtype),
            "w_kv": normal(ks[3], (d_model, 2 * d_model)),   # == [Wk; Wv].T
            "b_kv": jnp.zeros((2 * d_model,), dtype),
            "w_out": normal(ks[4], (d_model, d_model)),
            "b_out": jnp.zeros((d_model,), dtype),
        },
        "w_lin1": normal(ks[5], (d_model, dim_ff)),
        "b_lin1": jnp.zeros((dim_ff,), dtype),
        "w_lin2": normal(ks[6], (dim_ff, d_model)),
        "b_lin2": jnp.zeros((d_model,), dtype),
        "norm1_g": jnp.ones((d_model,), dtype), "norm1_b": jnp.zeros((d_model,), dtype),
        "norm2_g": jnp.ones((d_model,), dtype), "norm2_b": jnp.zeros((d_model,), dtype),
        "norm3_g": jnp.ones((d_model,), dtype), "norm3_b": jnp.zeros((d_model,), dtype),
    }


# ------------------------------------ main ------------------------------------

if __name__ == "__main__":
    d_model, num_heads, dim_ff = 128, 4, 256
    T, S, B = 8, 16, 2

    key = jax.random.PRNGKey(0)
    k_tgt, k_mem, k_par = jax.random.split(key, 3)

    tgt = jax.random.normal(k_tgt, (T, B, d_model), jnp.float32)      # (seq, batch, d_model)
    memory = jax.random.normal(k_mem, (S, B, d_model), jnp.float32)   # (seq, batch, d_model)
    params = init_params(k_par, d_model, num_heads, dim_ff)

    layer = jax.jit(functools.partial(transformer_decoder_layer, num_heads=num_heads))
    out = jax.block_until_ready(layer(tgt, memory, params))
    assert out.shape == (T, B, d_model)
    assert bool(jnp.all(jnp.isfinite(out)))
    print("KERNEL_OK")
</pallas_src>

<mosaic_0001>
module attributes {stable_mosaic.version = 11 : i64} {
  func.func @_attn_kernel(%arg0: i32, %arg1: i32, %arg2: i32, %arg3: memref<1x8x128xf32, #tpu.memory_space<vmem>>, %arg4: memref<1x8x128xf32, #tpu.memory_space<vmem>>, %arg5: memref<1x8x128xf32, #tpu.memory_space<vmem>>, %arg6: memref<1x8x128xf32, #tpu.memory_space<vmem>>, %arg7: memref<4x8x1xf32, #tpu.memory_space<vmem>>, %arg8: memref<4x8x1xf32, #tpu.memory_space<vmem>>, %arg9: memref<4x8x32xf32, #tpu.memory_space<vmem>>) attributes {dimension_semantics = [#tpu.dimension_semantics<parallel>, #tpu.dimension_semantics<parallel>, #tpu.dimension_semantics<arbitrary>], iteration_bounds = array<i64: 2, 1, 1>, scalar_prefetch = 0 : i64, scratch_operands = 3 : i64, tpu.core_type = #tpu.core_type<tc>, window_params = [{transform_indices = @transform_0, window_bounds = array<i64: 1, 8, 128>}, {transform_indices = @transform_1, window_bounds = array<i64: 1, 8, 128>}, {transform_indices = @transform_2, window_bounds = array<i64: 1, 8, 128>}, {transform_indices = @transform_3, window_bounds = array<i64: 1, 8, 128>}]} {
    %c0_i32 = arith.constant 0 : i32
    %0 = arith.cmpi eq, %arg2, %c0_i32 : i32
    %1 = arith.extui %0 : i1 to i32
    %c0_i32_0 = arith.constant 0 : i32
    %2 = arith.cmpi ne, %1, %c0_i32_0 : i32
    scf.if %2 {
      %cst_32 = arith.constant 0xFF800000 : f32
      %38 = vector.broadcast %cst_32 : f32 to vector<4x8x1xf32>
      %c0_33 = arith.constant 0 : index
      %c0_34 = arith.constant 0 : index
      %c0_35 = arith.constant 0 : index
      %39 = vector.load %arg7[%c0_33, %c0_34, %c0_35] : memref<4x8x1xf32, #tpu.memory_space<vmem>>, vector<4x8x1xf32>
      tpu.vector_store %arg7[%c0_33, %c0_34, %c0_35], %38 {strides = array<i32>} : memref<4x8x1xf32, #tpu.memory_space<vmem>>, vector<4x8x1xf32>,
      %cst_36 = arith.constant 0.000000e+00 : f32
      %40 = vector.broadcast %cst_36 : f32 to vector<4x8x1xf32>
      %c0_37 = arith.constant 0 : index
      %c0_38 = arith.constant 0 : index
      %c0_39 = arith.constant 0 : index
      %41 = vector.load %arg8[%c0_37, %c0_38, %c0_39] : memref<4x8x1xf32, #tpu.memory_space<vmem>>, vector<4x8x1xf32>
      tpu.vector_store %arg8[%c0_37, %c0_38, %c0_39], %40 {strides = array<i32>} : memref<4x8x1xf32, #tpu.memory_space<vmem>>, vector<4x8x1xf32>,
      %cst_40 = arith.constant 0.000000e+00 : f32
      %42 = vector.broadcast %cst_40 : f32 to vector<4x8x32xf32>
      %c0_41 = arith.constant 0 : index
      %c0_42 = arith.constant 0 : index
      %c0_43 = arith.constant 0 : index
      %43 = vector.load %arg9[%c0_41, %c0_42, %c0_43] : memref<4x8x32xf32, #tpu.memory_space<vmem>>, vector<4x8x32xf32>
      tpu.vector_store %arg9[%c0_41, %c0_42, %c0_43], %42 {strides = array<i32>} : memref<4x8x32xf32, #tpu.memory_space<vmem>>, vector<4x8x32xf32>,
    } else {
    }
    %c0 = arith.constant 0 : index
    %c0_1 = arith.constant 0 : index
    %c0_2 = arith.constant 0 : index
    %3 = vector.load %arg3[%c0, %c0_1, %c0_2] : memref<1x8x128xf32, #tpu.memory_space<vmem>>, vector<1x8x128xf32>
    %4 = vector.shape_cast %3 : vector<1x8x128xf32> to vector<8x128xf32>
    %5 = vector.shape_cast %4 : vector<8x128xf32> to vector<8x4x32xf32>
    %c0_3 = arith.constant 0 : index
    %c0_4 = arith.constant 0 : index
    %c0_5 = arith.constant 0 : index
    %6 = vector.load %arg4[%c0_3, %c0_4, %c0_5] : memref<1x8x128xf32, #tpu.memory_space<vmem>>, vector<1x8x128xf32>
    %7 = vector.shape_cast %6 : vector<1x8x128xf32> to vector<8x128xf32>
    %8 = vector.shape_cast %7 : vector<8x128xf32> to vector<8x4x32xf32>
    %c0_6 = arith.constant 0 : index
    %c0_7 = arith.constant 0 : index
    %c0_8 = arith.constant 0 : index
    %9 = vector.load %arg5[%c0_6, %c0_7, %c0_8] : memref<1x8x128xf32, #tpu.memory_space<vmem>>, vector<1x8x128xf32>
    %10 = vector.shape_cast %9 : vector<1x8x128xf32> to vector<8x128xf32>
    %11 = vector.shape_cast %10 : vector<8x128xf32> to vector<8x4x32xf32>
    "tpu.trace_start"() <{level = 10 : i32, message = "qhd,khd->hqk"}> : () -> ()
    %cst = arith.constant dense<0.000000e+00> : vector<4x8x8xf32>
    %12 = tpu.matmul %5, %8, %cst {dimension_numbers = #tpu.dot_dimension_numbers<[2], [2], [0], [0], [0, 1, 0, 0, 1, 0], [1], [1]>} : vector<8x4x32xf32>, vector<8x4x32xf32>, vector<4x8x8xf32> -> vector<4x8x8xf32>
    "tpu.trace_stop"() : () -> ()
    %c0_9 = arith.constant 0 : index
    %c0_10 = arith.constant 0 : index
    %c0_11 = arith.constant 0 : index
    %13 = vector.load %arg7[%c0_9, %c0_10, %c0_11] : memref<4x8x1xf32, #tpu.memory_space<vmem>>, vector<4x8x1xf32>
    %cst_12 = arith.constant dense<0xFF800000> : vector<4x8xf32>
    %14 = vector.multi_reduction <maximumf>, %12, %cst_12 [2] : vector<4x8x8xf32> to vector<4x8xf32>
    %15 = vector.shape_cast %14 : vector<4x8xf32> to vector<4x8x1xf32>
    %16 = arith.maximumf %13, %15 : vector<4x8x1xf32>
    %17 = arith.subf %13, %16 : vector<4x8x1xf32>
    %18 = math.exp %17 : vector<4x8x1xf32>
    %19 = vector.broadcast %16 : vector<4x8x1xf32> to vector<4x8x8xf32>
    %20 = arith.subf %12, %19 : vector<4x8x8xf32>
    %21 = math.exp %20 : vector<4x8x8xf32>
    %c0_13 = arith.constant 0 : index
    %c0_14 = arith.constant 0 : index
    %c0_15 = arith.constant 0 : index
    %22 = vector.load %arg8[%c0_13, %c0_14, %c0_15] : memref<4x8x1xf32, #tpu.memory_space<vmem>>, vector<4x8x1xf32>
    %23 = arith.mulf %18, %22 : vector<4x8x1xf32>
    %cst_16 = arith.constant dense<0.000000e+00> : vector<4x8xf32>
    %24 = vector.multi_reduction <add>, %21, %cst_16 [2] : vector<4x8x8xf32> to vector<4x8xf32>
    %25 = vector.shape_cast %24 : vector<4x8xf32> to vector<4x8x1xf32>
    %26 = arith.addf %23, %25 : vector<4x8x1xf32>
    %c0_17 = arith.constant 0 : index
    %c0_18 = arith.constant 0 : index
    %c0_19 = arith.constant 0 : index
    %27 = vector.load %arg8[%c0_17, %c0_18, %c0_19] : memref<4x8x1xf32, #tpu.memory_space<vmem>>, vector<4x8x1xf32>
    tpu.vector_store %arg8[%c0_17, %c0_18, %c0_19], %26 {strides = array<i32>} : memref<4x8x1xf32, #tpu.memory_space<vmem>>, vector<4x8x1xf32>,
    %c0_20 = arith.constant 0 : index
    %c0_21 = arith.constant 0 : index
    %c0_22 = arith.constant 0 : index
    %28 = vector.load %arg9[%c0_20, %c0_21, %c0_22] : memref<4x8x32xf32, #tpu.memory_space<vmem>>, vector<4x8x32xf32>
    %29 = vector.broadcast %18 : vector<4x8x1xf32> to vector<4x8x32xf32>
    %30 = arith.mulf %29, %28 : vector<4x8x32xf32>
    "tpu.trace_start"() <{level = 10 : i32, message = "hqk,khd->hqd"}> : () -> ()
    %cst_23 = arith.constant dense<0.000000e+00> : vector<4x8x32xf32>
    %31 = tpu.matmul %21, %11, %cst_23 {dimension_numbers = #tpu.dot_dimension_numbers<[2], [0], [1], [2], [0, 0, 0, 1, 1, 2], [0], [1]>} : vector<4x8x8xf32>, vector<8x4x32xf32>, vector<4x8x32xf32> -> vector<4x8x32xf32>
    "tpu.trace_stop"() : () -> ()
    %32 = arith.addf %30, %31 : vector<4x8x32xf32>
    %c0_24 = arith.constant 0 : index
    %c0_25 = arith.constant 0 : index
    %c0_26 = arith.constant 0 : index
    %33 = vector.load %arg9[%c0_24, %c0_25, %c0_26] : memref<4x8x32xf32, #tpu.memory_space<vmem>>, vector<4x8x32xf32>
    tpu.vector_store %arg9[%c0_24, %c0_25, %c0_26], %32 {strides = array<i32>} : memref<4x8x32xf32, #tpu.memory_space<vmem>>, vector<4x8x32xf32>,
    %c0_27 = arith.constant 0 : index
    %c0_28 = arith.constant 0 : index
    %c0_29 = arith.constant 0 : index
    %34 = vector.load %arg7[%c0_27, %c0_28, %c0_29] : memref<4x8x1xf32, #tpu.memory_space<vmem>>, vector<4x8x1xf32>
    tpu.vector_store %arg7[%c0_27, %c0_28, %c0_29], %16 {strides = array<i32>} : memref<4x8x1xf32, #tpu.memory_space<vmem>>, vector<4x8x1xf32>,
    %c0_i32_30 = arith.constant 0 : i32
    %35 = arith.cmpi eq, %arg2, %c0_i32_30 : i32
    %36 = arith.extui %35 : i1 to i32
    %c0_i32_31 = arith.constant 0 : i32
    %37 = arith.cmpi ne, %36, %c0_i32_31 : i32
    scf.if %37 {
      %c0_32 = arith.constant 0 : index
      %c0_33 = arith.constant 0 : index
      %c0_34 = arith.constant 0 : index
      %38 = vector.load %arg8[%c0_32, %c0_33, %c0_34] : memref<4x8x1xf32, #tpu.memory_space<vmem>>, vector<4x8x1xf32>
      %39 = tpu.reciprocal %38 {approx = true} : vector<4x8x1xf32> -> vector<4x8x1xf32>
      %c0_35 = arith.constant 0 : index
      %c0_36 = arith.constant 0 : index
      %c0_37 = arith.constant 0 : index
      %40 = vector.load %arg9[%c0_35, %c0_36, %c0_37] : memref<4x8x32xf32, #tpu.memory_space<vmem>>, vector<1x8x32xf32>
      %41 = vector.shape_cast %40 : vector<1x8x32xf32> to vector<8x32xf32>
      %42 = vector.extract_strided_slice %39 {offsets = [0, 0, 0], sizes = [1, 8, 1], strides = [1, 1, 1]} : vector<4x8x1xf32> to vector<1x8x1xf32>
      %43 = vector.shape_cast %42 : vector<1x8x1xf32> to vector<8x1xf32>
      %44 = vector.broadcast %43 : vector<8x1xf32> to vector<8x32xf32>
      %45 = arith.mulf %41, %44 : vector<8x32xf32>
      %c1 = arith.constant 1 : index
      %c0_38 = arith.constant 0 : index
      %c0_39 = arith.constant 0 : index
      %46 = vector.load %arg9[%c1, %c0_38, %c0_39] : memref<4x8x32xf32, #tpu.memory_space<vmem>>, vector<1x8x32xf32>
      %47 = vector.shape_cast %46 : vector<1x8x32xf32> to vector<8x32xf32>
      %48 = vector.extract_strided_slice %39 {offsets = [1, 0, 0], sizes = [1, 8, 1], strides = [1, 1, 1]} : vector<4x8x1xf32> to vector<1x8x1xf32>
      %49 = vector.shape_cast %48 : vector<1x8x1xf32> to vector<8x1xf32>
      %50 = vector.broadcast %49 : vector<8x1xf32> to vector<8x32xf32>
      %51 = arith.mulf %47, %50 : vector<8x32xf32>
      %c2 = arith.constant 2 : index
      %c0_40 = arith.constant 0 : index
      %c0_41 = arith.constant 0 : index
      %52 = vector.load %arg9[%c2, %c0_40, %c0_41] : memref<4x8x32xf32, #tpu.memory_space<vmem>>, vector<1x8x32xf32>
      %53 = vector.shape_cast %52 : vector<1x8x32xf32> to vector<8x32xf32>
      %54 = vector.extract_strided_slice %39 {offsets = [2, 0, 0], sizes = [1, 8, 1], strides = [1, 1, 1]} : vector<4x8x1xf32> to vector<1x8x1xf32>
      %55 = vector.shape_cast %54 : vector<1x8x1xf32> to vector<8x1xf32>
      %56 = vector.broadcast %55 : vector<8x1xf32> to vector<8x32xf32>
      %57 = arith.mulf %53, %56 : vector<8x32xf32>
      %c3 = arith.constant 3 : index
      %c0_42 = arith.constant 0 : index
      %c0_43 = arith.constant 0 : index
      %58 = vector.load %arg9[%c3, %c0_42, %c0_43] : memref<4x8x32xf32, #tpu.memory_space<vmem>>, vector<1x8x32xf32>
      %59 = vector.shape_cast %58 : vector<1x8x32xf32> to vector<8x32xf32>
      %60 = vector.extract_strided_slice %39 {offsets = [3, 0, 0], sizes = [1, 8, 1], strides = [1, 1, 1]} : vector<4x8x1xf32> to vector<1x8x1xf32>
      %61 = vector.shape_cast %60 : vector<1x8x1xf32> to vector<8x1xf32>
      %62 = vector.broadcast %61 : vector<8x1xf32> to vector<8x32xf32>
      %63 = arith.mulf %59, %62 : vector<8x32xf32>
      %64 = tpu.concatenate %45, %51, %57, %63 in 1 : vector<8x32xf32>, vector<8x32xf32>, vector<8x32xf32>, vector<8x32xf32> -> vector<8x128xf32>
      %c0_44 = arith.constant 0 : index
      %c0_45 = arith.constant 0 : index
      %c0_46 = arith.constant 0 : index
      %65 = vector.load %arg6[%c0_44, %c0_45, %c0_46] : memref<1x8x128xf32, #tpu.memory_space<vmem>>, vector<1x8x128xf32>
      %66 = vector.shape_cast %65 : vector<1x8x128xf32> to vector<8x128xf32>
      %67 = vector.shape_cast %64 : vector<8x128xf32> to vector<1x8x128xf32>
      tpu.vector_store %arg6[%c0_44, %c0_45, %c0_46], %67 {strides = array<i32>} : memref<1x8x128xf32, #tpu.memory_space<vmem>>, vector<1x8x128xf32>,
    } else {
    }
    return
  }
  func.func @transform_0(%arg0: i32, %arg1: i32, %arg2: i32) -> (i32, i32, i32) {
    %c0_i32 = arith.constant 0 : i32
    %c0_i32_0 = arith.constant 0 : i32
    return %arg0, %arg1, %c0_i32 : i32, i32, i32
  }
  func.func @transform_1(%arg0: i32, %arg1: i32, %arg2: i32) -> (i32, i32, i32) {
    %c1_i32 = arith.constant 1 : i32
    %c0_i32 = arith.constant 0 : i32
    return %arg0, %arg2, %c1_i32 : i32, i32, i32
  }
  func.func @transform_2(%arg0: i32, %arg1: i32, %arg2: i32) -> (i32, i32, i32) {
    %c2_i32 = arith.constant 2 : i32
    %c0_i32 = arith.constant 0 : i32
    return %arg0, %arg2, %c2_i32 : i32, i32, i32
  }
  func.func @transform_3(%arg0: i32, %arg1: i32, %arg2: i32) -> (i32, i32, i32) {
    %c0_i32 = arith.constant 0 : i32
    %c0_i32_0 = arith.constant 0 : i32
    return %arg0, %arg1, %c0_i32 : i32, i32, i32
  }
}

module attributes {stable_mosaic.version = 11 : i64} {
  func.func @_ln_linear_kernel(%arg0: i32, %arg1: i32, %arg2: i32, %arg3: memref<16x128xf32, #tpu.memory_space<vmem>>, %arg4: memref<1x128xf32, #tpu.memory_space<vmem>>, %arg5: memref<1x128xf32, #tpu.memory_space<vmem>>, %arg6: memref<128x384xf32, #tpu.memory_space<vmem>>, %arg7: memref<1x384xf32, #tpu.memory_space<vmem>>, %arg8: memref<16x384xf32, #tpu.memory_space<vmem>>, %arg9: memref<1x16x128xf32, #tpu.memory_space<vmem>>, %arg10: memref<16x384xf32, #tpu.memory_space<vmem>>) attributes {dimension_semantics = [#tpu.dimension_semantics<parallel>, #tpu.dimension_semantics<arbitrary>, #tpu.dimension_semantics<arbitrary>], iteration_bounds = array<i64: 1, 1, 1>, scalar_prefetch = 0 : i64, scratch_operands = 2 : i64, tpu.core_type = #tpu.core_type<tc>, window_params = [{transform_indices = @transform_0, window_bounds = array<i64: 16, 128>}, {pipeline_mode = #tpu.pipeline_mode<synchronous>, transform_indices = @transform_1, window_bounds = array<i64: 1, 128>}, {pipeline_mode = #tpu.pipeline_mode<synchronous>, transform_indices = @transform_2, window_bounds = array<i64: 1, 128>}, {transform_indices = @transform_3, window_bounds = array<i64: 128, 384>}, {transform_indices = @transform_4, window_bounds = array<i64: 1, 384>}, {transform_indices = @transform_5, window_bounds = array<i64: 16, 384>}]} {
    %c0_i32 = arith.constant 0 : i32
    %0 = arith.cmpi eq, %arg1, %c0_i32 : i32
    %c0_i32_0 = arith.constant 0 : i32
    %1 = arith.cmpi eq, %arg2, %c0_i32_0 : i32
    %2 = arith.andi %0, %1 : i1
    %3 = arith.extui %2 : i1 to i32
    %c0_i32_1 = arith.constant 0 : i32
    %4 = arith.cmpi ne, %3, %c0_i32_1 : i32
    scf.if %4 {
      %c0_13 = arith.constant 0 : index
      %c0_14 = arith.constant 0 : index
      %19 = vector.load %arg3[%c0_13, %c0_14] : memref<16x128xf32, #tpu.memory_space<vmem>>, vector<16x128xf32>
      %cst_15 = arith.constant dense<0.000000e+00> : vector<16xf32>
      %20 = vector.multi_reduction <add>, %19, %cst_15 [1] : vector<16x128xf32> to vector<16xf32>
      %21 = vector.shape_cast %20 : vector<16xf32> to vector<16x1xf32>
      %cst_16 = arith.constant 1.280000e+02 : f32
      %22 = vector.broadcast %cst_16 : f32 to vector<16x1xf32>
      %23 = arith.divf %21, %22 : vector<16x1xf32>
      %24 = vector.broadcast %23 : vector<16x1xf32> to vector<16x128xf32>
      %25 = arith.subf %19, %24 : vector<16x128xf32>
      %26 = arith.mulf %25, %25 : vector<16x128xf32>
      %cst_17 = arith.constant dense<0.000000e+00> : vector<16xf32>
      %27 = vector.multi_reduction <add>, %26, %cst_17 [1] : vector<16x128xf32> to vector<16xf32>
      %28 = vector.shape_cast %27 : vector<16xf32> to vector<16x1xf32>
      %cst_18 = arith.constant 1.280000e+02 : f32
      %29 = vector.broadcast %cst_18 : f32 to vector<16x1xf32>
      %30 = arith.divf %28, %29 : vector<16x1xf32>
      %31 = vector.broadcast %23 : vector<16x1xf32> to vector<16x128xf32>
      %32 = arith.subf %19, %31 : vector<16x128xf32>
      %cst_19 = arith.constant 9.99999974E-6 : f32
      %33 = vector.broadcast %cst_19 : f32 to vector<16x1xf32>
      %34 = arith.addf %30, %33 : vector<16x1xf32>
      %35 = math.rsqrt %34 : vector<16x1xf32>
      %36 = vector.broadcast %35 : vector<16x1xf32> to vector<16x128xf32>
      %37 = arith.mulf %32, %36 : vector<16x128xf32>
      %c0_20 = arith.constant 0 : index
      %c0_21 = arith.constant 0 : index
      %38 = vector.load %arg4[%c0_20, %c0_21] : memref<1x128xf32, #tpu.memory_space<vmem>>, vector<1x128xf32>
      %39 = vector.broadcast %38 : vector<1x128xf32> to vector<16x128xf32>
      %40 = arith.mulf %37, %39 : vector<16x128xf32>
      %c0_22 = arith.constant 0 : index
      %c0_23 = arith.constant 0 : index
      %41 = vector.load %arg5[%c0_22, %c0_23] : memref<1x128xf32, #tpu.memory_space<vmem>>, vector<1x128xf32>
      %42 = vector.broadcast %41 : vector<1x128xf32> to vector<16x128xf32>
      %43 = arith.addf %40, %42 : vector<16x128xf32>
      %c0_24 = arith.constant 0 : index
      %c0_25 = arith.constant 0 : index
      %c0_26 = arith.constant 0 : index
      %44 = vector.load %arg9[%c0_24, %c0_25, %c0_26] : memref<1x16x128xf32, #tpu.memory_space<vmem>>, vector<1x16x128xf32>
      %45 = vector.shape_cast %44 : vector<1x16x128xf32> to vector<16x128xf32>
      %46 = vector.shape_cast %43 : vector<16x128xf32> to vector<1x16x128xf32>
      tpu.vector_store %arg9[%c0_24, %c0_25, %c0_26], %46 {strides = array<i32>} : memref<1x16x128xf32, #tpu.memory_space<vmem>>, vector<1x16x128xf32>,
    } else {
    }
    %c0_i32_2 = arith.constant 0 : i32
    %5 = arith.cmpi eq, %arg2, %c0_i32_2 : i32
    %6 = arith.extui %5 : i1 to i32
    %c0_i32_3 = arith.constant 0 : i32
    %7 = arith.cmpi ne, %6, %c0_i32_3 : i32
    scf.if %7 {
      %cst_13 = arith.constant 0.000000e+00 : f32
      %19 = vector.broadcast %cst_13 : f32 to vector<16x384xf32>
      %c0_14 = arith.constant 0 : index
      %c0_15 = arith.constant 0 : index
      %20 = vector.load %arg10[%c0_14, %c0_15] : memref<16x384xf32, #tpu.memory_space<vmem>>, vector<16x384xf32>
      tpu.vector_store %arg10[%c0_14, %c0_15], %19 {strides = array<i32>} : memref<16x384xf32, #tpu.memory_space<vmem>>, vector<16x384xf32>,
    } else {
    }
    %c0 = arith.constant 0 : index
    %c0_4 = arith.constant 0 : index
    %8 = vector.load %arg10[%c0, %c0_4] : memref<16x384xf32, #tpu.memory_space<vmem>>, vector<16x384xf32>
    %9 = arith.index_cast %arg2 : i32 to index
    %c0_5 = arith.constant 0 : index
    %c0_6 = arith.constant 0 : index
    %10 = vector.load %arg9[%9, %c0_5, %c0_6] : memref<1x16x128xf32, #tpu.memory_space<vmem>>, vector<1x16x128xf32>
    %11 = vector.shape_cast %10 : vector<1x16x128xf32> to vector<16x128xf32>
    %c0_7 = arith.constant 0 : index
    %c0_8 = arith.constant 0 : index
    %12 = vector.load %arg6[%c0_7, %c0_8] : memref<128x384xf32, #tpu.memory_space<vmem>>, vector<128x384xf32>
    %cst = arith.constant dense<0.000000e+00> : vector<16x384xf32>
    %13 = tpu.matmul %11, %12, %cst {dimension_numbers = #tpu.dot_dimension_numbers<[1], [0], [0], [1], [0, 0, 1, 1], [], []>} : vector<16x128xf32>, vector<128x384xf32>, vector<16x384xf32> -> vector<16x384xf32>
    %14 = arith.addf %8, %13 : vector<16x384xf32>
    %c0_9 = arith.constant 0 : index
    %c0_10 = arith.constant 0 : index
    %15 = vector.load %arg10[%c0_9, %c0_10] : memref<16x384xf32, #tpu.memory_space<vmem>>, vector<16x384xf32>
    tpu.vector_store %arg10[%c0_9, %c0_10], %14 {strides = array<i32>} : memref<16x384xf32, #tpu.memory_space<vmem>>, vector<16x384xf32>,
    %c0_i32_11 = arith.constant 0 : i32
    %16 = arith.cmpi eq, %arg2, %c0_i32_11 : i32
    %17 = arith.extui %16 : i1 to i32
    %c0_i32_12 = arith.constant 0 : i32
    %18 = arith.cmpi ne, %17, %c0_i32_12 : i32
    scf.if %18 {
      %c0_13 = arith.constant 0 : index
      %c0_14 = arith.constant 0 : index
      %19 = vector.load %arg10[%c0_13, %c0_14] : memref<16x384xf32, #tpu.memory_space<vmem>>, vector<16x384xf32>
      %c0_15 = arith.constant 0 : index
      %c0_16 = arith.constant 0 : index
      %20 = vector.load %arg7[%c0_15, %c0_16] : memref<1x384xf32, #tpu.memory_space<vmem>>, vector<1x384xf32>
      %21 = vector.broadcast %20 : vector<1x384xf32> to vector<16x384xf32>
      %22 = arith.addf %19, %21 : vector<16x384xf32>
      %c0_17 = arith.constant 0 : index
      %c0_18 = arith.constant 0 : index
      %23 = vector.load %arg8[%c0_17, %c0_18] : memref<16x384xf32, #tpu.memory_space<vmem>>, vector<16x384xf32>
      tpu.vector_store %arg8[%c0_17, %c0_18], %22 {strides = array<i32>} : memref<16x384xf32, #tpu.memory_space<vmem>>, vector<16x384xf32>,
    } else {
    }
    return
  }
  func.func @transform_0(%arg0: i32, %arg1: i32, %arg2: i32) -> (i32, i32) {
    %c0_i32 = arith.constant 0 : i32
    %c0_i32_0 = arith.constant 0 : i32
    return %arg0, %c0_i32 : i32, i32
  }
  func.func @transform_1(%arg0: i32, %arg1: i32, %arg2: i32) -> (i32, i32) {
    %c0_i32 = arith.constant 0 : i32
    %c0_i32_0 = arith.constant 0 : i32
    %c0_i32_1 = arith.constant 0 : i32
    return %c0_i32, %c0_i32_0 : i32, i32
  }
  func.func @transform_2(%arg0: i32, %arg1: i32, %arg2: i32) -> (i32, i32) {
    %c0_i32 = arith.constant 0 : i32
    %c0_i32_0 = arith.constant 0 : i32
    %c0_i32_1 = arith.constant 0 : i32
    return %c0_i32, %c0_i32_0 : i32, i32
  }
  func.func @transform_3(%arg0: i32, %arg1: i32, %arg2: i32) -> (i32, i32) {
    %c0_i32 = arith.constant 0 : i32
    return %arg2, %arg1 : i32, i32
  }
  func.func @transform_4(%arg0: i32, %arg1: i32, %arg2: i32) -> (i32, i32) {
    %c0_i32 = arith.constant 0 : i32
    %c0_i32_0 = arith.constant 0 : i32
    return %c0_i32, %arg1 : i32, i32
  }
  func.func @transform_5(%arg0: i32, %arg1: i32, %arg2: i32) -> (i32, i32) {
    %c0_i32 = arith.constant 0 : i32
    return %arg0, %arg1 : i32, i32
  }
}

module attributes {stable_mosaic.version = 11 : i64} {
  func.func @kernel(%arg0: i32, %arg1: i32, %arg2: i32, %arg3: memref<16x128xf32, #tpu.memory_space<vmem>>, %arg4: memref<128x128xf32, #tpu.memory_space<vmem>>, %arg5: memref<1x128xf32, #tpu.memory_space<vmem>>, %arg6: memref<16x128xf32, #tpu.memory_space<vmem>>, %arg7: memref<16x128xf32, #tpu.memory_space<vmem>>, %arg8: memref<16x128xf32, #tpu.memory_space<vmem>>) attributes {dimension_semantics = [#tpu.dimension_semantics<parallel>, #tpu.dimension_semantics<parallel>, #tpu.dimension_semantics<arbitrary>], iteration_bounds = array<i64: 1, 1, 1>, scalar_prefetch = 0 : i64, scratch_operands = 1 : i64, tpu.core_type = #tpu.core_type<tc>, window_params = [{transform_indices = @transform_0, window_bounds = array<i64: 16, 128>}, {transform_indices = @transform_1, window_bounds = array<i64: 128, 128>}, {transform_indices = @transform_2, window_bounds = array<i64: 1, 128>}, {transform_indices = @transform_3, window_bounds = array<i64: 16, 128>}, {transform_indices = @transform_4, window_bounds = array<i64: 16, 128>}]} {
    %c0_i32 = arith.constant 0 : i32
    %0 = arith.cmpi eq, %arg2, %c0_i32 : i32
    %1 = arith.extui %0 : i1 to i32
    %c0_i32_0 = arith.constant 0 : i32
    %2 = arith.cmpi ne, %1, %c0_i32_0 : i32
    scf.if %2 {
      %cst_10 = arith.constant 0.000000e+00 : f32
      %12 = vector.broadcast %cst_10 : f32 to vector<16x128xf32>
      %c0_11 = arith.constant 0 : index
      %c0_12 = arith.constant 0 : index
      %13 = vector.load %arg8[%c0_11, %c0_12] : memref<16x128xf32, #tpu.memory_space<vmem>>, vector<16x128xf32>
      tpu.vector_store %arg8[%c0_11, %c0_12], %12 {strides = array<i32>} : memref<16x128xf32, #tpu.memory_space<vmem>>, vector<16x128xf32>,
    } else {
    }
    %c0 = arith.constant 0 : index
    %c0_1 = arith.constant 0 : index
    %3 = vector.load %arg8[%c0, %c0_1] : memref<16x128xf32, #tpu.memory_space<vmem>>, vector<16x128xf32>
    %c0_2 = arith.constant 0 : index
    %c0_3 = arith.constant 0 : index
    %4 = vector.load %arg3[%c0_2, %c0_3] : memref<16x128xf32, #tpu.memory_space<vmem>>, vector<16x128xf32>
    %c0_4 = arith.constant 0 : index
    %c0_5 = arith.constant 0 : index
    %5 = vector.load %arg4[%c0_4, %c0_5] : memref<128x128xf32, #tpu.memory_space<vmem>>, vector<128x128xf32>
    %cst = arith.constant dense<0.000000e+00> : vector<16x128xf32>
    %6 = tpu.matmul %4, %5, %cst {dimension_numbers = #tpu.dot_dimension_numbers<[1], [0], [0], [1], [0, 0, 1, 1], [], []>} : vector<16x128xf32>, vector<128x128xf32>, vector<16x128xf32> -> vector<16x128xf32>
    %7 = arith.addf %3, %6 : vector<16x128xf32>
    %c0_6 = arith.constant 0 : index
    %c0_7 = arith.constant 0 : index
    %8 = vector.load %arg8[%c0_6, %c0_7] : memref<16x128xf32, #tpu.memory_space<vmem>>, vector<16x128xf32>
    tpu.vector_store %arg8[%c0_6, %c0_7], %7 {strides = array<i32>} : memref<16x128xf32, #tpu.memory_space<vmem>>, vector<16x128xf32>,
    %c0_i32_8 = arith.constant 0 : i32
    %9 = arith.cmpi eq, %arg2, %c0_i32_8 : i32
    %10 = arith.extui %9 : i1 to i32
    %c0_i32_9 = arith.constant 0 : i32
    %11 = arith.cmpi ne, %10, %c0_i32_9 : i32
    scf.if %11 {
      %c0_10 = arith.constant 0 : index
      %c0_11 = arith.constant 0 : index
      %12 = vector.load %arg8[%c0_10, %c0_11] : memref<16x128xf32, #tpu.memory_space<vmem>>, vector<16x128xf32>
      %c0_12 = arith.constant 0 : index
      %c0_13 = arith.constant 0 : index
      %13 = vector.load %arg5[%c0_12, %c0_13] : memref<1x128xf32, #tpu.memory_space<vmem>>, vector<1x128xf32>
      %14 = vector.broadcast %13 : vector<1x128xf32> to vector<16x128xf32>
      %15 = arith.addf %12, %14 : vector<16x128xf32>
      %c0_14 = arith.constant 0 : index
      %c0_15 = arith.constant 0 : index
      %16 = vector.load %arg6[%c0_14, %c0_15] : memref<16x128xf32, #tpu.memory_space<vmem>>, vector<16x128xf32>
      %17 = arith.addf %15, %16 : vector<16x128xf32>
      %c0_16 = arith.constant 0 : index
      %c0_17 = arith.constant 0 : index
      %18 = vector.load %arg7[%c0_16, %c0_17] : memref<16x128xf32, #tpu.memory_space<vmem>>, vector<16x128xf32>
      tpu.vector_store %arg7[%c0_16, %c0_17], %17 {strides = array<i32>} : memref<16x128xf32, #tpu.memory_space<vmem>>, vector<16x128xf32>,
    } else {
    }
    return
  }
  func.func @transform_0(%arg0: i32, %arg1: i32, %arg2: i32) -> (i32, i32) {
    %c0_i32 = arith.constant 0 : i32
    return %arg0, %arg2 : i32, i32
  }
  func.func @transform_1(%arg0: i32, %arg1: i32, %arg2: i32) -> (i32, i32) {
    %c0_i32 = arith.constant 0 : i32
    return %arg2, %arg1 : i32, i32
  }
  func.func @transform_2(%arg0: i32, %arg1: i32, %arg2: i32) -> (i32, i32) {
    %c0_i32 = arith.constant 0 : i32
    %c0_i32_0 = arith.constant 0 : i32
    return %c0_i32, %arg1 : i32, i32
  }
  func.func @transform_3(%arg0: i32, %arg1: i32, %arg2: i32) -> (i32, i32) {
    %c0_i32 = arith.constant 0 : i32
    return %arg0, %arg1 : i32, i32
  }
  func.func @transform_4(%arg0: i32, %arg1: i32, %arg2: i32) -> (i32, i32) {
    %c0_i32 = arith.constant 0 : i32
    return %arg0, %arg1 : i32, i32
  }
}

module attributes {stable_mosaic.version = 11 : i64} {
  func.func @_ln_linear_kernel(%arg0: i32, %arg1: i32, %arg2: i32, %arg3: memref<16x128xf32, #tpu.memory_space<vmem>>, %arg4: memref<1x128xf32, #tpu.memory_space<vmem>>, %arg5: memref<1x128xf32, #tpu.memory_space<vmem>>, %arg6: memref<128x128xf32, #tpu.memory_space<vmem>>, %arg7: memref<1x128xf32, #tpu.memory_space<vmem>>, %arg8: memref<16x128xf32, #tpu.memory_space<vmem>>, %arg9: memref<1x16x128xf32, #tpu.memory_space<vmem>>, %arg10: memref<16x128xf32, #tpu.memory_space<vmem>>) attributes {dimension_semantics = [#tpu.dimension_semantics<parallel>, #tpu.dimension_semantics<arbitrary>, #tpu.dimension_semantics<arbitrary>], iteration_bounds = array<i64: 1, 1, 1>, scalar_prefetch = 0 : i64, scratch_operands = 2 : i64, tpu.core_type = #tpu.core_type<tc>, window_params = [{transform_indices = @transform_0, window_bounds = array<i64: 16, 128>}, {pipeline_mode = #tpu.pipeline_mode<synchronous>, transform_indices = @transform_1, window_bounds = array<i64: 1, 128>}, {pipeline_mode = #tpu.pipeline_mode<synchronous>, transform_indices = @transform_2, window_bounds = array<i64: 1, 128>}, {transform_indices = @transform_3, window_bounds = array<i64: 128, 128>}, {transform_indices = @transform_4, window_bounds = array<i64: 1, 128>}, {transform_indices = @transform_5, window_bounds = array<i64: 16, 128>}]} {
    %c0_i32 = arith.constant 0 : i32
    %0 = arith.cmpi eq, %arg1, %c0_i32 : i32
    %c0_i32_0 = arith.constant 0 : i32
    %1 = arith.cmpi eq, %arg2, %c0_i32_0 : i32
    %2 = arith.andi %0, %1 : i1
    %3 = arith.extui %2 : i1 to i32
    %c0_i32_1 = arith.constant 0 : i32
    %4 = arith.cmpi ne, %3, %c0_i32_1 : i32
    scf.if %4 {
      %c0_13 = arith.constant 0 : index
      %c0_14 = arith.constant 0 : index
      %19 = vector.load %arg3[%c0_13, %c0_14] : memref<16x128xf32, #tpu.memory_space<vmem>>, vector<16x128xf32>
      %cst_15 = arith.constant dense<0.000000e+00> : vector<16xf32>
      %20 = vector.multi_reduction <add>, %19, %cst_15 [1] : vector<16x128xf32> to vector<16xf32>
      %21 = vector.shape_cast %20 : vector<16xf32> to vector<16x1xf32>
      %cst_16 = arith.constant 1.280000e+02 : f32
      %22 = vector.broadcast %cst_16 : f32 to vector<16x1xf32>
      %23 = arith.divf %21, %22 : vector<16x1xf32>
      %24 = vector.broadcast %23 : vector<16x1xf32> to vector<16x128xf32>
      %25 = arith.subf %19, %24 : vector<16x128xf32>
      %26 = arith.mulf %25, %25 : vector<16x128xf32>
      %cst_17 = arith.constant dense<0.000000e+00> : vector<16xf32>
      %27 = vector.multi_reduction <add>, %26, %cst_17 [1] : vector<16x128xf32> to vector<16xf32>
      %28 = vector.shape_cast %27 : vector<16xf32> to vector<16x1xf32>
      %cst_18 = arith.constant 1.280000e+02 : f32
      %29 = vector.broadcast %cst_18 : f32 to vector<16x1xf32>
      %30 = arith.divf %28, %29 : vector<16x1xf32>
      %31 = vector.broadcast %23 : vector<16x1xf32> to vector<16x128xf32>
      %32 = arith.subf %19, %31 : vector<16x128xf32>
      %cst_19 = arith.constant 9.99999974E-6 : f32
      %33 = vector.broadcast %cst_19 : f32 to vector<16x1xf32>
      %34 = arith.addf %30, %33 : vector<16x1xf32>
      %35 = math.rsqrt %34 : vector<16x1xf32>
      %36 = vector.broadcast %35 : vector<16x1xf32> to vector<16x128xf32>
      %37 = arith.mulf %32, %36 : vector<16x128xf32>
      %c0_20 = arith.constant 0 : index
      %c0_21 = arith.constant 0 : index
      %38 = vector.load %arg4[%c0_20, %c0_21] : memref<1x128xf32, #tpu.memory_space<vmem>>, vector<1x128xf32>
      %39 = vector.broadcast %38 : vector<1x128xf32> to vector<16x128xf32>
      %40 = arith.mulf %37, %39 : vector<16x128xf32>
      %c0_22 = arith.constant 0 : index
      %c0_23 = arith.constant 0 : index
      %41 = vector.load %arg5[%c0_22, %c0_23] : memref<1x128xf32, #tpu.memory_space<vmem>>, vector<1x128xf32>
      %42 = vector.broadcast %41 : vector<1x128xf32> to vector<16x128xf32>
      %43 = arith.addf %40, %42 : vector<16x128xf32>
      %c0_24 = arith.constant 0 : index
      %c0_25 = arith.constant 0 : index
      %c0_26 = arith.constant 0 : index
      %44 = vector.load %arg9[%c0_24, %c0_25, %c0_26] : memref<1x16x128xf32, #tpu.memory_space<vmem>>, vector<1x16x128xf32>
      %45 = vector.shape_cast %44 : vector<1x16x128xf32> to vector<16x128xf32>
      %46 = vector.shape_cast %43 : vector<16x128xf32> to vector<1x16x128xf32>
      tpu.vector_store %arg9[%c0_24, %c0_25, %c0_26], %46 {strides = array<i32>} : memref<1x16x128xf32, #tpu.memory_space<vmem>>, vector<1x16x128xf32>,
    } else {
    }
    %c0_i32_2 = arith.constant 0 : i32
    %5 = arith.cmpi eq, %arg2, %c0_i32_2 : i32
    %6 = arith.extui %5 : i1 to i32
    %c0_i32_3 = arith.constant 0 : i32
    %7 = arith.cmpi ne, %6, %c0_i32_3 : i32
    scf.if %7 {
      %cst_13 = arith.constant 0.000000e+00 : f32
      %19 = vector.broadcast %cst_13 : f32 to vector<16x128xf32>
      %c0_14 = arith.constant 0 : index
      %c0_15 = arith.constant 0 : index
      %20 = vector.load %arg10[%c0_14, %c0_15] : memref<16x128xf32, #tpu.memory_space<vmem>>, vector<16x128xf32>
      tpu.vector_store %arg10[%c0_14, %c0_15], %19 {strides = array<i32>} : memref<16x128xf32, #tpu.memory_space<vmem>>, vector<16x128xf32>,
    } else {
    }
    %c0 = arith.constant 0 : index
    %c0_4 = arith.constant 0 : index
    %8 = vector.load %arg10[%c0, %c0_4] : memref<16x128xf32, #tpu.memory_space<vmem>>, vector<16x128xf32>
    %9 = arith.index_cast %arg2 : i32 to index
    %c0_5 = arith.constant 0 : index
    %c0_6 = arith.constant 0 : index
    %10 = vector.load %arg9[%9, %c0_5, %c0_6] : memref<1x16x128xf32, #tpu.memory_space<vmem>>, vector<1x16x128xf32>
    %11 = vector.shape_cast %10 : vector<1x16x128xf32> to vector<16x128xf32>
    %c0_7 = arith.constant 0 : index
    %c0_8 = arith.constant 0 : index
    %12 = vector.load %arg6[%c0_7, %c0_8] : memref<128x128xf32, #tpu.memory_space<vmem>>, vector<128x128xf32>
    %cst = arith.constant dense<0.000000e+00> : vector<16x128xf32>
    %13 = tpu.matmul %11, %12, %cst {dimension_numbers = #tpu.dot_dimension_numbers<[1], [0], [0], [1], [0, 0, 1, 1], [], []>} : vector<16x128xf32>, vector<128x128xf32>, vector<16x128xf32> -> vector<16x128xf32>
    %14 = arith.addf %8, %13 : vector<16x128xf32>
    %c0_9 = arith.constant 0 : index
    %c0_10 = arith.constant 0 : index
    %15 = vector.load %arg10[%c0_9, %c0_10] : memref<16x128xf32, #tpu.memory_space<vmem>>, vector<16x128xf32>
    tpu.vector_store %arg10[%c0_9, %c0_10], %14 {strides = array<i32>} : memref<16x128xf32, #tpu.memory_space<vmem>>, vector<16x128xf32>,
    %c0_i32_11 = arith.constant 0 : i32
    %16 = arith.cmpi eq, %arg2, %c0_i32_11 : i32
    %17 = arith.extui %16 : i1 to i32
    %c0_i32_12 = arith.constant 0 : i32
    %18 = arith.cmpi ne, %17, %c0_i32_12 : i32
    scf.if %18 {
      %c0_13 = arith.constant 0 : index
      %c0_14 = arith.constant 0 : index
      %19 = vector.load %arg10[%c0_13, %c0_14] : memref<16x128xf32, #tpu.memory_space<vmem>>, vector<16x128xf32>
      %c0_15 = arith.constant 0 : index
      %c0_16 = arith.constant 0 : index
      %20 = vector.load %arg7[%c0_15, %c0_16] : memref<1x128xf32, #tpu.memory_space<vmem>>, vector<1x128xf32>
      %21 = vector.broadcast %20 : vector<1x128xf32> to vector<16x128xf32>
      %22 = arith.addf %19, %21 : vector<16x128xf32>
      %c0_17 = arith.constant 0 : index
      %c0_18 = arith.constant 0 : index
      %23 = vector.load %arg8[%c0_17, %c0_18] : memref<16x128xf32, #tpu.memory_space<vmem>>, vector<16x128xf32>
      tpu.vector_store %arg8[%c0_17, %c0_18], %22 {strides = array<i32>} : memref<16x128xf32, #tpu.memory_space<vmem>>, vector<16x128xf32>,
    } else {
    }
    return
  }
  func.func @transform_0(%arg0: i32, %arg1: i32, %arg2: i32) -> (i32, i32) {
    %c0_i32 = arith.constant 0 : i32
    %c0_i32_0 = arith.constant 0 : i32
    return %arg0, %c0_i32 : i32, i32
  }
  func.func @transform_1(%arg0: i32, %arg1: i32, %arg2: i32) -> (i32, i32) {
    %c0_i32 = arith.constant 0 : i32
    %c0_i32_0 = arith.constant 0 : i32
    %c0_i32_1 = arith.constant 0 : i32
    return %c0_i32, %c0_i32_0 : i32, i32
  }
  func.func @transform_2(%arg0: i32, %arg1: i32, %arg2: i32) -> (i32, i32) {
    %c0_i32 = arith.constant 0 : i32
    %c0_i32_0 = arith.constant 0 : i32
    %c0_i32_1 = arith.constant 0 : i32
    return %c0_i32, %c0_i32_0 : i32, i32
  }
  func.func @transform_3(%arg0: i32, %arg1: i32, %arg2: i32) -> (i32, i32) {
    %c0_i32 = arith.constant 0 : i32
    return %arg2, %arg1 : i32, i32
  }
  func.func @transform_4(%arg0: i32, %arg1: i32, %arg2: i32) -> (i32, i32) {
    %c0_i32 = arith.constant 0 : i32
    %c0_i32_0 = arith.constant 0 : i32
    return %c0_i32, %arg1 : i32, i32
  }
  func.func @transform_5(%arg0: i32, %arg1: i32, %arg2: i32) -> (i32, i32) {
    %c0_i32 = arith.constant 0 : i32
    return %arg0, %arg1 : i32, i32
  }
}

module attributes {stable_mosaic.version = 11 : i64} {
  func.func @kernel(%arg0: i32, %arg1: i32, %arg2: i32, %arg3: memref<32x128xf32, #tpu.memory_space<vmem>>, %arg4: memref<128x256xf32, #tpu.memory_space<vmem>>, %arg5: memref<1x256xf32, #tpu.memory_space<vmem>>, %arg6: memref<32x256xf32, #tpu.memory_space<vmem>>, %arg7: memref<32x256xf32, #tpu.memory_space<vmem>>) attributes {dimension_semantics = [#tpu.dimension_semantics<parallel>, #tpu.dimension_semantics<parallel>, #tpu.dimension_semantics<arbitrary>], iteration_bounds = array<i64: 1, 1, 1>, scalar_prefetch = 0 : i64, scratch_operands = 1 : i64, tpu.core_type = #tpu.core_type<tc>, window_params = [{transform_indices = @transform_0, window_bounds = array<i64: 32, 128>}, {transform_indices = @transform_1, window_bounds = array<i64: 128, 256>}, {transform_indices = @transform_2, window_bounds = array<i64: 1, 256>}, {transform_indices = @transform_3, window_bounds = array<i64: 32, 256>}]} {
    %c0_i32 = arith.constant 0 : i32
    %0 = arith.cmpi eq, %arg2, %c0_i32 : i32
    %1 = arith.extui %0 : i1 to i32
    %c0_i32_0 = arith.constant 0 : i32
    %2 = arith.cmpi ne, %1, %c0_i32_0 : i32
    scf.if %2 {
      %cst_10 = arith.constant 0.000000e+00 : f32
      %12 = vector.broadcast %cst_10 : f32 to vector<32x256xf32>
      %c0_11 = arith.constant 0 : index
      %c0_12 = arith.constant 0 : index
      %13 = vector.load %arg7[%c0_11, %c0_12] : memref<32x256xf32, #tpu.memory_space<vmem>>, vector<32x256xf32>
      tpu.vector_store %arg7[%c0_11, %c0_12], %12 {strides = array<i32>} : memref<32x256xf32, #tpu.memory_space<vmem>>, vector<32x256xf32>,
    } else {
    }
    %c0 = arith.constant 0 : index
    %c0_1 = arith.constant 0 : index
    %3 = vector.load %arg7[%c0, %c0_1] : memref<32x256xf32, #tpu.memory_space<vmem>>, vector<32x256xf32>
    %c0_2 = arith.constant 0 : index
    %c0_3 = arith.constant 0 : index
    %4 = vector.load %arg3[%c0_2, %c0_3] : memref<32x128xf32, #tpu.memory_space<vmem>>, vector<32x128xf32>
    %c0_4 = arith.constant 0 : index
    %c0_5 = arith.constant 0 : index
    %5 = vector.load %arg4[%c0_4, %c0_5] : memref<128x256xf32, #tpu.memory_space<vmem>>, vector<128x256xf32>
    %cst = arith.constant dense<0.000000e+00> : vector<32x256xf32>
    %6 = tpu.matmul %4, %5, %cst {dimension_numbers = #tpu.dot_dimension_numbers<[1], [0], [0], [1], [0, 0, 1, 1], [], []>} : vector<32x128xf32>, vector<128x256xf32>, vector<32x256xf32> -> vector<32x256xf32>
    %7 = arith.addf %3, %6 : vector<32x256xf32>
    %c0_6 = arith.constant 0 : index
    %c0_7 = arith.constant 0 : index
    %8 = vector.load %arg7[%c0_6, %c0_7] : memref<32x256xf32, #tpu.memory_space<vmem>>, vector<32x256xf32>
    tpu.vector_store %arg7[%c0_6, %c0_7], %7 {strides = array<i32>} : memref<32x256xf32, #tpu.memory_space<vmem>>, vector<32x256xf32>,
    %c0_i32_8 = arith.constant 0 : i32
    %9 = arith.cmpi eq, %arg2, %c0_i32_8 : i32
    %10 = arith.extui %9 : i1 to i32
    %c0_i32_9 = arith.constant 0 : i32
    %11 = arith.cmpi ne, %10, %c0_i32_9 : i32
    scf.if %11 {
      %c0_10 = arith.constant 0 : index
      %c0_11 = arith.constant 0 : index
      %12 = vector.load %arg7[%c0_10, %c0_11] : memref<32x256xf32, #tpu.memory_space<vmem>>, vector<32x256xf32>
      %c0_12 = arith.constant 0 : index
      %c0_13 = arith.constant 0 : index
      %13 = vector.load %arg5[%c0_12, %c0_13] : memref<1x256xf32, #tpu.memory_space<vmem>>, vector<1x256xf32>
      %14 = vector.broadcast %13 : vector<1x256xf32> to vector<32x256xf32>
      %15 = arith.addf %12, %14 : vector<32x256xf32>
      %c0_14 = arith.constant 0 : index
      %c0_15 = arith.constant 0 : index
      %16 = vector.load %arg6[%c0_14, %c0_15] : memref<32x256xf32, #tpu.memory_space<vmem>>, vector<32x256xf32>
      tpu.vector_store %arg6[%c0_14, %c0_15], %15 {strides = array<i32>} : memref<32x256xf32, #tpu.memory_space<vmem>>, vector<32x256xf32>,
    } else {
    }
    return
  }
  func.func @transform_0(%arg0: i32, %arg1: i32, %arg2: i32) -> (i32, i32) {
    %c0_i32 = arith.constant 0 : i32
    return %arg0, %arg2 : i32, i32
  }
  func.func @transform_1(%arg0: i32, %arg1: i32, %arg2: i32) -> (i32, i32) {
    %c0_i32 = arith.constant 0 : i32
    return %arg2, %arg1 : i32, i32
  }
  func.func @transform_2(%arg0: i32, %arg1: i32, %arg2: i32) -> (i32, i32) {
    %c0_i32 = arith.constant 0 : i32
    %c0_i32_0 = arith.constant 0 : i32
    return %c0_i32, %arg1 : i32, i32
  }
  func.func @transform_3(%arg0: i32, %arg1: i32, %arg2: i32) -> (i32, i32) {
    %c0_i32 = arith.constant 0 : i32
    return %arg0, %arg1 : i32, i32
  }
}

module attributes {stable_mosaic.version = 11 : i64} {
  func.func @_attn_kernel(%arg0: i32, %arg1: i32, %arg2: i32, %arg3: memref<1x8x128xf32, #tpu.memory_space<vmem>>, %arg4: memref<1x16x128xf32, #tpu.memory_space<vmem>>, %arg5: memref<1x16x128xf32, #tpu.memory_space<vmem>>, %arg6: memref<1x8x128xf32, #tpu.memory_space<vmem>>, %arg7: memref<4x8x1xf32, #tpu.memory_space<vmem>>, %arg8: memref<4x8x1xf32, #tpu.memory_space<vmem>>, %arg9: memref<4x8x32xf32, #tpu.memory_space<vmem>>) attributes {dimension_semantics = [#tpu.dimension_semantics<parallel>, #tpu.dimension_semantics<parallel>, #tpu.dimension_semantics<arbitrary>], iteration_bounds = array<i64: 2, 1, 1>, scalar_prefetch = 0 : i64, scratch_operands = 3 : i64, tpu.core_type = #tpu.core_type<tc>, window_params = [{transform_indices = @transform_0, window_bounds = array<i64: 1, 8, 128>}, {transform_indices = @transform_1, window_bounds = array<i64: 1, 16, 128>}, {transform_indices = @transform_2, window_bounds = array<i64: 1, 16, 128>}, {transform_indices = @transform_3, window_bounds = array<i64: 1, 8, 128>}]} {
    %c0_i32 = arith.constant 0 : i32
    %0 = arith.cmpi eq, %arg2, %c0_i32 : i32
    %1 = arith.extui %0 : i1 to i32
    %c0_i32_0 = arith.constant 0 : i32
    %2 = arith.cmpi ne, %1, %c0_i32_0 : i32
    scf.if %2 {
      %cst_32 = arith.constant 0xFF800000 : f32
      %38 = vector.broadcast %cst_32 : f32 to vector<4x8x1xf32>
      %c0_33 = arith.constant 0 : index
      %c0_34 = arith.constant 0 : index
      %c0_35 = arith.constant 0 : index
      %39 = vector.load %arg7[%c0_33, %c0_34, %c0_35] : memref<4x8x1xf32, #tpu.memory_space<vmem>>, vector<4x8x1xf32>
      tpu.vector_store %arg7[%c0_33, %c0_34, %c0_35], %38 {strides = array<i32>} : memref<4x8x1xf32, #tpu.memory_space<vmem>>, vector<4x8x1xf32>,
      %cst_36 = arith.constant 0.000000e+00 : f32
      %40 = vector.broadcast %cst_36 : f32 to vector<4x8x1xf32>
      %c0_37 = arith.constant 0 : index
      %c0_38 = arith.constant 0 : index
      %c0_39 = arith.constant 0 : index
      %41 = vector.load %arg8[%c0_37, %c0_38, %c0_39] : memref<4x8x1xf32, #tpu.memory_space<vmem>>, vector<4x8x1xf32>
      tpu.vector_store %arg8[%c0_37, %c0_38, %c0_39], %40 {strides = array<i32>} : memref<4x8x1xf32, #tpu.memory_space<vmem>>, vector<4x8x1xf32>,
      %cst_40 = arith.constant 0.000000e+00 : f32
      %42 = vector.broadcast %cst_40 : f32 to vector<4x8x32xf32>
      %c0_41 = arith.constant 0 : index
      %c0_42 = arith.constant 0 : index
      %c0_43 = arith.constant 0 : index
      %43 = vector.load %arg9[%c0_41, %c0_42, %c0_43] : memref<4x8x32xf32, #tpu.memory_space<vmem>>, vector<4x8x32xf32>
      tpu.vector_store %arg9[%c0_41, %c0_42, %c0_43], %42 {strides = array<i32>} : memref<4x8x32xf32, #tpu.memory_space<vmem>>, vector<4x8x32xf32>,
    } else {
    }
    %c0 = arith.constant 0 : index
    %c0_1 = arith.constant 0 : index
    %c0_2 = arith.constant 0 : index
    %3 = vector.load %arg3[%c0, %c0_1, %c0_2] : memref<1x8x128xf32, #tpu.memory_space<vmem>>, vector<1x8x128xf32>
    %4 = vector.shape_cast %3 : vector<1x8x128xf32> to vector<8x128xf32>
    %5 = vector.shape_cast %4 : vector<8x128xf32> to vector<8x4x32xf32>
    %c0_3 = arith.constant 0 : index
    %c0_4 = arith.constant 0 : index
    %c0_5 = arith.constant 0 : index
    %6 = vector.load %arg4[%c0_3, %c0_4, %c0_5] : memref<1x16x128xf32, #tpu.memory_space<vmem>>, vector<1x16x128xf32>
    %7 = vector.shape_cast %6 : vector<1x16x128xf32> to vector<16x128xf32>
    %8 = vector.shape_cast %7 : vector<16x128xf32> to vector<16x4x32xf32>
    %c0_6 = arith.constant 0 : index
    %c0_7 = arith.constant 0 : index
    %c0_8 = arith.constant 0 : index
    %9 = vector.load %arg5[%c0_6, %c0_7, %c0_8] : memref<1x16x128xf32, #tpu.memory_space<vmem>>, vector<1x16x128xf32>
    %10 = vector.shape_cast %9 : vector<1x16x128xf32> to vector<16x128xf32>
    %11 = vector.shape_cast %10 : vector<16x128xf32> to vector<16x4x32xf32>
    "tpu.trace_start"() <{level = 10 : i32, message = "qhd,khd->hqk"}> : () -> ()
    %cst = arith.constant dense<0.000000e+00> : vector<4x8x16xf32>
    %12 = tpu.matmul %5, %8, %cst {dimension_numbers = #tpu.dot_dimension_numbers<[2], [2], [0], [0], [0, 1, 0, 0, 1, 0], [1], [1]>} : vector<8x4x32xf32>, vector<16x4x32xf32>, vector<4x8x16xf32> -> vector<4x8x16xf32>
    "tpu.trace_stop"() : () -> ()
    %c0_9 = arith.constant 0 : index
    %c0_10 = arith.constant 0 : index
    %c0_11 = arith.constant 0 : index
    %13 = vector.load %arg7[%c0_9, %c0_10, %c0_11] : memref<4x8x1xf32, #tpu.memory_space<vmem>>, vector<4x8x1xf32>
    %cst_12 = arith.constant dense<0xFF800000> : vector<4x8xf32>
    %14 = vector.multi_reduction <maximumf>, %12, %cst_12 [2] : vector<4x8x16xf32> to vector<4x8xf32>
    %15 = vector.shape_cast %14 : vector<4x8xf32> to vector<4x8x1xf32>
    %16 = arith.maximumf %13, %15 : vector<4x8x1xf32>
    %17 = arith.subf %13, %16 : vector<4x8x1xf32>
    %18 = math.exp %17 : vector<4x8x1xf32>
    %19 = vector.broadcast %16 : vector<4x8x1xf32> to vector<4x8x16xf32>
    %20 = arith.subf %12, %19 : vector<4x8x16xf32>
    %21 = math.exp %20 : vector<4x8x16xf32>
    %c0_13 = arith.constant 0 : index
    %c0_14 = arith.constant 0 : index
    %c0_15 = arith.constant 0 : index
    %22 = vector.load %arg8[%c0_13, %c0_14, %c0_15] : memref<4x8x1xf32, #tpu.memory_space<vmem>>, vector<4x8x1xf32>
    %23 = arith.mulf %18, %22 : vector<4x8x1xf32>
    %cst_16 = arith.constant dense<0.000000e+00> : vector<4x8xf32>
    %24 = vector.multi_reduction <add>, %21, %cst_16 [2] : vector<4x8x16xf32> to vector<4x8xf32>
    %25 = vector.shape_cast %24 : vector<4x8xf32> to vector<4x8x1xf32>
    %26 = arith.addf %23, %25 : vector<4x8x1xf32>
    %c0_17 = arith.constant 0 : index
    %c0_18 = arith.constant 0 : index
    %c0_19 = arith.constant 0 : index
    %27 = vector.load %arg8[%c0_17, %c0_18, %c0_19] : memref<4x8x1xf32, #tpu.memory_space<vmem>>, vector<4x8x1xf32>
    tpu.vector_store %arg8[%c0_17, %c0_18, %c0_19], %26 {strides = array<i32>} : memref<4x8x1xf32, #tpu.memory_space<vmem>>, vector<4x8x1xf32>,
    %c0_20 = arith.constant 0 : index
    %c0_21 = arith.constant 0 : index
    %c0_22 = arith.constant 0 : index
    %28 = vector.load %arg9[%c0_20, %c0_21, %c0_22] : memref<4x8x32xf32, #tpu.memory_space<vmem>>, vector<4x8x32xf32>
    %29 = vector.broadcast %18 : vector<4x8x1xf32> to vector<4x8x32xf32>
    %30 = arith.mulf %29, %28 : vector<4x8x32xf32>
    "tpu.trace_start"() <{level = 10 : i32, message = "hqk,khd->hqd"}> : () -> ()
    %cst_23 = arith.constant dense<0.000000e+00> : vector<4x8x32xf32>
    %31 = tpu.matmul %21, %11, %cst_23 {dimension_numbers = #tpu.dot_dimension_numbers<[2], [0], [1], [2], [0, 0, 0, 1, 1, 2], [0], [1]>} : vector<4x8x16xf32>, vector<16x4x32xf32>, vector<4x8x32xf32> -> vector<4x8x32xf32>
    "tpu.trace_stop"() : () -> ()
    %32 = arith.addf %30, %31 : vector<4x8x32xf32>
    %c0_24 = arith.constant 0 : index
    %c0_25 = arith.constant 0 : index
    %c0_26 = arith.constant 0 : index
    %33 = vector.load %arg9[%c0_24, %c0_25, %c0_26] : memref<4x8x32xf32, #tpu.memory_space<vmem>>, vector<4x8x32xf32>
    tpu.vector_store %arg9[%c0_24, %c0_25, %c0_26], %32 {strides = array<i32>} : memref<4x8x32xf32, #tpu.memory_space<vmem>>, vector<4x8x32xf32>,
    %c0_27 = arith.constant 0 : index
    %c0_28 = arith.constant 0 : index
    %c0_29 = arith.constant 0 : index
    %34 = vector.load %arg7[%c0_27, %c0_28, %c0_29] : memref<4x8x1xf32, #tpu.memory_space<vmem>>, vector<4x8x1xf32>
    tpu.vector_store %arg7[%c0_27, %c0_28, %c0_29], %16 {strides = array<i32>} : memref<4x8x1xf32, #tpu.memory_space<vmem>>, vector<4x8x1xf32>,
    %c0_i32_30 = arith.constant 0 : i32
    %35 = arith.cmpi eq, %arg2, %c0_i32_30 : i32
    %36 = arith.extui %35 : i1 to i32
    %c0_i32_31 = arith.constant 0 : i32
    %37 = arith.cmpi ne, %36, %c0_i32_31 : i32
    scf.if %37 {
      %c0_32 = arith.constant 0 : index
      %c0_33 = arith.constant 0 : index
      %c0_34 = arith.constant 0 : index
      %38 = vector.load %arg8[%c0_32, %c0_33, %c0_34] : memref<4x8x1xf32, #tpu.memory_space<vmem>>, vector<4x8x1xf32>
      %39 = tpu.reciprocal %38 {approx = true} : vector<4x8x1xf32> -> vector<4x8x1xf32>
      %c0_35 = arith.constant 0 : index
      %c0_36 = arith.constant 0 : index
      %c0_37 = arith.constant 0 : index
      %40 = vector.load %arg9[%c0_35, %c0_36, %c0_37] : memref<4x8x32xf32, #tpu.memory_space<vmem>>, vector<1x8x32xf32>
      %41 = vector.shape_cast %40 : vector<1x8x32xf32> to vector<8x32xf32>
      %42 = vector.extract_strided_slice %39 {offsets = [0, 0, 0], sizes = [1, 8, 1], strides = [1, 1, 1]} : vector<4x8x1xf32> to vector<1x8x1xf32>
      %43 = vector.shape_cast %42 : vector<1x8x1xf32> to vector<8x1xf32>
      %44 = vector.broadcast %43 : vector<8x1xf32> to vector<8x32xf32>
      %45 = arith.mulf %41, %44 : vector<8x32xf32>
      %c1 = arith.constant 1 : index
      %c0_38 = arith.constant 0 : index
      %c0_39 = arith.constant 0 : index
      %46 = vector.load %arg9[%c1, %c0_38, %c0_39] : memref<4x8x32xf32, #tpu.memory_space<vmem>>, vector<1x8x32xf32>
      %47 = vector.shape_cast %46 : vector<1x8x32xf32> to vector<8x32xf32>
      %48 = vector.extract_strided_slice %39 {offsets = [1, 0, 0], sizes = [1, 8, 1], strides = [1, 1, 1]} : vector<4x8x1xf32> to vector<1x8x1xf32>
      %49 = vector.shape_cast %48 : vector<1x8x1xf32> to vector<8x1xf32>
      %50 = vector.broadcast %49 : vector<8x1xf32> to vector<8x32xf32>
      %51 = arith.mulf %47, %50 : vector<8x32xf32>
      %c2 = arith.constant 2 : index
      %c0_40 = arith.constant 0 : index
      %c0_41 = arith.constant 0 : index
      %52 = vector.load %arg9[%c2, %c0_40, %c0_41] : memref<4x8x32xf32, #tpu.memory_space<vmem>>, vector<1x8x32xf32>
      %53 = vector.shape_cast %52 : vector<1x8x32xf32> to vector<8x32xf32>
      %54 = vector.extract_strided_slice %39 {offsets = [2, 0, 0], sizes = [1, 8, 1], strides = [1, 1, 1]} : vector<4x8x1xf32> to vector<1x8x1xf32>
      %55 = vector.shape_cast %54 : vector<1x8x1xf32> to vector<8x1xf32>
      %56 = vector.broadcast %55 : vector<8x1xf32> to vector<8x32xf32>
      %57 = arith.mulf %53, %56 : vector<8x32xf32>
      %c3 = arith.constant 3 : index
      %c0_42 = arith.constant 0 : index
      %c0_43 = arith.constant 0 : index
      %58 = vector.load %arg9[%c3, %c0_42, %c0_43] : memref<4x8x32xf32, #tpu.memory_space<vmem>>, vector<1x8x32xf32>
      %59 = vector.shape_cast %58 : vector<1x8x32xf32> to vector<8x32xf32>
      %60 = vector.extract_strided_slice %39 {offsets = [3, 0, 0], sizes = [1, 8, 1], strides = [1, 1, 1]} : vector<4x8x1xf32> to vector<1x8x1xf32>
      %61 = vector.shape_cast %60 : vector<1x8x1xf32> to vector<8x1xf32>
      %62 = vector.broadcast %61 : vector<8x1xf32> to vector<8x32xf32>
      %63 = arith.mulf %59, %62 : vector<8x32xf32>
      %64 = tpu.concatenate %45, %51, %57, %63 in 1 : vector<8x32xf32>, vector<8x32xf32>, vector<8x32xf32>, vector<8x32xf32> -> vector<8x128xf32>
      %c0_44 = arith.constant 0 : index
      %c0_45 = arith.constant 0 : index
      %c0_46 = arith.constant 0 : index
      %65 = vector.load %arg6[%c0_44, %c0_45, %c0_46] : memref<1x8x128xf32, #tpu.memory_space<vmem>>, vector<1x8x128xf32>
      %66 = vector.shape_cast %65 : vector<1x8x128xf32> to vector<8x128xf32>
      %67 = vector.shape_cast %64 : vector<8x128xf32> to vector<1x8x128xf32>
      tpu.vector_store %arg6[%c0_44, %c0_45, %c0_46], %67 {strides = array<i32>} : memref<1x8x128xf32, #tpu.memory_space<vmem>>, vector<1x8x128xf32>,
    } else {
    }
    return
  }
  func.func @transform_0(%arg0: i32, %arg1: i32, %arg2: i32) -> (i32, i32, i32) {
    %c0_i32 = arith.constant 0 : i32
    %c0_i32_0 = arith.constant 0 : i32
    return %arg0, %arg1, %c0_i32 : i32, i32, i32
  }
  func.func @transform_1(%arg0: i32, %arg1: i32, %arg2: i32) -> (i32, i32, i32) {
    %c0_i32 = arith.constant 0 : i32
    %c0_i32_0 = arith.constant 0 : i32
    return %arg0, %arg2, %c0_i32 : i32, i32, i32
  }
  func.func @transform_2(%arg0: i32, %arg1: i32, %arg2: i32) -> (i32, i32, i32) {
    %c1_i32 = arith.constant 1 : i32
    %c0_i32 = arith.constant 0 : i32
    return %arg0, %arg2, %c1_i32 : i32, i32, i32
  }
  func.func @transform_3(%arg0: i32, %arg1: i32, %arg2: i32) -> (i32, i32, i32) {
    %c0_i32 = arith.constant 0 : i32
    %c0_i32_0 = arith.constant 0 : i32
    return %arg0, %arg1, %c0_i32 : i32, i32, i32
  }
}

module attributes {stable_mosaic.version = 11 : i64} {
  func.func @_ln_linear_kernel(%arg0: i32, %arg1: i32, %arg2: i32, %arg3: memref<16x128xf32, #tpu.memory_space<vmem>>, %arg4: memref<1x128xf32, #tpu.memory_space<vmem>>, %arg5: memref<1x128xf32, #tpu.memory_space<vmem>>, %arg6: memref<128x256xf32, #tpu.memory_space<vmem>>, %arg7: memref<1x256xf32, #tpu.memory_space<vmem>>, %arg8: memref<16x256xf32, #tpu.memory_space<vmem>>, %arg9: memref<1x16x128xf32, #tpu.memory_space<vmem>>, %arg10: memref<16x256xf32, #tpu.memory_space<vmem>>) attributes {dimension_semantics = [#tpu.dimension_semantics<parallel>, #tpu.dimension_semantics<arbitrary>, #tpu.dimension_semantics<arbitrary>], iteration_bounds = array<i64: 1, 1, 1>, scalar_prefetch = 0 : i64, scratch_operands = 2 : i64, tpu.core_type = #tpu.core_type<tc>, window_params = [{transform_indices = @transform_0, window_bounds = array<i64: 16, 128>}, {pipeline_mode = #tpu.pipeline_mode<synchronous>, transform_indices = @transform_1, window_bounds = array<i64: 1, 128>}, {pipeline_mode = #tpu.pipeline_mode<synchronous>, transform_indices = @transform_2, window_bounds = array<i64: 1, 128>}, {transform_indices = @transform_3, window_bounds = array<i64: 128, 256>}, {transform_indices = @transform_4, window_bounds = array<i64: 1, 256>}, {transform_indices = @transform_5, window_bounds = array<i64: 16, 256>}]} {
    %c0_i32 = arith.constant 0 : i32
    %0 = arith.cmpi eq, %arg1, %c0_i32 : i32
    %c0_i32_0 = arith.constant 0 : i32
    %1 = arith.cmpi eq, %arg2, %c0_i32_0 : i32
    %2 = arith.andi %0, %1 : i1
    %3 = arith.extui %2 : i1 to i32
    %c0_i32_1 = arith.constant 0 : i32
    %4 = arith.cmpi ne, %3, %c0_i32_1 : i32
    scf.if %4 {
      %c0_13 = arith.constant 0 : index
      %c0_14 = arith.constant 0 : index
      %19 = vector.load %arg3[%c0_13, %c0_14] : memref<16x128xf32, #tpu.memory_space<vmem>>, vector<16x128xf32>
      %cst_15 = arith.constant dense<0.000000e+00> : vector<16xf32>
      %20 = vector.multi_reduction <add>, %19, %cst_15 [1] : vector<16x128xf32> to vector<16xf32>
      %21 = vector.shape_cast %20 : vector<16xf32> to vector<16x1xf32>
      %cst_16 = arith.constant 1.280000e+02 : f32
      %22 = vector.broadcast %cst_16 : f32 to vector<16x1xf32>
      %23 = arith.divf %21, %22 : vector<16x1xf32>
      %24 = vector.broadcast %23 : vector<16x1xf32> to vector<16x128xf32>
      %25 = arith.subf %19, %24 : vector<16x128xf32>
      %26 = arith.mulf %25, %25 : vector<16x128xf32>
      %cst_17 = arith.constant dense<0.000000e+00> : vector<16xf32>
      %27 = vector.multi_reduction <add>, %26, %cst_17 [1] : vector<16x128xf32> to vector<16xf32>
      %28 = vector.shape_cast %27 : vector<16xf32> to vector<16x1xf32>
      %cst_18 = arith.constant 1.280000e+02 : f32
      %29 = vector.broadcast %cst_18 : f32 to vector<16x1xf32>
      %30 = arith.divf %28, %29 : vector<16x1xf32>
      %31 = vector.broadcast %23 : vector<16x1xf32> to vector<16x128xf32>
      %32 = arith.subf %19, %31 : vector<16x128xf32>
      %cst_19 = arith.constant 9.99999974E-6 : f32
      %33 = vector.broadcast %cst_19 : f32 to vector<16x1xf32>
      %34 = arith.addf %30, %33 : vector<16x1xf32>
      %35 = math.rsqrt %34 : vector<16x1xf32>
      %36 = vector.broadcast %35 : vector<16x1xf32> to vector<16x128xf32>
      %37 = arith.mulf %32, %36 : vector<16x128xf32>
      %c0_20 = arith.constant 0 : index
      %c0_21 = arith.constant 0 : index
      %38 = vector.load %arg4[%c0_20, %c0_21] : memref<1x128xf32, #tpu.memory_space<vmem>>, vector<1x128xf32>
      %39 = vector.broadcast %38 : vector<1x128xf32> to vector<16x128xf32>
      %40 = arith.mulf %37, %39 : vector<16x128xf32>
      %c0_22 = arith.constant 0 : index
      %c0_23 = arith.constant 0 : index
      %41 = vector.load %arg5[%c0_22, %c0_23] : memref<1x128xf32, #tpu.memory_space<vmem>>, vector<1x128xf32>
      %42 = vector.broadcast %41 : vector<1x128xf32> to vector<16x128xf32>
      %43 = arith.addf %40, %42 : vector<16x128xf32>
      %c0_24 = arith.constant 0 : index
      %c0_25 = arith.constant 0 : index
      %c0_26 = arith.constant 0 : index
      %44 = vector.load %arg9[%c0_24, %c0_25, %c0_26] : memref<1x16x128xf32, #tpu.memory_space<vmem>>, vector<1x16x128xf32>
      %45 = vector.shape_cast %44 : vector<1x16x128xf32> to vector<16x128xf32>
      %46 = vector.shape_cast %43 : vector<16x128xf32> to vector<1x16x128xf32>
      tpu.vector_store %arg9[%c0_24, %c0_25, %c0_26], %46 {strides = array<i32>} : memref<1x16x128xf32, #tpu.memory_space<vmem>>, vector<1x16x128xf32>,
    } else {
    }
    %c0_i32_2 = arith.constant 0 : i32
    %5 = arith.cmpi eq, %arg2, %c0_i32_2 : i32
    %6 = arith.extui %5 : i1 to i32
    %c0_i32_3 = arith.constant 0 : i32
    %7 = arith.cmpi ne, %6, %c0_i32_3 : i32
    scf.if %7 {
      %cst_13 = arith.constant 0.000000e+00 : f32
      %19 = vector.broadcast %cst_13 : f32 to vector<16x256xf32>
      %c0_14 = arith.constant 0 : index
      %c0_15 = arith.constant 0 : index
      %20 = vector.load %arg10[%c0_14, %c0_15] : memref<16x256xf32, #tpu.memory_space<vmem>>, vector<16x256xf32>
      tpu.vector_store %arg10[%c0_14, %c0_15], %19 {strides = array<i32>} : memref<16x256xf32, #tpu.memory_space<vmem>>, vector<16x256xf32>,
    } else {
    }
    %c0 = arith.constant 0 : index
    %c0_4 = arith.constant 0 : index
    %8 = vector.load %arg10[%c0, %c0_4] : memref<16x256xf32, #tpu.memory_space<vmem>>, vector<16x256xf32>
    %9 = arith.index_cast %arg2 : i32 to index
    %c0_5 = arith.constant 0 : index
    %c0_6 = arith.constant 0 : index
    %10 = vector.load %arg9[%9, %c0_5, %c0_6] : memref<1x16x128xf32, #tpu.memory_space<vmem>>, vector<1x16x128xf32>
    %11 = vector.shape_cast %10 : vector<1x16x128xf32> to vector<16x128xf32>
    %c0_7 = arith.constant 0 : index
    %c0_8 = arith.constant 0 : index
    %12 = vector.load %arg6[%c0_7, %c0_8] : memref<128x256xf32, #tpu.memory_space<vmem>>, vector<128x256xf32>
    %cst = arith.constant dense<0.000000e+00> : vector<16x256xf32>
    %13 = tpu.matmul %11, %12, %cst {dimension_numbers = #tpu.dot_dimension_numbers<[1], [0], [0], [1], [0, 0, 1, 1], [], []>} : vector<16x128xf32>, vector<128x256xf32>, vector<16x256xf32> -> vector<16x256xf32>
    %14 = arith.addf %8, %13 : vector<16x256xf32>
    %c0_9 = arith.constant 0 : index
    %c0_10 = arith.constant 0 : index
    %15 = vector.load %arg10[%c0_9, %c0_10] : memref<16x256xf32, #tpu.memory_space<vmem>>, vector<16x256xf32>
    tpu.vector_store %arg10[%c0_9, %c0_10], %14 {strides = array<i32>} : memref<16x256xf32, #tpu.memory_space<vmem>>, vector<16x256xf32>,
    %c0_i32_11 = arith.constant 0 : i32
    %16 = arith.cmpi eq, %arg2, %c0_i32_11 : i32
    %17 = arith.extui %16 : i1 to i32
    %c0_i32_12 = arith.constant 0 : i32
    %18 = arith.cmpi ne, %17, %c0_i32_12 : i32
    scf.if %18 {
      %c0_13 = arith.constant 0 : index
      %c0_14 = arith.constant 0 : index
      %19 = vector.load %arg10[%c0_13, %c0_14] : memref<16x256xf32, #tpu.memory_space<vmem>>, vector<16x256xf32>
      %c0_15 = arith.constant 0 : index
      %c0_16 = arith.constant 0 : index
      %20 = vector.load %arg7[%c0_15, %c0_16] : memref<1x256xf32, #tpu.memory_space<vmem>>, vector<1x256xf32>
      %21 = vector.broadcast %20 : vector<1x256xf32> to vector<16x256xf32>
      %22 = arith.addf %19, %21 : vector<16x256xf32>
      %cst_17 = arith.constant 0.000000e+00 : f32
      %23 = vector.broadcast %cst_17 : f32 to vector<16x256xf32>
      %24 = arith.maximumf %22, %23 : vector<16x256xf32>
      %c0_18 = arith.constant 0 : index
      %c0_19 = arith.constant 0 : index
      %25 = vector.load %arg8[%c0_18, %c0_19] : memref<16x256xf32, #tpu.memory_space<vmem>>, vector<16x256xf32>
      tpu.vector_store %arg8[%c0_18, %c0_19], %24 {strides = array<i32>} : memref<16x256xf32, #tpu.memory_space<vmem>>, vector<16x256xf32>,
    } else {
    }
    return
  }
  func.func @transform_0(%arg0: i32, %arg1: i32, %arg2: i32) -> (i32, i32) {
    %c0_i32 = arith.constant 0 : i32
    %c0_i32_0 = arith.constant 0 : i32
    return %arg0, %c0_i32 : i32, i32
  }
  func.func @transform_1(%arg0: i32, %arg1: i32, %arg2: i32) -> (i32, i32) {
    %c0_i32 = arith.constant 0 : i32
    %c0_i32_0 = arith.constant 0 : i32
    %c0_i32_1 = arith.constant 0 : i32
    return %c0_i32, %c0_i32_0 : i32, i32
  }
  func.func @transform_2(%arg0: i32, %arg1: i32, %arg2: i32) -> (i32, i32) {
    %c0_i32 = arith.constant 0 : i32
    %c0_i32_0 = arith.constant 0 : i32
    %c0_i32_1 = arith.constant 0 : i32
    return %c0_i32, %c0_i32_0 : i32, i32
  }
  func.func @transform_3(%arg0: i32, %arg1: i32, %arg2: i32) -> (i32, i32) {
    %c0_i32 = arith.constant 0 : i32
    return %arg2, %arg1 : i32, i32
  }
  func.func @transform_4(%arg0: i32, %arg1: i32, %arg2: i32) -> (i32, i32) {
    %c0_i32 = arith.constant 0 : i32
    %c0_i32_0 = arith.constant 0 : i32
    return %c0_i32, %arg1 : i32, i32
  }
  func.func @transform_5(%arg0: i32, %arg1: i32, %arg2: i32) -> (i32, i32) {
    %c0_i32 = arith.constant 0 : i32
    return %arg0, %arg1 : i32, i32
  }
}

module attributes {stable_mosaic.version = 11 : i64} {
  func.func @kernel(%arg0: i32, %arg1: i32, %arg2: i32, %arg3: memref<16x256xf32, #tpu.memory_space<vmem>>, %arg4: memref<256x128xf32, #tpu.memory_space<vmem>>, %arg5: memref<1x128xf32, #tpu.memory_space<vmem>>, %arg6: memref<16x128xf32, #tpu.memory_space<vmem>>, %arg7: memref<16x128xf32, #tpu.memory_space<vmem>>, %arg8: memref<16x128xf32, #tpu.memory_space<vmem>>) attributes {dimension_semantics = [#tpu.dimension_semantics<parallel>, #tpu.dimension_semantics<parallel>, #tpu.dimension_semantics<arbitrary>], iteration_bounds = array<i64: 1, 1, 1>, scalar_prefetch = 0 : i64, scratch_operands = 1 : i64, tpu.core_type = #tpu.core_type<tc>, window_params = [{transform_indices = @transform_0, window_bounds = array<i64: 16, 256>}, {transform_indices = @transform_1, window_bounds = array<i64: 256, 128>}, {transform_indices = @transform_2, window_bounds = array<i64: 1, 128>}, {transform_indices = @transform_3, window_bounds = array<i64: 16, 128>}, {transform_indices = @transform_4, window_bounds = array<i64: 16, 128>}]} {
    %c0_i32 = arith.constant 0 : i32
    %0 = arith.cmpi eq, %arg2, %c0_i32 : i32
    %1 = arith.extui %0 : i1 to i32
    %c0_i32_0 = arith.constant 0 : i32
    %2 = arith.cmpi ne, %1, %c0_i32_0 : i32
    scf.if %2 {
      %cst_10 = arith.constant 0.000000e+00 : f32
      %12 = vector.broadcast %cst_10 : f32 to vector<16x128xf32>
      %c0_11 = arith.constant 0 : index
      %c0_12 = arith.constant 0 : index
      %13 = vector.load %arg8[%c0_11, %c0_12] : memref<16x128xf32, #tpu.memory_space<vmem>>, vector<16x128xf32>
      tpu.vector_store %arg8[%c0_11, %c0_12], %12 {strides = array<i32>} : memref<16x128xf32, #tpu.memory_space<vmem>>, vector<16x128xf32>,
    } else {
    }
    %c0 = arith.constant 0 : index
    %c0_1 = arith.constant 0 : index
    %3 = vector.load %arg8[%c0, %c0_1] : memref<16x128xf32, #tpu.memory_space<vmem>>, vector<16x128xf32>
    %c0_2 = arith.constant 0 : index
    %c0_3 = arith.constant 0 : index
    %4 = vector.load %arg3[%c0_2, %c0_3] : memref<16x256xf32, #tpu.memory_space<vmem>>, vector<16x256xf32>
    %c0_4 = arith.constant 0 : index
    %c0_5 = arith.constant 0 : index
    %5 = vector.load %arg4[%c0_4, %c0_5] : memref<256x128xf32, #tpu.memory_space<vmem>>, vector<256x128xf32>
    %cst = arith.constant dense<0.000000e+00> : vector<16x128xf32>
    %6 = tpu.matmul %4, %5, %cst {dimension_numbers = #tpu.dot_dimension_numbers<[1], [0], [0], [1], [0, 0, 1, 1], [], []>} : vector<16x256xf32>, vector<256x128xf32>, vector<16x128xf32> -> vector<16x128xf32>
    %7 = arith.addf %3, %6 : vector<16x128xf32>
    %c0_6 = arith.constant 0 : index
    %c0_7 = arith.constant 0 : index
    %8 = vector.load %arg8[%c0_6, %c0_7] : memref<16x128xf32, #tpu.memory_space<vmem>>, vector<16x128xf32>
    tpu.vector_store %arg8[%c0_6, %c0_7], %7 {strides = array<i32>} : memref<16x128xf32, #tpu.memory_space<vmem>>, vector<16x128xf32>,
    %c0_i32_8 = arith.constant 0 : i32
    %9 = arith.cmpi eq, %arg2, %c0_i32_8 : i32
    %10 = arith.extui %9 : i1 to i32
    %c0_i32_9 = arith.constant 0 : i32
    %11 = arith.cmpi ne, %10, %c0_i32_9 : i32
    scf.if %11 {
      %c0_10 = arith.constant 0 : index
      %c0_11 = arith.constant 0 : index
      %12 = vector.load %arg8[%c0_10, %c0_11] : memref<16x128xf32, #tpu.memory_space<vmem>>, vector<16x128xf32>
      %c0_12 = arith.constant 0 : index
      %c0_13 = arith.constant 0 : index
      %13 = vector.load %arg5[%c0_12, %c0_13] : memref<1x128xf32, #tpu.memory_space<vmem>>, vector<1x128xf32>
      %14 = vector.broadcast %13 : vector<1x128xf32> to vector<16x128xf32>
      %15 = arith.addf %12, %14 : vector<16x128xf32>
      %c0_14 = arith.constant 0 : index
      %c0_15 = arith.constant 0 : index
      %16 = vector.load %arg6[%c0_14, %c0_15] : memref<16x128xf32, #tpu.memory_space<vmem>>, vector<16x128xf32>
      %17 = arith.addf %15, %16 : vector<16x128xf32>
      %c0_16 = arith.constant 0 : index
      %c0_17 = arith.constant 0 : index
      %18 = vector.load %arg7[%c0_16, %c0_17] : memref<16x128xf32, #tpu.memory_space<vmem>>, vector<16x128xf32>
      tpu.vector_store %arg7[%c0_16, %c0_17], %17 {strides = array<i32>} : memref<16x128xf32, #tpu.memory_space<vmem>>, vector<16x128xf32>,
    } else {
    }
    return
  }
  func.func @transform_0(%arg0: i32, %arg1: i32, %arg2: i32) -> (i32, i32) {
    %c0_i32 = arith.constant 0 : i32
    return %arg0, %arg2 : i32, i32
  }
  func.func @transform_1(%arg0: i32, %arg1: i32, %arg2: i32) -> (i32, i32) {
    %c0_i32 = arith.constant 0 : i32
    return %arg2, %arg1 : i32, i32
  }
  func.func @transform_2(%arg0: i32, %arg1: i32, %arg2: i32) -> (i32, i32) {
    %c0_i32 = arith.constant 0 : i32
    %c0_i32_0 = arith.constant 0 : i32
    return %c0_i32, %arg1 : i32, i32
  }
  func.func @transform_3(%arg0: i32, %arg1: i32, %arg2: i32) -> (i32, i32) {
    %c0_i32 = arith.constant 0 : i32
    return %arg0, %arg1 : i32, i32
  }
  func.func @transform_4(%arg0: i32, %arg1: i32, %arg2: i32) -> (i32, i32) {
    %c0_i32 = arith.constant 0 : i32
    return %arg0, %arg1 : i32, i32
  }
}

</mosaic_0001>

<bundles_post_ra>
// kernel: transformer_decoder_layer.11
= control target key start
LH: loop header
LB: loop body
LE: loop exit
PB: predicated region body
PF: predicated region fallthrough
CT: control target
= control target key end

     0   :  { %9 = vsyncpa [#allocation4], 0  ;;  %s154_s18 = smov [#allocation3]   ;;  %s155_s20 = smov 128   ;;  %s206_s0 = inlined_call_operand.vmem [shape: f32[16,128], index: 0, kind: input, shape index: {}]   ;;  %s207_s1 = inlined_call_operand.hbm [shape: f32[128,128], index: 1, kind: input, shape index: {}]   ;;  %s208_s2 = inlined_call_operand.vmem [shape: f32[1,128], index: 2, kind: input, shape index: {}]   ;;  %s209_s3 = inlined_call_operand.vmem [shape: f32[16,128], index: 3, kind: input, shape index: {}]   ;;  %s210_s4 = inlined_call_operand.vmem [shape: f32[16,128], index: 4, kind: output, shape index: {}]  }
   0x1   :  { %s16_s17 = sshll.u32 %s207_s1, 4  ;;  %s18_s19 = sshll.u32 %s154_s18, 4  ;;  %s17_s17 = int_to_ptr.hbm [resolvable:$true] %s16_s17  ;;  %s19_s19 = int_to_ptr.vmem [resolvable:$true] %s18_s19 }
   0x2   :  { %s156_s21 = smov 8  }
   0x3   :  { %24 = dma.hbm_to_vmem [thread:$0]  %s17_s17, 2048, %s19_s19, [#allocation4], %s155_s20, %s155_s20, %s156_s21  }
   0x4   :  { %152 = dma.done.wait [#allocation4], 2048  }
   0x5   :  { %153 = vsyncadd [#allocation4], 4294965248  ;;  %v58_v0 = vld [vmem:[#allocation3 + $0x78] sm:$0xff]  ;;  %v57_v1 = vld [vmem:[#allocation3 + $0x70] sm:$0xff] }
   0x6   :  { %59 = vmatpush.msra.mxu0 %v58_v0  ;;  %108 = vmatpush.msra.mxu1 %v58_v0  ;;  %v56_v2 = vld [vmem:[#allocation3 + $0x68] sm:$0xff]  ;;  %v55_v3 = vld [vmem:[#allocation3 + $0x60] sm:$0xff]  ;;  %v54_v4 = vld [vmem:[#allocation3 + $0x58] sm:$0xff] }
   0x7   :  { %v53_v5 = vld [vmem:[#allocation3 + $0x50] sm:$0xff]  ;;  %v52_v6 = vld [vmem:[#allocation3 + $0x48] sm:$0xff]  ;;  %v51_v7 = vld [vmem:[#allocation3 + $0x40] sm:$0xff] }
   0x8   :  { %60 = vmatpush.msra.mxu0 %v57_v1  ;;  %109 = vmatpush.msra.mxu1 %v57_v1  ;;  %v50_v8 = vld [vmem:[#allocation3 + $0x38] sm:$0xff]  ;;  %v49_v9 = vld [vmem:[#allocation3 + $0x30] sm:$0xff]  ;;  %v48_v10 = vld [vmem:[#allocation3 + $0x28] sm:$0xff] }
   0x9   :  { %v47_v11 = vld [vmem:[#allocation3 + $0x20] sm:$0xff]  ;;  %v46_v12 = vld [vmem:[#allocation3 + $0x18] sm:$0xff]  ;;  %v45_v13 = vld [vmem:[#allocation3 + $0x10] sm:$0xff] }
   0xa   :  { %61 = vmatpush.msra.mxu0 %v56_v2  ;;  %110 = vmatpush.msra.mxu1 %v56_v2  ;;  %v44_v14 = vld [vmem:[#allocation3 + $0x8] sm:$0xff]  ;;  %v43_v15 = vld [vmem:[#allocation3] sm:$0xff] }
   0xb   :  { %v41_v16 = vld [vmem:[%s206_s0] sm:$0xff]  ;;  %v42_v17 = vld [vmem:[%s206_s0 + $0x8] sm:$0xff] }
   0xc   :  { %62 = vmatpush.msra.mxu0 %v55_v3  ;;  %111 = vmatpush.msra.mxu1 %v55_v3  ;;  %v127_v18 = vld [vmem:[%s208_s2] ss:$0 sm:$0xff]  ;;  %v98_v22 = vld [vmem:[%s209_s3 + $0x8] sm:$0xff] }
   0xd   :  { %v97_v20 = vld [vmem:[%s209_s3] sm:$0xff] }
   0xe   :  { %63 = vmatpush.msra.mxu0 %v54_v4  ;;  %112 = vmatpush.msra.mxu1 %v54_v4 }
  0x10   :  { %64 = vmatpush.msra.mxu0 %v53_v5  ;;  %113 = vmatpush.msra.mxu1 %v53_v5 }
  0x12   :  { %65 = vmatpush.msra.mxu0 %v52_v6  ;;  %114 = vmatpush.msra.mxu1 %v52_v6 }
  0x14   :  { %66 = vmatpush.msra.mxu0 %v51_v7  ;;  %115 = vmatpush.msra.mxu1 %v51_v7 }
  0x16   :  { %67 = vmatpush.msra.mxu0 %v50_v8  ;;  %116 = vmatpush.msra.mxu1 %v50_v8 }
  0x18   :  { %68 = vmatpush.msra.mxu0 %v49_v9  ;;  %117 = vmatpush.msra.mxu1 %v49_v9 }
  0x1a   :  { %69 = vmatpush.msra.mxu0 %v48_v10  ;;  %118 = vmatpush.msra.mxu1 %v48_v10 }
  0x1c   :  { %70 = vmatpush.msra.mxu0 %v47_v11  ;;  %119 = vmatpush.msra.mxu1 %v47_v11 }
  0x1e   :  { %71 = vmatpush.msra.mxu0 %v46_v12  ;;  %120 = vmatpush.msra.mxu1 %v46_v12 }
  0x20   :  { %72 = vmatpush.msra.mxu0 %v45_v13  ;;  %121 = vmatpush.msra.mxu1 %v45_v13 }
  0x22   :  { %73 = vmatpush.msra.mxu0 %v44_v14  ;;  %122 = vmatpush.msra.mxu1 %v44_v14 }
  0x24   :  { %74 = vmatpush.msra.mxu0 %v43_v15  ;;  %123 = vmatpush.msra.mxu1 %v43_v15 }
  0x25   :  { %75 = vmatmul.f32.vlgmr.msra.gmra.mxu0 %v41_v16  ;;  %78 = vmatmul.f32.vlgmr.msra.gmra.mxu1 %v42_v17 }
  0xa2   :  { %v76_v19 = vpop.f32.mrf.mxu0  ;;  %v79_v21 = vpop.f32.mrf.mxu1 }
  0xa3   :  { %v95_v23 = vadd.f32 %v127_v18, %v76_v19  ;;  %v96_v24 = vadd.f32 %v127_v18, %v79_v21 }
  0xa5   :  { %v99_v25 = vadd.f32 %v97_v20, %v95_v23  ;;  %v100_v26 = vadd.f32 %v98_v22, %v96_v24 }
  0xa7   :  { %101 = vst [vmem:[%s210_s4] sm:$0xff] %v99_v25 }
  0xa8   :  { %102 = vst [vmem:[%s210_s4 + $0x8] sm:$0xff] %v100_v26 }
  0xa9   :  { %107 = vsyncpa [#allocation4], 1 }

// kernel: transformer_decoder_layer.9
= control target key start
LH: loop header
LB: loop body
LE: loop exit
PB: predicated region body
PF: predicated region fallthrough
CT: control target
= control target key end

     0   :  { %10 = vsyncpa [#allocation5], 0  ;;  %s341_s21 = smov [#allocation4]   ;;  %s342_s23 = smov 384   ;;  %s427_s0 = inlined_call_operand.vmem [shape: f32[16,128], index: 0, kind: input, shape index: {}]   ;;  %s428_s1 = inlined_call_operand.vmem [shape: f32[1,128], index: 1, kind: input, shape index: {}]   ;;  %s429_s2 = inlined_call_operand.vmem [shape: f32[1,128], index: 2, kind: input, shape index: {}]   ;;  %s430_s3 = inlined_call_operand.hbm [shape: f32[128,384], index: 3, kind: input, shape index: {}]   ;;  %s431_s4 = inlined_call_operand.vmem [shape: f32[1,384], index: 4, kind: input, shape index: {}]   ;;  %s432_s5 = inlined_call_operand.vmem [shape: f32[16,384], index: 5, kind: output, shape index: {}]  }
   0x1   :  { %s21_s20 = sshll.u32 %s430_s3, 4  ;;  %s23_s22 = sshll.u32 %s341_s21, 4  ;;  %s22_s20 = int_to_ptr.hbm [resolvable:$true] %s21_s20  ;;  %s24_s22 = int_to_ptr.vmem [resolvable:$true] %s23_s22 }
   0x2   :  { %s343_s24 = smov 24  }
   0x3   :  { %29 = dma.hbm_to_vmem [thread:$0]  %s22_s20, 6144, %s24_s22, [#allocation5], %s342_s23, %s342_s23, %s343_s24  }
   0x4   :  { %339 = dma.done.wait [#allocation5], 6144  }
   0x5   :  { %340 = vsyncadd [#allocation5], 4294961152  ;;  %v42_v0 = vld [vmem:[%s427_s0] sm:$0xff]  ;;  %v43_v1 = vld [vmem:[%s427_s0 + $0x8] sm:$0xff]  ;;  %v344_v2 = vmov 128.0  }
   0x6   :  { %44 = vadd.xlane.f32.xlu0 %v42_v0  ;;  %309 = vrcp.f32 %v344_v2  ;;  %v169_v5 = vld [vmem:[#allocation4 + $0x168] sm:$0xff]  ;;  %v170_v6 = vld [vmem:[#allocation4 + $0x170] sm:$0xff]  ;;  %v171_v7 = vld [vmem:[#allocation4 + $0x178] sm:$0xff] }
   0x7   :  { %172 = vmatpush.msra.mxu0 %v169_v5  ;;  %195 = vmatpush.msra.mxu1 %v170_v6  ;;  %v166_v8 = vld [vmem:[#allocation4 + $0x150] sm:$0xff]  ;;  %v167_v9 = vld [vmem:[#allocation4 + $0x158] sm:$0xff]  ;;  %v168_v10 = vld [vmem:[#allocation4 + $0x160] sm:$0xff] }
   0x8   :  { %218 = vmatpush.msra.mxu2 %v171_v7  ;;  %287 = vmatpush.msra.mxu3 %v169_v5  ;;  %v163_v23 = vld [vmem:[#allocation4 + $0x138] sm:$0xff]  ;;  %v164_v24 = vld [vmem:[#allocation4 + $0x140] sm:$0xff]  ;;  %v165_v25 = vld [vmem:[#allocation4 + $0x148] sm:$0xff] }
   0x9   :  { %173 = vmatpush.msra.mxu0 %v166_v8  ;;  %196 = vmatpush.msra.mxu1 %v167_v9  ;;  %v160_v26 = vld [vmem:[#allocation4 + $0x120] sm:$0xff]  ;;  %v161_v27 = vld [vmem:[#allocation4 + $0x128] sm:$0xff]  ;;  %v162_v28 = vld [vmem:[#allocation4 + $0x130] sm:$0xff] }
   0xa   :  { %219 = vmatpush.msra.mxu2 %v168_v10  ;;  %288 = vmatpush.msra.mxu3 %v166_v8  ;;  %v157_v29 = vld [vmem:[#allocation4 + $0x108] sm:$0xff]  ;;  %v158_v30 = vld [vmem:[#allocation4 + $0x110] sm:$0xff]  ;;  %v159_v31 = vld [vmem:[#allocation4 + $0x118] sm:$0xff] }
   0xb   :  { %174 = vmatpush.msra.mxu0 %v163_v23  ;;  %197 = vmatpush.msra.mxu1 %v164_v24  ;;  %v154_v32 = vld [vmem:[#allocation4 + $0xf0] sm:$0xff]  ;;  %v155_v33 = vld [vmem:[#allocation4 + $0xf8] sm:$0xff]  ;;  %v156_v34 = vld [vmem:[#allocation4 + $0x100] sm:$0xff] }
   0xc   :  { %v310_v3 = vpop.eup %309  ;;  %220 = vmatpush.msra.mxu2 %v165_v25  ;;  %289 = vmatpush.msra.mxu3 %v163_v23  ;;  %v151_v35 = vld [vmem:[#allocation4 + $0xd8] sm:$0xff]  ;;  %v152_v36 = vld [vmem:[#allocation4 + $0xe0] sm:$0xff]  ;;  %v153_v37 = vld [vmem:[#allocation4 + $0xe8] sm:$0xff] }
   0xd   :  { %v49_v4 = vmul.f32 128.0, %v310_v3  ;;  %vm53_vm0 = vweird.f32 %v310_v3  ;;  %175 = vmatpush.msra.mxu0 %v160_v26  ;;  %198 = vmatpush.msra.mxu1 %v161_v27  ;;  %v148_v38 = vld [vmem:[#allocation4 + $0xc0] sm:$0xff]  ;;  %v149_v39 = vld [vmem:[#allocation4 + $0xc8] sm:$0xff]  ;;  %v150_v40 = vld [vmem:[#allocation4 + $0xd0] sm:$0xff] }
   0xe   :  { %46 = vadd.xlane.f32.xlu0 %v43_v1  ;;  %221 = vmatpush.msra.mxu2 %v162_v28  ;;  %v145_v41 = vld [vmem:[#allocation4 + $0xa8] sm:$0xff]  ;;  %v146_v42 = vld [vmem:[#allocation4 + $0xb0] sm:$0xff]  ;;  %v147_v43 = vld [vmem:[#allocation4 + $0xb8] sm:$0xff] }
   0xf   :  { %v50_v11 = vsub.f32 1.0, %v49_v4  ;;  %290 = vmatpush.msra.mxu3 %v160_v26  ;;  %176 = vmatpush.msra.mxu0 %v157_v29  ;;  %v142_v44 = vld [vmem:[#allocation4 + $0x90] sm:$0xff]  ;;  %v143_v45 = vld [vmem:[#allocation4 + $0x98] sm:$0xff]  ;;  %v144_v46 = vld [vmem:[#allocation4 + $0xa0] sm:$0xff] }
  0x10   :  { %199 = vmatpush.msra.mxu1 %v158_v30  ;;  %222 = vmatpush.msra.mxu2 %v159_v31  ;;  %v139_v47 = vld [vmem:[#allocation4 + $0x78] sm:$0xff]  ;;  %v140_v48 = vld [vmem:[#allocation4 + $0x80] sm:$0xff]  ;;  %v141_v49 = vld [vmem:[#allocation4 + $0x88] sm:$0xff] }
  0x11   :  { %v51_v12 = vmul.f32 %v310_v3, %v50_v11  ;;  %291 = vmatpush.msra.mxu3 %v157_v29  ;;  %177 = vmatpush.msra.mxu0 %v154_v32  ;;  %v136_v50 = vld [vmem:[#allocation4 + $0x60] sm:$0xff]  ;;  %v137_v51 = vld [vmem:[#allocation4 + $0x68] sm:$0xff]  ;;  %v138_v52 = vld [vmem:[#allocation4 + $0x70] sm:$0xff] }
  0x12   :  { %200 = vmatpush.msra.mxu1 %v155_v33  ;;  %223 = vmatpush.msra.mxu2 %v156_v34  ;;  %v133_v53 = vld [vmem:[#allocation4 + $0x48] sm:$0xff]  ;;  %v134_v54 = vld [vmem:[#allocation4 + $0x50] sm:$0xff]  ;;  %v135_v55 = vld [vmem:[#allocation4 + $0x58] sm:$0xff] }
  0x13   :  { %v52_v13 = vadd.f32 %v310_v3, %v51_v12  ;;  %292 = vmatpush.msra.mxu3 %v154_v32  ;;  %178 = vmatpush.msra.mxu0 %v151_v35  ;;  %v130_v56 = vld [vmem:[#allocation4 + $0x30] sm:$0xff]  ;;  %v131_v57 = vld [vmem:[#allocation4 + $0x38] sm:$0xff]  ;;  %v132_v58 = vld [vmem:[#allocation4 + $0x40] sm:$0xff] }
  0x14   :  { %201 = vmatpush.msra.mxu1 %v152_v36  ;;  %224 = vmatpush.msra.mxu2 %v153_v37  ;;  %v127_v59 = vld [vmem:[#allocation4 + $0x18] sm:$0xff]  ;;  %v128_v60 = vld [vmem:[#allocation4 + $0x20] sm:$0xff]  ;;  %v129_v61 = vld [vmem:[#allocation4 + $0x28] sm:$0xff] }
  0x15   :  { %v384_v14 = vsel %vm53_vm0, %v310_v3, %v52_v13  ;;  %293 = vmatpush.msra.mxu3 %v151_v35  ;;  %179 = vmatpush.msra.mxu0 %v148_v38  ;;  %v124_v62 = vld [vmem:[#allocation4] sm:$0xff]  ;;  %v125_v63 = vld [vmem:[#allocation4 + $0x8] sm:$0xff] }
  0x16   :  { %202 = vmatpush.msra.mxu1 %v149_v39  ;;  %225 = vmatpush.msra.mxu2 %v150_v40  ;;  %v262_v30 = vld [vmem:[%s431_s4] sm:$0x7] }
  0x17   :  { %294 = vmatpush.msra.mxu3 %v148_v38  ;;  %180 = vmatpush.msra.mxu0 %v145_v41  ;;  %v264_v31 = vperm.slane %v262_v30, 0  ;;  %v265_v32 = vperm.slane %v262_v30, 1 }
  0x18   :  { %203 = vmatpush.msra.mxu1 %v146_v42  ;;  %226 = vmatpush.msra.mxu2 %v147_v43 }
  0x19   :  { %295 = vmatpush.msra.mxu3 %v145_v41  ;;  %181 = vmatpush.msra.mxu0 %v142_v44 }
  0x1a   :  { %204 = vmatpush.msra.mxu1 %v143_v45  ;;  %227 = vmatpush.msra.mxu2 %v144_v46 }
  0x1b   :  { %296 = vmatpush.msra.mxu3 %v142_v44  ;;  %182 = vmatpush.msra.mxu0 %v139_v47 }
  0x1c   :  { %205 = vmatpush.msra.mxu1 %v140_v48  ;;  %228 = vmatpush.msra.mxu2 %v141_v49 }
  0x1d   :  { %297 = vmatpush.msra.mxu3 %v139_v47  ;;  %183 = vmatpush.msra.mxu0 %v136_v50 }
  0x1e   :  { %206 = vmatpush.msra.mxu1 %v137_v51  ;;  %229 = vmatpush.msra.mxu2 %v138_v52 }
  0x1f   :  { %298 = vmatpush.msra.mxu3 %v136_v50  ;;  %184 = vmatpush.msra.mxu0 %v133_v53 }
  0x20   :  { %207 = vmatpush.msra.mxu1 %v134_v54  ;;  %230 = vmatpush.msra.mxu2 %v135_v55 }
  0x21   :  { %299 = vmatpush.msra.mxu3 %v133_v53  ;;  %185 = vmatpush.msra.mxu0 %v130_v56 }
  0x22   :  { %208 = vmatpush.msra.mxu1 %v131_v57  ;;  %231 = vmatpush.msra.mxu2 %v132_v58 }
  0x23   :  { %300 = vmatpush.msra.mxu3 %v130_v56  ;;  %186 = vmatpush.msra.mxu0 %v127_v59 }
  0x24   :  { %209 = vmatpush.msra.mxu1 %v128_v60  ;;  %232 = vmatpush.msra.mxu2 %v129_v61 }
  0x25   :  { %301 = vmatpush.msra.mxu3 %v127_v59  ;;  %187 = vmatpush.msra.mxu0 %v124_v62 }
  0x26   :  { %210 = vmatpush.msra.mxu1 %v125_v63 }
  0x27   :  { %302 = vmatpush.msra.mxu3 %v124_v62 }
  0x79   :  { %v45_v15 = vpop.xlane.xlu0 %44 }
  0x7a   :  { %v55_v16 = vmul.f32 %v384_v14, %v45_v15 }
  0x7c   :  { %v387_v17 = vsub.f32 %v42_v0, %v55_v16  ;;  %v126_v0 = vld [vmem:[#allocation4 + $0x10] sm:$0xff]  ;;  %v307_v16 = vld [vmem:[%s428_s1] ss:$0 sm:$0xff] }
  0x7d   :  { %233 = vmatpush.msra.mxu2 %v126_v0 }
  0x7e   :  { %v59_v18 = vmul.f32 %v387_v17, %v387_v17 }
  0x80   :  { %61 = vadd.xlane.f32.xlu1 %v59_v18 }
  0x81   :  { %v47_v19 = vpop.xlane.xlu0 %46 }
  0x82   :  { %v56_v20 = vmul.f32 %v384_v14, %v47_v19 }
  0x84   :  { %v392_v21 = vsub.f32 %v43_v1, %v56_v20  ;;  %v308_v20 = vld [vmem:[%s429_s2] ss:$0 sm:$0xff] }
  0x86   :  { %v60_v22 = vmul.f32 %v392_v21, %v392_v21 }
  0x88   :  { %63 = vadd.xlane.f32.xlu1 %v60_v22 }
  0xf3   :  { %v62_v1 = vpop.xlane.xlu1 %61 }
  0xf4   :  { %v65_v2 = vmul.f32 %v62_v1, %v384_v14 }
  0xf6   :  { %v67_v3 = vadd.f32 1e-05, %v65_v2 }
  0xf8   :  { %311 = vrsqrt.f32 %v67_v3  ;;  %vm75_vm2 = vweird.f32 %v67_v3 }
  0xfb   :  { %v64_v4 = vpop.xlane.xlu1 %63 }
  0xfc   :  { %v66_v5 = vmul.f32 %v64_v4, %v384_v14 }
  0xfe   :  { %v312_v6 = vpop.eup %311  ;;  %v68_v7 = vadd.f32 1e-05, %v66_v5 }
  0xff   :  { %v70_v8 = vmul.f32 %v312_v6, %v67_v3  ;;  %vm76_vm1 = vweird.f32 %v312_v6 }
 0x100   :  { %313 = vrsqrt.f32 %v68_v7  ;;  %vm77_vm3 = vmor %vm75_vm2, %vm76_vm1  ;;  %vm85_vm5 = vweird.f32 %v68_v7 }
 0x101   :  { %v71_v9 = vmul.f32 %v312_v6, %v70_v8 }
 0x103   :  { %v72_v10 = vmul.f32 0.5, %v71_v9 }
 0x105   :  { %v73_v11 = vsub.f32 1.5, %v72_v10 }
 0x106   :  { %v314_v12 = vpop.eup %313 }
 0x107   :  { %v74_v13 = vmul.f32 %v312_v6, %v73_v11  ;;  %v80_v15 = vmul.f32 %v314_v12, %v68_v7  ;;  %vm86_vm4 = vweird.f32 %v314_v12 }
 0x108   :  { %vm87_vm6 = vmor %vm85_vm5, %vm86_vm4 }
 0x109   :  { %v78_v18 = vsel %vm77_vm3, %v312_v6, %v74_v13  ;;  %v81_v19 = vmul.f32 %v314_v12, %v80_v15 }
 0x10a   :  { %v89_v14 = vmul.f32 %v78_v18, %v387_v17 }
 0x10b   :  { %v82_v22 = vmul.f32 0.5, %v81_v19 }
 0x10c   :  { %v95_v23 = vmul.f32 %v307_v16, %v89_v14 }
 0x10d   :  { %v83_v24 = vsub.f32 1.5, %v82_v22 }
 0x10e   :  { %v101_v25 = vadd.f32 %v308_v20, %v95_v23 }
 0x10f   :  { %v84_v26 = vmul.f32 %v314_v12, %v83_v24 }
 0x110   :  { %188 = vmatmul.f32.vlgmr.msra.gmra.mxu0 %v101_v25  ;;  %211 = vmatmul.f32.vlgmr.msra.gmra.mxu1 %v101_v25 }
 0x111   :  { %v88_v27 = vsel %vm87_vm6, %v314_v12, %v84_v26  ;;  %234 = vmatmul.f32.vlgmr.msra.gmra.mxu2 %v101_v25 }
 0x112   :  { %v90_v28 = vmul.f32 %v88_v27, %v392_v21  ;;  %v266_v21 = vperm.slane %v262_v30, 2 }
 0x114   :  { %v96_v29 = vmul.f32 %v307_v16, %v90_v28 }
 0x116   :  { %v102_v17 = vadd.f32 %v308_v20, %v96_v29 }
 0x118   :  { %191 = vmatmul.f32.vlgmr.msra.gmra.mxu3 %v102_v17  ;;  %214 = vmatmul.f32.gmra.mxu1 %v102_v17 }
 0x119   :  { %237 = vmatmul.f32.gmra.mxu2 %v102_v17 }
 0x18d   :  { %v189_v33 = vpop.f32.mrf.mxu0  ;;  %v212_v34 = vpop.f32.mrf.mxu1 }
 0x18e   :  { %v270_v35 = vadd.f32 %v264_v31, %v189_v33  ;;  %v271_v36 = vadd.f32 %v265_v32, %v212_v34 }
 0x190   :  { %276 = vst [vmem:[%s432_s5] sm:$0xff] %v270_v35 }
 0x191   :  { %277 = vst [vmem:[%s432_s5 + $0x8] sm:$0xff] %v271_v36 }
 0x194   :  { %v235_v37 = vpop.f32.mrf.mxu2 }
 0x195   :  { %v272_v38 = vadd.f32 %v266_v21, %v235_v37  ;;  %v215_v39 = vpop.f32.mrf.mxu1 }
 0x196   :  { %v274_v40 = vadd.f32 %v265_v32, %v215_v39 }
 0x197   :  { %278 = vst [vmem:[%s432_s5 + $0x10] sm:$0xff] %v272_v38 }
 0x198   :  { %280 = vst [vmem:[%s432_s5 + $0x20] sm:$0xff] %v274_v40 }
 0x19b   :  { %v192_v41 = vpop.f32.mrf.mxu3 }
 0x19c   :  { %v273_v42 = vadd.f32 %v264_v31, %v192_v41  ;;  %v238_v43 = vpop.f32.mrf.mxu2 }
 0x19d   :  { %v275_v44 = vadd.f32 %v266_v21, %v238_v43 }
 0x19e   :  { %279 = vst [vmem:[%s432_s5 + $0x18] sm:$0xff] %v273_v42 }
 0x19f   :  { %281 = vst [vmem:[%s432_s5 + $0x28] sm:$0xff] %v275_v44 }
 0x1a0   :  { %286 = vsyncpa [#allocation5], 1 }

// kernel: transformer_decoder_layer.12
= control target key start
LH: loop header
LB: loop body
LE: loop exit
PB: predicated region body
PF: predicated region fallthrough
CT: control target
= control target key end

     0   :  { %10 = vsyncpa [#allocation5], 0  ;;  %s232_s21 = smov [#allocation4]   ;;  %s233_s23 = smov 128   ;;  %s300_s0 = inlined_call_operand.vmem [shape: f32[16,128], index: 0, kind: input, shape index: {}]   ;;  %s301_s1 = inlined_call_operand.vmem [shape: f32[1,128], index: 1, kind: input, shape index: {}]   ;;  %s302_s2 = inlined_call_operand.vmem [shape: f32[1,128], index: 2, kind: input, shape index: {}]   ;;  %s303_s3 = inlined_call_operand.hbm [shape: f32[128,128], index: 3, kind: input, shape index: {}]   ;;  %s304_s4 = inlined_call_operand.vmem [shape: f32[1,128], index: 4, kind: input, shape index: {}]   ;;  %s305_s5 = inlined_call_operand.vmem [shape: f32[16,128], index: 5, kind: output, shape index: {}]  }
   0x1   :  { %s21_s20 = sshll.u32 %s303_s3, 4  ;;  %s23_s22 = sshll.u32 %s232_s21, 4  ;;  %s22_s20 = int_to_ptr.hbm [resolvable:$true] %s21_s20  ;;  %s24_s22 = int_to_ptr.vmem [resolvable:$true] %s23_s22 }
   0x2   :  { %s234_s24 = smov 8  }
   0x3   :  { %29 = dma.hbm_to_vmem [thread:$0]  %s22_s20, 2048, %s24_s22, [#allocation5], %s233_s23, %s233_s23, %s234_s24  }
   0x4   :  { %230 = dma.done.wait [#allocation5], 2048  }
   0x5   :  { %231 = vsyncadd [#allocation5], 4294965248  ;;  %v42_v0 = vld [vmem:[%s300_s0] sm:$0xff]  ;;  %v43_v1 = vld [vmem:[%s300_s0 + $0x8] sm:$0xff]  ;;  %v235_v2 = vmov 128.0  }
   0x6   :  { %44 = vadd.xlane.f32.xlu0 %v42_v0  ;;  %200 = vrcp.f32 %v235_v2  ;;  %v131_v5 = vld [vmem:[#allocation4 + $0x78] sm:$0xff]  ;;  %v130_v6 = vld [vmem:[#allocation4 + $0x70] sm:$0xff]  ;;  %v129_v19 = vld [vmem:[#allocation4 + $0x68] sm:$0xff] }
   0x7   :  { %132 = vmatpush.msra.mxu0 %v131_v5  ;;  %177 = vmatpush.msra.mxu1 %v131_v5  ;;  %v128_v20 = vld [vmem:[#allocation4 + $0x60] sm:$0xff]  ;;  %v127_v21 = vld [vmem:[#allocation4 + $0x58] sm:$0xff]  ;;  %v126_v22 = vld [vmem:[#allocation4 + $0x50] sm:$0xff] }
   0x8   :  { %v125_v23 = vld [vmem:[#allocation4 + $0x48] sm:$0xff]  ;;  %v124_v24 = vld [vmem:[#allocation4 + $0x40] sm:$0xff]  ;;  %v123_v25 = vld [vmem:[#allocation4 + $0x38] sm:$0xff] }
   0x9   :  { %133 = vmatpush.msra.mxu0 %v130_v6  ;;  %178 = vmatpush.msra.mxu1 %v130_v6  ;;  %v122_v26 = vld [vmem:[#allocation4 + $0x30] sm:$0xff]  ;;  %v121_v27 = vld [vmem:[#allocation4 + $0x28] sm:$0xff]  ;;  %v120_v28 = vld [vmem:[#allocation4 + $0x20] sm:$0xff] }
   0xa   :  { %v119_v29 = vld [vmem:[#allocation4 + $0x18] sm:$0xff]  ;;  %v118_v30 = vld [vmem:[#allocation4 + $0x10] sm:$0xff]  ;;  %v117_v31 = vld [vmem:[#allocation4 + $0x8] sm:$0xff] }
   0xb   :  { %134 = vmatpush.msra.mxu0 %v129_v19  ;;  %179 = vmatpush.msra.mxu1 %v129_v19  ;;  %v116_v32 = vld [vmem:[#allocation4] sm:$0xff] }
   0xc   :  { %v201_v3 = vpop.eup %200  ;;  %v197_v47 = vld [vmem:[%s301_s1] ss:$0 sm:$0xff] }
   0xd   :  { %v49_v4 = vmul.f32 128.0, %v201_v3  ;;  %vm53_vm0 = vweird.f32 %v201_v3  ;;  %135 = vmatpush.msra.mxu0 %v128_v20  ;;  %180 = vmatpush.msra.mxu1 %v128_v20  ;;  %v198_v51 = vld [vmem:[%s302_s2] ss:$0 sm:$0xff] }
   0xe   :  { %46 = vadd.xlane.f32.xlu0 %v43_v1  ;;  %v199_v61 = vld [vmem:[%s304_s4] ss:$0 sm:$0xff] }
   0xf   :  { %v50_v7 = vsub.f32 1.0, %v49_v4  ;;  %136 = vmatpush.msra.mxu0 %v127_v21  ;;  %181 = vmatpush.msra.mxu1 %v127_v21 }
  0x11   :  { %v51_v8 = vmul.f32 %v201_v3, %v50_v7  ;;  %137 = vmatpush.msra.mxu0 %v126_v22  ;;  %182 = vmatpush.msra.mxu1 %v126_v22 }
  0x13   :  { %v52_v9 = vadd.f32 %v201_v3, %v51_v8  ;;  %138 = vmatpush.msra.mxu0 %v125_v23  ;;  %183 = vmatpush.msra.mxu1 %v125_v23 }
  0x15   :  { %v54_v10 = vsel %vm53_vm0, %v201_v3, %v52_v9  ;;  %139 = vmatpush.msra.mxu0 %v124_v24  ;;  %184 = vmatpush.msra.mxu1 %v124_v24 }
  0x17   :  { %140 = vmatpush.msra.mxu0 %v123_v25  ;;  %185 = vmatpush.msra.mxu1 %v123_v25 }
  0x19   :  { %141 = vmatpush.msra.mxu0 %v122_v26  ;;  %186 = vmatpush.msra.mxu1 %v122_v26 }
  0x1b   :  { %142 = vmatpush.msra.mxu0 %v121_v27  ;;  %187 = vmatpush.msra.mxu1 %v121_v27 }
  0x1d   :  { %143 = vmatpush.msra.mxu0 %v120_v28  ;;  %188 = vmatpush.msra.mxu1 %v120_v28 }
  0x1f   :  { %144 = vmatpush.msra.mxu0 %v119_v29  ;;  %189 = vmatpush.msra.mxu1 %v119_v29 }
  0x21   :  { %145 = vmatpush.msra.mxu0 %v118_v30  ;;  %190 = vmatpush.msra.mxu1 %v118_v30 }
  0x23   :  { %146 = vmatpush.msra.mxu0 %v117_v31  ;;  %191 = vmatpush.msra.mxu1 %v117_v31 }
  0x25   :  { %147 = vmatpush.msra.mxu0 %v116_v32  ;;  %192 = vmatpush.msra.mxu1 %v116_v32 }
  0x79   :  { %v45_v11 = vpop.xlane.xlu0 %44 }
  0x7a   :  { %v55_v12 = vmul.f32 %v54_v10, %v45_v11 }
  0x7c   :  { %v275_v13 = vsub.f32 %v42_v0, %v55_v12 }
  0x7e   :  { %v59_v14 = vmul.f32 %v275_v13, %v275_v13 }
  0x80   :  { %61 = vadd.xlane.f32.xlu1 %v59_v14 }
  0x81   :  { %v47_v15 = vpop.xlane.xlu0 %46 }
  0x82   :  { %v56_v16 = vmul.f32 %v54_v10, %v47_v15 }
  0x84   :  { %v279_v17 = vsub.f32 %v43_v1, %v56_v16 }
  0x86   :  { %v60_v18 = vmul.f32 %v279_v17, %v279_v17 }
  0x88   :  { %63 = vadd.xlane.f32.xlu1 %v60_v18 }
  0xf3   :  { %v62_v33 = vpop.xlane.xlu1 %61 }
  0xf4   :  { %v65_v34 = vmul.f32 %v62_v33, %v54_v10 }
  0xf6   :  { %v67_v35 = vadd.f32 1e-05, %v65_v34 }
  0xf8   :  { %202 = vrsqrt.f32 %v67_v35  ;;  %vm75_vm2 = vweird.f32 %v67_v35 }
  0xfb   :  { %v64_v36 = vpop.xlane.xlu1 %63 }
  0xfc   :  { %v66_v37 = vmul.f32 %v64_v36, %v54_v10 }
  0xfe   :  { %v203_v38 = vpop.eup %202  ;;  %v68_v39 = vadd.f32 1e-05, %v66_v37 }
  0xff   :  { %v70_v40 = vmul.f32 %v203_v38, %v67_v35  ;;  %vm76_vm1 = vweird.f32 %v203_v38 }
 0x100   :  { %204 = vrsqrt.f32 %v68_v39  ;;  %vm77_vm3 = vmor %vm75_vm2, %vm76_vm1  ;;  %vm85_vm5 = vweird.f32 %v68_v39 }
 0x101   :  { %v71_v41 = vmul.f32 %v203_v38, %v70_v40 }
 0x103   :  { %v72_v42 = vmul.f32 0.5, %v71_v41 }
 0x105   :  { %v73_v43 = vsub.f32 1.5, %v72_v42 }
 0x106   :  { %v205_v44 = vpop.eup %204 }
 0x107   :  { %v74_v45 = vmul.f32 %v203_v38, %v73_v43  ;;  %v80_v46 = vmul.f32 %v205_v44, %v68_v39  ;;  %vm86_vm4 = vweird.f32 %v205_v44 }
 0x108   :  { %vm87_vm6 = vmor %vm85_vm5, %vm86_vm4 }
 0x109   :  { %v81_v48 = vmul.f32 %v205_v44, %v80_v46  ;;  %v78_v49 = vsel %vm77_vm3, %v203_v38, %v74_v45 }
 0x10a   :  { %v89_v50 = vmul.f32 %v78_v49, %v275_v13 }
 0x10b   :  { %v82_v52 = vmul.f32 0.5, %v81_v48 }
 0x10c   :  { %v95_v53 = vmul.f32 %v197_v47, %v89_v50 }
 0x10d   :  { %v83_v54 = vsub.f32 1.5, %v82_v52 }
 0x10e   :  { %v101_v55 = vadd.f32 %v198_v51, %v95_v53 }
 0x10f   :  { %v84_v56 = vmul.f32 %v205_v44, %v83_v54 }
 0x110   :  { %148 = vmatmul.f32.vlgmr.msra.gmra.mxu0 %v101_v55 }
 0x111   :  { %v88_v57 = vsel %vm87_vm6, %v205_v44, %v84_v56 }
 0x112   :  { %v90_v58 = vmul.f32 %v88_v57, %v279_v17 }
 0x114   :  { %v96_v59 = vmul.f32 %v197_v47, %v90_v58 }
 0x116   :  { %v102_v60 = vadd.f32 %v198_v51, %v96_v59 }
 0x118   :  { %151 = vmatmul.f32.vlgmr.msra.gmra.mxu1 %v102_v60 }
 0x18d   :  { %v149_v62 = vpop.f32.mrf.mxu0 }
 0x18e   :  { %v168_v63 = vadd.f32 %v199_v61, %v149_v62 }
 0x190   :  { %170 = vst [vmem:[%s305_s5] sm:$0xff] %v168_v63 }
 0x195   :  { %v152_v0 = vpop.f32.mrf.mxu1 }
 0x196   :  { %v169_v1 = vadd.f32 %v199_v61, %v152_v0 }
 0x198   :  { %171 = vst [vmem:[%s305_s5 + $0x8] sm:$0xff] %v169_v1 }
 0x199   :  { %176 = vsyncpa [#allocation5], 1 }

// kernel: transformer_decoder_layer.13
= control target key start
LH: loop header
LB: loop body
LE: loop exit
PB: predicated region body
PF: predicated region fallthrough
CT: control target
= control target key end

     0   :  { %8 = vsyncpa [#allocation4], 0  ;;  %s259_s15 = smov [#allocation3]   ;;  %s260_s17 = smov 256   ;;  %s324_s0 = inlined_call_operand.vmem [shape: f32[32,128], index: 0, kind: input, shape index: {}]   ;;  %s325_s1 = inlined_call_operand.hbm [shape: f32[128,256], index: 1, kind: input, shape index: {}]   ;;  %s326_s2 = inlined_call_operand.vmem [shape: f32[1,256], index: 2, kind: input, shape index: {}]   ;;  %s327_s3 = inlined_call_operand.vmem [shape: f32[32,256], index: 3, kind: output, shape index: {}]  }
   0x1   :  { %s15_s14 = sshll.u32 %s325_s1, 4  ;;  %s17_s16 = sshll.u32 %s259_s15, 4  ;;  %s16_s14 = int_to_ptr.hbm [resolvable:$true] %s15_s14  ;;  %s18_s16 = int_to_ptr.vmem [resolvable:$true] %s17_s16 }
   0x2   :  { %s261_s18 = smov 16  }
   0x3   :  { %23 = dma.hbm_to_vmem [thread:$0]  %s16_s14, 4096, %s18_s16, [#allocation4], %s260_s17, %s260_s17, %s261_s18  }
   0x4   :  { %257 = dma.done.wait [#allocation4], 4096  }
   0x5   :  { %258 = vsyncadd [#allocation4], 4294963200  ;;  %v84_v0 = vld [vmem:[#allocation3 + $0xf0] sm:$0xff]  ;;  %v85_v1 = vld [vmem:[#allocation3 + $0xf8] sm:$0xff] }
   0x6   :  { %v82_v2 = vld [vmem:[#allocation3 + $0xe0] sm:$0xff]  ;;  %198 = vmatpush.msra.mxu2 %v84_v0  ;;  %214 = vmatpush.msra.mxu3 %v85_v1  ;;  %v83_v3 = vld [vmem:[#allocation3 + $0xe8] sm:$0xff]  ;;  %v80_v4 = vld [vmem:[#allocation3 + $0xd0] sm:$0xff] }
   0x7   :  { %v81_v5 = vld [vmem:[#allocation3 + $0xd8] sm:$0xff]  ;;  %86 = vmatpush.msra.mxu0 %v84_v0  ;;  %115 = vmatpush.msra.mxu1 %v85_v1  ;;  %v78_v6 = vld [vmem:[#allocation3 + $0xc0] sm:$0xff]  ;;  %v79_v7 = vld [vmem:[#allocation3 + $0xc8] sm:$0xff] }
   0x8   :  { %199 = vmatpush.msra.mxu2 %v82_v2  ;;  %215 = vmatpush.msra.mxu3 %v83_v3  ;;  %v76_v8 = vld [vmem:[#allocation3 + $0xb0] sm:$0xff]  ;;  %v77_v9 = vld [vmem:[#allocation3 + $0xb8] sm:$0xff]  ;;  %v74_v10 = vld [vmem:[#allocation3 + $0xa0] sm:$0xff] }
   0x9   :  { %87 = vmatpush.msra.mxu0 %v82_v2  ;;  %116 = vmatpush.msra.mxu1 %v83_v3  ;;  %v75_v11 = vld [vmem:[#allocation3 + $0xa8] sm:$0xff]  ;;  %v72_v12 = vld [vmem:[#allocation3 + $0x90] sm:$0xff]  ;;  %v73_v13 = vld [vmem:[#allocation3 + $0x98] sm:$0xff] }
   0xa   :  { %200 = vmatpush.msra.mxu2 %v80_v4  ;;  %216 = vmatpush.msra.mxu3 %v81_v5  ;;  %v70_v14 = vld [vmem:[#allocation3 + $0x80] sm:$0xff]  ;;  %v71_v15 = vld [vmem:[#allocation3 + $0x88] sm:$0xff]  ;;  %v68_v16 = vld [vmem:[#allocation3 + $0x70] sm:$0xff] }
   0xb   :  { %88 = vmatpush.msra.mxu0 %v80_v4  ;;  %117 = vmatpush.msra.mxu1 %v81_v5  ;;  %v69_v17 = vld [vmem:[#allocation3 + $0x78] sm:$0xff]  ;;  %v66_v18 = vld [vmem:[#allocation3 + $0x60] sm:$0xff]  ;;  %v67_v19 = vld [vmem:[#allocation3 + $0x68] sm:$0xff] }
   0xc   :  { %201 = vmatpush.msra.mxu2 %v78_v6  ;;  %217 = vmatpush.msra.mxu3 %v79_v7  ;;  %v64_v20 = vld [vmem:[#allocation3 + $0x50] sm:$0xff]  ;;  %v65_v21 = vld [vmem:[#allocation3 + $0x58] sm:$0xff]  ;;  %v62_v22 = vld [vmem:[#allocation3 + $0x40] sm:$0xff] }
   0xd   :  { %89 = vmatpush.msra.mxu0 %v78_v6  ;;  %118 = vmatpush.msra.mxu1 %v79_v7  ;;  %v63_v23 = vld [vmem:[#allocation3 + $0x48] sm:$0xff]  ;;  %v60_v24 = vld [vmem:[#allocation3 + $0x30] sm:$0xff]  ;;  %v61_v25 = vld [vmem:[#allocation3 + $0x38] sm:$0xff] }
   0xe   :  { %202 = vmatpush.msra.mxu2 %v76_v8  ;;  %218 = vmatpush.msra.mxu3 %v77_v9  ;;  %v58_v26 = vld [vmem:[#allocation3 + $0x20] sm:$0xff]  ;;  %v59_v27 = vld [vmem:[#allocation3 + $0x28] sm:$0xff]  ;;  %v56_v28 = vld [vmem:[#allocation3 + $0x10] sm:$0xff] }
   0xf   :  { %90 = vmatpush.msra.mxu0 %v76_v8  ;;  %119 = vmatpush.msra.mxu1 %v77_v9  ;;  %v57_v29 = vld [vmem:[#allocation3 + $0x18] sm:$0xff]  ;;  %v54_v30 = vld [vmem:[#allocation3] sm:$0xff]  ;;  %v55_v31 = vld [vmem:[#allocation3 + $0x8] sm:$0xff] }
  0x10   :  { %203 = vmatpush.msra.mxu2 %v74_v10  ;;  %219 = vmatpush.msra.mxu3 %v75_v11  ;;  %v52_v32 = vld [vmem:[%s324_s0 + $0x10] sm:$0xff]  ;;  %v50_v33 = vld [vmem:[%s324_s0] sm:$0xff]  ;;  %v53_v34 = vld [vmem:[%s324_s0 + $0x18] sm:$0xff] }
  0x11   :  { %91 = vmatpush.msra.mxu0 %v74_v10  ;;  %120 = vmatpush.msra.mxu1 %v75_v11  ;;  %v51_v35 = vld [vmem:[%s324_s0 + $0x8] sm:$0xff]  ;;  %v171_v36 = vld [vmem:[%s326_s2] sm:$0x3] }
  0x12   :  { %204 = vmatpush.msra.mxu2 %v72_v12  ;;  %220 = vmatpush.msra.mxu3 %v73_v13  ;;  %v173_v37 = vperm.slane %v171_v36, 0  ;;  %v174_v38 = vperm.slane %v171_v36, 1 }
  0x13   :  { %92 = vmatpush.msra.mxu0 %v72_v12  ;;  %121 = vmatpush.msra.mxu1 %v73_v13 }
  0x14   :  { %205 = vmatpush.msra.mxu2 %v70_v14  ;;  %221 = vmatpush.msra.mxu3 %v71_v15 }
  0x15   :  { %93 = vmatpush.msra.mxu0 %v70_v14  ;;  %122 = vmatpush.msra.mxu1 %v71_v15 }
  0x16   :  { %206 = vmatpush.msra.mxu2 %v68_v16  ;;  %222 = vmatpush.msra.mxu3 %v69_v17 }
  0x17   :  { %94 = vmatpush.msra.mxu0 %v68_v16  ;;  %123 = vmatpush.msra.mxu1 %v69_v17 }
  0x18   :  { %207 = vmatpush.msra.mxu2 %v66_v18  ;;  %223 = vmatpush.msra.mxu3 %v67_v19 }
  0x19   :  { %95 = vmatpush.msra.mxu0 %v66_v18  ;;  %124 = vmatpush.msra.mxu1 %v67_v19 }
  0x1a   :  { %208 = vmatpush.msra.mxu2 %v64_v20  ;;  %224 = vmatpush.msra.mxu3 %v65_v21 }
  0x1b   :  { %96 = vmatpush.msra.mxu0 %v64_v20  ;;  %125 = vmatpush.msra.mxu1 %v65_v21 }
  0x1c   :  { %209 = vmatpush.msra.mxu2 %v62_v22  ;;  %225 = vmatpush.msra.mxu3 %v63_v23 }
  0x1d   :  { %97 = vmatpush.msra.mxu0 %v62_v22  ;;  %126 = vmatpush.msra.mxu1 %v63_v23 }
  0x1e   :  { %210 = vmatpush.msra.mxu2 %v60_v24  ;;  %226 = vmatpush.msra.mxu3 %v61_v25 }
  0x1f   :  { %98 = vmatpush.msra.mxu0 %v60_v24  ;;  %127 = vmatpush.msra.mxu1 %v61_v25 }
  0x20   :  { %211 = vmatpush.msra.mxu2 %v58_v26  ;;  %227 = vmatpush.msra.mxu3 %v59_v27 }
  0x21   :  { %99 = vmatpush.msra.mxu0 %v58_v26  ;;  %128 = vmatpush.msra.mxu1 %v59_v27 }
  0x22   :  { %212 = vmatpush.msra.mxu2 %v56_v28  ;;  %228 = vmatpush.msra.mxu3 %v57_v29 }
  0x23   :  { %100 = vmatpush.msra.mxu0 %v56_v28  ;;  %129 = vmatpush.msra.mxu1 %v57_v29 }
  0x24   :  { %213 = vmatpush.msra.mxu2 %v54_v30  ;;  %229 = vmatpush.msra.mxu3 %v55_v31 }
  0x25   :  { %108 = vmatmul.f32.vlgmr.msra.gmra.mxu2 %v52_v32  ;;  %137 = vmatmul.f32.vlgmr.msra.gmra.mxu3 %v52_v32 }
  0x26   :  { %101 = vmatpush.msra.mxu0 %v54_v30  ;;  %130 = vmatpush.msra.mxu1 %v55_v31 }
  0x27   :  { %102 = vmatmul.f32.vlgmr.msra.gmra.mxu0 %v50_v33  ;;  %131 = vmatmul.f32.vlgmr.msra.gmra.mxu1 %v50_v33 }
  0x2d   :  { %111 = vmatmul.f32.gmra.mxu2 %v53_v34  ;;  %140 = vmatmul.f32.gmra.mxu3 %v53_v34 }
  0x2f   :  { %105 = vmatmul.f32.gmra.mxu0 %v51_v35  ;;  %134 = vmatmul.f32.gmra.mxu1 %v51_v35 }
  0xa4   :  { %v103_v39 = vpop.f32.mrf.mxu0  ;;  %v132_v40 = vpop.f32.mrf.mxu1 }
  0xa5   :  { %v177_v41 = vadd.f32 %v173_v37, %v103_v39  ;;  %v178_v42 = vadd.f32 %v174_v38, %v132_v40 }
  0xa7   :  { %185 = vst [vmem:[%s327_s3] sm:$0xff] %v177_v41 }
  0xa8   :  { %v109_v43 = vpop.f32.mrf.mxu2  ;;  %186 = vst [vmem:[%s327_s3 + $0x8] sm:$0xff] %v178_v42  ;;  %v138_v44 = vpop.f32.mrf.mxu3 }
  0xa9   :  { %v181_v45 = vadd.f32 %v173_v37, %v109_v43  ;;  %v182_v46 = vadd.f32 %v174_v38, %v138_v44 }
  0xab   :  { %189 = vst [vmem:[%s327_s3 + $0x20] sm:$0xff] %v181_v45 }
  0xac   :  { %190 = vst [vmem:[%s327_s3 + $0x28] sm:$0xff] %v182_v46  ;;  %v106_v47 = vpop.f32.mrf.mxu0  ;;  %v135_v48 = vpop.f32.mrf.mxu1 }
  0xad   :  { %v179_v49 = vadd.f32 %v173_v37, %v106_v47  ;;  %v180_v50 = vadd.f32 %v174_v38, %v135_v48 }
  0xaf   :  { %187 = vst [vmem:[%s327_s3 + $0x10] sm:$0xff] %v179_v49 }
  0xb0   :  { %v112_v51 = vpop.f32.mrf.mxu2  ;;  %188 = vst [vmem:[%s327_s3 + $0x18] sm:$0xff] %v180_v50  ;;  %v141_v52 = vpop.f32.mrf.mxu3 }
  0xb1   :  { %v183_v53 = vadd.f32 %v173_v37, %v112_v51  ;;  %v184_v54 = vadd.f32 %v174_v38, %v141_v52 }
  0xb3   :  { %191 = vst [vmem:[%s327_s3 + $0x30] sm:$0xff] %v183_v53 }
  0xb4   :  { %192 = vst [vmem:[%s327_s3 + $0x38] sm:$0xff] %v184_v54 }
  0xb5   :  { %197 = vsyncpa [#allocation4], 1 }

// kernel: transformer_decoder_layer.10
= control target key start
LH: loop header
LB: loop body
LE: loop exit
PB: predicated region body
PF: predicated region fallthrough
CT: control target
= control target key end

     0   :  { %s3407_s12 = smov 0   ;;  %s3409_s13 = smov 0   ;;  %s4218_s0 = inlined_call_operand.vmem [shape: f32[2,8,384], index: 0, kind: input, shape index: {}, may-alias: {0,1,2}]   ;;  %s4219_s1 = inlined_call_operand.vmem [shape: f32[2,8,384], index: 1, kind: input, shape index: {}, may-alias: {0,1,2}]   ;;  %s4220_s2 = inlined_call_operand.vmem [shape: f32[2,8,384], index: 2, kind: input, shape index: {}, may-alias: {0,1,2}]   ;;  %s4221_s3 = inlined_call_operand.vmem [shape: f32[2,8,128], index: 3, kind: output, shape index: {}]  }
   0x1   :  { %s3411_s14 = smov 0  }
   0x2 LB: > { %s32_s15 = sadd.s32 1, %s3373_s13  ;;  %p3078_p0 = scmp.ge.s32.totalorder %s3377_s14, 1  ;;  %s3377_s14 = sphi %s3411_s14, %s13_s14   ;;  %s3373_s13 = sphi %s3409_s13, %s4244_s13   ;;  %s3369_s12 = sphi %s3407_s12, %s4243_s12  }
   0x3   : > { %p34_p1 = scmp.ge.s32.totalorder %s32_s15, 2  ;;  %p198_p2 = scmp.lt.s32.totalorder %s3377_s14, 3 }
   0x5   : > { %s4246_s15 = smov (%p34_p1, %s32_s15), 0  ;;  %p199_p3 = pnand %p3078_p0, %p198_p2 }
   0x7   : > { %202 = sbr.rel (%p199_p3) target bundleno = 1364 (0x554), region = 32 }
   0xc   : > { %p248_p4 = scmp.lt.s32.totalorder %s3369_s12, 1  ;;  %s3379_s23 = smov 96   ;;  %v3382_v2 = vmov 1983009808   ;;  %vm314_vm0 = vcmask 1047556   ;;  %vm297_vm1 = vcmask 261120  }
   0xd   : > { %s3380_s24 = smov 64   ;;  %s3381_s25 = smov 32   ;;  %v319_v3 = vunpack.c.l.s4 %v3382_v2  ;;  %v3383_v14 = vmov 1934713408   ;;  %vm2607_vm2 = vcmask 64512   ;;  %vm288_vm3 = vcmask 7168  }
   0xe   : > { %s4248_s12 = smov (!%p248_p4, %s3369_s12), 1  ;;  %v343_v15 = vunpack.c.l.s4 %v3383_v14  ;;  %vm2938_vm4 = vcmask 523264   ;;  %vm2940_vm5 = vcmask 785408  }
   0xf   : > { %s3428_s16 = smul.u32 24, %s4248_s12  ;;  %v3449_v6 = vunpack.c.0.s8 %v319_v3  ;;  %s3082_s29 = sshll.u32 %s4248_s12, 3 }
  0x10   : > { %v3458_v23 = vunpack.c.0.s8 %v343_v15  ;;  %s283_s5 = scalar_lea.vmem %s4221_s3, %s3082_s29 }
  0x11   : > { %s3014_s19 = scalar_lea.vmem %s4219_s1, %s3428_s16  ;;  %s256_s22 = scalar_lea.vmem %s4218_s0, %s3428_s16 }
  0x12   : > { %v3083_v0 = vld [vmem:[%s3014_s19 + $0x8] sm:$0xff]  ;;  %v3440_v1 = vld [vmem:[%s256_s22] sm:$0xff]  ;;  %s3020_s28 = scalar_lea.vmem %s4220_s2, %s3428_s16 }
  0x13   : > { %372 = vrot.lane.b32.xlu0 %v3083_v0, %s3379_s23  ;;  %375 = vrot.lane.b32.xlu1 %v3083_v0, %s3380_s24  ;;  %4228 = vst [vmem:[#allocation5_spill] sm:$0xff] %v3440_v1  ;;  %v383_v4 = vrot.slane %v3083_v0, 4 }
  0x14   : > { %307 = vrot.lane.b32.xlu2 %v3440_v1, %s3380_s24 }
  0x1b   : > { %378 = vrot.lane.b32.xlu0 %v3083_v0, %s3381_s25  ;;  %310 = vrot.lane.b32.xlu1 %v3440_v1, %s3381_s25 }
  0x23   : > { %304 = vrot.lane.b32.xlu0 %v3440_v1, %s3379_s23 }
  0x6e   : > { %v3473_v47 = vpop.permute.xlu2 %307 }
  0x6f   : > { %4229 = vst [vmem:[#allocation6_spill] sm:$0xff] %v3473_v47 }
  0x85   : > { %v373_v5 = vpop.permute.xlu0 %372  ;;  %v376_v7 = vpop.permute.xlu1 %375 }
  0x86   : > { %v381_v8 = vrot.slane %v376_v7, 4  ;;  %v384_v9 = vsel %vm314_vm0, %v376_v7, %v383_v4  ;;  %v395_v13 = vrot.slane %v373_v5, 4 }
  0x87   : > { %v392_v11 = vperm.slane %v384_v9, %v3449_v6 }
  0x88   : > { %v382_v10 = vsel %vm314_vm0, %v381_v8, %v3083_v0 }
  0x89   : > { %v388_v12 = vperm.slane %v382_v10, %v3449_v6  ;;  %v419_v16 = vrot.slane %v392_v11, 4 }
  0x8b   : > { %v407_v20 = vrot.slane %v388_v12, 4 }
  0x8d   : > { %v379_v17 = vpop.permute.xlu0 %378  ;;  %v3475_v48 = vpop.permute.xlu1 %310 }
  0x8e   : > { %v393_v18 = vrot.slane %v379_v17, 4  ;;  %v396_v19 = vsel %vm314_vm0, %v379_v17, %v395_v13  ;;  %4230 = vst [vmem:[#allocation7_spill] sm:$0xff] %v3475_v48 }
  0x8f   : > { %v404_v21 = vperm.slane %v396_v19, %v3449_v6 }
  0x90   : > { %v394_v22 = vsel %vm314_vm0, %v393_v18, %v373_v5 }
  0x91   : > { %v400_v24 = vperm.slane %v394_v22, %v3449_v6  ;;  %v417_v25 = vrot.slane %v404_v21, 4  ;;  %v420_v26 = vsel %vm314_vm0, %v404_v21, %v419_v16 }
  0x92   : > { %v428_v31 = vperm.slane %v420_v26, %v3458_v23 }
  0x93   : > { %v418_v27 = vsel %vm314_vm0, %v417_v25, %v392_v11  ;;  %v405_v28 = vrot.slane %v400_v24, 4  ;;  %v408_v29 = vsel %vm314_vm0, %v400_v24, %v407_v20 }
  0x94   : > { %v424_v30 = vperm.slane %v418_v27, %v3458_v23  ;;  %v416_v32 = vperm.slane %v408_v29, %v3458_v23  ;;  %v435_v44 = vrot.slane %v428_v31, 4 }
  0x95   : > { %v406_v33 = vsel %vm314_vm0, %v405_v28, %v388_v12  ;;  %v3479_v50 = vpop.permute.xlu0 %304 }
  0x96   : > { %v3194_v34 = vpack.i.bf16 %v428_v31, %v424_v30  ;;  %v412_v35 = vperm.slane %v406_v33, %v3458_v23  ;;  %v433_v36 = vrot.slane %v424_v30, 4  ;;  %v431_v37 = vrot.slane %v416_v32, 4  ;;  %4231 = vst [vmem:[#allocation8_spill] sm:$0xff] %v3479_v50 }
  0x97   : > { %v436_v45 = vsel %vm314_vm0, 0.0, %v435_v44 }
  0x98   : > { %3195 = vxpose.xlu1.b32.start.end [1/1] (short) (narrow) %v3194_v34, 32  ;;  %v434_v38 = vsel %vm314_vm0, 0.0, %v433_v36  ;;  %v429_v39 = vrot.slane %v412_v35, 4  ;;  %v432_v42 = vsel %vm314_vm0, 0.0, %v431_v37  ;;  %v3150_v46 = vpack.i.bf16 %v436_v45, %v416_v32 }
  0x99   : > { %v3128_v40 = vpack.i.bf16 %v434_v38, %v412_v35 }
  0x9a   : > { %v430_v41 = vsel %vm314_vm0, 0.0, %v429_v39 }
  0x9b   : > { %3129 = vxpose.xlu2.b32.start.end [1/1] (short) (narrow) %v3128_v40, 32  ;;  %v3172_v43 = vpack.i.bf16 %v432_v42, %v430_v41 }
  0x9d   : > { %3173 = vxpose.xlu0.b32.start.end [1/1] (short) (narrow) %v3172_v43, 32 }
  0xbb   : > { %3151 = vxpose.xlu2.b32.start.end [1/1] (short) (narrow) %v3150_v46, 32 }
 0x134   : > { %v3477_v49 = vpop.trf.xlu2 }
 0x135   : > { %v3134_v57 = vunpack.i.h.bf16 %v3477_v49  ;;  %v3131_v60 = vunpack.i.l.bf16 %v3477_v49 }
 0x137   : > { %v3492_v7 = vrot.slane %v3134_v57, 4  ;;  %v816_v8 = vrot.slane %v3131_v60, 4 }
 0x13c   : > { %v3481_v51 = vpop.trf.xlu2  ;;  %v3196_v52 = vpop.trf.xlu1 }
 0x13d   : > { %v3197_v53 = vunpack.i.l.bf16 %v3196_v52  ;;  %v3200_v54 = vunpack.i.h.bf16 %v3196_v52  ;;  %v4222_v3 = vunpack.i.h.bf16 %v3481_v51  ;;  %v3136_v4 = vunpack.i.l.bf16 %v3481_v51 }
 0x13f   : > { %v840_v56 = vrot.slane %v3197_v53, 4  ;;  %v838_v61 = vrot.slane %v3200_v54, 4  ;;  %v3503_v18 = vrot.slane %v4222_v3, 4  ;;  %v3507_v19 = vrot.slane %v3136_v4, 4 }
 0x141   : > { %v3174_v55 = vpop.trf.xlu0  ;;  %v841_v62 = vsel %vm314_vm0, %v3200_v54, %v840_v56  ;;  %v839_v9 = vsel %vm314_vm0, %v838_v61, %v3197_v53 }
 0x142   : > { %v3178_v63 = vunpack.i.h.bf16 %v3174_v55  ;;  %v3175_v0 = vunpack.i.l.bf16 %v3174_v55  ;;  %v3498_v10 = vperm.slane %v841_v62, %v3449_v6  ;;  %v3513_v26 = vperm.slane %v839_v9, %v3449_v6 }
 0x144   : > { %v3484_v58 = vpop.trf.xlu2  ;;  %v3201_v59 = vpop.trf.xlu1  ;;  %v826_v13 = vrot.slane %v3178_v63, 4  ;;  %v828_v15 = vrot.slane %v3175_v0, 4  ;;  %v900_v27 = vrot.slane %v3498_v10, 4 }
 0x145   : > { %v3205_v2 = vunpack.i.h.bf16 %v3201_v59  ;;  %v3202_v5 = vunpack.i.l.bf16 %v3201_v59  ;;  %v3144_v12 = vunpack.i.h.bf16 %v3484_v58  ;;  %v3141_v25 = vunpack.i.l.bf16 %v3484_v58 }
 0x146   : > { %v827_v28 = vsel %vm314_vm0, %v826_v13, %v3175_v0  ;;  %v829_v32 = vsel %vm314_vm0, %v3178_v63, %v828_v15 }
 0x147   : > { %v950_v16 = vrot.slane %v3205_v2, 4  ;;  %v952_v21 = vrot.slane %v3202_v5, 4  ;;  %v3519_v31 = vrot.slane %v3144_v12, 4  ;;  %v3543_v63 = vrot.slane %v3141_v25, 4 }
 0x148   : > { %v3546_v0 = vperm.slane %v827_v28, %v3449_v6 }
 0x149   : > { %v3179_v11 = vpop.trf.xlu0  ;;  %v951_v33 = vsel %vm314_vm0, %v950_v16, %v3202_v5  ;;  %v953_v34 = vsel %vm314_vm0, %v3205_v2, %v952_v21  ;;  %v3549_v2 = vperm.slane %v829_v32, %v3449_v6 }
 0x14a   : > { %v3183_v14 = vunpack.i.h.bf16 %v3179_v11  ;;  %v3180_v17 = vunpack.i.l.bf16 %v3179_v11  ;;  %v3529_v44 = vperm.slane %v953_v34, %v3449_v6  ;;  %v3552_v5 = vperm.slane %v951_v33, %v3449_v6 }
 0x14c   : > { %v3509_v20 = vpop.trf.xlu2  ;;  %v938_v22 = vrot.slane %v3183_v14, 4  ;;  %v3206_v24 = vpop.trf.xlu1  ;;  %v940_v29 = vrot.slane %v3180_v17, 4 }
 0x14d   : > { %v3210_v30 = vunpack.i.h.bf16 %v3206_v24  ;;  %v3149_v37 = vunpack.i.h.bf16 %v3509_v20  ;;  %v3146_v38 = vunpack.i.l.bf16 %v3509_v20  ;;  %v3207_v40 = vunpack.i.l.bf16 %v3206_v24 }
 0x14e   : > { %v939_v35 = vsel %vm314_vm0, %v938_v22, %v3180_v17  ;;  %v941_v39 = vsel %vm314_vm0, %v3183_v14, %v940_v29 }
 0x14f   : > { %v1062_v36 = vrot.slane %v3210_v30, 4  ;;  %v3532_v45 = vperm.slane %v939_v35, %v3449_v6  ;;  %v1064_v52 = vrot.slane %v3207_v40, 4  ;;  %v3536_v54 = vperm.slane %v941_v39, %v3449_v6 }
 0x150   : > { %v3556_v11 = vrot.slane %v3149_v37, 4  ;;  %v3560_v13 = vrot.slane %v3146_v38, 4 }
 0x151   : > { %v3184_v41 = vpop.trf.xlu0  ;;  %v1063_v46 = vsel %vm314_vm0, %v1062_v36, %v3207_v40  ;;  %v1065_v15 = vsel %vm314_vm0, %v3210_v30, %v1064_v52  ;;  %v986_v22 = vrot.slane %v3536_v54, 4 }
 0x152   : > { %v3188_v42 = vunpack.i.h.bf16 %v3184_v41  ;;  %v3185_v43 = vunpack.i.l.bf16 %v3184_v41  ;;  %v3539_v55 = vperm.slane %v1063_v46, %v3449_v6  ;;  %v3576_v35 = vperm.slane %v1065_v15, %v3449_v6 }
 0x154   : > { %v3152_v53 = vpop.trf.xlu2  ;;  %v1050_v56 = vrot.slane %v3188_v42, 4  ;;  %v1052_v59 = vrot.slane %v3185_v43, 4  ;;  %v3211_v9 = vpop.trf.xlu1  ;;  %v1112_v21 = vrot.slane %v3539_v55, 4 }
 0x155   : > { %v3156_v61 = vunpack.i.h.bf16 %v3152_v53  ;;  %v3153_v62 = vunpack.i.l.bf16 %v3152_v53  ;;  %v3215_v32 = vunpack.i.h.bf16 %v3211_v9  ;;  %v3212_v39 = vunpack.i.l.bf16 %v3211_v9 }
 0x156   : > { %v1051_v28 = vsel %vm314_vm0, %v1050_v56, %v3185_v43  ;;  %v1053_v29 = vsel %vm314_vm0, %v3188_v42, %v1052_v59 }
 0x157   : > { %v817_v14 = vsel %vm314_vm0, %v3153_v62, %v816_v8  ;;  %v850_v24 = vrot.slane %v3156_v61, 4  ;;  %v814_v34 = vrot.slane %v3153_v62, 4  ;;  %v853_v30 = vsel %vm314_vm0, %v3156_v61, %v3492_v7 }
 0x158   : > { %v3571_v8 = vperm.slane %v817_v14, %v3449_v6  ;;  %v1174_v36 = vrot.slane %v3215_v32, 4  ;;  %v1176_v56 = vrot.slane %v3212_v39, 4  ;;  %v3587_v14 = vperm.slane %v853_v30, %v3449_v6 }
 0x159   : > { %v3189_v33 = vpop.trf.xlu0  ;;  %v815_v42 = vsel %vm314_vm0, %v814_v34, %v3131_v60  ;;  %v3608_v30 = vperm.slane %v1053_v29, %v3449_v6 }
 0x15a   : > { %v3193_v41 = vunpack.i.h.bf16 %v3189_v33  ;;  %v3190_v46 = vunpack.i.l.bf16 %v3189_v33  ;;  %v1175_v53 = vsel %vm314_vm0, %v1174_v36, %v3212_v39  ;;  %v1177_v60 = vsel %vm314_vm0, %v3215_v32, %v1176_v56 }
 0x15b   : > { %v3594_v33 = vperm.slane %v1175_v53, %v3449_v6  ;;  %v3597_v34 = vperm.slane %v815_v42, %v3449_v6  ;;  %v1124_v32 = vrot.slane %v3576_v35, 4  ;;  %v3615_v39 = vperm.slane %v1177_v60, %v3449_v6 }
 0x15c   : > { %v3157_v40 = vpop.trf.xlu2  ;;  %v1164_v59 = vrot.slane %v3190_v46, 4  ;;  %v1162_v9 = vrot.slane %v3193_v41, 4  ;;  %v876_v53 = vrot.slane %v3571_v8, 4 }
 0x15d   : > { %v3161_v43 = vunpack.i.h.bf16 %v3157_v40  ;;  %v3158_v52 = vunpack.i.l.bf16 %v3157_v40 }
 0x15e   : > { %v1165_v40 = vsel %vm314_vm0, %v3193_v41, %v1164_v59  ;;  %v901_v41 = vsel %vm314_vm0, %v3587_v14, %v900_v27 }
 0x15f   : > { %v926_v62 = vrot.slane %v3158_v52, 4  ;;  %v929_v7 = vsel %vm314_vm0, %v3158_v52, %v3507_v19  ;;  %v965_v61 = vsel %vm314_vm0, %v3161_v43, %v3503_v18  ;;  %v3602_v19 = vsel %vm314_vm0, %v850_v24, %v3134_v57 }
 0x160   : > { %v3590_v15 = vperm.slane %v965_v61, %v3449_v6  ;;  %v3605_v18 = vperm.slane %v1051_v28, %v3449_v6  ;;  %v3611_v36 = vperm.slane %v929_v7, %v3449_v6  ;;  %v3618_v49 = vrot.slane %v3161_v43, 4 }
 0x161   : > { %v3623_v57 = vsel %vm314_vm0, %v926_v62, %v3136_v4  ;;  %v1163_v28 = vsel %vm314_vm0, %v1162_v9, %v3190_v46  ;;  %v1173_v42 = vperm.slane %v1165_v40, %v3449_v6  ;;  %v1236_v4 = vrot.slane %v3615_v39, 4 }
 0x162   : > { %v1010_v24 = vrot.slane %v3590_v15, 4  ;;  %v3636_v59 = vperm.slane %v1163_v28, %v3449_v6  ;;  %v3639_v46 = vperm.slane %v901_v41, %v3458_v23  ;;  %v987_v62 = vsel %vm314_vm0, %v986_v22, %v3611_v36 }
 0x163   : > { %v877_v28 = vsel %vm314_vm0, %v3549_v2, %v876_v53  ;;  %v933_v47 = vperm.slane %v3623_v57, %v3449_v6  ;;  %v4235_v57 = vrot.slane %v3529_v44, 4 }
 0x164   : > { %v3162_v29 = vpop.trf.xlu2  ;;  %v1011_v22 = vsel %vm314_vm0, %v1010_v24, %v3529_v44  ;;  %v1198_v24 = vrot.slane %v3636_v59, 4  ;;  %v3675_v58 = vperm.slane %v877_v28, %v3458_v23 }
 0x165   : > { %v3166_v43 = vunpack.i.h.bf16 %v3162_v29  ;;  %v3163_v56 = vunpack.i.l.bf16 %v3162_v29 }
 0x167   : > { %v1074_v7 = vrot.slane %v3166_v43, 4  ;;  %v1038_v61 = vrot.slane %v3163_v56, 4  ;;  %v1041_v9 = vsel %vm314_vm0, %v3163_v56, %v3543_v63  ;;  %v1077_v27 = vsel %vm314_vm0, %v3166_v43, %v3519_v31 }
 0x168   : > { %v3648_v60 = vperm.slane %v1041_v9, %v3449_v6  ;;  %v3651_v40 = vperm.slane %v1077_v27, %v3449_v6  ;;  %v1210_v63 = vrot.slane %v1173_v42, 4 }
 0x169   : > { %v1039_v29 = vsel %vm314_vm0, %v1038_v61, %v3141_v25  ;;  %v1075_v31 = vsel %vm314_vm0, %v1074_v7, %v3144_v12  ;;  %v3679_v7 = vperm.slane %v1011_v22, %v3458_v23 }
 0x16a   : > { %v3665_v43 = vperm.slane %v1039_v29, %v3449_v6  ;;  %v3668_v56 = vperm.slane %v1075_v31, %v3449_v6  ;;  %v1100_v53 = vrot.slane %v3648_v60, 4  ;;  %v1125_v25 = vsel %vm314_vm0, %v3651_v40, %v1124_v32 }
 0x16b   : > { %v3684_v27 = vperm.slane %v1125_v25, %v3458_v23 }
 0x16c   : > { %v3167_v61 = vpop.trf.xlu2  ;;  %v1101_v9 = vsel %vm314_vm0, %v3608_v30, %v1100_v53  ;;  %v1088_v29 = vrot.slane %v3665_v43, 4  ;;  %v1113_v32 = vsel %vm314_vm0, %v3668_v56, %v1112_v21  ;;  %v3699_v53 = vperm.slane %v987_v62, %v3458_v23 }
 0x16d   : > { %v3171_v28 = vunpack.i.h.bf16 %v3167_v61  ;;  %v3168_v31 = vunpack.i.l.bf16 %v3167_v61  ;;  %v3692_v17 = vperm.slane %v1101_v9, %v3458_v23  ;;  %v1146_v22 = vrot.slane %v3684_v27, 4 }
 0x16e   : > { %v3696_v12 = vperm.slane %v1113_v32, %v3458_v23  ;;  %v1089_v32 = vsel %vm314_vm0, %v3605_v18, %v1088_v29 }
 0x16f   : > { %v1186_v25 = vrot.slane %v3171_v28, 4  ;;  %v1150_v16 = vrot.slane %v3168_v31, 4  ;;  %v1153_v41 = vsel %vm314_vm0, %v3168_v31, %v3560_v13  ;;  %v1189_v21 = vsel %vm314_vm0, %v3171_v28, %v3556_v11 }
 0x170   : > { %v1161_v9 = vperm.slane %v1153_v41, %v3449_v6  ;;  %v1197_v3 = vperm.slane %v1189_v21, %v3449_v6  ;;  %v1147_v11 = vsel %vm314_vm0, %v1146_v22, %v3692_v17  ;;  %v1030_v28 = vrot.slane %v3679_v7, 4 }
 0x171   : > { %v1151_v62 = vsel %vm314_vm0, %v1150_v16, %v3146_v38  ;;  %v1187_v13 = vsel %vm314_vm0, %v1186_v25, %v3149_v37  ;;  %v3724_v38 = vperm.slane %v1089_v32, %v3458_v23  ;;  %v1138_v20 = vrot.slane %v3696_v12, 4 }
 0x172   : > { %v1157_v41 = vperm.slane %v1151_v62, %v3449_v6  ;;  %v1193_v31 = vperm.slane %v1187_v13, %v3449_v6  ;;  %v1234_v21 = vrot.slane %v1197_v3, 4  ;;  %v1212_v61 = vrot.slane %v1161_v9, 4 }
 0x173   : > { %v1237_v29 = vsel %vm314_vm0, %v1197_v3, %v1236_v4  ;;  %v1211_v52 = vsel %vm314_vm0, %v1210_v63, %v1161_v9  ;;  %v4232_v22 = vrot.slane %v3594_v33, 4 }
 0x174   : > { %v1200_v37 = vrot.slane %v1157_v41, 4  ;;  %v1213_v16 = vsel %vm314_vm0, %v1173_v42, %v1212_v61  ;;  %v1245_v62 = vperm.slane %v1237_v29, %v3458_v23  ;;  %v1217_v4 = vperm.slane %v1211_v52, %v3458_v23 }
 0x175   : > { %v1225_v25 = vsel %vm314_vm0, %v1193_v31, %v4232_v22  ;;  %v1221_v13 = vperm.slane %v1213_v16, %v3458_v23  ;;  %v1235_v63 = vsel %vm314_vm0, %v1234_v21, %v3615_v39  ;;  %v1148_v61 = vrot.slane %v3692_v17, 4 }
 0x176   : > { %v1233_v3 = vperm.slane %v1225_v25, %v3458_v23  ;;  %v1201_v9 = vsel %vm314_vm0, %v3636_v59, %v1200_v37  ;;  %v1258_v32 = vrot.slane %v1245_v62, 4  ;;  %v1241_v42 = vperm.slane %v1235_v63, %v3458_v23 }
 0x177   : > { %v1209_v22 = vperm.slane %v1201_v9, %v3458_v23  ;;  %v1139_v16 = vsel %vm314_vm0, %v1138_v20, %v3724_v38  ;;  %v1260_v25 = vrot.slane %v1221_v13, 4  ;;  %v1199_v52 = vsel %vm314_vm0, %v1198_v24, %v1157_v41 }
 0x178   : > { %v1250_v29 = vrot.slane %v1233_v3, 4  ;;  %v1254_v50 = vrot.slane %v1241_v42, 4  ;;  %v1222_v48 = vrot.slane %v1193_v31, 4  ;;  %v1256_v39 = vrot.slane %v1217_v4, 4 }
 0x179   : > { %v1259_v59 = vsel %vm314_vm0, %v1258_v32, %v1221_v13  ;;  %v1261_v37 = vsel %vm314_vm0, %v1245_v62, %v1260_v25  ;;  %v1252_v63 = vrot.slane %v1209_v22, 4  ;;  %v4233_v24 = vunpack.i.h.bf16 %v3481_v51 }
 0x17a   : > { %v1251_v21 = vsel %vm314_vm0, %v1250_v29, %v1209_v22  ;;  %v1255_v9 = vsel %vm314_vm0, %v1254_v50, %v1217_v4  ;;  %v3230_v1 = vpack.i.bf16 %v1139_v16, %v1261_v37  ;;  %v1223_v20 = vsel %vm314_vm0, %v1222_v48, %v3594_v33 }
 0x17b   : > { %v3216_v17 = vpack.i.bf16 %v1251_v21, %v1259_v59  ;;  %v963_v41 = vsel %vm314_vm0, %v3618_v49, %v4233_v24  ;;  %v3223_v31 = vpack.i.bf16 %v1255_v9, %v1147_v11  ;;  %v1229_v13 = vperm.slane %v1223_v20, %v3458_v23 }
 0x17c   : > { %v1086_v62 = vrot.slane %v3605_v18, 4  ;;  %3231 = vxpose.xlu0.b32.start.end [1/1] (short) (narrow) %v3230_v1, 8  ;;  %v1205_v50 = vperm.slane %v1199_v52, %v3458_v23  ;;  %v1257_v4 = vsel %vm314_vm0, %v1241_v42, %v1256_v39  ;;  %v1031_v48 = vsel %vm314_vm0, %v1030_v28, %v3699_v53 }
 0x17d   : > { %3217 = vxpose.xlu2.b32.start.end [1/1] (short) (narrow) %v3216_v17, 8  ;;  %3224 = vxpose.xlu1.b32.start.end [1/1] (short) (narrow) %v3223_v31, 8  ;;  %v1246_v33 = vrot.slane %v1229_v13, 4  ;;  %v4234_v51 = vrot.slane %v3611_v36, 4  ;;  %v1013_v18 = vsel %vm314_vm0, %v3590_v15, %v4235_v57  ;;  %v1098_v1 = vrot.slane %v3608_v30, 4 }
 0x17e   : > { %v1253_v11 = vsel %vm314_vm0, %v1233_v3, %v1252_v63  ;;  %v1149_v32 = vsel %vm314_vm0, %v3684_v27, %v1148_v61  ;;  %v4236_v28 = vrot.slane %v3639_v46, 4  ;;  %v1140_v3 = vrot.slane %v3724_v38, 4 }
 0x17f   : > { %v989_v49 = vsel %vm314_vm0, %v3536_v54, %v4234_v51  ;;  %v4237_v54 = vrot.slane %v3651_v40, 4  ;;  %v1247_v42 = vsel %vm314_vm0, %v1246_v33, %v1205_v50  ;;  %v3258_v15 = vpack.i.bf16 %v1257_v4, %v1149_v32 }
 0x180   : > { %v923_v36 = vsel %vm314_vm0, %v4236_v28, %v3675_v58  ;;  %v1248_v27 = vrot.slane %v1205_v50, 4  ;;  %v3789_v61 = vperm.slane %v989_v49, %v3458_v23  ;;  %v3792_v29 = vperm.slane %v1013_v18, %v3458_v23 }
 0x181   : > { %v1123_v44 = vsel %vm314_vm0, %v4237_v54, %v3576_v35  ;;  %v3272_v22 = vpack.i.bf16 %v1031_v48, %v923_v36  ;;  %v1099_v40 = vsel %vm314_vm0, %v1098_v1, %v3648_v60  ;;  %v969_v35 = vperm.slane %v963_v41, %v3449_v6 }
 0x182   : > { %v3785_v30 = vperm.slane %v1123_v44, %v3458_v23  ;;  %v976_v16 = vrot.slane %v933_v47, 4  ;;  %v1087_v25 = vsel %vm314_vm0, %v1086_v62, %v3665_v43  ;;  %v3237_v52 = vpack.i.bf16 %v1253_v11, %v1247_v42 }
 0x183   : > { %v1093_v38 = vperm.slane %v1087_v25, %v3458_v23  ;;  %v1110_v21 = vrot.slane %v3668_v56, 4  ;;  %v1000_v37 = vrot.slane %v3552_v5, 4  ;;  %v857_v60 = vperm.slane %v3602_v19, %v3449_v6 }
 0x184   : > { %v1142_v39 = vrot.slane %v3785_v30, 4  ;;  %v977_v59 = vsel %vm314_vm0, %v3532_v45, %v976_v16  ;;  %v864_v63 = vrot.slane %v3597_v34, 4  ;;  %3259 = vxpose.xlu0.b32.start.end [1/1] (short) (narrow) %v3258_v15, 8  ;;  %v1034_v43 = vrot.slane %v3792_v29, 4 }
 0x185   : > { %3238 = vxpose.xlu2.b32.start.end [1/1] (short) (narrow) %v3237_v52, 8  ;;  %v3810_v17 = vperm.slane %v1099_v40, %v3458_v23  ;;  %v985_v9 = vperm.slane %v977_v59, %v3458_v23  ;;  %v1136_v56 = vrot.slane %v1093_v38, 4  ;;  %3273 = vxpose.xlu1.b32.start.end [1/1] (short) (narrow) %v3272_v22, 8  ;;  %v1001_v20 = vsel %vm314_vm0, %v969_v35, %v1000_v37 }
 0x186   : > { %v1111_v24 = vsel %vm314_vm0, %v1110_v21, %v3539_v55  ;;  %v888_v19 = vrot.slane %v3513_v26, 4  ;;  %v4238_v41 = vrot.slane %v3532_v45, 4  ;;  %v1249_v62 = vsel %vm314_vm0, %v1229_v13, %v1248_v27 }
 0x187   : > { %v1028_v50 = vrot.slane %v985_v9, 4  ;;  %v1117_v4 = vperm.slane %v1111_v24, %v3458_v23  ;;  %v1143_v48 = vsel %vm314_vm0, %v1142_v39, %v3810_v17  ;;  %v865_v33 = vsel %vm314_vm0, %v3546_v0, %v864_v63 }
 0x188   : > { %v975_v31 = vsel %vm314_vm0, %v4238_v41, %v933_v47  ;;  %v889_v51 = vsel %vm314_vm0, %v857_v60, %v888_v19  ;;  %v998_v55 = vrot.slane %v969_v35, 4  ;;  %v1141_v49 = vsel %vm314_vm0, %v3696_v12, %v1140_v3 }
 0x189   : > { %v1009_v45 = vperm.slane %v1001_v20, %v3458_v23  ;;  %v1137_v47 = vsel %vm314_vm0, %v1117_v4, %v1136_v56  ;;  %v981_v13 = vperm.slane %v975_v31, %v3458_v23  ;;  %v3265_v57 = vpack.i.bf16 %v1249_v62, %v1141_v49 }
 0x18a   : > { %v1035_v18 = vsel %vm314_vm0, %v1034_v43, %v3789_v61  ;;  %v897_v1 = vperm.slane %v889_v51, %v3458_v23  ;;  %v999_v11 = vsel %vm314_vm0, %v998_v55, %v3552_v5  ;;  %v873_v12 = vperm.slane %v865_v33, %v3458_v23 }
 0x18b   : > { %v3244_v32 = vpack.i.bf16 %v1143_v48, %v1035_v18  ;;  %v1029_v28 = vsel %vm314_vm0, %v1009_v45, %v1028_v50  ;;  %v1005_v36 = vperm.slane %v999_v11, %v3458_v23  ;;  %v1134_v44 = vrot.slane %v1117_v4, 4 }
 0x18c   : > { %v3293_v54 = vpack.i.bf16 %v1137_v47, %v1029_v28  ;;  %3266 = vxpose.xlu0.b32.start.end [1/1] (short) (narrow) %v3265_v57, 8  ;;  %v1024_v42 = vrot.slane %v981_v13, 4  ;;  %v886_v22 = vrot.slane %v857_v60, 4  ;;  %v1026_v3 = vrot.slane %v1009_v45, 4  ;;  %v4240_v45 = vld [vmem:[#allocation5_spill] sm:$0xff]  ;;  %v4241_v57 = vld [vmem:[#allocation7_spill] sm:$0xff] }
 0x18d   : > { %3245 = vxpose.xlu2.b32.start.end [1/1] (short) (narrow) %v3244_v32, 8  ;;  %v1022_v15 = vrot.slane %v1005_v36, 4  ;;  %v914_v27 = vrot.slane %v897_v1, 4  ;;  %v916_v40 = vrot.slane %v873_v12, 4  ;;  %v1135_v35 = vsel %vm314_vm0, %v1134_v44, %v1093_v38 }
 0x18e   : > { %3294 = vxpose.xlu1.b32.start.end [1/1] (short) (narrow) %v3293_v54, 8  ;;  %v887_v5 = vsel %vm314_vm0, %v886_v22, %v3513_v26  ;;  %v898_v25 = vrot.slane %v3587_v14, 4  ;;  %v1025_v52 = vsel %vm314_vm0, %v1005_v36, %v1024_v42  ;;  %v862_v39 = vrot.slane %v3546_v0, 4 }
 0x18f   : > { %v1023_v16 = vsel %vm314_vm0, %v1022_v15, %v981_v13  ;;  %v1027_v21 = vsel %vm314_vm0, %v1026_v3, %v985_v9  ;;  %v915_v59 = vsel %vm314_vm0, %v914_v27, %v873_v12  ;;  %v893_v37 = vperm.slane %v887_v5, %v3458_v23 }
 0x190   : > { %v3251_v60 = vpack.i.bf16 %v1135_v35, %v1027_v21  ;;  %v917_v63 = vsel %vm314_vm0, %v897_v1, %v916_v40  ;;  %v3286_v26 = vpack.i.bf16 %v1023_v16, %v915_v59  ;;  %v1144_v38 = vrot.slane %v3810_v17, 4  ;;  %v4242_v1 = vld [vmem:[#allocation8_spill] sm:$0xff] }
 0x191   : > { %v3314_v43 = vpack.i.bf16 %v1025_v52, %v917_v63  ;;  %v1032_v56 = vrot.slane %v3699_v53, 4  ;;  %v863_v0 = vsel %vm314_vm0, %v862_v39, %v3597_v34  ;;  %v899_v14 = vsel %vm314_vm0, %v898_v25, %v3498_v10 }
 0x192   : > { %v1036_v9 = vrot.slane %v3789_v61, 4  ;;  %v910_v20 = vrot.slane %v893_v37, 4  ;;  %v874_v24 = vrot.slane %v3549_v2, 4  ;;  %v1145_v19 = vsel %vm314_vm0, %v3785_v30, %v1144_v38 }
 0x193   : > { %v869_v17 = vperm.slane %v863_v0, %v3458_v23  ;;  %v1033_v53 = vsel %vm314_vm0, %v3679_v7, %v1032_v56  ;;  %v905_v41 = vperm.slane %v899_v14, %v3458_v23  ;;  %v924_v30 = vrot.slane %v3675_v58, 4  ;;  %v4239_v58 = vld [vmem:[#allocation6_spill] sm:$0xff] }
 0x194   : > { %3287 = vxpose.xlu0.b32.start.end [1/1] (short) (narrow) %v3286_v26, 8  ;;  %v1037_v34 = vsel %vm314_vm0, %v3792_v29, %v1036_v9  ;;  %v875_v2 = vsel %vm314_vm0, %v874_v24, %v3571_v8  ;;  %v313_v49 = vrot.slane %v4239_v58, 4  ;;  %v316_v47 = vrot.slane %v4240_v45, 4 }
 0x195   : > { %3252 = vxpose.xlu2.b32.start.end [1/1] (short) (narrow) %v3251_v60, 8  ;;  %v911_v10 = vsel %vm314_vm0, %v910_v20, %v869_v17  ;;  %v3279_v31 = vpack.i.bf16 %v1145_v19, %v1037_v34  ;;  %v918_v62 = vrot.slane %v905_v41, 4  ;;  %v881_v50 = vperm.slane %v875_v2, %v3458_v23 }
 0x196   : > { %3315 = vxpose.xlu1.b32.start.end [1/1] (short) (narrow) %v3314_v43, 8  ;;  %v3307_v61 = vpack.i.bf16 %v911_v10, %v1033_v53  ;;  %v925_v4 = vsel %vm314_vm0, %v3639_v46, %v924_v30  ;;  %v912_v48 = vrot.slane %v869_v17, 4  ;;  %v315_v13 = vsel %vm314_vm0, %v313_v49, %v4240_v45 }
 0x197   : > { %v919_v7 = vsel %vm314_vm0, %v918_v62, %v881_v50  ;;  %v920_v33 = vrot.slane %v881_v50, 4  ;;  %v326_v18 = vrot.slane %v4241_v57, 4  ;;  %v317_v46 = vsel %vm314_vm0, %v4239_v58, %v316_v47 }
 0x198   : > { %v3300_v29 = vpack.i.bf16 %v925_v4, %v919_v7  ;;  %v913_v51 = vsel %vm314_vm0, %v893_v37, %v912_v48  ;;  %v328_v11 = vrot.slane %v4242_v1, 4  ;;  %v321_v32 = vperm.slane %v315_v13, %v3449_v6 }
 0x199   : > { %v921_v8 = vsel %vm314_vm0, %v905_v41, %v920_v33  ;;  %v325_v28 = vperm.slane %v317_v46, %v3449_v6  ;;  %v327_v12 = vsel %vm314_vm0, %v326_v18, %v4242_v1 }
 0x19a   : > { %v3321_v55 = vpack.i.bf16 %v913_v51, %v921_v8  ;;  %v329_v36 = vsel %vm314_vm0, %v4241_v57, %v328_v11  ;;  %v340_v54 = vrot.slane %v321_v32, 4  ;;  %v333_v44 = vperm.slane %v327_v12, %v3449_v6 }
 0x19b   : > { %v352_v42 = vrot.slane %v325_v28, 4  ;;  %v337_v15 = vperm.slane %v329_v36, %v3449_v6 }
 0x19c   : > { %3308 = vxpose.xlu0.b32.start.end [1/1] (short) (narrow) %v3307_v61, 8  ;;  %v338_v22 = vrot.slane %v333_v44, 4  ;;  %v341_v3 = vsel %vm314_vm0, %v333_v44, %v340_v54 }
 0x19d   : > { %3280 = vxpose.xlu2.b32.start.end [1/1] (short) (narrow) %v3279_v31, 8  ;;  %v350_v27 = vrot.slane %v337_v15, 4  ;;  %v353_v40 = vsel %vm314_vm0, %v337_v15, %v352_v42  ;;  %v349_v5 = vperm.slane %v341_v3, %v3458_v23 }
 0x19e   : > { %v339_v35 = vsel %vm314_vm0, %v338_v22, %v321_v32  ;;  %v361_v16 = vperm.slane %v353_v40, %v3458_v23 }
 0x19f   : > { %v351_v25 = vsel %vm314_vm0, %v350_v27, %v325_v28  ;;  %v345_v52 = vperm.slane %v339_v35, %v3458_v23  ;;  %v364_v39 = vrot.slane %v349_v5, 4 }
 0x1a0   : > { %v357_v21 = vperm.slane %v351_v25, %v3458_v23  ;;  %v368_v59 = vrot.slane %v361_v16, 4 }
 0x1a1   : > { %v362_v37 = vrot.slane %v345_v52, 4  ;;  %v365_v60 = vsel %vm314_vm0, 0.0, %v364_v39  ;;  %v504_v9 = vsel %vm314_vm0, %v364_v39, %v345_v52 }
 0x1a2   : > { %v366_v63 = vrot.slane %v357_v21, 4  ;;  %v369_v26 = vsel %vm314_vm0, 0.0, %v368_v59  ;;  %v509_v43 = vrot.slane %v365_v60, 4  ;;  %v508_v19 = vperm.slane %v504_v9, %v3449_v6 }
 0x1a3   : > { %v363_v56 = vsel %vm314_vm0, 0.0, %v362_v37  ;;  %v520_v0 = vrot.slane %v369_v26, 4  ;;  %v515_v53 = vsel %vm314_vm0, %v368_v59, %v357_v21 }
 0x1a4   : > { %v367_v14 = vsel %vm314_vm0, 0.0, %v366_v63  ;;  %v510_v20 = vsel %vm314_vm0, %v509_v43, %v363_v56  ;;  %v519_v61 = vperm.slane %v515_v53, %v3449_v6  ;;  %v528_v30 = vrot.slane %v508_v19, 4 }
 0x1a5   : > { %3301 = vxpose.xlu2.b32.start.end [1/1] (short) (narrow) %v3300_v29, 8  ;;  %v521_v24 = vsel %vm314_vm0, %v520_v0, %v367_v14  ;;  %v514_v17 = vperm.slane %v510_v20, %v3449_v6 }
 0x1a6   : > { %v525_v10 = vperm.slane %v521_v24, %v3449_v6  ;;  %v540_v8 = vrot.slane %v519_v61, 4 }
 0x1a7   : > { %v526_v50 = vrot.slane %v514_v17, 4  ;;  %v529_v45 = vsel %vm314_vm0, %v514_v17, %v528_v30 }
 0x1a8   : > { %v538_v29 = vrot.slane %v525_v10, 4  ;;  %v3922_v28 = vperm.slane %v529_v45, %v3458_v23  ;;  %v541_v12 = vsel %vm314_vm0, %v525_v10, %v540_v8 }
 0x1a9   : > { %v527_v57 = vsel %vm314_vm0, %v526_v50, %v508_v19  ;;  %v3939_v21 = vperm.slane %v541_v12, %v3458_v23 }
 0x1aa   : > { %v539_v18 = vsel %vm314_vm0, %v538_v29, %v519_v61  ;;  %v3932_v16 = vperm.slane %v527_v57, %v3458_v23  ;;  %v556_v59 = vrot.slane %v3922_v28, 4 }
 0x1ab   : > { %v3935_v25 = vperm.slane %v539_v18, %v3458_v23 }
 0x1ad   : > { %3322 = vxpose.xlu2.b32.start.end [1/1] (short) (narrow) %v3321_v55, 8 }
 0x216   : > { %v3218_v38 = vpop.trf.xlu2 }
 0x217   : > { %v3222_v41 = vunpack.i.h.bf16 %v3218_v38  ;;  %v3219_v31 = vunpack.i.l.bf16 %v3218_v38 }
 0x219   : > { %v2454_v7 = vrot.slane %v3222_v41, 4  ;;  %v2466_v51 = vrot.slane %v3219_v31, 4 }
 0x21e   : > { %v3239_v34 = vpop.trf.xlu2 }
 0x21f   : > { %v3240_v2 = vunpack.i.l.bf16 %v3239_v34  ;;  %v3243_v11 = vunpack.i.h.bf16 %v3239_v34 }
 0x220   : > { %v3232_v62 = vpop.trf.xlu0 }
 0x221   : > { %v3225_v4 = vpop.trf.xlu1  ;;  %v2455_v55 = vsel %vm314_vm0, %v2454_v7, %v3240_v2  ;;  %v3233_v49 = vunpack.i.l.bf16 %v3232_v62  ;;  %v3236_v54 = vunpack.i.h.bf16 %v3232_v62  ;;  %v2460_v52 = vrot.slane %v3243_v11, 4 }
 0x222   : > { %v3229_v48 = vunpack.i.h.bf16 %v3225_v4  ;;  %v3226_v33 = vunpack.i.l.bf16 %v3225_v4  ;;  %v3919_v32 = vperm.slane %v2455_v55, %v3449_v6 }
 0x223   : > { %v2472_v44 = vrot.slane %v3233_v49, 4  ;;  %v2398_v37 = vrot.slane %v3236_v54, 4 }
 0x224   : > { %v2410_v58 = vrot.slane %v3226_v33, 4  ;;  %v2467_v47 = vsel %vm314_vm0, %v2466_v51, %v3229_v48  ;;  %v2480_v26 = vrot.slane %v3919_v32, 4 }
 0x225   : > { %v2471_v36 = vperm.slane %v2467_v47, %v3449_v6 }
 0x226   : > { %v3246_v13 = vpop.trf.xlu2 }
 0x227   : > { %v3250_v46 = vunpack.i.h.bf16 %v3246_v13  ;;  %v3247_v1 = vunpack.i.l.bf16 %v3246_v13  ;;  %v2492_v43 = vrot.slane %v2471_v36, 4 }
 0x228   : > { %v3260_v15 = vpop.trf.xlu0 }
 0x229   : > { %v2411_v42 = vsel %vm314_vm0, %v2410_v58, %v3250_v46  ;;  %v2354_v22 = vrot.slane %v3247_v1, 4  ;;  %v3264_v3 = vunpack.i.h.bf16 %v3260_v15  ;;  %v3274_v27 = vpop.trf.xlu1  ;;  %v3261_v38 = vunpack.i.l.bf16 %v3260_v15  ;;  %v3966_v1 = vld [vmem:[%s3020_s28 + $0x10] sm:$0xff] }
 0x22a   : > { %v3278_v40 = vunpack.i.h.bf16 %v3274_v27  ;;  %v3928_v5 = vperm.slane %v2411_v42, %v3449_v6  ;;  %v3275_v0 = vunpack.i.l.bf16 %v3274_v27  ;;  %442 = vrot.lane.b32.xlu1 %v3966_v1, %s3380_s24 }
 0x22b   : > { %v2473_v35 = vsel %vm314_vm0, %v2472_v44, %v3264_v3  ;;  %v2416_v62 = vrot.slane %v3261_v38, 4 }
 0x22c   : > { %v2477_v39 = vperm.slane %v2473_v35, %v3449_v6  ;;  %v2355_v60 = vsel %vm314_vm0, %v2354_v22, %v3278_v40  ;;  %v2436_v20 = vrot.slane %v3928_v5, 4  ;;  %v2298_v4 = vrot.slane %v3275_v0, 4 }
 0x22d   : > { %v3947_v24 = vperm.slane %v2355_v60, %v3449_v6 }
 0x22e   : > { %v3253_v63 = vpop.trf.xlu2  ;;  %v2493_v14 = vsel %vm314_vm0, %v2477_v39, %v2492_v43  ;;  %v2490_v9 = vrot.slane %v2477_v39, 4 }
 0x22f   : > { %v3257_v56 = vunpack.i.h.bf16 %v3253_v63  ;;  %v3254_v17 = vunpack.i.l.bf16 %v3253_v63  ;;  %v2501_v41 = vperm.slane %v2493_v14, %v3458_v23  ;;  %v2380_v49 = vrot.slane %v3947_v24, 4 }
 0x230   : > { %v3267_v53 = vpop.trf.xlu0  ;;  %v2491_v7 = vsel %vm314_vm0, %v2490_v9, %v2471_v36 }
 0x231   : > { %v2399_v19 = vsel %vm314_vm0, %v2398_v37, %v3257_v56  ;;  %v3271_v10 = vunpack.i.h.bf16 %v3267_v53  ;;  %v3268_v61 = vunpack.i.l.bf16 %v3267_v53  ;;  %v2497_v33 = vperm.slane %v2491_v7, %v3458_v23 }
 0x232   : > { %v3952_v34 = vperm.slane %v2399_v19, %v3449_v6  ;;  %v3295_v31 = vpop.trf.xlu1  ;;  %v2342_v51 = vrot.slane %v3254_v17, 4  ;;  %v2506_v55 = vrot.slane %v2501_v41, 4 }
 0x233   : > { %v3299_v2 = vunpack.i.h.bf16 %v3295_v31  ;;  %v2461_v30 = vsel %vm314_vm0, %v2460_v52, %v3271_v10  ;;  %v3296_v50 = vunpack.i.l.bf16 %v3295_v31  ;;  %v2404_v29 = vrot.slane %v3268_v61, 4 }
 0x234   : > { %v2465_v48 = vperm.slane %v2461_v30, %v3449_v6  ;;  %v2424_v58 = vrot.slane %v3952_v34, 4  ;;  %v2502_v44 = vrot.slane %v2497_v33, 4 }
 0x235   : > { %v2405_v45 = vsel %vm314_vm0, %v2404_v29, %v3299_v2  ;;  %v2348_v13 = vrot.slane %v3296_v50, 4 }
 0x236   : > { %v3281_v8 = vpop.trf.xlu2  ;;  %v2481_v18 = vsel %vm314_vm0, %v2465_v48, %v2480_v26  ;;  %v2478_v46 = vrot.slane %v2465_v48, 4  ;;  %v2409_v11 = vperm.slane %v2405_v45, %v3449_v6 }
 0x237   : > { %v3285_v47 = vunpack.i.h.bf16 %v3281_v8  ;;  %v3282_v57 = vunpack.i.l.bf16 %v3281_v8  ;;  %v2489_v54 = vperm.slane %v2481_v18, %v3458_v23 }
 0x238   : > { %v3288_v36 = vpop.trf.xlu0  ;;  %v2479_v39 = vsel %vm314_vm0, %v2478_v46, %v3919_v32  ;;  %v2425_v10 = vsel %vm314_vm0, %v2409_v11, %v2424_v58  ;;  %v2422_v30 = vrot.slane %v2409_v11, 4 }
 0x239   : > { %v2417_v12 = vsel %vm314_vm0, %v2416_v62, %v3285_v47  ;;  %v2360_v42 = vrot.slane %v3282_v57, 4  ;;  %v3292_v22 = vunpack.i.h.bf16 %v3288_v36  ;;  %v3289_v35 = vunpack.i.l.bf16 %v3288_v36 }
 0x23a   : > { %v3316_v15 = vpop.trf.xlu1  ;;  %v2507_v52 = vsel %vm314_vm0, %v2506_v55, %v2489_v54  ;;  %v2485_v26 = vperm.slane %v2479_v39, %v3458_v23  ;;  %v2508_v56 = vrot.slane %v2489_v54, 4  ;;  %v2421_v14 = vperm.slane %v2417_v12, %v3449_v6 }
 0x23b   : > { %v3320_v3 = vunpack.i.h.bf16 %v3316_v15  ;;  %v3317_v27 = vunpack.i.l.bf16 %v3316_v15  ;;  %v2343_v40 = vsel %vm314_vm0, %v2342_v51, %v3292_v22  ;;  %2572 = vmatpush.msra.mxu2 %v2507_v52  ;;  %v2286_v38 = vrot.slane %v3289_v35, 4 }
 0x23c   : > { %v2347_v63 = vperm.slane %v2343_v40, %v3449_v6  ;;  %v2503_v9 = vsel %vm314_vm0, %v2502_v44, %v2485_v26  ;;  %v2509_v32 = vsel %vm314_vm0, %v2501_v41, %v2508_v56  ;;  %v2504_v53 = vrot.slane %v2485_v26, 4 }
 0x23d   : > { %v2349_v37 = vsel %vm314_vm0, %v2348_v13, %v3320_v3  ;;  %v2292_v60 = vrot.slane %v3317_v27, 4  ;;  %2526 = vmatpush.msra.mxu0 %v2503_v9  ;;  %2595 = vmatpush.msra.mxu3 %v2509_v32  ;;  %v2433_v61 = vperm.slane %v2425_v10, %v3458_v23  ;;  %v2437_v2 = vsel %vm314_vm0, %v2421_v14, %v2436_v20 }
 0x23e   : > { %v2353_v43 = vperm.slane %v2349_v37, %v3449_v6  ;;  %v3302_v0 = vpop.trf.xlu2  ;;  %v2505_v7 = vsel %vm314_vm0, %v2497_v33, %v2504_v53  ;;  %v2445_v41 = vperm.slane %v2437_v2, %v3458_v23  ;;  %v2423_v58 = vsel %vm314_vm0, %v2422_v30, %v3952_v34 }
 0x23f   : > { %v3306_v19 = vunpack.i.h.bf16 %v3302_v0  ;;  %v3303_v17 = vunpack.i.l.bf16 %v3302_v0  ;;  %2549 = vmatpush.msra.mxu1 %v2505_v7  ;;  %v2452_v51 = vrot.slane %v2433_v61, 4  ;;  %v2434_v20 = vrot.slane %v2421_v14, 4 }
 0x240   : > { %v3309_v62 = vpop.trf.xlu0  ;;  %v2429_v33 = vperm.slane %v2423_v58, %v3458_v23  ;;  %v2450_v47 = vrot.slane %v2445_v41, 4  ;;  %v2368_v46 = vrot.slane %v2347_v63, 4  ;;  %v2366_v11 = vrot.slane %v2353_v43, 4 }
 0x241   : > { %v2304_v31 = vrot.slane %v3306_v19, 4  ;;  %v2299_v50 = vsel %vm314_vm0, %v2298_v4, %v3303_v17  ;;  %v3313_v29 = vunpack.i.h.bf16 %v3309_v62  ;;  %v3310_v55 = vunpack.i.l.bf16 %v3309_v62 }
 0x242   : > { %v2303_v48 = vperm.slane %v2299_v50, %v3449_v6  ;;  %v2453_v45 = vsel %vm314_vm0, %v2445_v41, %v2452_v51  ;;  %v2435_v57 = vsel %vm314_vm0, %v2434_v20, %v3928_v5  ;;  %v2448_v34 = vrot.slane %v2429_v33, 4 }
 0x243   : > { %v2287_v8 = vsel %vm314_vm0, %v2286_v38, %v3313_v29  ;;  %2596 = vmatpush.msra.mxu3 %v2453_v45  ;;  %v2361_v13 = vsel %vm314_vm0, %v2360_v42, %v3310_v55  ;;  %v2441_v12 = vperm.slane %v2435_v57, %v3458_v23  ;;  %v2451_v36 = vsel %vm314_vm0, %v2450_v47, %v2433_v61 }
 0x244   : > { %v2291_v4 = vperm.slane %v2287_v8, %v3449_v6  ;;  %2573 = vmatpush.msra.mxu2 %v2451_v36  ;;  %v2365_v15 = vperm.slane %v2361_v13, %v3449_v6  ;;  %v2369_v5 = vsel %vm314_vm0, %v2353_v43, %v2368_v46  ;;  %v2367_v52 = vsel %vm314_vm0, %v2366_v11, %v2347_v63 }
 0x245   : > { %v2449_v22 = vsel %vm314_vm0, %v2441_v12, %v2448_v34  ;;  %v2446_v3 = vrot.slane %v2441_v12, 4  ;;  %v2377_v40 = vperm.slane %v2369_v5, %v3458_v23  ;;  %v2324_v19 = vrot.slane %v2303_v48, 4 }
 0x246   : > { %v3323_v18 = vpop.trf.xlu2  ;;  %2550 = vmatpush.msra.mxu1 %v2449_v22  ;;  %v2381_v35 = vsel %vm314_vm0, %v2365_v15, %v2380_v49  ;;  %v2378_v38 = vrot.slane %v2365_v15, 4  ;;  %v2312_v0 = vrot.slane %v2291_v4, 4  ;;  %v554_v30 = vrot.slane %v3939_v21, 4 }
 0x247   : > { %v3327_v54 = vunpack.i.h.bf16 %v3323_v18  ;;  %v3324_v44 = vunpack.i.l.bf16 %v3323_v18  ;;  %v2447_v39 = vsel %vm314_vm0, %v2446_v3, %v2429_v33  ;;  %v2389_v26 = vperm.slane %v2381_v35, %v3458_v23 }
 0x248   : > { %2527 = vmatpush.msra.mxu0 %v2447_v39  ;;  %v2396_v43 = vrot.slane %v2377_v40, 4  ;;  %v2379_v32 = vsel %vm314_vm0, %v2378_v38, %v3947_v24  ;;  %v552_v58 = vrot.slane %v3932_v16, 4  ;;  %v557_v47 = vsel %vm314_vm0, %v3939_v21, %v556_v59 }
 0x249   : > { %v2293_v42 = vsel %vm314_vm0, %v2292_v60, %v3327_v54  ;;  %v2305_v27 = vsel %vm314_vm0, %v2304_v31, %v3324_v44  ;;  %v2373_v60 = vperm.slane %v2367_v52, %v3458_v23  ;;  %v2394_v9 = vrot.slane %v2389_v26, 4 }
 0x24a   : > { %v2309_v37 = vperm.slane %v2305_v27, %v3449_v6  ;;  %v2297_v56 = vperm.slane %v2293_v42, %v3449_v6  ;;  %v2397_v63 = vsel %vm314_vm0, %v2389_v26, %v2396_v43  ;;  %v2385_v10 = vperm.slane %v2379_v32, %v3458_v23 }
 0x24b   : > { %v2392_v14 = vrot.slane %v2373_v60, 4  ;;  %2597 = vmatpush.msra.mxu3 %v2397_v63  ;;  %v2395_v31 = vsel %vm314_vm0, %v2394_v9, %v2377_v40  ;;  %v555_v57 = vsel %vm314_vm0, %v554_v30, %v3922_v28  ;;  %v553_v11 = vsel %vm314_vm0, %v3935_v25, %v552_v58 }
 0x24c   : > { %v2322_v49 = vrot.slane %v2309_v37, 4  ;;  %v2313_v17 = vsel %vm314_vm0, %v2297_v56, %v2312_v0  ;;  %v2310_v53 = vrot.slane %v2297_v56, 4  ;;  %v2325_v2 = vsel %vm314_vm0, %v2309_v37, %v2324_v19  ;;  %2574 = vmatpush.msra.mxu2 %v2395_v31 }
 0x24d   : > { %v2321_v61 = vperm.slane %v2313_v17, %v3458_v23  ;;  %v2333_v62 = vperm.slane %v2325_v2, %v3458_v23  ;;  %v2393_v7 = vsel %vm314_vm0, %v2385_v10, %v2392_v14  ;;  %v2390_v41 = vrot.slane %v2385_v10, 4 }
 0x24e   : > { %v2311_v50 = vsel %vm314_vm0, %v2310_v53, %v2291_v4  ;;  %v2323_v24 = vsel %vm314_vm0, %v2322_v49, %v2303_v48  ;;  %2551 = vmatpush.msra.mxu1 %v2393_v7  ;;  %v550_v48 = vrot.slane %v3935_v25, 4  ;;  %v3384_v36 = vmov -inf  }
 0x24f   : > { %v2340_v29 = vrot.slane %v2321_v61, 4  ;;  %v2317_v51 = vperm.slane %v2311_v50, %v3458_v23  ;;  %v2338_v8 = vrot.slane %v2333_v62, 4  ;;  %v2329_v55 = vperm.slane %v2323_v24, %v3458_v23  ;;  %290 = vst.msk [vmem:[#allocation2 + $0x8] sm:$0xff] %vm288_vm3, %v3384_v36 }
 0x250   : > { %v2391_v20 = vsel %vm314_vm0, %v2390_v41, %v2373_v60  ;;  %v551_v21 = vsel %vm314_vm0, %v550_v48, %v3932_v16  ;;  %289 = vst.msk [vmem:[#allocation2] sm:$0xff] %vm288_vm3, %v3384_v36  ;;  %v3385_v15 = vmov 0   ;;  %v450_v56 = vrot.slane %v3966_v1, 4 }
 0x251   : > { %v2341_v45 = vsel %vm314_vm0, %v2333_v62, %v2340_v29  ;;  %v2336_v4 = vrot.slane %v2317_v51, 4  ;;  %2528 = vmatpush.msra.mxu0 %v2391_v20  ;;  %v2339_v33 = vsel %vm314_vm0, %v2338_v8, %v2321_v61  ;;  %v2334_v13 = vrot.slane %v2329_v55, 4  ;;  %291 = vst.msk [vmem:[#allocation2 + $0x10] sm:$0xff] %vm288_vm3, %v3384_v36  ;;  %3328 = vset.pattern.permute.xlu1 %v3385_v15 }
 0x252   : > { %2598 = vmatpush.msra.mxu3 %v2341_v45  ;;  %2575 = vmatpush.msra.mxu2 %v2339_v33  ;;  %292 = vst.msk [vmem:[#allocation2 + $0x18] sm:$0xff] %vm288_vm3, %v3384_v36  ;;  %v3386_v50 = vmov 0.0  }
 0x253   : > { %3088 = vmatmul.msk.f32.vlgmr.msra.gmra.mxu3 %vm297_vm1, %v557_v47  ;;  %v2337_v18 = vsel %vm314_vm0, %v2329_v55, %v2336_v4  ;;  %3087 = vmatmul.msk.f32.vlgmr.msra.gmra.mxu2 %vm297_vm1, %v555_v57  ;;  %v2335_v46 = vsel %vm314_vm0, %v2334_v13, %v2317_v51  ;;  %296 = vst.msk [vmem:[#allocation3 + $0x18] sm:$0xff] %vm288_vm3, %v3386_v50 }
 0x254   : > { %2552 = vmatpush.msra.mxu1 %v2337_v18  ;;  %2529 = vmatpush.msra.mxu0 %v2335_v46  ;;  %293 = vst.msk [vmem:[#allocation3] sm:$0xff] %vm288_vm3, %v3386_v50 }
 0x255   : > { %3086 = vmatmul.msk.f32.vlgmr.msra.gmra.mxu1 %vm297_vm1, %v553_v11  ;;  %3085 = vmatmul.msk.f32.vlgmr.msra.gmra.mxu0 %vm297_vm1, %v551_v21  ;;  %294 = vst.msk [vmem:[#allocation3 + $0x8] sm:$0xff] %vm288_vm3, %v3386_v50 }
 0x256   : > { %3329 = vset.pattern.permute.xlu2 %v3385_v15  ;;  %3330 = vset.pattern.permute.xlu0 %v3385_v15  ;;  %v4079_v3 = vld [vmem:[#allocation2 + $0x8] sm:$0xff]  ;;  %295 = vst.msk [vmem:[#allocation3 + $0x10] sm:$0xff] %vm288_vm3, %v3386_v50 }
 0x257   : > { %298 = vst.msk [vmem:[#allocation4] sm:$0xff] %vm297_vm1, %v3386_v50 }
 0x258   : > { %v4090_v35 = vld [vmem:[#allocation2 + $0x10] sm:$0xff]  ;;  %299 = vst.msk [vmem:[#allocation4 + $0x8] sm:$0xff] %vm297_vm1, %v3386_v50 }
 0x259   : > { %v4084_v27 = vld [vmem:[#allocation2 + $0x18] sm:$0xff]  ;;  %300 = vst.msk [vmem:[#allocation4 + $0x10] sm:$0xff] %vm297_vm1, %v3386_v50 }
 0x25a   : > { %301 = vst.msk [vmem:[#allocation4 + $0x18] sm:$0xff] %vm297_vm1, %v3386_v50 }
 0x29c   : > { %v443_v22 = vpop.permute.xlu1 %442 }
 0x29d   : > { %v448_v38 = vrot.slane %v443_v22, 4  ;;  %v451_v9 = vsel %vm314_vm0, %v443_v22, %v450_v56 }
 0x29e   : > { %v459_v63 = vperm.slane %v451_v9, %v3449_v6 }
 0x29f   : > { %v449_v14 = vsel %vm314_vm0, %v448_v38, %v3966_v1 }
 0x2a0   : > { %v455_v49 = vperm.slane %v449_v14, %v3449_v6  ;;  %v486_v2 = vrot.slane %v459_v63, 4 }
 0x2a2   : > { %v474_v10 = vrot.slane %v455_v49, 4 }
 0x2d2   : > { %v4055_v28 = vpop.f32.mrf.mxu1  ;;  %v4075_v54 = vpop.f32.mrf.mxu0 }
 0x2d3   : > { %v2611_v59 = vsel %vm2607_vm2, %v4055_v28, -inf  ;;  %v2608_v44 = vsel %vm2607_vm2, %v4075_v54, -inf }
 0x2d4   : > { %2612 = vmax.xlane.f32.xlu2 %v2611_v59 }
 0x2d6   : > { %v4059_v12 = vpop.f32.mrf.mxu3  ;;  %v4061_v34 = vpop.f32.mrf.mxu2 }
 0x2d7   : > { %v2617_v25 = vsel %vm2607_vm2, %v4059_v12, -inf  ;;  %v2614_v16 = vsel %vm2607_vm2, %v4061_v34, -inf }
 0x2d8   : > { %2618 = vmax.xlane.f32.xlu1 %v2617_v25  ;;  %2615 = vmax.xlane.f32.xlu0 %v2614_v16 }
 0x2ec   : > { %445 = vrot.lane.b32.xlu2 %v3966_v1, %s3381_s25  ;;  %439 = vrot.lane.b32.xlu0 %v3966_v1, %s3379_s23 }
 0x316   : > { %2609 = vmax.xlane.f32.xlu0 %v2608_v44 }
 0x347   : > { %v2613_v42 = vpop.xlane.xlu2 %2612 }
 0x348   : > { %v4082_v5 = vmax.f32 %v4079_v3, %v2613_v42 }
 0x34a   : > { %v2625_v40 = vsub.f32 %v4079_v3, %v4082_v5  ;;  %2880 = vst.msk [vmem:[#allocation2 + $0x8] sm:$0xff] %vm288_vm3, %v4082_v5  ;;  %v2671_v3 = vld [vmem:[#allocation3 + $0x18] sm:$0xff] }
 0x34b   : > { %v2619_v52 = vpop.xlane.xlu1 %2618  ;;  %v2616_v37 = vpop.xlane.xlu0 %2615 }
 0x34c   : > { %v4093_v39 = vmax.f32 %v4084_v27, %v2619_v52  ;;  %v4096_v26 = vmax.f32 %v4090_v35, %v2616_v37 }
 0x34e   : > { %v2627_v60 = vsub.f32 %v4084_v27, %v4093_v39  ;;  %2882 = vst.msk [vmem:[#allocation2 + $0x18] sm:$0xff] %vm288_vm3, %v4093_v39  ;;  %2653 = vperm.xlu1 %3328, %v4093_v39   ;;  %v2626_v43 = vsub.f32 %v4090_v35, %v4096_v26 }
 0x34f   : > { %2881 = vst.msk [vmem:[#allocation2 + $0x10] sm:$0xff] %vm288_vm3, %v4096_v26  ;;  %v446_v0 = vpop.permute.xlu2 %445 }
 0x350   : > { %v460_v19 = vrot.slane %v446_v0, 4 }
 0x356   : > { %2648 = vperm.xlu1 %3328, %v4096_v26  }
 0x35e   : > { %2643 = vperm.xlu1 %3328, %v4082_v5   ;;  %v440_v32 = vpop.permute.xlu0 %439 }
 0x35f   : > { %v461_v17 = vsel %vm314_vm0, %v460_v19, %v440_v32  ;;  %v462_v53 = vrot.slane %v440_v32, 4 }
 0x360   : > { %v467_v31 = vperm.slane %v461_v17, %v3449_v6 }
 0x361   : > { %v463_v61 = vsel %vm314_vm0, %v446_v0, %v462_v53 }
 0x362   : > { %v471_v1 = vperm.slane %v463_v61, %v3449_v6  ;;  %v472_v62 = vrot.slane %v467_v31, 4  ;;  %v475_v30 = vsel %vm314_vm0, %v467_v31, %v474_v10 }
 0x363   : > { %v483_v24 = vperm.slane %v475_v30, %v3458_v23 }
 0x364   : > { %v473_v7 = vsel %vm314_vm0, %v472_v62, %v455_v49  ;;  %v484_v41 = vrot.slane %v471_v1, 4  ;;  %v487_v29 = vsel %vm314_vm0, %v471_v1, %v486_v2  ;;  %v4159_v1 = vld [vmem:[#allocation2] sm:$0xff] }
 0x365   : > { %v479_v51 = vperm.slane %v473_v7, %v3458_v23  ;;  %v495_v8 = vperm.slane %v487_v29, %v3458_v23  ;;  %v498_v55 = vrot.slane %v483_v24, 4 }
 0x366   : > { %v485_v58 = vsel %vm314_vm0, %v484_v41, %v459_v63 }
 0x367   : > { %v491_v20 = vperm.slane %v485_v58, %v3458_v23  ;;  %v496_v45 = vrot.slane %v479_v51, 4  ;;  %v499_v4 = vsel %vm314_vm0, 0.0, %v498_v55  ;;  %v502_v48 = vrot.slane %v495_v8, 4 }
 0x368   : > { %v2725_v33 = vsel %vm314_vm0, %v498_v55, %v479_v51  ;;  %v2730_v47 = vrot.slane %v499_v4, 4 }
 0x369   : > { %v497_v13 = vsel %vm314_vm0, 0.0, %v496_v45  ;;  %v503_v57 = vsel %vm314_vm0, 0.0, %v502_v48  ;;  %v2729_v18 = vperm.slane %v2725_v33, %v3449_v6  ;;  %v500_v46 = vrot.slane %v491_v20, 4 }
 0x36a   : > { %v2741_v11 = vrot.slane %v503_v57, 4  ;;  %v2731_v21 = vsel %vm314_vm0, %v2730_v47, %v497_v13  ;;  %v2736_v59 = vsel %vm314_vm0, %v502_v48, %v491_v20  ;;  %v2634_v33 = vmul.f32 1.442695, %v2627_v60 }
 0x36b   : > { %v501_v25 = vsel %vm314_vm0, 0.0, %v500_v46  ;;  %v2735_v16 = vperm.slane %v2731_v21, %v3449_v6  ;;  %v2740_v36 = vperm.slane %v2736_v59, %v3449_v6  ;;  %v2749_v44 = vrot.slane %v2729_v18, 4  ;;  %v2670_v21 = vld [vmem:[#allocation3 + $0x10] sm:$0xff] }
 0x36c   : > { %v2742_v15 = vsel %vm314_vm0, %v2741_v11, %v501_v25  ;;  %v2630_v57 = vmul.f32 1.442695, %v2625_v40 }
 0x36d   : > { %v2746_v22 = vperm.slane %v2742_v15, %v3449_v6  ;;  %v2750_v42 = vsel %vm314_vm0, %v2735_v16, %v2749_v44  ;;  %v2761_v52 = vrot.slane %v2740_v36, 4  ;;  %v2747_v37 = vrot.slane %v2735_v16, 4  ;;  %v2700_v44 = vld [vmem:[#allocation4 + $0x18] sm:$0xff] }
 0x36e   : > { %v2758_v38 = vperm.slane %v2750_v42, %v3458_v23 }
 0x36f   : > { %v2762_v56 = vsel %vm314_vm0, %v2746_v22, %v2761_v52  ;;  %v2748_v0 = vsel %vm314_vm0, %v2747_v37, %v2729_v18  ;;  %v2759_v14 = vrot.slane %v2746_v22, 4 }
 0x370   : > { %v2770_v9 = vperm.slane %v2762_v56, %v3458_v23  ;;  %v2777_v19 = vrot.slane %v2758_v38, 4  ;;  %v2754_v49 = vperm.slane %v2748_v0, %v3458_v23 }
 0x371   : > { %v2760_v63 = vsel %vm314_vm0, %v2759_v14, %v2740_v36  ;;  %v2669_v36 = vld [vmem:[#allocation3 + $0x8] sm:$0xff] }
 0x372   : > { %v2778_v6 = vsel %vm314_vm0, %v2770_v9, %v2777_v19  ;;  %v2766_v32 = vperm.slane %v2760_v63, %v3458_v23  ;;  %v2773_v17 = vrot.slane %v2754_v49, 4  ;;  %v2775_v53 = vrot.slane %v2770_v9, 4 }
 0x373   : > { %2866 = vmatpush.msrb.mxu3 %v2778_v6  ;;  %v2698_v6 = vld [vmem:[#allocation4 + $0x8] sm:$0xff] }
 0x374   : > { %v2774_v10 = vsel %vm314_vm0, %v2766_v32, %v2773_v17  ;;  %v2776_v31 = vsel %vm314_vm0, %v2775_v53, %v2758_v38  ;;  %v2771_v61 = vrot.slane %v2766_v32, 4 }
 0x375   : > { %2820 = vmatpush.msrb.mxu1 %v2774_v10  ;;  %2843 = vmatpush.msrb.mxu2 %v2776_v31 }
 0x376   : > { %v2772_v2 = vsel %vm314_vm0, %v2771_v61, %v2754_v49  ;;  %v2668_v49 = vld [vmem:[#allocation3] sm:$0xff] }
 0x377   : > { %2797 = vmatpush.msrb.mxu0 %v2772_v2 }
 0x389   : > { %v2610_v62 = vpop.xlane.xlu0 %2609 }
 0x38a   : > { %v4162_v30 = vmax.f32 %v4159_v1, %v2610_v62 }
 0x38c   : > { %v2624_v23 = vsub.f32 %v4159_v1, %v4162_v30  ;;  %2879 = vst.msk [vmem:[#allocation2] sm:$0xff] %vm288_vm3, %v4162_v30  ;;  %2638 = vperm.xlu2 %3329, %v4162_v30   ;;  %v2699_v30 = vld [vmem:[#allocation4 + $0x10] sm:$0xff] }
 0x38e   : > { %v2628_v38 = vmul.f32 1.442695, %v2624_v23 }
 0x3c0   : > { %v2654_v50 = vpop.permute.xlu1 %2653 }
 0x3c1   : > { %v2659_v24 = vsub.f32 %v4059_v12, %v2654_v50 }
 0x3c3   : > { %v2666_v7 = vmul.f32 1.442695, %v2659_v24 }
 0x3c5   : > { %3331 = vpow2.f32 %v2666_v7 }
 0x3c8   : > { %v2649_v41 = vpop.permute.xlu1 %2648 }
 0x3c9   : > { %v2658_v29 = vsub.f32 %v4061_v34, %v2649_v41 }
 0x3cb   : > { %v3332_v51 = vpop.eup %3331  ;;  %v2664_v8 = vmul.f32 1.442695, %v2658_v29 }
 0x3cc   : > { %3092 = vmatmul.msk.f32.vlgmr.msrb.gmra.mxu3 %vm2607_vm2, %v3332_v51  ;;  %v2685_v55 = vsel %vm2607_vm2, %v3332_v51, 0.0 }
 0x3cd   : > { %3333 = vpow2.f32 %v2664_v8  ;;  %2686 = vadd.xlane.f32.xlu0 %v2685_v55  ;;  %v2697_v8 = vld [vmem:[#allocation4] sm:$0xff] }
 0x3d0   : > { %v2644_v58 = vpop.permute.xlu1 %2643 }
 0x3d1   : > { %v2657_v20 = vsub.f32 %v4055_v28, %v2644_v58 }
 0x3d3   : > { %v3334_v45 = vpop.eup %3333  ;;  %v2662_v4 = vmul.f32 1.442695, %v2657_v20 }
 0x3d4   : > { %3091 = vmatmul.msk.f32.vlgmr.msrb.gmra.mxu2 %vm2607_vm2, %v3334_v45  ;;  %v2682_v12 = vsel %vm2607_vm2, %v3334_v45, 0.0 }
 0x3d5   : > { %3335 = vpow2.f32 %v2662_v4  ;;  %2683 = vadd.xlane.f32.xlu2 %v2682_v12 }
 0x3d6   : > { %3337 = vpow2.f32 %v2634_v33 }
 0x3db   : > { %v3336_v34 = vpop.eup %3335 }
 0x3dc   : > { %3090 = vmatmul.msk.f32.vlgmr.msrb.gmra.mxu1 %vm2607_vm2, %v3336_v34  ;;  %v2679_v48 = vsel %vm2607_vm2, %v3336_v34, 0.0  ;;  %v3338_v18 = vpop.eup %3337 }
 0x3dd   : > { %2680 = vadd.xlane.f32.xlu1 %v2679_v48  ;;  %v2675_v5 = vmul.f32 %v3338_v18, %v2671_v3 }
 0x3e6   : > { %v2639_v28 = vpop.permute.xlu2 %2638 }
 0x3e7   : > { %v2656_v47 = vsub.f32 %v4075_v54, %v2639_v28  ;;  %v2632_v54 = vmul.f32 1.442695, %v2626_v43 }
 0x3e9   : > { %v2660_v13 = vmul.f32 1.442695, %v2656_v47 }
 0x3eb   : > { %3339 = vpow2.f32 %v2660_v13 }
 0x3ec   : > { %3341 = vpow2.f32 %v2630_v57 }
 0x3ed   : > { %2718 = vperm.xlu2 %3329, %v3338_v18   ;;  %3343 = vpow2.f32 %v2632_v54 }
 0x3f1   : > { %v3340_v46 = vpop.eup %3339 }
 0x3f2   : > { %3089 = vmatmul.msk.f32.vlgmr.msrb.gmra.mxu0 %vm2607_vm2, %v3340_v46  ;;  %v2676_v11 = vsel %vm2607_vm2, %v3340_v46, 0.0  ;;  %v3342_v27 = vpop.eup %3341 }
 0x3f3   : > { %2677 = vadd.xlane.f32.xlu0 %v2676_v11  ;;  %v3344_v39 = vpop.eup %3343  ;;  %v2673_v15 = vmul.f32 %v3342_v27, %v2669_v36 }
 0x3f4   : > { %v2674_v59 = vmul.f32 %v3344_v39, %v2670_v21 }
 0x3f6   : > { %2708 = vperm.xlu1 %3328, %v3342_v27  }
 0x407   : > { %2713 = vperm.xlu0 %3330, %v3344_v39  }
 0x440   : > { %v2687_v40 = vpop.xlane.xlu0 %2686 }
 0x441   : > { %v2691_v60 = vadd.f32 %v2687_v40, %v2675_v5 }
 0x443   : > { %2696 = vst.msk [vmem:[#allocation3 + $0x18] sm:$0xff] %vm288_vm3, %v2691_v60 }
 0x448   : > { %v2684_v25 = vpop.xlane.xlu2 %2683 }
 0x449   : > { %v2690_v16 = vadd.f32 %v2684_v25, %v2674_v59 }
 0x44a   : > { %v2889_v9 = vld [vmem:[#allocation3 + $0x18] sm:$0xff] }
 0x44b   : > { %2695 = vst.msk [vmem:[#allocation3 + $0x10] sm:$0xff] %vm288_vm3, %v2690_v16 }
 0x44f   : > { %v2868_v42 = vpop.f32.mrf.mxu3 }
 0x450   : > { %v2681_v35 = vpop.xlane.xlu1 %2680  ;;  %v2719_v26 = vpop.permute.xlu2 %2718 }
 0x451   : > { %v2689_v43 = vadd.f32 %v2681_v35, %v2673_v15  ;;  %v2724_v22 = vmul.f32 %v2719_v26, %v2700_v44 }
 0x452   : > { %v2888_v52 = vld [vmem:[#allocation3 + $0x10] sm:$0xff] }
 0x453   : > { %2694 = vst.msk [vmem:[#allocation3 + $0x8] sm:$0xff] %vm288_vm3, %v2689_v43  ;;  %v2874_v37 = vadd.f32 %v2868_v42, %v2724_v22  ;;  %3345 = vrcp.f32 %v2888_v52 }
 0x454   : > { %3347 = vpow2.f32 %v2628_v38 }
 0x455   : > { %2878 = vst.msk [vmem:[#allocation4 + $0x18] sm:$0xff] %vm297_vm1, %v2874_v37 }
 0x457   : > { %v2845_v24 = vpop.f32.mrf.mxu2 }
 0x459   : > { %v3346_v56 = vpop.eup %3345  ;;  %v2822_v61 = vpop.f32.mrf.mxu1 }
 0x45a   : > { %2913 = vperm.xlu2 %3329, %v3346_v56   ;;  %v2887_v0 = vld [vmem:[#allocation3 + $0x8] sm:$0xff]  ;;  %v3348_v14 = vpop.eup %3347 }
 0x45b   : > { %3349 = vrcp.f32 %v2887_v0  ;;  %v2672_v63 = vmul.f32 %v3348_v14, %v2668_v49 }
 0x45c   : > { %3351 = vrcp.f32 %v2889_v9  ;;  %v2918_v48 = vld [vmem:[#allocation4 + $0x18] sm:$0xff] }
 0x461   : > { %v3350_v19 = vpop.eup %3349 }
 0x462   : > { %2905 = vperm.xlu1 %3328, %v3350_v19   ;;  %2703 = vperm.xlu2 %3329, %v3348_v14   ;;  %v3352_v10 = vpop.eup %3351 }
 0x466   : > { %v2678_v32 = vpop.xlane.xlu0 %2677 }
 0x467   : > { %v2688_v17 = vadd.f32 %v2678_v32, %v2672_v63 }
 0x468   : > { %v2709_v53 = vpop.permute.xlu1 %2708 }
 0x469   : > { %v2722_v31 = vmul.f32 %v2709_v53, %v2698_v6  ;;  %2693 = vst.msk [vmem:[#allocation3] sm:$0xff] %vm288_vm3, %v2688_v17 }
 0x46a   : > { %2921 = vperm.xlu1 %3328, %v3352_v10  }
 0x46b   : > { %v2872_v2 = vadd.f32 %v2822_v61, %v2722_v31 }
 0x46d   : > { %2876 = vst.msk [vmem:[#allocation4 + $0x8] sm:$0xff] %vm297_vm1, %v2872_v2 }
 0x46f   : > { %v2799_v20 = vpop.f32.mrf.mxu0 }
 0x470   : > { %v2886_v1 = vld [vmem:[#allocation3] sm:$0xff] }
 0x471   : > { %3353 = vrcp.f32 %v2886_v1 }
 0x474   : > { %v2902_v12 = vld [vmem:[#allocation4 + $0x8] sm:$0xff] }
 0x477   : > { %v3354_v62 = vpop.eup %3353 }
 0x478   : > { %2897 = vperm.xlu1 %3328, %v3354_v62  }
 0x479   : > { %v2714_v23 = vpop.permute.xlu0 %2713 }
 0x47a   : > { %v2723_v50 = vmul.f32 %v2714_v23, %v2699_v30 }
 0x47c   : > { %v2873_v7 = vadd.f32 %v2845_v24, %v2723_v50 }
 0x47e   : > { %2877 = vst.msk [vmem:[#allocation4 + $0x10] sm:$0xff] %vm297_vm1, %v2873_v7 }
 0x485   : > { %v2910_v29 = vld [vmem:[#allocation4 + $0x10] sm:$0xff] }
 0x4b4   : > { %v2914_v41 = vpop.permute.xlu2 %2913 }
 0x4b5   : > { %v2916_v51 = vmul.f32 %v2914_v41, %v2910_v29 }
 0x4b7   : > { %2930 = vrot.lane.b32.xlu2 %v2916_v51, %s3380_s24 }
 0x4bc   : > { %v2704_v55 = vpop.permute.xlu2 %2703 }
 0x4bd   : > { %v2721_v58 = vmul.f32 %v2704_v55, %v2697_v8 }
 0x4bf   : > { %v2871_v45 = vadd.f32 %v2799_v20, %v2721_v58 }
 0x4c1   : > { %2875 = vst.msk [vmem:[#allocation4] sm:$0xff] %vm297_vm1, %v2871_v45 }
 0x4c8   : > { %v2894_v13 = vld [vmem:[#allocation4] sm:$0xff] }
 0x4d4   : > { %v2906_v4 = vpop.permute.xlu1 %2905 }
 0x4d5   : > { %v2908_v34 = vmul.f32 %v2906_v4, %v2902_v12 }
 0x4d7   : > { %2926 = vrot.lane.b32.xlu0 %v2908_v34, %s3381_s25 }
 0x4dc   : > { %v2922_v33 = vpop.permute.xlu1 %2921 }
 0x4dd   : > { %v2924_v28 = vmul.f32 %v2922_v33, %v2918_v48 }
 0x4df   : > { %2934 = vrot.lane.b32.xlu1 %v2924_v28, %s3379_s23 }
 0x4ea   : > { %v2898_v47 = vpop.permute.xlu1 %2897 }
 0x4eb   : > { %v2900_v18 = vmul.f32 %v2898_v47, %v2894_v13 }
 0x511   : > { %v2931_v11 = vpop.permute.xlu2 %2930 }
 0x549   : > { %v2927_v57 = vpop.permute.xlu0 %2926 }
 0x54a   : > { %v2937_v46 = vsel %vm297_vm1, %v2900_v18, %v2927_v57 }
 0x54b   : > { %v2939_v54 = vsel %vm2938_vm4, %v2937_v46, %v2931_v11 }
 0x551   : > { %v2935_v27 = vpop.permute.xlu1 %2934 }
 0x552   : > { %v2941_v39 = vsel %vm2940_vm5, %v2939_v54, %v2935_v27 }
 0x553   : > { %2942 = vst [vmem:[%s283_s5] sm:$0xff] %v2941_v39 }
 0x554 PF: > { %s13_s14 = sadd.s32 1, %s3377_s14   ;;  %s4243_s12 = smov %s3373_s13 }
 0x555   : > { %p10_p5 = scmp.ge.s32.totalorder %s13_s14, 4   ;;  %s4244_s13 = smov %s4246_s15 }
 0x557   :  { %12 = sbr.rel (!%p10_p5) target bundleno = 2 (0x2), region = 79 }

// kernel: transformer_decoder_layer.16
= control target key start
LH: loop header
LB: loop body
LE: loop exit
PB: predicated region body
PF: predicated region fallthrough
CT: control target
= control target key end

     0   :  { %10 = vsyncpa [#allocation5], 0  ;;  %s306_s21 = smov [#allocation4]   ;;  %s307_s23 = smov 256   ;;  %s386_s0 = inlined_call_operand.vmem [shape: f32[16,128], index: 0, kind: input, shape index: {}]   ;;  %s387_s1 = inlined_call_operand.vmem [shape: f32[1,128], index: 1, kind: input, shape index: {}]   ;;  %s388_s2 = inlined_call_operand.vmem [shape: f32[1,128], index: 2, kind: input, shape index: {}]   ;;  %s389_s3 = inlined_call_operand.hbm [shape: f32[128,256], index: 3, kind: input, shape index: {}]   ;;  %s390_s4 = inlined_call_operand.vmem [shape: f32[1,256], index: 4, kind: input, shape index: {}]   ;;  %s391_s5 = inlined_call_operand.vmem [shape: f32[16,256], index: 5, kind: output, shape index: {}]  }
   0x1   :  { %s21_s20 = sshll.u32 %s389_s3, 4  ;;  %s23_s22 = sshll.u32 %s306_s21, 4  ;;  %s22_s20 = int_to_ptr.hbm [resolvable:$true] %s21_s20  ;;  %s24_s22 = int_to_ptr.vmem [resolvable:$true] %s23_s22 }
   0x2   :  { %s308_s24 = smov 16  }
   0x3   :  { %29 = dma.hbm_to_vmem [thread:$0]  %s22_s20, 4096, %s24_s22, [#allocation5], %s307_s23, %s307_s23, %s308_s24  }
   0x4   :  { %304 = dma.done.wait [#allocation5], 4096  }
   0x5   :  { %305 = vsyncadd [#allocation5], 4294963200  ;;  %v43_v0 = vld [vmem:[%s386_s0 + $0x8] sm:$0xff]  ;;  %v42_v1 = vld [vmem:[%s386_s0] sm:$0xff]  ;;  %v309_v2 = vmov 128.0  }
   0x6   :  { %46 = vadd.xlane.f32.xlu0 %v43_v0  ;;  %274 = vrcp.f32 %v309_v2  ;;  %v150_v5 = vld [vmem:[#allocation4 + $0xf0] sm:$0xff]  ;;  %v151_v6 = vld [vmem:[#allocation4 + $0xf8] sm:$0xff]  ;;  %v148_v7 = vld [vmem:[#allocation4 + $0xe0] sm:$0xff] }
   0x7   :  { %236 = vmatpush.msra.mxu2 %v150_v5  ;;  %252 = vmatpush.msra.mxu3 %v151_v6  ;;  %v149_v8 = vld [vmem:[#allocation4 + $0xe8] sm:$0xff]  ;;  %v146_v21 = vld [vmem:[#allocation4 + $0xd0] sm:$0xff]  ;;  %v147_v22 = vld [vmem:[#allocation4 + $0xd8] sm:$0xff] }
   0x8   :  { %152 = vmatpush.msra.mxu0 %v150_v5  ;;  %175 = vmatpush.msra.mxu1 %v151_v6  ;;  %v144_v23 = vld [vmem:[#allocation4 + $0xc0] sm:$0xff]  ;;  %v145_v24 = vld [vmem:[#allocation4 + $0xc8] sm:$0xff]  ;;  %v142_v25 = vld [vmem:[#allocation4 + $0xb0] sm:$0xff] }
   0x9   :  { %237 = vmatpush.msra.mxu2 %v148_v7  ;;  %253 = vmatpush.msra.mxu3 %v149_v8  ;;  %v143_v26 = vld [vmem:[#allocation4 + $0xb8] sm:$0xff]  ;;  %v140_v27 = vld [vmem:[#allocation4 + $0xa0] sm:$0xff]  ;;  %v141_v28 = vld [vmem:[#allocation4 + $0xa8] sm:$0xff] }
   0xa   :  { %153 = vmatpush.msra.mxu0 %v148_v7  ;;  %176 = vmatpush.msra.mxu1 %v149_v8  ;;  %v138_v29 = vld [vmem:[#allocation4 + $0x90] sm:$0xff]  ;;  %v139_v30 = vld [vmem:[#allocation4 + $0x98] sm:$0xff]  ;;  %v136_v31 = vld [vmem:[#allocation4 + $0x80] sm:$0xff] }
   0xb   :  { %238 = vmatpush.msra.mxu2 %v146_v21  ;;  %254 = vmatpush.msra.mxu3 %v147_v22  ;;  %v137_v32 = vld [vmem:[#allocation4 + $0x88] sm:$0xff]  ;;  %v134_v33 = vld [vmem:[#allocation4 + $0x70] sm:$0xff]  ;;  %v135_v34 = vld [vmem:[#allocation4 + $0x78] sm:$0xff] }
   0xc   :  { %v275_v3 = vpop.eup %274  ;;  %154 = vmatpush.msra.mxu0 %v146_v21  ;;  %177 = vmatpush.msra.mxu1 %v147_v22  ;;  %v132_v35 = vld [vmem:[#allocation4 + $0x60] sm:$0xff]  ;;  %v133_v36 = vld [vmem:[#allocation4 + $0x68] sm:$0xff]  ;;  %v130_v37 = vld [vmem:[#allocation4 + $0x50] sm:$0xff] }
   0xd   :  { %v49_v4 = vmul.f32 128.0, %v275_v3  ;;  %vm53_vm0 = vweird.f32 %v275_v3  ;;  %239 = vmatpush.msra.mxu2 %v144_v23  ;;  %255 = vmatpush.msra.mxu3 %v145_v24  ;;  %v131_v38 = vld [vmem:[#allocation4 + $0x58] sm:$0xff]  ;;  %v128_v39 = vld [vmem:[#allocation4 + $0x40] sm:$0xff]  ;;  %v129_v40 = vld [vmem:[#allocation4 + $0x48] sm:$0xff] }
   0xe   :  { %44 = vadd.xlane.f32.xlu0 %v42_v1  ;;  %155 = vmatpush.msra.mxu0 %v144_v23  ;;  %v126_v41 = vld [vmem:[#allocation4 + $0x30] sm:$0xff]  ;;  %v127_v42 = vld [vmem:[#allocation4 + $0x38] sm:$0xff]  ;;  %v124_v43 = vld [vmem:[#allocation4 + $0x20] sm:$0xff] }
   0xf   :  { %v50_v9 = vsub.f32 1.0, %v49_v4  ;;  %178 = vmatpush.msra.mxu1 %v145_v24  ;;  %240 = vmatpush.msra.mxu2 %v142_v25  ;;  %v125_v44 = vld [vmem:[#allocation4 + $0x28] sm:$0xff]  ;;  %v122_v45 = vld [vmem:[#allocation4 + $0x10] sm:$0xff]  ;;  %v123_v46 = vld [vmem:[#allocation4 + $0x18] sm:$0xff] }
  0x10   :  { %256 = vmatpush.msra.mxu3 %v143_v26  ;;  %156 = vmatpush.msra.mxu0 %v142_v25  ;;  %v120_v47 = vld [vmem:[#allocation4] sm:$0xff]  ;;  %v121_v48 = vld [vmem:[#allocation4 + $0x8] sm:$0xff] }
  0x11   :  { %v51_v10 = vmul.f32 %v275_v3, %v50_v9  ;;  %179 = vmatpush.msra.mxu1 %v143_v26  ;;  %241 = vmatpush.msra.mxu2 %v140_v27  ;;  %v272_v63 = vld [vmem:[%s387_s1] ss:$0 sm:$0xff] }
  0x12   :  { %257 = vmatpush.msra.mxu3 %v141_v28  ;;  %157 = vmatpush.msra.mxu0 %v140_v27 }
  0x13   :  { %v52_v11 = vadd.f32 %v275_v3, %v51_v10  ;;  %180 = vmatpush.msra.mxu1 %v141_v28  ;;  %242 = vmatpush.msra.mxu2 %v138_v29 }
  0x14   :  { %258 = vmatpush.msra.mxu3 %v139_v30  ;;  %158 = vmatpush.msra.mxu0 %v138_v29 }
  0x15   :  { %v349_v12 = vsel %vm53_vm0, %v275_v3, %v52_v11  ;;  %181 = vmatpush.msra.mxu1 %v139_v30  ;;  %243 = vmatpush.msra.mxu2 %v136_v31  ;;  %v273_v3 = vld [vmem:[%s388_s2] ss:$0 sm:$0xff] }
  0x16   :  { %259 = vmatpush.msra.mxu3 %v137_v32  ;;  %159 = vmatpush.msra.mxu0 %v136_v31 }
  0x17   :  { %182 = vmatpush.msra.mxu1 %v137_v32  ;;  %244 = vmatpush.msra.mxu2 %v134_v33 }
  0x18   :  { %260 = vmatpush.msra.mxu3 %v135_v34  ;;  %160 = vmatpush.msra.mxu0 %v134_v33 }
  0x19   :  { %183 = vmatpush.msra.mxu1 %v135_v34  ;;  %245 = vmatpush.msra.mxu2 %v132_v35 }
  0x1a   :  { %261 = vmatpush.msra.mxu3 %v133_v36  ;;  %161 = vmatpush.msra.mxu0 %v132_v35 }
  0x1b   :  { %184 = vmatpush.msra.mxu1 %v133_v36  ;;  %246 = vmatpush.msra.mxu2 %v130_v37 }
  0x1c   :  { %262 = vmatpush.msra.mxu3 %v131_v38  ;;  %162 = vmatpush.msra.mxu0 %v130_v37 }
  0x1d   :  { %185 = vmatpush.msra.mxu1 %v131_v38  ;;  %247 = vmatpush.msra.mxu2 %v128_v39 }
  0x1e   :  { %263 = vmatpush.msra.mxu3 %v129_v40  ;;  %163 = vmatpush.msra.mxu0 %v128_v39 }
  0x1f   :  { %186 = vmatpush.msra.mxu1 %v129_v40  ;;  %248 = vmatpush.msra.mxu2 %v126_v41 }
  0x20   :  { %264 = vmatpush.msra.mxu3 %v127_v42  ;;  %164 = vmatpush.msra.mxu0 %v126_v41 }
  0x21   :  { %187 = vmatpush.msra.mxu1 %v127_v42  ;;  %249 = vmatpush.msra.mxu2 %v124_v43 }
  0x22   :  { %265 = vmatpush.msra.mxu3 %v125_v44  ;;  %165 = vmatpush.msra.mxu0 %v124_v43 }
  0x23   :  { %188 = vmatpush.msra.mxu1 %v125_v44  ;;  %250 = vmatpush.msra.mxu2 %v122_v45 }
  0x24   :  { %266 = vmatpush.msra.mxu3 %v123_v46  ;;  %166 = vmatpush.msra.mxu0 %v122_v45 }
  0x25   :  { %189 = vmatpush.msra.mxu1 %v123_v46  ;;  %251 = vmatpush.msra.mxu2 %v120_v47 }
  0x26   :  { %267 = vmatpush.msra.mxu3 %v121_v48  ;;  %167 = vmatpush.msra.mxu0 %v120_v47 }
  0x27   :  { %190 = vmatpush.msra.mxu1 %v121_v48 }
  0x79   :  { %v47_v13 = vpop.xlane.xlu0 %46 }
  0x7a   :  { %v56_v14 = vmul.f32 %v349_v12, %v47_v13  ;;  %v213_v13 = vld [vmem:[%s390_s4] sm:$0x3] }
  0x7c   :  { %v352_v15 = vsub.f32 %v43_v0, %v56_v14  ;;  %v215_v14 = vperm.slane %v213_v13, 0 }
  0x7e   :  { %v60_v16 = vmul.f32 %v352_v15, %v352_v15 }
  0x80   :  { %63 = vadd.xlane.f32.xlu1 %v60_v16 }
  0x81   :  { %v45_v17 = vpop.xlane.xlu0 %44 }
  0x82   :  { %v55_v18 = vmul.f32 %v349_v12, %v45_v17 }
  0x84   :  { %v357_v19 = vsub.f32 %v42_v1, %v55_v18 }
  0x86   :  { %v59_v20 = vmul.f32 %v357_v19, %v357_v19 }
  0x88   :  { %61 = vadd.xlane.f32.xlu1 %v59_v20 }
  0xf3   :  { %v64_v49 = vpop.xlane.xlu1 %63 }
  0xf4   :  { %v66_v50 = vmul.f32 %v64_v49, %v349_v12 }
  0xf6   :  { %v68_v51 = vadd.f32 1e-05, %v66_v50 }
  0xf8   :  { %276 = vrsqrt.f32 %v68_v51  ;;  %vm85_vm2 = vweird.f32 %v68_v51 }
  0xfb   :  { %v62_v52 = vpop.xlane.xlu1 %61 }
  0xfc   :  { %v65_v53 = vmul.f32 %v62_v52, %v349_v12 }
  0xfe   :  { %v277_v54 = vpop.eup %276  ;;  %v67_v55 = vadd.f32 1e-05, %v65_v53 }
  0xff   :  { %v80_v56 = vmul.f32 %v277_v54, %v68_v51  ;;  %vm86_vm1 = vweird.f32 %v277_v54 }
 0x100   :  { %278 = vrsqrt.f32 %v67_v55  ;;  %vm87_vm3 = vmor %vm85_vm2, %vm86_vm1  ;;  %vm75_vm5 = vweird.f32 %v67_v55 }
 0x101   :  { %v81_v57 = vmul.f32 %v277_v54, %v80_v56 }
 0x103   :  { %v82_v58 = vmul.f32 0.5, %v81_v57 }
 0x105   :  { %v83_v59 = vsub.f32 1.5, %v82_v58 }
 0x106   :  { %v279_v60 = vpop.eup %278 }
 0x107   :  { %v84_v61 = vmul.f32 %v277_v54, %v83_v59  ;;  %v70_v62 = vmul.f32 %v279_v60, %v67_v55  ;;  %vm76_vm4 = vweird.f32 %v279_v60 }
 0x108   :  { %vm77_vm6 = vmor %vm75_vm5, %vm76_vm4 }
 0x109   :  { %v71_v0 = vmul.f32 %v279_v60, %v70_v62  ;;  %v88_v1 = vsel %vm87_vm3, %v277_v54, %v84_v61 }
 0x10a   :  { %v90_v2 = vmul.f32 %v88_v1, %v352_v15  ;;  %v216_v15 = vperm.slane %v213_v13, 1 }
 0x10b   :  { %v72_v4 = vmul.f32 0.5, %v71_v0 }
 0x10c   :  { %v96_v5 = vmul.f32 %v272_v63, %v90_v2 }
 0x10d   :  { %v73_v6 = vsub.f32 1.5, %v72_v4 }
 0x10e   :  { %v102_v7 = vadd.f32 %v273_v3, %v96_v5 }
 0x10f   :  { %v74_v8 = vmul.f32 %v279_v60, %v73_v6 }
 0x110   :  { %171 = vmatmul.f32.vlgmr.msra.gmra.mxu2 %v102_v7  ;;  %194 = vmatmul.f32.vlgmr.msra.gmra.mxu3 %v102_v7 }
 0x111   :  { %v78_v9 = vsel %vm77_vm6, %v279_v60, %v74_v8 }
 0x112   :  { %v89_v10 = vmul.f32 %v78_v9, %v357_v19 }
 0x114   :  { %v95_v11 = vmul.f32 %v272_v63, %v89_v10 }
 0x116   :  { %v101_v12 = vadd.f32 %v273_v3, %v95_v11 }
 0x118   :  { %168 = vmatmul.f32.vlgmr.msra.gmra.mxu0 %v101_v12  ;;  %191 = vmatmul.f32.vlgmr.msra.gmra.mxu1 %v101_v12 }
 0x193   :  { %v172_v16 = vpop.f32.mrf.mxu2  ;;  %v195_v17 = vpop.f32.mrf.mxu3 }
 0x194   :  { %v221_v18 = vadd.f32 %v215_v14, %v172_v16  ;;  %v222_v20 = vadd.f32 %v216_v15, %v195_v17 }
 0x195   :  { %v169_v21 = vpop.f32.mrf.mxu0  ;;  %v192_v22 = vpop.f32.mrf.mxu1 }
 0x196   :  { %v225_v23 = vmax.f32 %v221_v18, 0.0  ;;  %v226_v24 = vmax.f32 %v222_v20, 0.0  ;;  %v219_v25 = vadd.f32 %v215_v14, %v169_v21  ;;  %v220_v19 = vadd.f32 %v216_v15, %v192_v22 }
 0x198   :  { %229 = vst [vmem:[%s391_s5 + $0x10] sm:$0xff] %v225_v23  ;;  %v223_v26 = vmax.f32 %v219_v25, 0.0  ;;  %v224_v27 = vmax.f32 %v220_v19, 0.0 }
 0x199   :  { %230 = vst [vmem:[%s391_s5 + $0x18] sm:$0xff] %v226_v24 }
 0x19a   :  { %227 = vst [vmem:[%s391_s5] sm:$0xff] %v223_v26 }
 0x19b   :  { %228 = vst [vmem:[%s391_s5 + $0x8] sm:$0xff] %v224_v27 }
 0x19c   :  { %235 = vsyncpa [#allocation5], 1 }

// kernel: transformer_decoder_layer.17
= control target key start
LH: loop header
LB: loop body
LE: loop exit
PB: predicated region body
PF: predicated region fallthrough
CT: control target
= control target key end

     0   :  { %9 = vsyncpa [#allocation4], 0  ;;  %s211_s18 = smov [#allocation3]   ;;  %s212_s20 = smov 128   ;;  %s269_s0 = inlined_call_operand.vmem [shape: f32[16,256], index: 0, kind: input, shape index: {}]   ;;  %s270_s1 = inlined_call_operand.hbm [shape: f32[256,128], index: 1, kind: input, shape index: {}]   ;;  %s271_s2 = inlined_call_operand.vmem [shape: f32[1,128], index: 2, kind: input, shape index: {}]   ;;  %s272_s3 = inlined_call_operand.vmem [shape: f32[16,128], index: 3, kind: input, shape index: {}]   ;;  %s273_s4 = inlined_call_operand.vmem [shape: f32[16,128], index: 4, kind: output, shape index: {}]  }
   0x1   :  { %s16_s17 = sshll.u32 %s270_s1, 4  ;;  %s18_s19 = sshll.u32 %s211_s18, 4  ;;  %s17_s17 = int_to_ptr.hbm [resolvable:$true] %s16_s17  ;;  %s19_s19 = int_to_ptr.vmem [resolvable:$true] %s18_s19 }
   0x2   :  { %s213_s21 = smov 8  }
   0x3   :  { %24 = dma.hbm_to_vmem [thread:$0]  %s17_s17, 4096, %s19_s19, [#allocation4], %s212_s20, %s212_s20, %s213_s21  }
   0x4   :  { %209 = dma.done.wait [#allocation4], 4096  }
   0x5   :  { %210 = vsyncadd [#allocation4], 4294963200  ;;  %v60_v0 = vld [vmem:[#allocation3 + $0x78] sm:$0xff]  ;;  %v59_v2 = vld [vmem:[#allocation3 + $0x70] sm:$0xff] }
   0x6   :  { %v76_v1 = vld [vmem:[#allocation3 + $0xf8] sm:$0xff]  ;;  %149 = vmatpush.msra.mxu2 %v60_v0  ;;  %v75_v3 = vld [vmem:[#allocation3 + $0xf0] sm:$0xff]  ;;  %v58_v4 = vld [vmem:[#allocation3 + $0x68] sm:$0xff]  ;;  %77 = vmatpush.msra.mxu0 %v60_v0 }
   0x7   :  { %165 = vmatpush.msra.mxu3 %v76_v1  ;;  %v74_v5 = vld [vmem:[#allocation3 + $0xe8] sm:$0xff]  ;;  %100 = vmatpush.msra.mxu1 %v76_v1  ;;  %v57_v6 = vld [vmem:[#allocation3 + $0x60] sm:$0xff]  ;;  %v56_v8 = vld [vmem:[#allocation3 + $0x58] sm:$0xff] }
   0x8   :  { %150 = vmatpush.msra.mxu2 %v59_v2  ;;  %v73_v7 = vld [vmem:[#allocation3 + $0xe0] sm:$0xff]  ;;  %78 = vmatpush.msra.mxu0 %v59_v2  ;;  %v72_v9 = vld [vmem:[#allocation3 + $0xd8] sm:$0xff]  ;;  %v55_v10 = vld [vmem:[#allocation3 + $0x50] sm:$0xff] }
   0x9   :  { %166 = vmatpush.msra.mxu3 %v75_v3  ;;  %101 = vmatpush.msra.mxu1 %v75_v3  ;;  %v71_v11 = vld [vmem:[#allocation3 + $0xd0] sm:$0xff]  ;;  %v54_v12 = vld [vmem:[#allocation3 + $0x48] sm:$0xff]  ;;  %v53_v14 = vld [vmem:[#allocation3 + $0x40] sm:$0xff] }
   0xa   :  { %151 = vmatpush.msra.mxu2 %v58_v4  ;;  %79 = vmatpush.msra.mxu0 %v58_v4  ;;  %v70_v13 = vld [vmem:[#allocation3 + $0xc8] sm:$0xff]  ;;  %v69_v15 = vld [vmem:[#allocation3 + $0xc0] sm:$0xff]  ;;  %v52_v16 = vld [vmem:[#allocation3 + $0x38] sm:$0xff] }
   0xb   :  { %167 = vmatpush.msra.mxu3 %v74_v5  ;;  %102 = vmatpush.msra.mxu1 %v74_v5  ;;  %v68_v17 = vld [vmem:[#allocation3 + $0xb8] sm:$0xff]  ;;  %v51_v18 = vld [vmem:[#allocation3 + $0x30] sm:$0xff]  ;;  %v50_v20 = vld [vmem:[#allocation3 + $0x28] sm:$0xff] }
   0xc   :  { %152 = vmatpush.msra.mxu2 %v57_v6  ;;  %80 = vmatpush.msra.mxu0 %v57_v6  ;;  %v67_v19 = vld [vmem:[#allocation3 + $0xb0] sm:$0xff]  ;;  %v66_v21 = vld [vmem:[#allocation3 + $0xa8] sm:$0xff]  ;;  %v49_v22 = vld [vmem:[#allocation3 + $0x20] sm:$0xff] }
   0xd   :  { %168 = vmatpush.msra.mxu3 %v73_v7  ;;  %103 = vmatpush.msra.mxu1 %v73_v7  ;;  %v65_v23 = vld [vmem:[#allocation3 + $0xa0] sm:$0xff]  ;;  %v48_v24 = vld [vmem:[#allocation3 + $0x18] sm:$0xff]  ;;  %v47_v26 = vld [vmem:[#allocation3 + $0x10] sm:$0xff] }
   0xe   :  { %153 = vmatpush.msra.mxu2 %v56_v8  ;;  %81 = vmatpush.msra.mxu0 %v56_v8  ;;  %v64_v25 = vld [vmem:[#allocation3 + $0x98] sm:$0xff]  ;;  %v63_v27 = vld [vmem:[#allocation3 + $0x90] sm:$0xff]  ;;  %v46_v28 = vld [vmem:[#allocation3 + $0x8] sm:$0xff] }
   0xf   :  { %169 = vmatpush.msra.mxu3 %v72_v9  ;;  %104 = vmatpush.msra.mxu1 %v72_v9  ;;  %v62_v29 = vld [vmem:[#allocation3 + $0x88] sm:$0xff]  ;;  %v45_v30 = vld [vmem:[#allocation3] sm:$0xff]  ;;  %v43_v32 = vld [vmem:[%s269_s0 + $0x10] sm:$0xff] }
  0x10   :  { %154 = vmatpush.msra.mxu2 %v55_v10  ;;  %82 = vmatpush.msra.mxu0 %v55_v10  ;;  %v61_v31 = vld [vmem:[#allocation3 + $0x80] sm:$0xff]  ;;  %v44_v33 = vld [vmem:[%s269_s0 + $0x18] sm:$0xff]  ;;  %v42_v35 = vld [vmem:[%s269_s0 + $0x8] sm:$0xff] }
  0x11   :  { %170 = vmatpush.msra.mxu3 %v71_v11  ;;  %105 = vmatpush.msra.mxu1 %v71_v11  ;;  %v41_v34 = vld [vmem:[%s269_s0] sm:$0xff]  ;;  %v139_v46 = vld [vmem:[%s272_s3 + $0x8] sm:$0xff] }
  0x12   :  { %155 = vmatpush.msra.mxu2 %v54_v12  ;;  %83 = vmatpush.msra.mxu0 %v54_v12  ;;  %v184_v36 = vld [vmem:[%s271_s2] ss:$0 sm:$0xff] }
  0x13   :  { %171 = vmatpush.msra.mxu3 %v70_v13  ;;  %106 = vmatpush.msra.mxu1 %v70_v13  ;;  %v138_v40 = vld [vmem:[%s272_s3] sm:$0xff] }
  0x14   :  { %156 = vmatpush.msra.mxu2 %v53_v14  ;;  %84 = vmatpush.msra.mxu0 %v53_v14 }
  0x15   :  { %172 = vmatpush.msra.mxu3 %v69_v15  ;;  %107 = vmatpush.msra.mxu1 %v69_v15 }
  0x16   :  { %157 = vmatpush.msra.mxu2 %v52_v16  ;;  %85 = vmatpush.msra.mxu0 %v52_v16 }
  0x17   :  { %173 = vmatpush.msra.mxu3 %v68_v17  ;;  %108 = vmatpush.msra.mxu1 %v68_v17 }
  0x18   :  { %158 = vmatpush.msra.mxu2 %v51_v18  ;;  %86 = vmatpush.msra.mxu0 %v51_v18 }
  0x19   :  { %174 = vmatpush.msra.mxu3 %v67_v19  ;;  %109 = vmatpush.msra.mxu1 %v67_v19 }
  0x1a   :  { %159 = vmatpush.msra.mxu2 %v50_v20  ;;  %87 = vmatpush.msra.mxu0 %v50_v20 }
  0x1b   :  { %175 = vmatpush.msra.mxu3 %v66_v21  ;;  %110 = vmatpush.msra.mxu1 %v66_v21 }
  0x1c   :  { %160 = vmatpush.msra.mxu2 %v49_v22  ;;  %88 = vmatpush.msra.mxu0 %v49_v22 }
  0x1d   :  { %176 = vmatpush.msra.mxu3 %v65_v23  ;;  %111 = vmatpush.msra.mxu1 %v65_v23 }
  0x1e   :  { %161 = vmatpush.msra.mxu2 %v48_v24  ;;  %89 = vmatpush.msra.mxu0 %v48_v24 }
  0x1f   :  { %177 = vmatpush.msra.mxu3 %v64_v25  ;;  %112 = vmatpush.msra.mxu1 %v64_v25 }
  0x20   :  { %162 = vmatpush.msra.mxu2 %v47_v26  ;;  %90 = vmatpush.msra.mxu0 %v47_v26 }
  0x21   :  { %178 = vmatpush.msra.mxu3 %v63_v27  ;;  %113 = vmatpush.msra.mxu1 %v63_v27 }
  0x22   :  { %163 = vmatpush.msra.mxu2 %v46_v28  ;;  %91 = vmatpush.msra.mxu0 %v46_v28 }
  0x23   :  { %179 = vmatpush.msra.mxu3 %v62_v29  ;;  %114 = vmatpush.msra.mxu1 %v62_v29 }
  0x24   :  { %164 = vmatpush.msra.mxu2 %v45_v30  ;;  %92 = vmatpush.msra.mxu0 %v45_v30 }
  0x25   :  { %180 = vmatpush.msra.mxu3 %v61_v31  ;;  %96 = vmatmul.f32.vlgmr.msra.gmra.mxu2 %v43_v32 }
  0x26   :  { %119 = vmatmul.f32.vlgmr.msra.gmra.mxu3 %v44_v33  ;;  %115 = vmatpush.msra.mxu1 %v61_v31 }
  0x27   :  { %93 = vmatmul.f32.vlgmr.msra.gmra.mxu0 %v41_v34  ;;  %116 = vmatmul.f32.vlgmr.msra.gmra.mxu1 %v42_v35 }
  0xa4   :  { %v94_v37 = vpop.f32.mrf.mxu0  ;;  %v117_v38 = vpop.f32.mrf.mxu1 }
  0xa5   :  { %v118_v39 = vadd.f32 %v117_v38, %v94_v37 }
  0xa7   :  { %v136_v41 = vadd.f32 %v184_v36, %v118_v39 }
  0xa8   :  { %v97_v42 = vpop.f32.mrf.mxu2 }
  0xa9   :  { %v120_v43 = vpop.f32.mrf.mxu3  ;;  %v140_v44 = vadd.f32 %v138_v40, %v136_v41 }
  0xaa   :  { %v121_v45 = vadd.f32 %v120_v43, %v97_v42 }
  0xab   :  { %142 = vst [vmem:[%s273_s4] sm:$0xff] %v140_v44 }
  0xac   :  { %v137_v47 = vadd.f32 %v184_v36, %v121_v45 }
  0xae   :  { %v141_v48 = vadd.f32 %v139_v46, %v137_v47 }
  0xb0   :  { %143 = vst [vmem:[%s273_s4 + $0x8] sm:$0xff] %v141_v48 }
  0xb1   :  { %148 = vsyncpa [#allocation4], 1 }

// kernel: transformer_decoder_layer.14
= control target key start
LH: loop header
LB: loop body
LE: loop exit
PB: predicated region body
PF: predicated region fallthrough
CT: control target
= control target key end

     0   :  { %s4530_s12 = smov 0   ;;  %s4532_s13 = smov 0   ;;  %s5915_s0 = inlined_call_operand.vmem [shape: f32[2,8,128], index: 0, kind: input, shape index: {}]   ;;  %s5916_s1 = inlined_call_operand.vmem [shape: f32[2,16,256], index: 1, kind: input, shape index: {}, may-alias: {1,2}]   ;;  %s5917_s2 = inlined_call_operand.vmem [shape: f32[2,16,256], index: 2, kind: input, shape index: {}, may-alias: {1,2}]   ;;  %s5918_s3 = inlined_call_operand.vmem [shape: f32[2,8,128], index: 3, kind: output, shape index: {}]  }
   0x1   :  { %s4534_s14 = smov 0   ;;  %s4536_s15 = smov 0  }
   0x2   :  { %s4538_s16 = smov 0  }
   0x3 LB: > { %s32_s17 = sadd.s32 1, %s4496_s15  ;;  %p76_p1 = scmp.ne.s32.totalorder %s4488_s13, %s4484_s12  ;;  %s4500_s16 = sphi %s4538_s16, %s13_s16   ;;  %s4496_s15 = sphi %s4536_s15, %s6076_s15   ;;  %s4492_s14 = sphi %s4534_s14, %s6075_s14   ;;  %s4488_s13 = sphi %s4532_s13, %s6074_s13   ;;  %s4484_s12 = sphi %s4530_s12, %s6073_s12  }
   0x4   : > { %p34_p0 = scmp.ge.s32.totalorder %s32_s17, 2  ;;  %p77_p2 = scmp.eq.s32.totalorder %s4500_s16, 0 }
   0x5   : > { %s69_s20 = sadd.s32 1, %s4488_s13  ;;  %p4011_p5 = scmp.ge.s32.totalorder %s4500_s16, 2 }
   0x6   : > { %s6078_s17 = smov (%p34_p0, %s32_s17), 0  ;;  %p4561_p3 = por %p77_p2, %p76_p1 }
   0x7   : > { %s64_s19 = ssub.s32 %s4496_s15, %s6078_s17  ;;  %158 = sbr.rel (%p4011_p5) target bundleno = 24 (0x18), region = 16 }
   0x8   : > { %p67_p4 = scmp.eq.s32.totalorder %s64_s19, 0 }
   0xa   : > { %s4569_s21 = scalar_select %p67_p4, %s4488_s13, %s69_s20  }
   0xc   : > { %171 = sbr.rel (!%p4561_p3) target bundleno = 18 (0x12), region = 24  ;;  %s173_s22 = sand.u32 (%p4561_p3), 1, %s4488_s13  }
   0xd   : > { %s4035_s23 = sshll.u32 (%p4561_p3), %s4496_s15, 5  ;;  %s4012_s24 = sshll.u32 (%p4561_p3), %s173_s22, 4 }
   0xe   : > { %s181_s27 = scalar_lea.vmem (%p4561_p3), %s5916_s1, %s4035_s23  ;;  %s175_s28 = scalar_lea.vmem (%p4561_p3), [#allocation5], %s4012_s24 }
   0xf   : > { %v212_v0 = vld [vmem:[%s181_s27] sm:$0xff] (%p4561_p3)  ;;  %v214_v1 = vld [vmem:[%s181_s27 + $0x10] sm:$0xff] (%p4561_p3) }
  0x10   : > { %213 = vst [vmem:[%s175_s28] sm:$0xff] (%p4561_p3), %v212_v0 }
  0x11   : > { %215 = vst [vmem:[%s175_s28 + $0x8] sm:$0xff] %v214_v1 }
  0x12 PF: > { %221 = sbr.rel (!%p4561_p3) target bundleno = 24 (0x18), region = 62  ;;  %s223_s29 = sand.u32 (%p4561_p3), 1, %s4488_s13  }
  0x13   : > { %s4036_s30 = sshll.u32 (%p4561_p3), %s4496_s15, 5  ;;  %s4015_s4 = sshll.u32 (%p4561_p3), %s223_s29, 4 }
  0x14   : > { %s3929_s7 = scalar_lea.vmem (%p4561_p3), %s5917_s2, %s4036_s30  ;;  %s225_s8 = scalar_lea.vmem (%p4561_p3), [#allocation6], %s4015_s4 }
  0x15   : > { %v4018_v2 = vld [vmem:[%s3929_s7 + $0x8] sm:$0xff] (%p4561_p3)  ;;  %v4019_v3 = vld [vmem:[%s3929_s7 + $0x18] sm:$0xff] (%p4561_p3) }
  0x16   : > { %264 = vst [vmem:[%s225_s8] sm:$0xff] (%p4561_p3), %v4018_v2 }
  0x17   : > { %266 = vst [vmem:[%s225_s8 + $0x8] sm:$0xff] %v4019_v3 }
  0x18 PF: > { %p4020_p6 = scmp.ge.s32.totalorder %s4500_s16, 1  ;;  %p271_p7 = scmp.lt.s32.totalorder %s4500_s16, 3 }
  0x1a   : > { %p272_p8 = pnand %p4020_p6, %p271_p7 }
  0x1c   : > { %275 = sbr.rel (%p272_p8) target bundleno = 1469 (0x5bd), region = 100 }
  0x21   : > { %p321_p9 = scmp.lt.s32.totalorder %s4492_s14, 1  ;;  %s278_s9 = sand.u32 1, %s4484_s12   ;;  %vm367_vm0 = vcmask 1047556   ;;  %v4505_v21 = vmov 1983009808   ;;  %vm350_vm1 = vcmask 261120  }
  0x22   : > { %s4594_s11 = sshll.u32 %s278_s9, 4  ;;  %s4502_s22 = smov 32   ;;  %v372_v22 = vunpack.c.l.s4 %v4505_v21  ;;  %v4506_v37 = vmov 1934713408   ;;  %vm341_vm2 = vcmask 7168   ;;  %vm3498_vm3 = vcmask 130048  }
  0x23   : > { %s6080_s14 = smov (!%p321_p9, %s4492_s14), 1  ;;  %s4503_s23 = smov 96   ;;  %v396_v38 = vunpack.c.l.s4 %v4506_v37  ;;  %vm3883_vm4 = vcmask 523264   ;;  %vm3885_vm5 = vcmask 785408  }
  0x24   : > { %s4023_s10 = sshll.u32 %s6080_s14, 3  ;;  %s280_s12 = scalar_lea.vmem [#allocation5], %s4594_s11  ;;  %v4629_v27 = vunpack.c.0.s8 %v372_v22 }
  0x25   : > { %s327_s20 = scalar_lea.vmem %s5915_s0, %s4023_s10  ;;  %v423_v5 = vld [vmem:[%s280_s12] sm:$0xff]  ;;  %v4608_v6 = vld [vmem:[%s280_s12 + $0x8] sm:$0xff]  ;;  %s4504_s24 = smov 64   ;;  %v4640_v47 = vunpack.c.0.s8 %v396_v38 }
  0x26   : > { %v4601_v4 = vld [vmem:[%s327_s20] sm:$0xff]  ;;  %v4090_v7 = vpack.i.bf16 %v4608_v6, %v423_v5  ;;  %v503_v15 = vrot.slane %v4608_v6, 4  ;;  %v447_v25 = vrot.slane %v423_v5, 4  ;;  %s287_s25 = scalar_lea.vmem [#allocation6], %s4594_s11  ;;  %s336_s28 = scalar_lea.vmem %s5918_s3, %s4023_s10 }
  0x27   : > { %363 = vrot.lane.b32.xlu1 %v4601_v4, %s4502_s22  ;;  %357 = vrot.lane.b32.xlu0 %v4601_v4, %s4503_s23 }
  0x28   : > { %4091 = vrot.lane.b32.xlu2 %v4090_v7, %s4504_s24 }
  0x2f   : > { %360 = vrot.lane.b32.xlu0 %v4601_v4, %s4504_s24  ;;  %4086 = vrot.lane.b32.xlu1 %v4090_v7, %s4503_s23 }
  0x30   : > { %4096 = vrot.lane.b32.xlu2 %v4090_v7, %s4502_s22 }
  0x82   : > { %v4616_v8 = vpop.permute.xlu2 %4091 }
  0x83   : > { %v4093_v9 = vunpack.i.l.bf16 %v4616_v8  ;;  %v4094_v16 = vunpack.i.h.bf16 %v4616_v8 }
  0x85   : > { %v445_v17 = vrot.slane %v4093_v9, 4  ;;  %v504_v23 = vsel %vm367_vm0, %v4094_v16, %v503_v15  ;;  %v448_v33 = vsel %vm367_vm0, %v4093_v9, %v447_v25 }
  0x86   : > { %v512_v31 = vperm.slane %v504_v23, %v4629_v27  ;;  %v456_v42 = vperm.slane %v448_v33, %v4629_v27 }
  0x87   : > { %v446_v24 = vsel %vm367_vm0, %v445_v17, %v423_v5 }
  0x88   : > { %v452_v32 = vperm.slane %v446_v24, %v4629_v27  ;;  %v539_v45 = vrot.slane %v512_v31, 4  ;;  %v483_v54 = vrot.slane %v456_v42, 4 }
  0x8a   : > { %v4097_v10 = vpop.permute.xlu2 %4096  ;;  %v471_v43 = vrot.slane %v452_v32, 4 }
  0x8b   : > { %v4098_v20 = vunpack.i.l.bf16 %v4097_v10  ;;  %v4099_v34 = vunpack.i.h.bf16 %v4097_v10  ;;  %v501_v10 = vrot.slane %v4094_v16, 4 }
  0x8d   : > { %v457_v26 = vrot.slane %v4098_v20, 4  ;;  %v513_v5 = vrot.slane %v4099_v34, 4 }
  0x99   : > { %v364_v11 = vpop.permute.xlu1 %363  ;;  %v358_v12 = vpop.permute.xlu0 %357 }
  0x9a   : > { %v379_v13 = vrot.slane %v364_v11, 4  ;;  %v381_v14 = vrot.slane %v358_v12, 4 }
  0x9c   : > { %v4622_v18 = vsel %vm367_vm0, %v379_v13, %v358_v12  ;;  %v4625_v19 = vsel %vm367_vm0, %v364_v11, %v381_v14  ;;  %v502_v13 = vsel %vm367_vm0, %v501_v10, %v4608_v6 }
  0x9d   : > { %v508_v17 = vperm.slane %v502_v13, %v4629_v27 }
  0x9f   : > { %v527_v23 = vrot.slane %v508_v17, 4 }
  0xa1   : > { %v4087_v28 = vpop.permute.xlu1 %4086 }
  0xa2   : > { %v4089_v29 = vunpack.i.h.bf16 %v4087_v28  ;;  %v4088_v30 = vunpack.i.l.bf16 %v4087_v28 }
  0xa4   : > { %v515_v35 = vrot.slane %v4089_v29, 4  ;;  %v458_v36 = vsel %vm367_vm0, %v457_v26, %v4088_v30  ;;  %v459_v40 = vrot.slane %v4088_v30, 4  ;;  %v514_v8 = vsel %vm367_vm0, %v513_v5, %v4089_v29 }
  0xa5   : > { %v464_v41 = vperm.slane %v458_v36, %v4629_v27  ;;  %v520_v11 = vperm.slane %v514_v8, %v4629_v27 }
  0xa6   : > { %v516_v39 = vsel %vm367_vm0, %v4099_v34, %v515_v35  ;;  %v460_v46 = vsel %vm367_vm0, %v4098_v20, %v459_v40  ;;  %v361_v40 = vpop.permute.xlu0 %360 }
  0xa7   : > { %v524_v44 = vperm.slane %v516_v39, %v4629_v27  ;;  %v472_v48 = vsel %vm367_vm0, %v464_v41, %v471_v43  ;;  %v468_v53 = vperm.slane %v460_v46, %v4629_v27  ;;  %v469_v1 = vrot.slane %v464_v41, 4 }
  0xa8   : > { %v480_v51 = vperm.slane %v472_v48, %v4640_v47  ;;  %v525_v14 = vrot.slane %v520_v11, 4  ;;  %v528_v28 = vsel %vm367_vm0, %v520_v11, %v527_v23  ;;  %v369_v39 = vrot.slane %v4601_v4, 4 }
  0xa9   : > { %v537_v49 = vrot.slane %v524_v44, 4  ;;  %v540_v50 = vsel %vm367_vm0, %v524_v44, %v539_v45  ;;  %v484_v58 = vsel %vm367_vm0, %v468_v53, %v483_v54  ;;  %v470_v3 = vsel %vm367_vm0, %v469_v1, %v452_v32 }
  0xaa   : > { %v548_v56 = vperm.slane %v540_v50, %v4640_v47  ;;  %v495_v57 = vrot.slane %v480_v51, 4  ;;  %v492_v60 = vperm.slane %v484_v58, %v4640_v47  ;;  %v481_v7 = vrot.slane %v468_v53, 4 }
  0xab   : > { %v538_v52 = vsel %vm367_vm0, %v537_v49, %v512_v31  ;;  %v526_v21 = vsel %vm367_vm0, %v525_v14, %v508_v17  ;;  %v536_v30 = vperm.slane %v528_v28, %v4640_v47  ;;  %v476_v33 = vperm.slane %v470_v3, %v4640_v47 }
  0xac   : > { %v544_v55 = vperm.slane %v538_v52, %v4640_v47  ;;  %v496_v61 = vsel %vm367_vm0, 0.0, %v495_v57  ;;  %v499_v63 = vrot.slane %v492_v60, 4  ;;  %v482_v9 = vsel %vm367_vm0, %v481_v7, %v456_v42 }
  0xad   : > { %v4188_v62 = vpack.i.bf16 %v496_v61, %v480_v51  ;;  %v488_v12 = vperm.slane %v482_v9, %v4640_v47  ;;  %v555_v24 = vrot.slane %v548_v56, 4  ;;  %v532_v25 = vperm.slane %v526_v21, %v4640_v47 }
  0xae   : > { %v4100_v59 = vpack.i.bf16 %v548_v56, %v544_v55  ;;  %v500_v0 = vsel %vm367_vm0, 0.0, %v499_v63  ;;  %v553_v20 = vrot.slane %v544_v55, 4  ;;  %v551_v34 = vrot.slane %v536_v30, 4 }
  0xaf   : > { %4189 = vxpose.xlu1.b32.start.end [1/1] (short) (narrow) %v4188_v62, 32  ;;  %v4122_v2 = vpack.i.bf16 %v500_v0, %v492_v60  ;;  %v497_v15 = vrot.slane %v488_v12, 4  ;;  %v556_v6 = vsel %vm367_vm0, 0.0, %v555_v24  ;;  %v549_v32 = vrot.slane %v532_v25, 4 }
  0xb0   : > { %4101 = vxpose.xlu2.b32.start.end [1/1] (short) (narrow) %v4100_v59, 32  ;;  %v554_v16 = vsel %vm367_vm0, 0.0, %v553_v20  ;;  %v4144_v31 = vpack.i.bf16 %v556_v6, %v536_v30  ;;  %v493_v36 = vrot.slane %v476_v33, 4  ;;  %v552_v37 = vsel %vm367_vm0, 0.0, %v551_v34 }
  0xb1   : > { %4123 = vxpose.xlu0.b32.start.end [1/1] (short) (narrow) %v4122_v2, 32  ;;  %v498_v22 = vsel %vm367_vm0, 0.0, %v497_v15  ;;  %v4232_v29 = vpack.i.bf16 %v554_v16, %v532_v25  ;;  %v550_v35 = vsel %vm367_vm0, 0.0, %v549_v32  ;;  %v370_v42 = vsel %vm367_vm0, %v361_v40, %v369_v39 }
  0xb2   : > { %v4210_v26 = vpack.i.bf16 %v498_v22, %v488_v12  ;;  %v4254_v38 = vpack.i.bf16 %v552_v37, %v550_v35  ;;  %v494_v41 = vsel %vm367_vm0, 0.0, %v493_v36  ;;  %v366_v44 = vrot.slane %v361_v40, 4 }
  0xb3   : > { %v4166_v43 = vpack.i.bf16 %v494_v41, %v476_v33  ;;  %v378_v45 = vperm.slane %v370_v42, %v4629_v27  ;;  %v390_v49 = vperm.slane %v4625_v19, %v4629_v27  ;;  %v386_v54 = vperm.slane %v4622_v18, %v4629_v27 }
  0xb4   : > { %v368_v46 = vsel %vm367_vm0, %v366_v44, %v4601_v4 }
  0xb5   : > { %v405_v48 = vrot.slane %v378_v45, 4  ;;  %v374_v50 = vperm.slane %v368_v46, %v4629_v27  ;;  %v403_v55 = vrot.slane %v390_v49, 4  ;;  %v391_v58 = vrot.slane %v386_v54, 4 }
  0xb7   : > { %v406_v51 = vsel %vm367_vm0, %v390_v49, %v405_v48  ;;  %v393_v52 = vrot.slane %v374_v50, 4  ;;  %v404_v57 = vsel %vm367_vm0, %v403_v55, %v378_v45  ;;  %v392_v60 = vsel %vm367_vm0, %v391_v58, %v374_v50 }
  0xb8   : > { %v414_v53 = vperm.slane %v406_v51, %v4640_v47  ;;  %v410_v19 = vperm.slane %v404_v57, %v4640_v47  ;;  %v398_v62 = vperm.slane %v392_v60, %v4640_v47 }
  0xb9   : > { %v394_v56 = vsel %vm367_vm0, %v386_v54, %v393_v52 }
  0xba   : > { %v421_v4 = vrot.slane %v414_v53, 4  ;;  %v402_v59 = vperm.slane %v394_v56, %v4640_v47  ;;  %v419_v0 = vrot.slane %v410_v19, 4  ;;  %v415_v3 = vrot.slane %v398_v62, 4 }
  0xbc   : > { %v422_v61 = vsel %vm367_vm0, 0.0, %v421_v4  ;;  %v417_v63 = vrot.slane %v402_v59, 4  ;;  %v702_v18 = vsel %vm367_vm0, %v421_v4, %v410_v19  ;;  %v420_v7 = vsel %vm367_vm0, 0.0, %v419_v0 }
  0xbd   : > { %v707_v1 = vrot.slane %v422_v61, 4  ;;  %v706_v2 = vperm.slane %v702_v18, %v4629_v27  ;;  %v416_v13 = vsel %vm367_vm0, 0.0, %v415_v3 }
  0xbe   : > { %v418_v5 = vsel %vm367_vm0, 0.0, %v417_v63  ;;  %v691_v9 = vsel %vm367_vm0, %v417_v63, %v398_v62 }
  0xbf   : > { %v708_v8 = vsel %vm367_vm0, %v707_v1, %v420_v7  ;;  %v695_v10 = vperm.slane %v691_v9, %v4629_v27  ;;  %v696_v11 = vrot.slane %v418_v5, 4  ;;  %v727_v12 = vrot.slane %v706_v2, 4 }
  0xc0   : > { %v712_v14 = vperm.slane %v708_v8, %v4629_v27 }
  0xc1   : > { %v697_v15 = vsel %vm367_vm0, %v696_v11, %v416_v13  ;;  %v715_v17 = vrot.slane %v695_v10, 4 }
  0xc2   : > { %v701_v20 = vperm.slane %v697_v15, %v4629_v27  ;;  %v728_v21 = vsel %vm367_vm0, %v712_v14, %v727_v12  ;;  %v725_v22 = vrot.slane %v712_v14, 4 }
  0xc3   : > { %v736_v23 = vperm.slane %v728_v21, %v4640_v47 }
  0xc4   : > { %v716_v24 = vsel %vm367_vm0, %v701_v20, %v715_v17  ;;  %v713_v16 = vrot.slane %v701_v20, 4  ;;  %v726_v25 = vsel %vm367_vm0, %v725_v22, %v706_v2 }
  0xc5   : > { %v741_v28 = vrot.slane %v736_v23, 4 }
  0xc6   : > { %v714_v6 = vsel %vm367_vm0, %v713_v16, %v695_v10 }
  0xcf   : > { %4233 = vxpose.xlu1.b32.start.end [1/1] (short) (narrow) %v4232_v29, 32  ;;  %v732_v29 = vperm.slane %v726_v25, %v4640_v47 }
  0xd0   : > { %4211 = vxpose.xlu2.b32.start.end [1/1] (short) (narrow) %v4210_v26, 32  ;;  %v724_v26 = vperm.slane %v716_v24, %v4640_v47 }
  0xd1   : > { %4145 = vxpose.xlu0.b32.start.end [1/1] (short) (narrow) %v4144_v31, 32  ;;  %v720_v31 = vperm.slane %v714_v6, %v4640_v47  ;;  %v737_v32 = vrot.slane %v732_v29, 4 }
  0xd2   : > { %v4710_v30 = vsel %vm367_vm0, %v741_v28, %v724_v26  ;;  %v743_v33 = vrot.slane %v724_v26, 4 }
  0xd3   : > { %5966 = vst [vmem:[#allocation7_spill] sm:$0xff] %v4710_v30  ;;  %v4714_v34 = vsel %vm367_vm0, %v737_v32, %v720_v31  ;;  %v739_v36 = vrot.slane %v720_v31, 4 }
  0xd4   : > { %5967 = vst [vmem:[#allocation8_spill] sm:$0xff] %v4714_v34  ;;  %v4717_v35 = vsel %vm367_vm0, %v736_v23, %v743_v33 }
  0xd5   : > { %5968 = vst [vmem:[#allocation9_spill] sm:$0xff] %v4717_v35  ;;  %v4720_v37 = vsel %vm367_vm0, %v732_v29, %v739_v36 }
  0xd6   : > { %5969 = vst [vmem:[#allocation10_spill] sm:$0xff] %v4720_v37 }
  0xf0   : > { %4255 = vxpose.xlu2.b32.start.end [1/1] (short) (narrow) %v4254_v38, 32 }
  0xf1   : > { %4167 = vxpose.xlu0.b32.start.end [1/1] (short) (narrow) %v4166_v43, 32 }
 0x149   : > { %v4102_v38 = vpop.trf.xlu2 }
 0x14a   : > { %v4106_v39 = vunpack.i.h.bf16 %v4102_v38  ;;  %v4103_v40 = vunpack.i.l.bf16 %v4102_v38 }
 0x14c   : > { %v1393_v44 = vrot.slane %v4106_v39, 4  ;;  %v1395_v45 = vrot.slane %v4103_v40, 4 }
 0x14e   : > { %v1394_v50 = vsel %vm367_vm0, %v1393_v44, %v4103_v40  ;;  %v1396_v51 = vsel %vm367_vm0, %v4106_v39, %v1395_v45 }
 0x14f   : > { %v4731_v57 = vperm.slane %v1394_v50, %v4629_v27  ;;  %v4734_v58 = vperm.slane %v1396_v51, %v4629_v27 }
 0x151   : > { %v4107_v41 = vpop.trf.xlu2 }
 0x152   : > { %v4111_v42 = vunpack.i.h.bf16 %v4107_v41  ;;  %v4108_v43 = vunpack.i.l.bf16 %v4107_v41 }
 0x153   : > { %v4722_v49 = vpop.trf.xlu1 }
 0x154   : > { %v1617_v46 = vrot.slane %v4111_v42, 4  ;;  %v1619_v48 = vrot.slane %v4108_v43, 4  ;;  %v5926_v60 = vunpack.i.h.bf16 %v4722_v49  ;;  %v5925_v61 = vunpack.i.l.bf16 %v4722_v49 }
 0x155   : > { %v4726_v52 = vpop.trf.xlu0 }
 0x156   : > { %v1618_v54 = vsel %vm367_vm0, %v1617_v46, %v4108_v43  ;;  %v1620_v55 = vsel %vm367_vm0, %v4111_v42, %v1619_v48  ;;  %v4128_v5 = vunpack.i.h.bf16 %v4726_v52  ;;  %v4755_v9 = vrot.slane %v5926_v60, 4 }
 0x157   : > { %v4737_v59 = vperm.slane %v1618_v54, %v4629_v27  ;;  %v4740_v19 = vperm.slane %v1620_v55, %v4629_v27  ;;  %v4759_v10 = vrot.slane %v5925_v61, 4  ;;  %v4125_v12 = vunpack.i.l.bf16 %v4726_v52 }
 0x158   : > { %v1293_v20 = vrot.slane %v4128_v5, 4 }
 0x159   : > { %v4112_v53 = vpop.trf.xlu2  ;;  %v1281_v31 = vrot.slane %v4125_v12, 4 }
 0x15a   : > { %v4116_v56 = vunpack.i.h.bf16 %v4112_v53  ;;  %v4113_v4 = vunpack.i.l.bf16 %v4112_v53 }
 0x15b   : > { %v4744_v63 = vpop.trf.xlu1 }
 0x15c   : > { %v1841_v62 = vrot.slane %v4116_v56, 4  ;;  %v1843_v0 = vrot.slane %v4113_v4, 4  ;;  %v5924_v15 = vunpack.i.h.bf16 %v4744_v63  ;;  %v5923_v22 = vunpack.i.l.bf16 %v4744_v63 }
 0x15d   : > { %v4751_v7 = vpop.trf.xlu0 }
 0x15e   : > { %v1842_v11 = vsel %vm367_vm0, %v1841_v62, %v4113_v4  ;;  %v1844_v13 = vsel %vm367_vm0, %v4116_v56, %v1843_v0  ;;  %v4133_v16 = vunpack.i.h.bf16 %v4751_v7  ;;  %v4130_v25 = vunpack.i.l.bf16 %v4751_v7 }
 0x15f   : > { %v4766_v21 = vperm.slane %v1842_v11, %v4629_v27  ;;  %v4770_v24 = vperm.slane %v1844_v13, %v4629_v27  ;;  %v4780_v32 = vrot.slane %v5924_v15, 4  ;;  %v4789_v39 = vrot.slane %v5923_v22, 4 }
 0x160   : > { %v1517_v45 = vrot.slane %v4133_v16, 4  ;;  %v1505_v48 = vrot.slane %v4130_v25, 4 }
 0x161   : > { %v4117_v8 = vpop.trf.xlu2  ;;  %5970 = vst [vmem:[#allocation11_spill] sm:$0xff] %v4770_v24 }
 0x162   : > { %v4121_v14 = vunpack.i.h.bf16 %v4117_v8  ;;  %v4118_v17 = vunpack.i.l.bf16 %v4117_v8 }
 0x163   : > { %v4774_v28 = vpop.trf.xlu1 }
 0x164   : > { %v2065_v23 = vrot.slane %v4121_v14, 4  ;;  %v2067_v26 = vrot.slane %v4118_v17, 4  ;;  %v5922_v6 = vunpack.i.h.bf16 %v4774_v28  ;;  %v5921_v41 = vunpack.i.l.bf16 %v4774_v28 }
 0x165   : > { %v4795_v42 = vpop.trf.xlu0 }
 0x166   : > { %v2066_v29 = vsel %vm367_vm0, %v2065_v23, %v4118_v17  ;;  %v2068_v33 = vsel %vm367_vm0, %v4121_v14, %v2067_v26  ;;  %v4138_v46 = vunpack.i.h.bf16 %v4795_v42  ;;  %v4805_v50 = vrot.slane %v5922_v6, 4 }
 0x167   : > { %v4784_v36 = vperm.slane %v2066_v29, %v4629_v27  ;;  %v4792_v40 = vperm.slane %v2068_v33, %v4629_v27  ;;  %v4811_v55 = vrot.slane %v5921_v41, 4  ;;  %v4135_v56 = vunpack.i.l.bf16 %v4795_v42 }
 0x168   : > { %v1741_v62 = vrot.slane %v4138_v46, 4 }
 0x169   : > { %5971 = vst [vmem:[#allocation12_spill] sm:$0xff] %v4784_v36  ;;  %v4212_v43 = vpop.trf.xlu2 }
 0x16a   : > { %5972 = vst [vmem:[#allocation13_spill] sm:$0xff] %v4792_v40  ;;  %v4216_v51 = vunpack.i.h.bf16 %v4212_v43  ;;  %v4213_v53 = vunpack.i.l.bf16 %v4212_v43 }
 0x16b   : > { %v4818_v13 = vpop.trf.xlu1 }
 0x16c   : > { %v1295_v4 = vrot.slane %v4216_v51, 4  ;;  %v1294_v0 = vsel %vm367_vm0, %v1293_v20, %v4216_v51  ;;  %v1282_v8 = vsel %vm367_vm0, %v1281_v31, %v4213_v53  ;;  %v1283_v11 = vrot.slane %v4213_v53, 4 }
 0x16d   : > { %v4822_v17 = vperm.slane %v1282_v8, %v4629_v27  ;;  %v5920_v23 = vunpack.i.h.bf16 %v4818_v13  ;;  %v5919_v29 = vunpack.i.l.bf16 %v4818_v13  ;;  %v1729_v20 = vrot.slane %v4135_v56, 4  ;;  %v4839_v51 = vpop.trf.xlu0 }
 0x16e   : > { %v1296_v14 = vsel %vm367_vm0, %v4128_v5, %v1295_v4  ;;  %v1284_v26 = vsel %vm367_vm0, %v4125_v12, %v1283_v11  ;;  %v4833_v31 = vperm.slane %v1294_v0, %v4629_v27  ;;  %v5928_v4 = vunpack.i.h.bf16 %v4839_v51 }
 0x16f   : > { %5973 = vst [vmem:[#allocation14_spill] sm:$0xff] %v4822_v17  ;;  %v4828_v33 = vperm.slane %v1296_v14, %v4629_v27  ;;  %v4836_v5 = vperm.slane %v1284_v26, %v4629_v27  ;;  %v4843_v12 = vrot.slane %v5920_v23, 4  ;;  %v5927_v8 = vunpack.i.l.bf16 %v4839_v51 }
 0x170   : > { %5974 = vst [vmem:[#allocation15_spill] sm:$0xff] %v4833_v31  ;;  %v4849_v0 = vrot.slane %v5919_v29, 4  ;;  %v4853_v14 = vrot.slane %v5928_v4, 4 }
 0x171   : > { %v4217_v53 = vpop.trf.xlu2  ;;  %v1341_v38 = vrot.slane %v4828_v33, 4  ;;  %v4858_v54 = vrot.slane %v5927_v8, 4 }
 0x172   : > { %v4221_v11 = vunpack.i.h.bf16 %v4217_v53  ;;  %v4218_v26 = vunpack.i.l.bf16 %v4217_v53 }
 0x173   : > { %v4234_v29 = vpop.trf.xlu1  ;;  %v4868_v53 = vsel %vm367_vm0, %v1341_v38, %v4836_v5 }
 0x174   : > { %v1518_v52 = vsel %vm367_vm0, %v1517_v45, %v4221_v11  ;;  %v1519_v44 = vrot.slane %v4221_v11, 4  ;;  %v1506_v18 = vsel %vm367_vm0, %v1505_v48, %v4218_v26  ;;  %v1507_v1 = vrot.slane %v4218_v26, 4 }
 0x175   : > { %v4863_v2 = vperm.slane %v1518_v52, %v4629_v27  ;;  %v4874_v45 = vperm.slane %v1506_v18, %v4629_v27  ;;  %v4238_v11 = vunpack.i.h.bf16 %v4234_v29 }
 0x176   : > { %v1520_v23 = vsel %vm367_vm0, %v4133_v16, %v1519_v44  ;;  %v1508_v48 = vsel %vm367_vm0, %v4130_v25, %v1507_v1  ;;  %v4235_v16 = vunpack.i.l.bf16 %v4234_v29  ;;  %v4146_v44 = vpop.trf.xlu0 }
 0x177   : > { %v4877_v43 = vperm.slane %v1520_v23, %v4629_v27  ;;  %v4884_v38 = vperm.slane %v1508_v48, %v4629_v27  ;;  %v1407_v41 = vrot.slane %v4238_v11, 4  ;;  %v4150_v6 = vunpack.i.h.bf16 %v4146_v44 }
 0x178   : > { %v4147_v22 = vunpack.i.l.bf16 %v4146_v44  ;;  %v1371_v15 = vrot.slane %v4235_v16, 4 }
 0x179   : > { %v4222_v18 = vpop.trf.xlu2  ;;  %v1405_v61 = vrot.slane %v4150_v6, 4  ;;  %v1408_v52 = vsel %vm367_vm0, %v4150_v6, %v1407_v41 }
 0x17a   : > { %v4226_v23 = vunpack.i.h.bf16 %v4222_v18  ;;  %v1369_v60 = vrot.slane %v4147_v22, 4  ;;  %v4223_v7 = vunpack.i.l.bf16 %v4222_v18  ;;  %v4889_v1 = vperm.slane %v1408_v52, %v4629_v27 }
 0x17b   : > { %v1372_v25 = vsel %vm367_vm0, %v4147_v22, %v1371_v15  ;;  %v1406_v29 = vsel %vm367_vm0, %v1405_v61, %v4238_v11  ;;  %v4239_v6 = vpop.trf.xlu1 }
 0x17c   : > { %v1742_v48 = vsel %vm367_vm0, %v1741_v62, %v4226_v23  ;;  %v1743_v26 = vrot.slane %v4226_v23, 4  ;;  %v1370_v3 = vsel %vm367_vm0, %v1369_v60, %v4235_v16  ;;  %v4896_v44 = vperm.slane %v1372_v25, %v4629_v27 }
 0x17d   : > { %v4899_v8 = vperm.slane %v1742_v48, %v4629_v27  ;;  %v4902_v41 = vperm.slane %v1406_v29, %v4629_v27  ;;  %v4906_v15 = vperm.slane %v1370_v3, %v4629_v27  ;;  %v1730_v11 = vsel %vm367_vm0, %v1729_v20, %v4223_v7 }
 0x17e   : > { %v1744_v61 = vsel %vm367_vm0, %v4138_v46, %v1743_v26  ;;  %v1731_v16 = vrot.slane %v4223_v7, 4  ;;  %v4918_v18 = vperm.slane %v1730_v11, %v4629_v27  ;;  %v4243_v23 = vunpack.i.h.bf16 %v4239_v6  ;;  %v4151_v3 = vpop.trf.xlu0 }
 0x17f   : > { %v4913_v22 = vperm.slane %v1744_v61, %v4629_v27  ;;  %v4240_v48 = vunpack.i.l.bf16 %v4239_v6  ;;  %v4155_v29 = vunpack.i.h.bf16 %v4151_v3  ;;  %v4152_v52 = vunpack.i.l.bf16 %v4151_v3 }
 0x180   : > { %v1732_v46 = vsel %vm367_vm0, %v4135_v56, %v1731_v16  ;;  %v1631_v61 = vrot.slane %v4243_v23, 4 }
 0x181   : > { %v4227_v25 = vpop.trf.xlu2  ;;  %v4925_v62 = vperm.slane %v1732_v46, %v4629_v27  ;;  %v1595_v20 = vrot.slane %v4240_v48, 4  ;;  %v1629_v7 = vrot.slane %v4155_v29, 4  ;;  %v1593_v42 = vrot.slane %v4152_v52, 4 }
 0x182   : > { %v1632_v11 = vsel %vm367_vm0, %v4155_v29, %v1631_v61  ;;  %v4231_v60 = vunpack.i.h.bf16 %v4227_v25 }
 0x183   : > { %v1630_v4 = vsel %vm367_vm0, %v1629_v7, %v4243_v23  ;;  %v4930_v6 = vperm.slane %v1632_v11, %v4629_v27  ;;  %v1596_v56 = vsel %vm367_vm0, %v4152_v52, %v1595_v20  ;;  %v4244_v16 = vpop.trf.xlu1  ;;  %v1594_v23 = vsel %vm367_vm0, %v1593_v42, %v4240_v48 }
 0x184   : > { %v4934_v26 = vperm.slane %v1630_v4, %v4629_v27  ;;  %v4937_v46 = vperm.slane %v1596_v56, %v4629_v27  ;;  %v1966_v3 = vsel %vm367_vm0, %v4853_v14, %v4231_v60  ;;  %v1967_v29 = vrot.slane %v4231_v60, 4 }
 0x185   : > { %v4944_v7 = vperm.slane %v1966_v3, %v4629_v27  ;;  %v4228_v11 = vunpack.i.l.bf16 %v4227_v25  ;;  %v4948_v4 = vperm.slane %v1594_v23, %v4629_v27  ;;  %v5976_v56 = vunpack.i.h.bf16 %v4839_v51 }
 0x186   : > { %v4156_v60 = vpop.trf.xlu0  ;;  %v4248_v42 = vunpack.i.h.bf16 %v4244_v16  ;;  %v4245_v23 = vunpack.i.l.bf16 %v4244_v16  ;;  %v5979_v20 = vunpack.i.l.bf16 %v4839_v51 }
 0x187   : > { %5975 = vst [vmem:[#allocation16_spill] sm:$0xff] %v4944_v7  ;;  %v1968_v14 = vsel %vm367_vm0, %v5976_v56, %v1967_v29  ;;  %v1954_v48 = vsel %vm367_vm0, %v4858_v54, %v4228_v11  ;;  %v1955_v25 = vrot.slane %v4228_v11, 4  ;;  %v4160_v29 = vunpack.i.h.bf16 %v4156_v60 }
 0x188   : > { %v4955_v61 = vperm.slane %v1968_v14, %v4629_v27  ;;  %v4960_v3 = vperm.slane %v1954_v48, %v4629_v27  ;;  %v1855_v35 = vrot.slane %v4248_v42, 4  ;;  %v1819_v34 = vrot.slane %v4245_v23, 4 }
 0x189   : > { %v4256_v37 = vpop.trf.xlu2  ;;  %v1956_v52 = vsel %vm367_vm0, %v5979_v20, %v1955_v25  ;;  %v1853_v30 = vrot.slane %v4160_v29, 4  ;;  %v4157_v11 = vunpack.i.l.bf16 %v4156_v60 }
 0x18a   : > { %5977 = vst [vmem:[#allocation17_spill] sm:$0xff] %v4955_v61  ;;  %v4966_v56 = vperm.slane %v1956_v52, %v4629_v27  ;;  %v1856_v54 = vsel %vm367_vm0, %v4160_v29, %v1855_v35  ;;  %v4260_v36 = vunpack.i.h.bf16 %v4256_v37  ;;  %v4257_v16 = vunpack.i.l.bf16 %v4256_v37 }
 0x18b   : > { %5978 = vst [vmem:[#allocation18_spill] sm:$0xff] %v4960_v3  ;;  %v4971_v48 = vperm.slane %v1856_v54, %v4629_v27  ;;  %v4249_v51 = vpop.trf.xlu1  ;;  %v1854_v20 = vsel %vm367_vm0, %v1853_v30, %v4248_v42  ;;  %v1817_v25 = vrot.slane %v4157_v11, 4  ;;  %v1820_v40 = vsel %vm367_vm0, %v4157_v11, %v1819_v34 }
 0x18c   : > { %5980 = vst [vmem:[#allocation19_spill] sm:$0xff] %v4966_v56  ;;  %v1381_v52 = vrot.slane %v4260_v36, 4  ;;  %v4976_v56 = vperm.slane %v1854_v20, %v4629_v27  ;;  %v4980_v35 = vperm.slane %v1820_v40, %v4629_v27  ;;  %v1383_v60 = vrot.slane %v4257_v16, 4 }
 0x18d   : > { %5981 = vst [vmem:[#allocation20_spill] sm:$0xff] %v4971_v48  ;;  %v1818_v37 = vsel %vm367_vm0, %v1817_v25, %v4245_v23  ;;  %v4253_v30 = vunpack.i.h.bf16 %v4249_v51  ;;  %v4250_v23 = vunpack.i.l.bf16 %v4249_v51 }
 0x18e   : > { %5982 = vst [vmem:[#allocation21_spill] sm:$0xff] %v4976_v56  ;;  %v4161_v29 = vpop.trf.xlu0  ;;  %v1382_v7 = vsel %vm367_vm0, %v1381_v52, %v4257_v16  ;;  %v4986_v34 = vperm.slane %v1818_v37, %v4629_v27  ;;  %v1384_v20 = vsel %vm367_vm0, %v4260_v36, %v1383_v60  ;;  %v5985_v52 = vrot.slane %v4836_v5, 4 }
 0x18f   : > { %5983 = vst [vmem:[#allocation22_spill] sm:$0xff] %v4980_v35  ;;  %v4991_v40 = vperm.slane %v1382_v7, %v4629_v27  ;;  %v4994_v14 = vperm.slane %v1384_v20, %v4629_v27  ;;  %v2079_v3 = vrot.slane %v4253_v30, 4  ;;  %v4165_v25 = vunpack.i.h.bf16 %v4161_v29 }
 0x190   : > { %v4162_v42 = vunpack.i.l.bf16 %v4161_v29  ;;  %v2043_v61 = vrot.slane %v4250_v23, 4  ;;  %v1344_v29 = vsel %vm367_vm0, %v4828_v33, %v5985_v52 }
 0x191   : > { %v4261_v54 = vpop.trf.xlu2  ;;  %v2077_v48 = vrot.slane %v4165_v25, 4  ;;  %v2080_v11 = vsel %vm367_vm0, %v4165_v25, %v2079_v3 }
 0x192   : > { %v4265_v37 = vunpack.i.h.bf16 %v4261_v54  ;;  %v5000_v36 = vperm.slane %v2080_v11, %v4629_v27  ;;  %v2041_v7 = vrot.slane %v4162_v42, 4  ;;  %v2044_v51 = vsel %vm367_vm0, %v4162_v42, %v2043_v61 }
 0x193   : > { %v2078_v20 = vsel %vm367_vm0, %v2077_v48, %v4253_v30  ;;  %v4262_v24 = vunpack.i.l.bf16 %v4261_v54  ;;  %v5014_v25 = vperm.slane %v2044_v51, %v4629_v27 }
 0x194   : > { %5984 = vst [vmem:[#allocation23_spill] sm:$0xff] %v5000_v36  ;;  %v1605_v60 = vrot.slane %v4265_v37, 4  ;;  %v5009_v56 = vperm.slane %v2078_v20, %v4629_v27  ;;  %v2042_v11 = vsel %vm367_vm0, %v2041_v7, %v4250_v23 }
 0x195   : > { %5987 = vst [vmem:[#allocation25_spill] sm:$0xff] %v5014_v25  ;;  %v5017_v61 = vperm.slane %v2042_v11, %v4629_v27  ;;  %v1607_v54 = vrot.slane %v4262_v24, 4  ;;  %v5989_v11 = vunpack.i.h.bf16 %v4722_v49 }
 0x196   : > { %v4168_v35 = vpop.trf.xlu0  ;;  %5986 = vst [vmem:[#allocation24_spill] sm:$0xff] %v5009_v56  ;;  %v1606_v48 = vsel %vm367_vm0, %v1605_v60, %v4262_v24 }
 0x197   : > { %5988 = vst [vmem:[#allocation26_spill] sm:$0xff] %v5017_v61  ;;  %v4172_v5 = vunpack.i.h.bf16 %v4168_v35  ;;  %v5022_v33 = vperm.slane %v1606_v48, %v4629_v27  ;;  %v1608_v42 = vsel %vm367_vm0, %v4265_v37, %v1607_v54  ;;  %v4169_v7 = vunpack.i.l.bf16 %v4168_v35 }
 0x198   : > { %v5028_v20 = vperm.slane %v1608_v42, %v4629_v27 }
 0x199   : > { %v4266_v16 = vpop.trf.xlu2  ;;  %v1270_v23 = vsel %vm367_vm0, %v4755_v9, %v4172_v5  ;;  %v1271_v52 = vrot.slane %v4172_v5, 4  ;;  %v1258_v37 = vsel %vm367_vm0, %v4759_v10, %v4169_v7  ;;  %v1259_v54 = vrot.slane %v4169_v7, 4 }
 0x19a   : > { %v5032_v24 = vperm.slane %v1270_v23, %v4629_v27  ;;  %v4270_v60 = vunpack.i.h.bf16 %v4266_v16  ;;  %v5043_v42 = vperm.slane %v1258_v37, %v4629_v27  ;;  %v5991_v23 = vunpack.i.l.bf16 %v4722_v49 }
 0x19b   : > { %v1272_v48 = vsel %vm367_vm0, %v5989_v11, %v1271_v52  ;;  %v4267_v51 = vunpack.i.l.bf16 %v4266_v16 }
 0x19c   : > { %v1280_v35 = vperm.slane %v1272_v48, %v4629_v27  ;;  %5990 = vst [vmem:[#allocation27_spill] sm:$0xff] %v5043_v42  ;;  %v1260_v30 = vsel %vm367_vm0, %v5991_v23, %v1259_v54  ;;  %v1829_v3 = vrot.slane %v4270_v60, 4 }
 0x19d   : > { %v1831_v9 = vrot.slane %v4267_v51, 4 }
 0x19e   : > { %v4173_v52 = vpop.trf.xlu0  ;;  %v1830_v7 = vsel %vm367_vm0, %v1829_v3, %v4267_v51 }
 0x19f   : > { %v4177_v56 = vunpack.i.h.bf16 %v4173_v52  ;;  %v4174_v10 = vunpack.i.l.bf16 %v4173_v52  ;;  %v5050_v48 = vperm.slane %v1830_v7, %v4629_v27  ;;  %v1832_v16 = vsel %vm367_vm0, %v4270_v60, %v1831_v9 }
 0x1a0   : > { %v5064_v51 = vperm.slane %v1832_v16, %v4629_v27  ;;  %v5993_v60 = vunpack.i.l.bf16 %v4744_v63  ;;  %v1317_v16 = vrot.slane %v1280_v35, 4  ;;  %v5080_v52 = vperm.slane %v4868_v53, %v4640_v47 }
 0x1a1   : > { %v4271_v11 = vpop.trf.xlu2  ;;  %v1494_v37 = vsel %vm367_vm0, %v4780_v32, %v4177_v56  ;;  %v1495_v5 = vrot.slane %v4177_v56, 4  ;;  %v1482_v49 = vsel %vm367_vm0, %v4789_v39, %v4174_v10  ;;  %v1483_v23 = vrot.slane %v4174_v10, 4 }
 0x1a2   : > { %v4275_v61 = vunpack.i.h.bf16 %v4271_v11  ;;  %v5058_v54 = vperm.slane %v1494_v37, %v4629_v27  ;;  %v5061_v3 = vperm.slane %v1482_v49, %v4629_v27  ;;  %v5992_v32 = vunpack.i.h.bf16 %v4744_v63  ;;  %5994 = vst [vmem:[#allocation28_spill] sm:$0xff] %v5080_v52 }
 0x1a3   : > { %v1484_v9 = vsel %vm367_vm0, %v5993_v60, %v1483_v23  ;;  %v4272_v10 = vunpack.i.l.bf16 %v4271_v11  ;;  %v1268_v49 = vperm.slane %v1260_v30, %v4629_v27  ;;  %v1307_v63 = vrot.slane %v5043_v42, 4 }
 0x1a4   : > { %v1496_v56 = vsel %vm367_vm0, %v5992_v32, %v1495_v5  ;;  %v2053_v7 = vrot.slane %v4275_v61, 4 }
 0x1a5   : > { %v5071_v39 = vperm.slane %v1496_v56, %v4629_v27  ;;  %v2055_v32 = vrot.slane %v4272_v10, 4  ;;  %v1352_v56 = vperm.slane %v1344_v29, %v4640_v47  ;;  %v1318_v37 = vsel %vm367_vm0, %v1317_v16, %v1268_v49 }
 0x1a6   : > { %v2054_v5 = vsel %vm367_vm0, %v2053_v7, %v4272_v10  ;;  %v4178_v36 = vpop.trf.xlu0  ;;  %v1319_v25 = vrot.slane %v1268_v49, 4  ;;  %v5995_v16 = vunpack.i.h.bf16 %v4774_v28 }
 0x1a7   : > { %v5086_v23 = vperm.slane %v2054_v5, %v4629_v27  ;;  %v4182_v11 = vunpack.i.h.bf16 %v4178_v36  ;;  %v2056_v60 = vsel %vm367_vm0, %v4275_v61, %v2055_v32  ;;  %v4179_v30 = vunpack.i.l.bf16 %v4178_v36 }
 0x1a8   : > { %v5091_v53 = vperm.slane %v2056_v60, %v4629_v27  ;;  %v1320_v36 = vsel %vm367_vm0, %v1280_v35, %v1319_v25  ;;  %v1361_v35 = vrot.slane %v5080_v52, 4 }
 0x1a9   : > { %v1718_v29 = vsel %vm367_vm0, %v4805_v50, %v4182_v11  ;;  %v1719_v10 = vrot.slane %v4182_v11, 4  ;;  %v1706_v5 = vsel %vm367_vm0, %v4811_v55, %v4179_v30  ;;  %v1707_v61 = vrot.slane %v4179_v30, 4 }
 0x1aa   : > { %v5097_v42 = vperm.slane %v1718_v29, %v4629_v27  ;;  %v5107_v60 = vperm.slane %v1706_v5, %v4629_v27  ;;  %v5110_v50 = vperm.slane %v1318_v37, %v4640_v47  ;;  %v5997_v55 = vunpack.i.l.bf16 %v4774_v28 }
 0x1ab   : > { %v1720_v32 = vsel %vm367_vm0, %v5995_v16, %v1719_v10  ;;  %v1328_v25 = vperm.slane %v1320_v36, %v4640_v47  ;;  %v1308_v29 = vsel %vm367_vm0, %v5032_v24, %v1307_v63  ;;  %v5998_v10 = vrot.slane %v4822_v17, 4 }
 0x1ac   : > { %5996 = vst [vmem:[#allocation29_spill] sm:$0xff] %v5110_v50  ;;  %v5113_v11 = vperm.slane %v1720_v32, %v4629_v27  ;;  %v5118_v30 = vsel %vm367_vm0, %v5997_v55, %v1707_v61  ;;  %v1529_v5 = vrot.slane %v5058_v54, 4  ;;  %v5999_v28 = vrot.slane %v4863_v2, 4 }
 0x1ad   : > { %v1332_v37 = vsel %vm367_vm0, %v4833_v31, %v5998_v10  ;;  %v1362_v36 = vsel %vm367_vm0, %v1361_v35, %v5110_v50  ;;  %v1367_v16 = vrot.slane %v1328_v25, 4  ;;  %v5136_v32 = vperm.slane %v1308_v29, %v4640_v47 }
 0x1ae   : > { %v1554_v61 = vsel %vm367_vm0, %v5999_v28, %v4874_v45  ;;  %v5139_v63 = vperm.slane %v1332_v37, %v4640_v47  ;;  %v4183_v55 = vpop.trf.xlu0  ;;  %v1530_v10 = vsel %vm367_vm0, %v1529_v5, %v5061_v3 }
 0x1af   : > { %6000 = vst [vmem:[#allocation30_spill] sm:$0xff] %v5136_v32  ;;  %v5144_v7 = vperm.slane %v1554_v61, %v4640_v47  ;;  %v4187_v49 = vunpack.i.h.bf16 %v4183_v55  ;;  %v1368_v28 = vsel %vm367_vm0, %v1352_v56, %v1367_v16  ;;  %v5149_v35 = vperm.slane %v1530_v10, %v4640_v47 }
 0x1b0   : > { %6001 = vst [vmem:[#allocation31_spill] sm:$0xff] %v5139_v63  ;;  %v1357_v52 = vrot.slane %v5139_v63, 4  ;;  %v4276_v29 = vpack.i.bf16 %v1368_v28, %v1362_v36  ;;  %v4184_v31 = vunpack.i.l.bf16 %v4183_v55  ;;  %v1365_v16 = vrot.slane %v1352_v56, 4 }
 0x1b1   : > { %6002 = vst [vmem:[#allocation32_spill] sm:$0xff] %v5144_v7  ;;  %v1577_v17 = vrot.slane %v5144_v7, 4  ;;  %v1942_v37 = vsel %vm367_vm0, %v4843_v12, %v4187_v49  ;;  %v1943_v50 = vrot.slane %v4187_v49, 4  ;;  %v6004_v36 = vunpack.i.h.bf16 %v4818_v13 }
 0x1b2   : > { %6003 = vst [vmem:[#allocation33_spill] sm:$0xff] %v5149_v35  ;;  %v1358_v5 = vsel %vm367_vm0, %v1357_v52, %v5136_v32  ;;  %v5157_v61 = vperm.slane %v1942_v37, %v4629_v27  ;;  %4277 = vxpose.xlu2.b32.start [1/2] (short) (narrow) %v4276_v29, 8  ;;  %v5165_v63 = vperm.slane %v1484_v9, %v4629_v27  ;;  %v1541_v12 = vrot.slane %v5071_v39, 4 }
 0x1b3   : > { %v1578_v10 = vsel %vm367_vm0, %v1577_v17, %v5149_v35  ;;  %v1944_v28 = vsel %vm367_vm0, %v6004_v36, %v1943_v50  ;;  %v1930_v56 = vsel %vm367_vm0, %v4849_v0, %v4184_v31  ;;  %v1931_v29 = vrot.slane %v4184_v31, 4 }
 0x1b4   : > { %v4285_v49 = vpack.i.bf16 %v1578_v10, %v1358_v5  ;;  %v5169_v52 = vperm.slane %v1944_v28, %v4629_v27  ;;  %v5175_v17 = vperm.slane %v1930_v56, %v4629_v27  ;;  %v1366_v50 = vsel %vm367_vm0, %v1365_v16, %v1328_v25 }
 0x1b5   : > { %v1542_v9 = vsel %vm367_vm0, %v1541_v12, %v5165_v63  ;;  %v1565_v5 = vrot.slane %v4877_v43, 4  ;;  %v6005_v10 = vrot.slane %v4994_v14, 4  ;;  %v6006_v31 = vrot.slane %v4896_v44, 4 }
 0x1b6   : > { %4286 = vxpose.xlu0.b32.start [1/2] (short) (narrow) %v4285_v49, 8  ;;  %v5181_v37 = vperm.slane %v1542_v9, %v4640_v47  ;;  %v6007_v25 = vunpack.i.l.bf16 %v4818_v13  ;;  %v6008_v49 = vrot.slane %v4889_v1, 4  ;;  %v1419_v9 = vrot.slane %v4906_v15, 4 }
 0x1b7   : > { %v1430_v0 = vsel %vm367_vm0, %v6005_v10, %v4896_v44  ;;  %v1432_v36 = vsel %vm367_vm0, %v4994_v14, %v6006_v31  ;;  %v1566_v44 = vsel %vm367_vm0, %v1565_v5, %v4884_v38  ;;  %v6009_v14 = vrot.slane %v4734_v58, 4 }
 0x1b8   : > { %v5195_v16 = vsel %vm367_vm0, %v6007_v25, %v1931_v29  ;;  %v5198_v28 = vperm.slane %v1430_v0, %v4640_v47  ;;  %v1440_v12 = vperm.slane %v1432_v36, %v4640_v47  ;;  %v1454_v56 = vsel %vm367_vm0, %v6008_v49, %v4734_v58 }
 0x1b9   : > { %v1456_v13 = vsel %vm367_vm0, %v4889_v1, %v6009_v14  ;;  %v5212_v29 = vperm.slane %v1454_v56, %v4640_v47  ;;  %v5216_v10 = vperm.slane %v1566_v44, %v4640_v47  ;;  %v6011_v36 = vrot.slane %v4731_v57, 4 }
 0x1ba   : > { %v1464_v0 = vperm.slane %v1456_v13, %v4640_v47  ;;  %v1479_v31 = vrot.slane %v1440_v12, 4  ;;  %v1420_v1 = vsel %vm367_vm0, %v4991_v40, %v1419_v9  ;;  %v6013_v49 = vrot.slane %v5022_v33, 4 }
 0x1bb   : > { %6010 = vst [vmem:[#allocation34_spill] sm:$0xff] %v5212_v29  ;;  %v1444_v5 = vsel %vm367_vm0, %v4902_v41, %v6011_v36  ;;  %v1473_v58 = vrot.slane %v5212_v29, 4  ;;  %v1585_v44 = vrot.slane %v5216_v10, 4  ;;  %v5236_v13 = vperm.slane %v1420_v1, %v4640_v47 }
 0x1bc   : > { %v5227_v25 = vperm.slane %v1444_v5, %v4640_v47  ;;  %v1642_v56 = vsel %vm367_vm0, %v6013_v49, %v4948_v4  ;;  %v1480_v14 = vsel %vm367_vm0, %v1464_v0, %v1479_v31  ;;  %v6015_v55 = vrot.slane %v4934_v26, 4 }
 0x1bd   : > { %v5239_v36 = vperm.slane %v1642_v56, %v4640_v47  ;;  %v1474_v9 = vsel %vm367_vm0, %v1473_v58, %v5198_v28  ;;  %v1477_v7 = vrot.slane %v1464_v0, 4  ;;  %v1586_v31 = vsel %vm367_vm0, %v1585_v44, %v5181_v37 }
 0x1be   : > { %6012 = vst [vmem:[#allocation35_spill] sm:$0xff] %v5227_v25  ;;  %v1469_v5 = vrot.slane %v5227_v25, 4  ;;  %v1666_v49 = vsel %vm367_vm0, %v6015_v55, %v4737_v59  ;;  %v4278_v32 = vpack.i.bf16 %v1480_v14, %v1474_v9  ;;  %v6017_v56 = vrot.slane %v5028_v20, 4 }
 0x1bf   : > { %6014 = vst [vmem:[#allocation36_spill] sm:$0xff] %v5239_v36  ;;  %v5251_v1 = vperm.slane %v1666_v49, %v4640_v47  ;;  %v4294_v35 = vpack.i.bf16 %v1586_v31, %v1366_v50  ;;  %v1478_v29 = vsel %vm367_vm0, %v1477_v7, %v1440_v12  ;;  %v6018_v44 = vrot.slane %v4930_v6, 4 }
 0x1c0   : > { %v1654_v58 = vsel %vm367_vm0, %v6017_v56, %v4937_v46  ;;  %v1470_v25 = vsel %vm367_vm0, %v1469_v5, %v5236_v13  ;;  %4279 = vxpose.xlu2.b32.end [2/2] (short) (narrow) %v4278_v32, 8  ;;  %v1531_v9 = vrot.slane %v5061_v3, 4  ;;  %v6019_v50 = vrot.slane %v4874_v45, 4 }
 0x1c1   : > { %6016 = vst [vmem:[#allocation37_spill] sm:$0xff] %v5251_v1  ;;  %v5261_v55 = vperm.slane %v1654_v58, %v4640_v47  ;;  %v1689_v0 = vrot.slane %v5251_v1, 4  ;;  %v1678_v14 = vsel %vm367_vm0, %v6018_v44, %v4740_v19  ;;  %4295 = vxpose.xlu1.b32.start [1/2] (short) (narrow) %v4294_v35, 8  ;;  %v1753_v12 = vrot.slane %v5097_v42, 4 }
 0x1c2   : > { %v1556_v5 = vsel %vm367_vm0, %v4863_v2, %v6019_v50  ;;  %v5274_v7 = vperm.slane %v1678_v14, %v4640_v47  ;;  %v6020_v49 = vrot.slane %v4899_v8, 4  ;;  %v1532_v45 = vsel %vm367_vm0, %v5058_v54, %v1531_v9 }
 0x1c3   : > { %v1564_v32 = vperm.slane %v1556_v5, %v4640_v47  ;;  %v1690_v3 = vsel %vm367_vm0, %v1689_v0, %v5239_v36  ;;  %v1543_v35 = vrot.slane %v5165_v63, 4  ;;  %v1540_v44 = vperm.slane %v1532_v45, %v4640_v47 }
 0x1c4   : > { %v1778_v31 = vsel %vm367_vm0, %v6020_v49, %v4918_v18  ;;  %v4287_v56 = vpack.i.bf16 %v1690_v3, %v1470_v25  ;;  %v1697_v58 = vrot.slane %v5274_v7, 4  ;;  %v1754_v50 = vsel %vm367_vm0, %v1753_v12, %v5107_v60 }
 0x1c5   : > { %v1784_v2 = vperm.slane %v1778_v31, %v4640_v47  ;;  %v1581_v14 = vrot.slane %v1564_v32, 4  ;;  %v1544_v0 = vsel %vm367_vm0, %v5071_v39, %v1543_v35  ;;  %v1567_v49 = vrot.slane %v4884_v38, 4 }
 0x1c6   : > { %4288 = vxpose.xlu0.b32.end [2/2] (short) (narrow) %v4287_v56, 8  ;;  %v1698_v54 = vsel %vm367_vm0, %v1697_v58, %v5261_v55  ;;  %v1760_v25 = vperm.slane %v1754_v50, %v4640_v47  ;;  %v1552_v9 = vperm.slane %v1544_v0, %v4640_v47  ;;  %v5304_v3 = vperm.slane %v5118_v30, %v4629_v27 }
 0x1c7   : > { %v1801_v5 = vrot.slane %v1784_v2, 4  ;;  %v1582_v63 = vsel %vm367_vm0, %v1581_v14, %v1540_v44  ;;  %v4296_v31 = vpack.i.bf16 %v1698_v54, %v1478_v29  ;;  %v1568_v12 = vsel %vm367_vm0, %v4877_v43, %v1567_v49 }
 0x1c8   : > { %v1765_v38 = vrot.slane %v5113_v11, 4  ;;  %v1576_v45 = vperm.slane %v1568_v12, %v4640_v47  ;;  %v1789_v35 = vrot.slane %v4913_v22, 4  ;;  %v1583_v56 = vrot.slane %v1540_v44, 4 }
 0x1c9   : > { %v1802_v39 = vsel %vm367_vm0, %v1801_v5, %v1760_v25  ;;  %v1803_v14 = vrot.slane %v1760_v25, 4  ;;  %v1643_v43 = vrot.slane %v4948_v4, 4  ;;  %4297 = vxpose.xlu1.b32.end [2/2] (short) (narrow) %v4296_v31, 8  ;;  %v1591_v1 = vrot.slane %v1552_v9, 4 }
 0x1ca   : > { %v4303_v58 = vpack.i.bf16 %v1802_v39, %v1582_v63  ;;  %v1766_v29 = vsel %vm367_vm0, %v1765_v38, %v5304_v3  ;;  %v1589_v50 = vrot.slane %v1576_v45, 4  ;;  %v1790_v0 = vsel %vm367_vm0, %v1789_v35, %v4925_v62 }
 0x1cb   : > { %v1772_v30 = vperm.slane %v1766_v29, %v4640_v47  ;;  %v1584_v5 = vsel %vm367_vm0, %v1564_v32, %v1583_v56  ;;  %v1796_v49 = vperm.slane %v1790_v0, %v4640_v47  ;;  %v1804_v44 = vsel %vm367_vm0, %v1784_v2, %v1803_v14 }
 0x1cc   : > { %4304 = vxpose.xlu2.b32.start [1/2] (short) (narrow) %v4303_v58, 8  ;;  %v1644_v54 = vsel %vm367_vm0, %v5022_v33, %v1643_v43  ;;  %v6021_v63 = vrot.slane %v4737_v59, 4  ;;  %v1590_v25 = vsel %vm367_vm0, %v1589_v50, %v1552_v9  ;;  %v4330_v31 = vpack.i.bf16 %v1804_v44, %v1584_v5  ;;  %v6023_v33 = vld [vmem:[#allocation21_spill] sm:$0xff]  ;;  %v6027_v44 = vld [vmem:[#allocation22_spill] sm:$0xff] }
 0x1cd   : > { %v1652_v12 = vperm.slane %v1644_v54, %v4640_v47  ;;  %v1809_v38 = vrot.slane %v1796_v49, 4  ;;  %v6022_v39 = vrot.slane %v5050_v48, 4  ;;  %v6024_v35 = vrot.slane %v6023_v33, 4  ;;  %v6029_v54 = vld [vmem:[#allocation11_spill] sm:$0xff] }
 0x1ce   : > { %v1668_v4 = vsel %vm367_vm0, %v4934_v26, %v6021_v63  ;;  %v6025_v26 = vrot.slane %v4937_v46, 4  ;;  %v6026_v0 = vrot.slane %v4740_v19, 4  ;;  %v6028_v46 = vrot.slane %v5064_v51, 4  ;;  %v6030_v63 = vld [vmem:[#allocation20_spill] sm:$0xff] }
 0x1cf   : > { %v1676_v32 = vperm.slane %v1668_v4, %v4640_v47  ;;  %v1866_v2 = vsel %vm367_vm0, %v6022_v39, %v4986_v34  ;;  %v1890_v59 = vsel %vm367_vm0, %v6024_v35, %v4766_v21  ;;  %v1810_v50 = vsel %vm367_vm0, %v1809_v38, %v1772_v30 }
 0x1d0   : > { %v1656_v56 = vsel %vm367_vm0, %v5028_v20, %v6025_v26  ;;  %v1872_v29 = vperm.slane %v1866_v2, %v4640_v47  ;;  %v1896_v14 = vperm.slane %v1890_v59, %v4640_v47  ;;  %v1680_v5 = vsel %vm367_vm0, %v4930_v6, %v6026_v0 }
 0x1d1   : > { %v1693_v58 = vrot.slane %v1676_v32, 4  ;;  %v5343_v43 = vperm.slane %v1656_v56, %v4640_v47  ;;  %v1878_v20 = vsel %vm367_vm0, %v6028_v46, %v6027_v44  ;;  %v6031_v4 = vrot.slane %v6030_v63, 4  ;;  %4331 = vxpose.xlu1.b32.start [1/2] (short) (narrow) %v4330_v31, 8 }
 0x1d2   : > { %v4312_v2 = vpack.i.bf16 %v1810_v50, %v1590_v25  ;;  %v1913_v59 = vrot.slane %v1896_v14, 4  ;;  %v1688_v38 = vperm.slane %v1680_v5, %v4640_v47  ;;  %v1884_v19 = vperm.slane %v1878_v20, %v4640_v47 }
 0x1d3   : > { %v1902_v39 = vsel %vm367_vm0, %v6031_v4, %v6029_v54  ;;  %v1694_v35 = vsel %vm367_vm0, %v1693_v58, %v1652_v12  ;;  %v1695_v26 = vrot.slane %v1652_v12, 4  ;;  %v1915_v56 = vrot.slane %v1872_v29, 4 }
 0x1d4   : > { %v1908_v6 = vperm.slane %v1902_v39, %v4640_v47  ;;  %4313 = vxpose.xlu0.b32.start [1/2] (short) (narrow) %v4312_v2, 8  ;;  %v1914_v0 = vsel %vm367_vm0, %v1913_v59, %v1872_v29  ;;  %v1701_v46 = vrot.slane %v1688_v38, 4  ;;  %v1811_v36 = vrot.slane %v1772_v30, 4 }
 0x1d5   : > { %v4305_v4 = vpack.i.bf16 %v1914_v0, %v1694_v35  ;;  %v1696_v58 = vsel %vm367_vm0, %v1676_v32, %v1695_v26  ;;  %v1916_v50 = vsel %vm367_vm0, %v1896_v14, %v1915_v56  ;;  %v1592_v12 = vsel %vm367_vm0, %v1576_v45, %v1591_v1  ;;  %v6032_v35 = vld [vmem:[#allocation17_spill] sm:$0xff]  ;;  %v6035_v26 = vld [vmem:[#allocation16_spill] sm:$0xff] }
 0x1d6   : > { %v1921_v25 = vrot.slane %v1908_v6, 4  ;;  %v1702_v5 = vsel %vm367_vm0, %v1701_v46, %v5343_v43  ;;  %v4332_v20 = vpack.i.bf16 %v1916_v50, %v1696_v58  ;;  %v1812_v39 = vsel %vm367_vm0, %v1796_v49, %v1811_v36  ;;  %v6033_v49 = vld [vmem:[#allocation18_spill] sm:$0xff]  ;;  %v6036_v46 = vld [vmem:[#allocation19_spill] sm:$0xff] }
 0x1d7   : > { %4306 = vxpose.xlu2.b32.end [2/2] (short) (narrow) %v4305_v4, 8  ;;  %v4321_v29 = vpack.i.bf16 %v1812_v39, %v1592_v12  ;;  %v1767_v9 = vrot.slane %v5304_v3, 4  ;;  %v1791_v30 = vrot.slane %v4925_v62, 4  ;;  %v1940_v32 = vperm.slane %v5195_v16, %v4629_v27 }
 0x1d8   : > { %v1922_v31 = vsel %vm367_vm0, %v1921_v25, %v1884_v19  ;;  %v1989_v14 = vrot.slane %v5169_v52, 4  ;;  %v2013_v59 = vrot.slane %v6032_v35, 4  ;;  %v1979_v45 = vrot.slane %v5175_v17, 4 }
 0x1d9   : > { %v4314_v2 = vpack.i.bf16 %v1922_v31, %v1702_v5  ;;  %v1768_v1 = vsel %vm367_vm0, %v5113_v11, %v1767_v9  ;;  %v1792_v36 = vsel %vm367_vm0, %v4913_v22, %v1791_v30  ;;  %v6034_v3 = vrot.slane %v6033_v49, 4  ;;  %4333 = vxpose.xlu1.b32.end [2/2] (short) (narrow) %v4332_v20, 8 }
 0x1da   : > { %v5386_v56 = vperm.slane %v1768_v1, %v4640_v47  ;;  %v5389_v16 = vperm.slane %v1792_v36, %v4640_v47  ;;  %v1990_v0 = vsel %vm367_vm0, %v1989_v14, %v1940_v32  ;;  %v2014_v11 = vsel %vm367_vm0, %v2013_v59, %v6036_v46 }
 0x1db   : > { %v2004_v62 = vsel %vm367_vm0, %v6035_v26, %v6034_v3  ;;  %v5395_v22 = vperm.slane %v1990_v0, %v4640_v47  ;;  %v5398_v4 = vperm.slane %v2014_v11, %v4640_v47  ;;  %v1980_v25 = vsel %vm367_vm0, %v5157_v61, %v1979_v45 }
 0x1dc   : > { %v1991_v58 = vrot.slane %v1940_v32, 4  ;;  %4315 = vxpose.xlu0.b32.end [2/2] (short) (narrow) %v4314_v2, 8  ;;  %v1813_v50 = vrot.slane %v5389_v16, 4  ;;  %v5404_v5 = vperm.slane %v1980_v25, %v4640_v47  ;;  %v5407_v12 = vperm.slane %v2004_v62, %v4640_v47 }
 0x1dd   : > { %v2015_v39 = vrot.slane %v6036_v46, 4  ;;  %v2033_v31 = vrot.slane %v5398_v4, 4  ;;  %v1703_v30 = vrot.slane %v5343_v43, 4  ;;  %v1923_v32 = vrot.slane %v1884_v19, 4 }
 0x1de   : > { %v1992_v9 = vsel %vm367_vm0, %v5169_v52, %v1991_v58  ;;  %v1814_v20 = vsel %vm367_vm0, %v1813_v50, %v5386_v56  ;;  %v2029_v59 = vrot.slane %v5407_v12, 4  ;;  %v6037_v62 = vrot.slane %v6027_v44, 4  ;;  %v6042_v50 = vld [vmem:[#allocation23_spill] sm:$0xff] }
 0x1df   : > { %v2000_v2 = vperm.slane %v1992_v9, %v4640_v47  ;;  %v2016_v14 = vsel %vm367_vm0, %v6032_v35, %v2015_v39  ;;  %4322 = vxpose.xlu2.b32.start [1/2] (short) (narrow) %v4321_v29, 8  ;;  %v2034_v1 = vsel %vm367_vm0, %v2033_v31, %v5395_v22  ;;  %v1704_v52 = vsel %vm367_vm0, %v1688_v38, %v1703_v30 }
 0x1e0   : > { %v2024_v36 = vperm.slane %v2016_v14, %v4640_v47  ;;  %v1924_v43 = vsel %vm367_vm0, %v1908_v6, %v1923_v32  ;;  %v4366_v19 = vpack.i.bf16 %v2034_v1, %v1814_v20  ;;  %v2030_v45 = vsel %vm367_vm0, %v2029_v59, %v5404_v5  ;;  %v6039_v6 = vld [vmem:[#allocation25_spill] sm:$0xff]  ;;  %v6046_v14 = vld [vmem:[#allocation12_spill] sm:$0xff] }
 0x1e1   : > { %v4323_v3 = vpack.i.bf16 %v1924_v43, %v1704_v52  ;;  %v1880_v35 = vsel %vm367_vm0, %v5064_v51, %v6037_v62  ;;  %v6038_v46 = vrot.slane %v6029_v54, 4  ;;  %v6040_v11 = vrot.slane %v5091_v53, 4  ;;  %v6041_v51 = vld [vmem:[#allocation13_spill] sm:$0xff]  ;;  %v6044_v54 = vld [vmem:[#allocation26_spill] sm:$0xff]  ;;  %v6048_v1 = vld [vmem:[#allocation24_spill] sm:$0xff] }
 0x1e2   : > { %v2037_v29 = vrot.slane %v2024_v36, 4  ;;  %v5432_v0 = vperm.slane %v1880_v35, %v4640_v47  ;;  %v6043_v39 = vrot.slane %v6042_v50, 4  ;;  %v2091_v9 = vrot.slane %v6044_v54, 4 }
 0x1e3   : > { %v1904_v38 = vsel %vm367_vm0, %v6030_v63, %v6038_v46  ;;  %v2102_v25 = vsel %vm367_vm0, %v6040_v11, %v6039_v6  ;;  %v6045_v32 = vrot.slane %v6039_v6, 4  ;;  %v6047_v59 = vrot.slane %v6046_v14, 4 }
 0x1e4   : > { %v5443_v58 = vperm.slane %v1904_v38, %v4640_v47  ;;  %v5446_v44 = vperm.slane %v2102_v25, %v4640_v47  ;;  %v2126_v31 = vsel %vm367_vm0, %v6043_v39, %v6041_v51  ;;  %v2038_v63 = vsel %vm367_vm0, %v2037_v29, %v2000_v2  ;;  %4367 = vxpose.xlu0.b32.start [1/2] (short) (narrow) %v4366_v19, 8 }
 0x1e5   : > { %v5455_v30 = vperm.slane %v2126_v31, %v4640_v47  ;;  %v2104_v20 = vsel %vm367_vm0, %v5091_v53, %v6045_v32  ;;  %v2116_v52 = vsel %vm367_vm0, %v6048_v1, %v6047_v59  ;;  %v4339_v43 = vpack.i.bf16 %v2030_v45, %v2038_v63 }
 0x1e6   : > { %v1925_v62 = vrot.slane %v5443_v58, 4  ;;  %v2092_v35 = vsel %vm367_vm0, %v5086_v23, %v2091_v9  ;;  %v2112_v29 = vperm.slane %v2104_v20, %v4640_v47  ;;  %v2124_v53 = vperm.slane %v2116_v52, %v4640_v47 }
 0x1e7   : > { %v2145_v46 = vrot.slane %v5455_v30, 4  ;;  %v5471_v38 = vperm.slane %v2092_v35, %v4640_v47  ;;  %v6049_v6 = vrot.slane %v6041_v51, 4  ;;  %4340 = vxpose.xlu1.b32.start [1/2] (short) (narrow) %v4339_v43, 8  ;;  %v1755_v25 = vrot.slane %v5107_v60, 4  ;;  %4324 = vxpose.xlu2.b32.end [2/2] (short) (narrow) %v4323_v3, 8 }
 0x1e8   : > { %v1926_v45 = vsel %vm367_vm0, %v1925_v62, %v5432_v0  ;;  %v6050_v39 = vrot.slane %v4918_v18, 4  ;;  %v2141_v9 = vrot.slane %v2124_v53, 4  ;;  %v2039_v63 = vrot.slane %v2000_v2, 4 }
 0x1e9   : > { %v2128_v19 = vsel %vm367_vm0, %v6042_v50, %v6049_v6  ;;  %v2146_v51 = vsel %vm367_vm0, %v2145_v46, %v5446_v44  ;;  %v1756_v59 = vsel %vm367_vm0, %v5097_v42, %v1755_v25  ;;  %v6051_v60 = vrot.slane %v5157_v61, 4 }
 0x1ea   : > { %v2136_v11 = vperm.slane %v2128_v19, %v4640_v47  ;;  %v1780_v31 = vsel %vm367_vm0, %v4899_v8, %v6050_v39  ;;  %v4368_v32 = vpack.i.bf16 %v2146_v51, %v1926_v45  ;;  %v2142_v8 = vsel %vm367_vm0, %v2141_v9, %v5471_v38 }
 0x1eb   : > { %v1788_v50 = vperm.slane %v1780_v31, %v4640_v47  ;;  %v1978_v18 = vsel %vm367_vm0, %v6051_v60, %v5175_v17  ;;  %v1764_v3 = vperm.slane %v1756_v59, %v4640_v47  ;;  %v2040_v43 = vsel %vm367_vm0, %v2024_v36, %v2039_v63 }
 0x1ec   : > { %v2149_v20 = vrot.slane %v2136_v11, 4  ;;  %v1984_v62 = vperm.slane %v1978_v18, %v4640_v47  ;;  %v2001_v35 = vrot.slane %v6035_v26, 4  ;;  %v2031_v42 = vrot.slane %v5404_v5, 4  ;;  %4369 = vxpose.xlu0.b32.end [2/2] (short) (narrow) %v4368_v32, 8 }
 0x1ed   : > { %v1805_v52 = vrot.slane %v1788_v50, 4  ;;  %v1807_v17 = vrot.slane %v1764_v3, 4  ;;  %v1867_v6 = vrot.slane %v4986_v34, 4  ;;  %v6052_v31 = vrot.slane %v4766_v21, 4 }
 0x1ee   : > { %v2150_v2 = vsel %vm367_vm0, %v2149_v20, %v2112_v29  ;;  %v2002_v45 = vsel %vm367_vm0, %v2001_v35, %v6033_v49  ;;  %v2027_v36 = vrot.slane %v1984_v62, 4  ;;  %v2032_v25 = vsel %vm367_vm0, %v5407_v12, %v2031_v42  ;;  %v6056_v42 = vld [vmem:[#allocation15_spill] sm:$0xff] }
 0x1ef   : > { %v4341_v46 = vpack.i.bf16 %v2142_v8, %v2150_v2  ;;  %v1806_v61 = vsel %vm367_vm0, %v1805_v52, %v1764_v3  ;;  %v1808_v39 = vsel %vm367_vm0, %v1788_v50, %v1807_v17  ;;  %v2008_v26 = vperm.slane %v2002_v45, %v4640_v47  ;;  %v6057_v17 = vld [vmem:[#allocation29_spill] sm:$0xff]  ;;  %v6058_v45 = vld [vmem:[#allocation14_spill] sm:$0xff] }
 0x1f0   : > { %v4348_v19 = vpack.i.bf16 %v1806_v61, %v2040_v43  ;;  %v1868_v5 = vsel %vm367_vm0, %v5050_v48, %v1867_v6  ;;  %v1892_v34 = vsel %vm367_vm0, %v6023_v33, %v6052_v31  ;;  %v2151_v9 = vrot.slane %v2112_v29, 4 }
 0x1f1   : > { %4342 = vxpose.xlu1.b32.end [2/2] (short) (narrow) %v4341_v46, 8  ;;  %v1876_v51 = vperm.slane %v1868_v5, %v4640_v47  ;;  %v1900_v49 = vperm.slane %v1892_v34, %v4640_v47  ;;  %v6053_v12 = vrot.slane %v5086_v23, 4  ;;  %v2028_v63 = vsel %vm367_vm0, %v2008_v26, %v2027_v36 }
 0x1f2   : > { %4349 = vxpose.xlu2.b32.start [1/2] (short) (narrow) %v4348_v19, 8  ;;  %v2025_v48 = vrot.slane %v2008_v26, 4  ;;  %v2113_v32 = vrot.slane %v6048_v1, 4  ;;  %v4384_v33 = vpack.i.bf16 %v2028_v63, %v1808_v39  ;;  %v2152_v59 = vsel %vm367_vm0, %v2136_v11, %v2151_v9  ;;  %v6054_v11 = vld [vmem:[#allocation27_spill] sm:$0xff] }
 0x1f3   : > { %v2090_v50 = vsel %vm367_vm0, %v6053_v12, %v6044_v54  ;;  %v1917_v20 = vrot.slane %v1900_v49, 4  ;;  %v1919_v60 = vrot.slane %v1876_v51, 4  ;;  %v2143_v54 = vrot.slane %v5471_v38, 4 }
 0x1f4   : > { %v2096_v21 = vperm.slane %v2090_v50, %v4640_v47  ;;  %v2026_v29 = vsel %vm367_vm0, %v2025_v48, %v1984_v62  ;;  %v2114_v23 = vsel %vm367_vm0, %v2113_v32, %v6046_v14  ;;  %v6055_v35 = vrot.slane %v5032_v24, 4  ;;  %4385 = vxpose.xlu0.b32.start [1/2] (short) (narrow) %v4384_v33, 8 }
 0x1f5   : > { %v4357_v8 = vpack.i.bf16 %v2032_v25, %v2026_v29  ;;  %v1918_v3 = vsel %vm367_vm0, %v1917_v20, %v1876_v51  ;;  %v1920_v52 = vsel %vm367_vm0, %v1900_v49, %v1919_v60  ;;  %v2120_v1 = vperm.slane %v2114_v23, %v4640_v47  ;;  %v6059_v49 = vld [vmem:[#allocation28_spill] sm:$0xff]  ;;  %v6061_v20 = vld [vmem:[#allocation34_spill] sm:$0xff] }
 0x1f6   : > { %v2139_v18 = vrot.slane %v2096_v21, 4  ;;  %v4350_v43 = vpack.i.bf16 %v1918_v3, %v2152_v59  ;;  %v2144_v2 = vsel %vm367_vm0, %v2124_v53, %v2143_v54  ;;  %v1306_v62 = vsel %vm367_vm0, %v6055_v35, %v6054_v11  ;;  %v6062_v3 = vld [vmem:[#allocation35_spill] sm:$0xff]  ;;  %v6066_v35 = vld [vmem:[#allocation30_spill] sm:$0xff] }
 0x1f7   : > { %v1329_v14 = vrot.slane %v6056_v42, 4  ;;  %v2137_v46 = vrot.slane %v2120_v1, 4  ;;  %v1312_v61 = vperm.slane %v1306_v62, %v4640_v47  ;;  %v1363_v6 = vrot.slane %v6057_v17, 4  ;;  %v6067_v42 = vld [vmem:[#allocation32_spill] sm:$0xff] }
 0x1f8   : > { %v2140_v38 = vsel %vm367_vm0, %v2120_v1, %v2139_v18  ;;  %v1587_v53 = vrot.slane %v5181_v37, 4  ;;  %v1815_v24 = vrot.slane %v5386_v56, 4  ;;  %v2035_v51 = vrot.slane %v5395_v22, 4 }
 0x1f9   : > { %v4386_v19 = vpack.i.bf16 %v2140_v38, %v1920_v52  ;;  %v1330_v36 = vsel %vm367_vm0, %v1329_v14, %v6058_v45  ;;  %4358 = vxpose.xlu1.b32.start [1/2] (short) (narrow) %v4357_v8, 8  ;;  %v2138_v25 = vsel %vm367_vm0, %v2137_v46, %v2096_v21  ;;  %v1355_v26 = vrot.slane %v1312_v61, 4  ;;  %v6068_v38 = vld [vmem:[#allocation31_spill] sm:$0xff] }
 0x1fa   : > { %v1336_v39 = vperm.slane %v1330_v36, %v4640_v47  ;;  %4351 = vxpose.xlu2.b32.end [2/2] (short) (narrow) %v4350_v43, 8  ;;  %v4359_v5 = vpack.i.bf16 %v2144_v2, %v2138_v25  ;;  %v1588_v31 = vsel %vm367_vm0, %v5216_v10, %v1587_v53  ;;  %v1816_v34 = vsel %vm367_vm0, %v5389_v16, %v1815_v24  ;;  %v6063_v43 = vld [vmem:[#allocation36_spill] sm:$0xff]  ;;  %v6064_v2 = vld [vmem:[#allocation37_spill] sm:$0xff] }
 0x1fb   : > { %v1364_v37 = vsel %vm367_vm0, %v6059_v49, %v1363_v6  ;;  %v6060_v9 = vrot.slane %v4991_v40, 4  ;;  %v1441_v50 = vrot.slane %v4902_v41, 4  ;;  %v2036_v10 = vsel %vm367_vm0, %v5398_v4, %v2035_v51 }
 0x1fc   : > { %v1353_v56 = vrot.slane %v1336_v39, 4  ;;  %v1356_v63 = vsel %vm367_vm0, %v1336_v39, %v1355_v26  ;;  %v1475_v22 = vrot.slane %v5198_v28, 4  ;;  %v4375_v21 = vpack.i.bf16 %v2036_v10, %v1816_v34  ;;  %4387 = vxpose.xlu0.b32.end [2/2] (short) (narrow) %v4386_v19, 8 }
 0x1fd   : > { %v1418_v12 = vsel %vm367_vm0, %v6060_v9, %v4906_v15  ;;  %v1442_v32 = vsel %vm367_vm0, %v1441_v50, %v4731_v57  ;;  %v1699_v40 = vrot.slane %v5261_v55, 4  ;;  %v4421_v4 = vpack.i.bf16 %v1356_v63, %v1364_v37 }
 0x1fe   : > { %v1424_v16 = vperm.slane %v1418_v12, %v4640_v47  ;;  %v1354_v48 = vsel %vm367_vm0, %v1353_v56, %v1312_v61  ;;  %v1448_v41 = vperm.slane %v1442_v32, %v4640_v47  ;;  %v1476_v59 = vsel %vm367_vm0, %v6061_v20, %v1475_v22 }
 0x1ff   : > { %v4393_v15 = vpack.i.bf16 %v1354_v48, %v1588_v31  ;;  %v1927_v60 = vrot.slane %v5432_v0, 4  ;;  %v2147_v28 = vrot.slane %v5446_v44, 4  ;;  %v1700_v57 = vsel %vm367_vm0, %v5274_v7, %v1699_v40 }
 0x200   : > { %v1467_v33 = vrot.slane %v1424_v16, 4  ;;  %v1465_v23 = vrot.slane %v1448_v41, 4  ;;  %v1471_v55 = vrot.slane %v5236_v13, 4  ;;  %v1691_v7 = vrot.slane %v6063_v43, 4 }
 0x201   : > { %4360 = vxpose.xlu1.b32.end [2/2] (short) (narrow) %v4359_v5, 8  ;;  %v1928_v54 = vsel %vm367_vm0, %v5443_v58, %v1927_v60  ;;  %v2148_v8 = vsel %vm367_vm0, %v5455_v30, %v2147_v28  ;;  %v6065_v58 = vld [vmem:[#allocation33_spill] sm:$0xff]  ;;  %v1359_v62 = vrot.slane %v6066_v35, 4 }
 0x202   : > { %v1468_v29 = vsel %vm367_vm0, %v1448_v41, %v1467_v33  ;;  %4422 = vxpose.xlu2.b32.start [1/2] (short) (narrow) %v4421_v4, 8  ;;  %v1466_v0 = vsel %vm367_vm0, %v1465_v23, %v1424_v16  ;;  %v4377_v44 = vpack.i.bf16 %v2148_v8, %v1928_v54  ;;  %v1472_v52 = vsel %vm367_vm0, %v6062_v3, %v1471_v55 }
 0x203   : > { %v4423_v18 = vpack.i.bf16 %v1468_v29, %v1476_v59  ;;  %v4395_v1 = vpack.i.bf16 %v1466_v0, %v1700_v57  ;;  %v1692_v13 = vsel %vm367_vm0, %v6064_v2, %v1691_v7  ;;  %v1579_v30 = vrot.slane %v6065_v58, 4 }
 0x204   : > { %v4409_v11 = vpack.i.bf16 %v1692_v13, %v1472_v52  ;;  %4394 = vxpose.xlu0.b32.start [1/2] (short) (narrow) %v4393_v15, 8  ;;  %v1360_v46 = vsel %vm367_vm0, %v6068_v38, %v1359_v62 }
 0x205   : > { %v1580_v14 = vsel %vm367_vm0, %v6067_v42, %v1579_v30 }
 0x206   : > { %v4407_v61 = vpack.i.bf16 %v1580_v14, %v1360_v46 }
 0x209   : > { %4376 = vxpose.xlu1.b32.start [1/2] (short) (narrow) %v4375_v21, 8 }
 0x20a   : > { %4424 = vxpose.xlu2.b32.end [2/2] (short) (narrow) %v4423_v18, 8 }
 0x20c   : > { %4396 = vxpose.xlu0.b32.end [2/2] (short) (narrow) %v4395_v1, 8 }
 0x211   : > { %4378 = vxpose.xlu1.b32.end [2/2] (short) (narrow) %v4377_v44, 8 }
 0x219   : > { %4408 = vxpose.xlu1.b32.start [1/2] (short) (narrow) %v4407_v61, 8 }
 0x221   : > { %4410 = vxpose.xlu1.b32.end [2/2] (short) (narrow) %v4409_v11, 8 }
 0x251   : > { %v4280_v17 = vpop.trf.xlu2 }
 0x252   : > { %v4281_v24 = vunpack.i.l.bf16 %v4280_v17  ;;  %v4284_v50 = vunpack.i.h.bf16 %v4280_v17 }
 0x254   : > { %v3195_v40 = vrot.slane %v4284_v50, 4 }
 0x262   : > { %v5595_v6 = vpop.trf.xlu0 }
 0x263   : > { %v4293_v45 = vunpack.i.h.bf16 %v5595_v6  ;;  %v4290_v58 = vunpack.i.l.bf16 %v5595_v6 }
 0x265   : > { %v5598_v53 = vpop.trf.xlu1 }
 0x266   : > { %v4299_v25 = vunpack.i.l.bf16 %v5598_v53  ;;  %v4302_v42 = vunpack.i.h.bf16 %v5598_v53 }
 0x268   : > { %v4307_v19 = vpop.trf.xlu2  ;;  %v3189_v26 = vrot.slane %v4299_v25, 4 }
 0x269   : > { %v4308_v36 = vunpack.i.l.bf16 %v4307_v19  ;;  %v4311_v4 = vunpack.i.h.bf16 %v4307_v19 }
 0x26a   : > { %v3190_v31 = vsel %vm367_vm0, %v3189_v26, %v4281_v24 }
 0x26b   : > { %v3233_v39 = vrot.slane %v4308_v36, 4  ;;  %v3194_v0 = vperm.slane %v3190_v31, %v4629_v27 }
 0x26d   : > { %v5602_v5 = vsel %vm367_vm0, %v3233_v39, %v4293_v45  ;;  %v3215_v46 = vrot.slane %v3194_v0, 4 }
 0x26e   : > { %v3238_v6 = vperm.slane %v5602_v5, %v4629_v27 }
 0x275   : > { %v5607_v49 = vpop.trf.xlu1 }
 0x276   : > { %v4338_v28 = vunpack.i.h.bf16 %v5607_v49 }
 0x278   : > { %v4316_v34 = vpop.trf.xlu0  ;;  %v5605_v51 = vpop.trf.xlu2 }
 0x279   : > { %v4320_v44 = vunpack.i.h.bf16 %v4316_v34  ;;  %v4317_v13 = vunpack.i.l.bf16 %v4316_v34  ;;  %v4326_v11 = vunpack.i.l.bf16 %v5605_v51  ;;  %v4329_v61 = vunpack.i.h.bf16 %v5605_v51 }
 0x27b   : > { %v3245_v36 = vrot.slane %v4317_v13, 4  ;;  %v3251_v24 = vrot.slane %v4326_v11, 4 }
 0x288   : > { %v4370_v37 = vpop.trf.xlu0 }
 0x289   : > { %v4371_v29 = vunpack.i.l.bf16 %v4370_v37  ;;  %v4374_v54 = vunpack.i.h.bf16 %v4370_v37 }
 0x28b   : > { %v4352_v56 = vpop.trf.xlu2  ;;  %v3301_v1 = vrot.slane %v4371_v29, 4 }
 0x28c   : > { %v4356_v16 = vunpack.i.h.bf16 %v4352_v56  ;;  %v4353_v30 = vunpack.i.l.bf16 %v4352_v56 }
 0x28d   : > { %v4343_v9 = vpop.trf.xlu1  ;;  %v3302_v17 = vsel %vm367_vm0, %v3301_v1, %v4320_v44 }
 0x28e   : > { %v4347_v12 = vunpack.i.h.bf16 %v4343_v9  ;;  %v4344_v20 = vunpack.i.l.bf16 %v4343_v9  ;;  %v3289_v60 = vrot.slane %v4356_v16, 4  ;;  %v3363_v53 = vrot.slane %v4353_v30, 4 }
 0x28f   : > { %v3306_v34 = vperm.slane %v3302_v17, %v4629_v27  ;;  %v4335_v16 = vunpack.i.l.bf16 %v5607_v49 }
 0x290   : > { %v3345_v22 = vrot.slane %v4347_v12, 4  ;;  %v3357_v8 = vrot.slane %v4344_v20, 4  ;;  %v3290_v3 = vsel %vm367_vm0, %v3289_v60, %v4311_v4 }
 0x291   : > { %v3294_v35 = vperm.slane %v3290_v3, %v4629_v27 }
 0x292   : > { %v3358_v62 = vsel %vm367_vm0, %v3357_v8, %v4374_v54 }
 0x293   : > { %v3362_v39 = vperm.slane %v3358_v62, %v4629_v27  ;;  %v3315_v31 = vrot.slane %v3294_v35, 4 }
 0x298   : > { %v4388_v63 = vpop.trf.xlu0 }
 0x299   : > { %v4389_v21 = vunpack.i.l.bf16 %v4388_v63  ;;  %v4392_v15 = vunpack.i.h.bf16 %v4388_v63 }
 0x29b   : > { %v5609_v10 = vpop.trf.xlu2  ;;  %v3295_v23 = vrot.slane %v4389_v21, 4  ;;  %v5645_v21 = vld [vmem:[%s287_s25] sm:$0xff] }
 0x29c   : > { %v4426_v41 = vunpack.i.l.bf16 %v5609_v10 }
 0x29d   : > { %v4361_v48 = vpop.trf.xlu1  ;;  %v3296_v43 = vsel %vm367_vm0, %v3295_v23, %v4338_v28  ;;  %v3246_v28 = vsel %vm367_vm0, %v3245_v36, %v4302_v42  ;;  %v3327_v23 = vrot.slane %v3306_v34, 4 }
 0x29e   : > { %v4365_v32 = vunpack.i.h.bf16 %v4361_v48  ;;  %v4362_v33 = vunpack.i.l.bf16 %v4361_v48  ;;  %v3196_v55 = vsel %vm367_vm0, %v3195_v40, %v4426_v41  ;;  %v3300_v14 = vperm.slane %v3296_v43, %v4629_v27 }
 0x29f   : > { %v3200_v7 = vperm.slane %v3196_v55, %v4629_v27  ;;  %v3383_v48 = vrot.slane %v3362_v39, 4  ;;  %v3250_v30 = vperm.slane %v3246_v28, %v4629_v27 }
 0x2a0   : > { %v3351_v59 = vrot.slane %v4365_v32, 4  ;;  %v3346_v57 = vsel %vm367_vm0, %v3345_v22, %v4362_v33  ;;  %v3313_v56 = vrot.slane %v3300_v14, 4  ;;  %v5647_v32 = vld [vmem:[%s287_s25 + $0x8] sm:$0xff]  ;;  %v3316_v41 = vsel %vm367_vm0, %v3300_v14, %v3315_v31 }
 0x2a1   : > { %v3350_v52 = vperm.slane %v3346_v57, %v4629_v27  ;;  %v3213_v45 = vrot.slane %v3200_v7, 4  ;;  %v5634_v26 = vsel %vm367_vm0, %v3200_v7, %v3215_v46  ;;  %v4416_v33 = vpack.i.bf16 %v5647_v32, %v5645_v21 }
 0x2a2   : > { %v3352_v18 = vsel %vm367_vm0, %v3351_v59, %v4392_v15  ;;  %v3314_v60 = vsel %vm367_vm0, %v3313_v56, %v3294_v35  ;;  %v3324_v54 = vperm.slane %v3316_v41, %v4640_v47 }
 0x2a3   : > { %v3356_v2 = vperm.slane %v3352_v18, %v4629_v27  ;;  %v3371_v38 = vrot.slane %v3350_v52, 4  ;;  %v5639_v9 = vsel %vm367_vm0, %v3213_v45, %v3194_v0  ;;  %4417 = vrot.lane.b32.xlu1 %v4416_v33, %s4504_s24  ;;  %v3320_v3 = vperm.slane %v3314_v60, %v4640_v47  ;;  %4403 = vrot.lane.b32.xlu0 %v4416_v33, %s4503_s23 }
 0x2a4   : > { %v3343_v62 = vrot.slane %v3324_v54, 4  ;;  %4431 = vrot.lane.b32.xlu2 %v4416_v33, %s4502_s22  ;;  %v3220_v60 = vperm.slane %v5639_v9, %v4640_v47 }
 0x2a5   : > { %v3369_v19 = vrot.slane %v3356_v2, 4  ;;  %v3372_v51 = vsel %vm367_vm0, %v3356_v2, %v3371_v38 }
 0x2a6   : > { %v3380_v15 = vperm.slane %v3372_v51, %v4640_v47 }
 0x2a7   : > { %v3370_v63 = vsel %vm367_vm0, %v3369_v19, %v3350_v52 }
 0x2a8   : > { %v5630_v25 = vpop.trf.xlu0  ;;  %v3376_v4 = vperm.slane %v3370_v63, %v4640_v47  ;;  %v3399_v0 = vrot.slane %v3380_v15, 4 }
 0x2a9   : > { %v4398_v12 = vunpack.i.l.bf16 %v5630_v25  ;;  %v4401_v14 = vunpack.i.h.bf16 %v5630_v25 }
 0x2aa   : > { %v3395_v43 = vrot.slane %v3376_v4, 4 }
 0x2ab   : > { %v3252_v29 = vsel %vm367_vm0, %v3251_v24, %v4398_v12  ;;  %v3177_v24 = vrot.slane %v4290_v58, 4  ;;  %v3239_v58 = vrot.slane %v4335_v16, 4  ;;  %v3224_v16 = vperm.slane %v5634_v26, %v4640_v47 }
 0x2ac   : > { %v3256_v52 = vperm.slane %v3252_v29, %v4629_v27 }
 0x2ad   : > { %v4379_v37 = vpop.trf.xlu1  ;;  %v3178_v51 = vsel %vm367_vm0, %v3177_v24, %v4401_v14  ;;  %v3229_v26 = vrot.slane %v3224_v16, 4  ;;  %v581_v24 = vrot.slane %v5645_v21, 4 }
 0x2ae   : > { %v4383_v50 = vunpack.i.h.bf16 %v4379_v37  ;;  %v4380_v22 = vunpack.i.l.bf16 %v4379_v37  ;;  %v3269_v36 = vrot.slane %v3256_v52, 4  ;;  %v3271_v37 = vrot.slane %v3250_v30, 4 }
 0x2b0   : > { %v3364_v40 = vsel %vm367_vm0, %v3363_v53, %v4383_v50  ;;  %v3307_v20 = vrot.slane %v4380_v22, 4  ;;  %v3339_v53 = vrot.slane %v3320_v3, 4  ;;  %v3272_v50 = vsel %vm367_vm0, %v3256_v52, %v3271_v37 }
 0x2b1   : > { %v3368_v59 = vperm.slane %v3364_v40, %v4629_v27  ;;  %v3270_v63 = vsel %vm367_vm0, %v3269_v36, %v3250_v30  ;;  %v4429_v40 = vunpack.i.h.bf16 %v5609_v10  ;;  %v3280_v49 = vperm.slane %v3272_v50, %v4640_v47  ;;  %v6072_v36 = vld [vmem:[#allocation10_spill] sm:$0xff] }
 0x2b2   : > { %v3308_v57 = vsel %vm367_vm0, %v3307_v20, %v4329_v61 }
 0x2b3   : > { %v3384_v55 = vsel %vm367_vm0, %v3368_v59, %v3383_v48  ;;  %v3381_v18 = vrot.slane %v3368_v59, 4  ;;  %v3312_v44 = vperm.slane %v3308_v57, %v4629_v27  ;;  %v3259_v59 = vrot.slane %v3238_v6, 4 }
 0x2b4   : > { %v3392_v8 = vperm.slane %v3384_v55, %v4640_v47 }
 0x2b5   : > { %v3382_v1 = vsel %vm367_vm0, %v3381_v18, %v3362_v39  ;;  %v3328_v11 = vsel %vm367_vm0, %v3312_v44, %v3327_v23  ;;  %v3325_v42 = vrot.slane %v3312_v44, 4  ;;  %v3285_v18 = vrot.slane %v3280_v49, 4 }
 0x2b6   : > { %v3400_v7 = vsel %vm367_vm0, %v3392_v8, %v3399_v0  ;;  %v3388_v2 = vperm.slane %v3382_v1, %v4640_v47  ;;  %v3397_v13 = vrot.slane %v3392_v8, 4  ;;  %v3336_v35 = vperm.slane %v3328_v11, %v4640_v47 }
 0x2b7   : > { %3486 = vmatpush.msra.mxu3 %v3400_v7  ;;  %v3326_v19 = vsel %vm367_vm0, %v3325_v42, %v3306_v34  ;;  %v3225_v7 = vrot.slane %v3220_v60, 4  ;;  %v6069_v42 = vld [vmem:[#allocation7_spill] sm:$0xff] }
 0x2b8   : > { %v3396_v38 = vsel %vm367_vm0, %v3388_v2, %v3395_v43  ;;  %v3398_v46 = vsel %vm367_vm0, %v3397_v13, %v3380_v15  ;;  %v3393_v61 = vrot.slane %v3388_v2, 4  ;;  %v3344_v17 = vsel %vm367_vm0, %v3336_v35, %v3343_v62 }
 0x2b9   : > { %3440 = vmatpush.msra.mxu1 %v3396_v38  ;;  %3463 = vmatpush.msra.mxu2 %v3398_v46  ;;  %v3341_v45 = vrot.slane %v3336_v35, 4  ;;  %v3332_v25 = vperm.slane %v3326_v19, %v4640_v47  ;;  %v3182_v15 = vperm.slane %v3178_v51, %v4629_v27  ;;  %v6070_v19 = vld [vmem:[#allocation8_spill] sm:$0xff] }
 0x2ba   : > { %3487 = vmatpush.msra.mxu3 %v3344_v17  ;;  %v3394_v39 = vsel %vm367_vm0, %v3393_v61, %v3376_v4  ;;  %v3276_v4 = vperm.slane %v3270_v63, %v4640_v47 }
 0x2bb   : > { %3417 = vmatpush.msra.mxu0 %v3394_v39  ;;  %v3342_v31 = vsel %vm367_vm0, %v3341_v45, %v3324_v54  ;;  %v3340_v56 = vsel %vm367_vm0, %v3332_v25, %v3339_v53  ;;  %v3337_v34 = vrot.slane %v3332_v25, 4  ;;  %v3203_v57 = vrot.slane %v3182_v15, 4  ;;  %v6071_v45 = vld [vmem:[#allocation9_spill] sm:$0xff] }
 0x2bc   : > { %3464 = vmatpush.msra.mxu2 %v3342_v31  ;;  %3441 = vmatpush.msra.mxu1 %v3340_v56  ;;  %v3281_v8 = vrot.slane %v3276_v4, 4  ;;  %v637_v39 = vrot.slane %v5647_v32, 4 }
 0x2bd   : > { %v4411_v12 = vpop.trf.xlu1  ;;  %v3338_v41 = vsel %vm367_vm0, %v3337_v34, %v3320_v3 }
 0x2be   : > { %v4415_v22 = vunpack.i.h.bf16 %v4411_v12  ;;  %v4412_v48 = vunpack.i.l.bf16 %v4411_v12  ;;  %3418 = vmatpush.msra.mxu0 %v3338_v41 }
 0x2c0   : > { %v3240_v33 = vsel %vm367_vm0, %v3239_v58, %v4415_v22  ;;  %v3183_v5 = vrot.slane %v4412_v48, 4 }
 0x2c1   : > { %v3244_v20 = vperm.slane %v3240_v33, %v4629_v27 }
 0x2c2   : > { %v3184_v10 = vsel %vm367_vm0, %v3183_v5, %v4429_v40 }
 0x2c3   : > { %v3260_v28 = vsel %vm367_vm0, %v3244_v20, %v3259_v59  ;;  %v3257_v29 = vrot.slane %v3244_v20, 4  ;;  %v3188_v23 = vperm.slane %v3184_v10, %v4629_v27 }
 0x2c4   : > { %v3268_v55 = vperm.slane %v3260_v28, %v4640_v47 }
 0x2c5   : > { %v3258_v54 = vsel %vm367_vm0, %v3257_v29, %v3238_v6  ;;  %v3204_v0 = vsel %vm367_vm0, %v3188_v23, %v3203_v57  ;;  %v3201_v44 = vrot.slane %v3188_v23, 4 }
 0x2c6   : > { %v3286_v3 = vsel %vm367_vm0, %v3285_v18, %v3268_v55  ;;  %v3264_v9 = vperm.slane %v3258_v54, %v4640_v47  ;;  %v3212_v52 = vperm.slane %v3204_v0, %v4640_v47  ;;  %v3287_v1 = vrot.slane %v3268_v55, 4 }
 0x2c7   : > { %3465 = vmatpush.msra.mxu2 %v3286_v3  ;;  %v3202_v43 = vsel %vm367_vm0, %v3201_v44, %v3182_v15  ;;  %v4507_v3 = vmov -inf  }
 0x2c8   : > { %v3282_v2 = vsel %vm367_vm0, %v3281_v8, %v3264_v9  ;;  %v3230_v13 = vsel %vm367_vm0, %v3229_v26, %v3212_v52  ;;  %v3288_v11 = vsel %vm367_vm0, %v3280_v49, %v3287_v1  ;;  %v3208_v30 = vperm.slane %v3202_v43, %v4640_v47  ;;  %343 = vst.msk [vmem:[#allocation2 + $0x8] sm:$0xff] %vm341_vm2, %v4507_v3 }
 0x2c9   : > { %3419 = vmatpush.msra.mxu0 %v3282_v2  ;;  %3466 = vmatpush.msra.mxu2 %v3230_v13  ;;  %v3283_v35 = vrot.slane %v3264_v9, 4  ;;  %v3231_v62 = vrot.slane %v3212_v52, 4  ;;  %342 = vst.msk [vmem:[#allocation2] sm:$0xff] %vm341_vm2, %v4507_v3 }
 0x2ca   : > { %3488 = vmatpush.msra.mxu3 %v3288_v11  ;;  %4027 = vmatmul.msk.f32.vlgmr.msra.gmra.mxu2 %vm350_vm1, %v6069_v42  ;;  %v3226_v14 = vsel %vm367_vm0, %v3225_v7, %v3208_v30  ;;  %v3227_v38 = vrot.slane %v3208_v30, 4  ;;  %344 = vst.msk [vmem:[#allocation2 + $0x10] sm:$0xff] %vm341_vm2, %v4507_v3 }
 0x2cb   : > { %3420 = vmatpush.msra.mxu0 %v3226_v14  ;;  %v3284_v46 = vsel %vm367_vm0, %v3276_v4, %v3283_v35  ;;  %v3232_v61 = vsel %vm367_vm0, %v3224_v16, %v3231_v62  ;;  %345 = vst.msk [vmem:[#allocation2 + $0x18] sm:$0xff] %vm341_vm2, %v4507_v3 }
 0x2cc   : > { %3442 = vmatpush.msra.mxu1 %v3284_v46  ;;  %3489 = vmatpush.msra.mxu3 %v3232_v61  ;;  %v3228_v17 = vsel %vm367_vm0, %v3220_v60, %v3227_v38 }
 0x2cd   : > { %4025 = vmatmul.msk.f32.vlgmr.msra.gmra.mxu0 %vm350_vm1, %v6070_v19  ;;  %4028 = vmatmul.msk.f32.vlgmr.msra.gmra.mxu3 %vm350_vm1, %v6071_v45 }
 0x2ce   : > { %3443 = vmatpush.msra.mxu1 %v3228_v17 }
 0x2cf   : > { %4026 = vmatmul.msk.f32.vlgmr.msra.gmra.mxu1 %vm350_vm1, %v6072_v36 }
 0x2fe   : > { %v4432_v53 = vpop.permute.xlu2 %4431 }
 0x2ff   : > { %v4434_v51 = vunpack.i.h.bf16 %v4432_v53  ;;  %v4433_v56 = vunpack.i.l.bf16 %v4432_v53 }
 0x301   : > { %v647_v15 = vrot.slane %v4434_v51, 4  ;;  %v591_v41 = vrot.slane %v4433_v56, 4 }
 0x315   : > { %v4418_v25 = vpop.permute.xlu1 %4417  ;;  %v4404_v34 = vpop.permute.xlu0 %4403 }
 0x316   : > { %v4420_v31 = vunpack.i.h.bf16 %v4418_v25  ;;  %v4419_v37 = vunpack.i.l.bf16 %v4418_v25  ;;  %v4406_v6 = vunpack.i.h.bf16 %v4404_v34  ;;  %v4405_v58 = vunpack.i.l.bf16 %v4404_v34 }
 0x318   : > { %v635_v12 = vrot.slane %v4420_v31, 4  ;;  %v638_v50 = vsel %vm367_vm0, %v4420_v31, %v637_v39  ;;  %v579_v63 = vrot.slane %v4419_v37, 4  ;;  %v582_v22 = vsel %vm367_vm0, %v4419_v37, %v581_v24 }
 0x319   : > { %v646_v48 = vperm.slane %v638_v50, %v4629_v27  ;;  %v590_v40 = vperm.slane %v582_v22, %v4629_v27  ;;  %v649_v49 = vrot.slane %v4406_v6, 4  ;;  %v593_v16 = vrot.slane %v4405_v58, 4 }
 0x31a   : > { %v636_v33 = vsel %vm367_vm0, %v635_v12, %v5647_v32  ;;  %v580_v5 = vsel %vm367_vm0, %v579_v63, %v5645_v21  ;;  %v648_v60 = vsel %vm367_vm0, %v647_v15, %v4406_v6  ;;  %v592_v29 = vsel %vm367_vm0, %v591_v41, %v4405_v58 }
 0x31b   : > { %v642_v20 = vperm.slane %v636_v33, %v4629_v27  ;;  %v673_v59 = vrot.slane %v646_v48, 4  ;;  %v586_v4 = vperm.slane %v580_v5, %v4629_v27  ;;  %v617_v10 = vrot.slane %v590_v40, 4 }
 0x31c   : > { %v650_v28 = vsel %vm367_vm0, %v4434_v51, %v649_v49  ;;  %v594_v23 = vsel %vm367_vm0, %v4433_v56, %v593_v16  ;;  %v654_v21 = vperm.slane %v648_v60, %v4629_v27  ;;  %v598_v18 = vperm.slane %v592_v29, %v4629_v27 }
 0x31d   : > { %v661_v32 = vrot.slane %v642_v20, 4  ;;  %v605_v57 = vrot.slane %v586_v4, 4  ;;  %v658_v55 = vperm.slane %v650_v28, %v4629_v27  ;;  %v602_v26 = vperm.slane %v594_v23, %v4629_v27 }
 0x31e   : > { %v659_v54 = vrot.slane %v654_v21, 4  ;;  %v603_v1 = vrot.slane %v598_v18, 4 }
 0x31f   : > { %v662_v8 = vsel %vm367_vm0, %v654_v21, %v661_v32  ;;  %v671_v0 = vrot.slane %v658_v55, 4  ;;  %v674_v44 = vsel %vm367_vm0, %v658_v55, %v673_v59  ;;  %v606_v43 = vsel %vm367_vm0, %v598_v18, %v605_v57 }
 0x320   : > { %v670_v9 = vperm.slane %v662_v8, %v4640_v47  ;;  %v682_v52 = vperm.slane %v674_v44, %v4640_v47  ;;  %v660_v7 = vsel %vm367_vm0, %v659_v54, %v642_v20  ;;  %v614_v13 = vperm.slane %v606_v43, %v4640_v47 }
 0x321   : > { %v672_v2 = vsel %vm367_vm0, %v671_v0, %v646_v48  ;;  %v615_v11 = vrot.slane %v602_v26, 4  ;;  %v666_v30 = vperm.slane %v660_v7, %v4640_v47  ;;  %v604_v42 = vsel %vm367_vm0, %v603_v1, %v586_v4 }
 0x322   : > { %v685_v35 = vrot.slane %v670_v9, 4  ;;  %v689_v62 = vrot.slane %v682_v52, 4  ;;  %v610_v14 = vperm.slane %v604_v42, %v4640_v47  ;;  %v618_v46 = vsel %vm367_vm0, %v602_v26, %v617_v10 }
 0x323   : > { %v616_v38 = vsel %vm367_vm0, %v615_v11, %v590_v40  ;;  %v629_v61 = vrot.slane %v614_v13, 4  ;;  %v683_v17 = vrot.slane %v666_v30, 4  ;;  %v626_v36 = vperm.slane %v618_v46, %v4640_v47 }
 0x324   : > { %v686_v19 = vsel %vm367_vm0, 0.0, %v685_v35  ;;  %v690_v45 = vsel %vm367_vm0, 0.0, %v689_v62  ;;  %v627_v25 = vrot.slane %v610_v14, 4  ;;  %v678_v51 = vperm.slane %v672_v2, %v4640_v47 }
 0x325   : > { %v3675_v24 = vrot.slane %v686_v19, 4  ;;  %v3686_v39 = vrot.slane %v690_v45, 4  ;;  %v630_v53 = vsel %vm367_vm0, 0.0, %v629_v61  ;;  %v633_v31 = vrot.slane %v626_v36, 4 }
 0x326   : > { %v3621_v37 = vrot.slane %v630_v53, 4  ;;  %v684_v56 = vsel %vm367_vm0, 0.0, %v683_v17  ;;  %v3670_v34 = vsel %vm367_vm0, %v685_v35, %v666_v30  ;;  %v622_v58 = vperm.slane %v616_v38, %v4640_v47 }
 0x327   : > { %v3676_v6 = vsel %vm367_vm0, %v3675_v24, %v684_v56  ;;  %v628_v12 = vsel %vm367_vm0, 0.0, %v627_v25  ;;  %v634_v50 = vsel %vm367_vm0, 0.0, %v633_v31  ;;  %v687_v63 = vrot.slane %v678_v51, 4 }
 0x328   : > { %v3674_v22 = vperm.slane %v3670_v34, %v4629_v27  ;;  %v3680_v48 = vperm.slane %v3676_v6, %v4629_v27  ;;  %v3632_v15 = vrot.slane %v634_v50, 4  ;;  %v3681_v41 = vsel %vm367_vm0, %v689_v62, %v678_v51 }
 0x329   : > { %v631_v33 = vrot.slane %v622_v58, 4  ;;  %v3616_v5 = vsel %vm367_vm0, %v629_v61, %v610_v14  ;;  %v688_v16 = vsel %vm367_vm0, 0.0, %v687_v63  ;;  %v3685_v20 = vperm.slane %v3681_v41, %v4629_v27 }
 0x32a   : > { %v3692_v59 = vrot.slane %v3680_v48, 4  ;;  %v3687_v10 = vsel %vm367_vm0, %v3686_v39, %v688_v16  ;;  %v3620_v28 = vperm.slane %v3616_v5, %v4629_v27  ;;  %v3622_v29 = vsel %vm367_vm0, %v3621_v37, %v628_v12  ;;  %v5836_v5 = vld [vmem:[#allocation2 + $0x10] sm:$0xff] }
 0x32b   : > { %v632_v60 = vsel %vm367_vm0, 0.0, %v631_v33  ;;  %v3691_v57 = vperm.slane %v3687_v10, %v4629_v27  ;;  %v3626_v55 = vperm.slane %v3622_v29, %v4629_v27  ;;  %v3627_v54 = vsel %vm367_vm0, %v633_v31, %v622_v58  ;;  %v5834_v33 = vld [vmem:[#allocation2 + $0x8] sm:$0xff] }
 0x32c   : > { %v3693_v21 = vsel %vm367_vm0, %v3692_v59, %v3674_v22  ;;  %v3633_v8 = vsel %vm367_vm0, %v3632_v15, %v632_v60  ;;  %v3631_v44 = vperm.slane %v3627_v54, %v4629_v27  ;;  %v3694_v43 = vrot.slane %v3674_v22, 4  ;;  %v3497_v59 = vld [vmem:[#allocation2 + $0x18] sm:$0xff] }
 0x32d   : > { %v3699_v26 = vperm.slane %v3693_v21, %v4640_v47  ;;  %v3704_v0 = vrot.slane %v3691_v57, 4  ;;  %v3637_v3 = vperm.slane %v3633_v8, %v4629_v27  ;;  %v3638_v9 = vrot.slane %v3626_v55, 4 }
 0x32e   : > { %v3706_v7 = vrot.slane %v3685_v20, 4  ;;  %v3640_v2 = vrot.slane %v3620_v28, 4  ;;  %v3695_v42 = vsel %vm367_vm0, %v3680_v48, %v3694_v43  ;;  %v3652_v31 = vrot.slane %v3631_v44, 4 }
 0x32f   : > { %v3718_v1 = vrot.slane %v3699_v26, 4  ;;  %v3705_v11 = vsel %vm367_vm0, %v3704_v0, %v3685_v20  ;;  %v3639_v30 = vsel %vm367_vm0, %v3638_v9, %v3620_v28  ;;  %v3650_v35 = vrot.slane %v3637_v3, 4 }
 0x330   : > { %v3711_v62 = vperm.slane %v3705_v11, %v4640_v47  ;;  %v3645_v27 = vperm.slane %v3639_v30, %v4640_v47  ;;  %v3707_v14 = vsel %vm367_vm0, %v3691_v57, %v3706_v7  ;;  %v3703_v46 = vperm.slane %v3695_v42, %v4640_v47 }
 0x331   : > { %v3651_v38 = vsel %vm367_vm0, %v3650_v35, %v3631_v44  ;;  %v3715_v61 = vperm.slane %v3707_v14, %v4640_v47  ;;  %v3641_v17 = vsel %vm367_vm0, %v3626_v55, %v3640_v2  ;;  %v3653_v58 = vsel %vm367_vm0, %v3637_v3, %v3652_v31 }
 0x332   : > { %v3719_v19 = vsel %vm367_vm0, %v3711_v62, %v3718_v1  ;;  %v3716_v45 = vrot.slane %v3711_v62, 4  ;;  %v3657_v36 = vperm.slane %v3651_v38, %v4640_v47  ;;  %v3664_v24 = vrot.slane %v3645_v27, 4 }
 0x333   : > { %3764 = vmatpush.msrb.mxu1 %v3719_v19  ;;  %v3722_v39 = vrot.slane %v3703_v46, 4  ;;  %v3720_v25 = vrot.slane %v3715_v61, 4  ;;  %v3649_v53 = vperm.slane %v3641_v17, %v4640_v47  ;;  %v3661_v63 = vperm.slane %v3653_v58, %v4640_v47 }
 0x334   : > { %v3717_v37 = vsel %vm367_vm0, %v3716_v45, %v3699_v26  ;;  %v3665_v51 = vsel %vm367_vm0, %v3657_v36, %v3664_v24  ;;  %v3662_v56 = vrot.slane %v3657_v36, 4  ;;  %v4508_v41 = vmov 0  }
 0x335   : > { %3741 = vmatpush.msrb.mxu0 %v3717_v37  ;;  %3765 = vmatpush.msrb.mxu1 %v3665_v51  ;;  %v3723_v34 = vsel %vm367_vm0, %v3715_v61, %v3722_v39  ;;  %v3721_v6 = vsel %vm367_vm0, %v3720_v25, %v3703_v46  ;;  %v3668_v12 = vrot.slane %v3649_v53, 4  ;;  %v3666_v48 = vrot.slane %v3661_v63, 4 }
 0x336   : > { %3810 = vmatpush.msrb.mxu3 %v3723_v34  ;;  %v3663_v50 = vsel %vm367_vm0, %v3662_v56, %v3645_v27  ;;  %3787 = vmatpush.msrb.mxu2 %v3721_v6  ;;  %v4509_v26 = vmov 0.0  }
 0x337   : > { %3742 = vmatpush.msrb.mxu0 %v3663_v50  ;;  %v3669_v22 = vsel %vm367_vm0, %v3661_v63, %v3668_v12  ;;  %v3667_v15 = vsel %vm367_vm0, %v3666_v48, %v3649_v53  ;;  %4436 = vset.pattern.permute.xlu1 %v4508_v41  ;;  %348 = vst.msk [vmem:[#allocation3 + $0x10] sm:$0xff] %vm341_vm2, %v4509_v26 }
 0x338   : > { %3811 = vmatpush.msrb.mxu3 %v3669_v22  ;;  %3788 = vmatpush.msrb.mxu2 %v3667_v15  ;;  %346 = vst.msk [vmem:[#allocation3] sm:$0xff] %vm341_vm2, %v4509_v26 }
 0x339   : > { %4435 = vset.pattern.permute.xlu0 %v4508_v41  ;;  %4437 = vset.pattern.permute.xlu2 %v4508_v41  ;;  %347 = vst.msk [vmem:[#allocation3 + $0x8] sm:$0xff] %vm341_vm2, %v4509_v26 }
 0x33a   : > { %349 = vst.msk [vmem:[#allocation3 + $0x18] sm:$0xff] %vm341_vm2, %v4509_v26 }
 0x33b   : > { %351 = vst.msk [vmem:[#allocation4] sm:$0xff] %vm350_vm1, %v4509_v26 }
 0x33c   : > { %352 = vst.msk [vmem:[#allocation4 + $0x8] sm:$0xff] %vm350_vm1, %v4509_v26 }
 0x33d   : > { %353 = vst.msk [vmem:[#allocation4 + $0x10] sm:$0xff] %vm350_vm1, %v4509_v26 }
 0x33e   : > { %354 = vst.msk [vmem:[#allocation4 + $0x18] sm:$0xff] %vm350_vm1, %v4509_v26  ;;  %v3561_v19 = vld [vmem:[#allocation3 + $0x10] sm:$0xff] }
 0x33f   : > { %v3559_v22 = vld [vmem:[#allocation3] sm:$0xff] }
 0x340   : > { %v3560_v51 = vld [vmem:[#allocation3 + $0x8] sm:$0xff] }
 0x341   : > { %v3562_v36 = vld [vmem:[#allocation3 + $0x18] sm:$0xff] }
 0x344   : > { %v3590_v12 = vld [vmem:[#allocation4 + $0x10] sm:$0xff] }
 0x34a   : > { %v5780_v40 = vpop.f32.mrf.mxu0 }
 0x34b   : > { %v3499_v49 = vsel %vm3498_vm3, %v5780_v40, -inf }
 0x34c   : > { %v5788_v4 = vpop.f32.mrf.mxu1 }
 0x34d   : > { %v5794_v23 = vpop.f32.mrf.mxu2  ;;  %v3502_v32 = vsel %vm3498_vm3, %v5788_v4, -inf }
 0x34e   : > { %3503 = vmax.xlane.f32.xlu2 %v3502_v32  ;;  %v3505_v18 = vsel %vm3498_vm3, %v5794_v23, -inf  ;;  %v5848_v32 = vld [vmem:[#allocation2] sm:$0xff] }
 0x34f   : > { %3506 = vmax.xlane.f32.xlu0 %v3505_v18 }
 0x350   : > { %v5808_v52 = vpop.f32.mrf.mxu3 }
 0x351   : > { %v3508_v13 = vsel %vm3498_vm3, %v5808_v52, -inf }
 0x352   : > { %3509 = vmax.xlane.f32.xlu1 %v3508_v13 }
 0x356   : > { %3500 = vmax.xlane.f32.xlu2 %v3499_v49 }
 0x3c1   : > { %v3504_v49 = vpop.xlane.xlu2 %3503 }
 0x3c2   : > { %v5839_v16 = vmax.f32 %v5834_v33, %v3504_v49  ;;  %v3507_v47 = vpop.xlane.xlu0 %3506 }
 0x3c3   : > { %v3513_v20 = vmax.f32 %v5836_v5, %v3507_v47 }
 0x3c4   : > { %v3516_v10 = vsub.f32 %v5834_v33, %v5839_v16  ;;  %3825 = vst.msk [vmem:[#allocation2 + $0x8] sm:$0xff] %vm341_vm2, %v5839_v16 }
 0x3c5   : > { %v3517_v60 = vsub.f32 %v5836_v5, %v3513_v20  ;;  %3826 = vst.msk [vmem:[#allocation2 + $0x10] sm:$0xff] %vm341_vm2, %v3513_v20  ;;  %v3510_v28 = vpop.xlane.xlu1 %3509  ;;  %3539 = vperm.xlu1 %4436, %v3513_v20  }
 0x3c6   : > { %v3514_v29 = vmax.f32 %v3497_v59, %v3510_v28  ;;  %v3521_v61 = vmul.f32 1.442695, %v3516_v10  ;;  %v3591_v10 = vld [vmem:[#allocation4 + $0x18] sm:$0xff] }
 0x3c7   : > { %v3523_v42 = vmul.f32 1.442695, %v3517_v60 }
 0x3c8   : > { %v3518_v57 = vsub.f32 %v3497_v59, %v3514_v29  ;;  %3827 = vst.msk [vmem:[#allocation2 + $0x18] sm:$0xff] %vm341_vm2, %v3514_v29  ;;  %3544 = vperm.xlu0 %4435, %v3514_v29  }
 0x3c9   : > { %v3501_v21 = vpop.xlane.xlu2 %3500 }
 0x3ca   : > { %v5852_v55 = vmax.f32 %v5848_v32, %v3501_v21 }
 0x3cc   : > { %v3515_v18 = vsub.f32 %v5848_v32, %v5852_v55  ;;  %3824 = vst.msk [vmem:[#allocation2] sm:$0xff] %vm341_vm2, %v5852_v55  ;;  %3529 = vperm.xlu2 %4437, %v5852_v55  }
 0x3cd   : > { %3534 = vperm.xlu1 %4436, %v5839_v16  }
 0x3ce   : > { %v3519_v25 = vmul.f32 1.442695, %v3515_v18  ;;  %v3589_v18 = vld [vmem:[#allocation4 + $0x8] sm:$0xff] }
 0x426   : > { %v3530_v54 = vpop.permute.xlu2 %3529 }
 0x427   : > { %v3547_v8 = vsub.f32 %v5780_v40, %v3530_v54 }
 0x429   : > { %v3551_v0 = vmul.f32 1.442695, %v3547_v8 }
 0x42b   : > { %4438 = vpow2.f32 %v3551_v0 }
 0x431   : > { %v4439_v44 = vpop.eup %4438 }
 0x432   : > { %4029 = vmatmul.msk.f32.vlgmr.msrb.gmra.mxu0 %vm3498_vm3, %v4439_v44  ;;  %v3567_v14 = vsel %vm3498_vm3, %v4439_v44, 0.0 }
 0x437   : > { %v3540_v3 = vpop.permute.xlu1 %3539 }
 0x438   : > { %v3549_v9 = vsub.f32 %v5794_v23, %v3540_v3 }
 0x43a   : > { %v3555_v1 = vmul.f32 1.442695, %v3549_v9  ;;  %v3545_v43 = vpop.permute.xlu0 %3544 }
 0x43b   : > { %v3550_v7 = vsub.f32 %v5808_v52, %v3545_v43 }
 0x43c   : > { %4440 = vpow2.f32 %v3555_v1 }
 0x43d   : > { %v3557_v2 = vmul.f32 1.442695, %v3550_v7 }
 0x43f   : > { %4442 = vpow2.f32 %v3557_v2  ;;  %v3535_v13 = vpop.permute.xlu1 %3534 }
 0x440   : > { %v3548_v11 = vsub.f32 %v5788_v4, %v3535_v13  ;;  %v3525_v4 = vmul.f32 1.442695, %v3518_v57 }
 0x442   : > { %v4441_v30 = vpop.eup %4440  ;;  %v3553_v40 = vmul.f32 1.442695, %v3548_v11 }
 0x443   : > { %4031 = vmatmul.msk.f32.vlgmr.msrb.gmra.mxu2 %vm3498_vm3, %v4441_v30  ;;  %v3573_v35 = vsel %vm3498_vm3, %v4441_v30, 0.0  ;;  %v3588_v30 = vld [vmem:[#allocation4] sm:$0xff] }
 0x444   : > { %4444 = vpow2.f32 %v3553_v40  ;;  %3574 = vadd.xlane.f32.xlu2 %v3573_v35 }
 0x445   : > { %v4443_v62 = vpop.eup %4442  ;;  %4446 = vpow2.f32 %v3525_v4 }
 0x446   : > { %4032 = vmatmul.msk.f32.vlgmr.msrb.gmra.mxu3 %vm3498_vm3, %v4443_v62  ;;  %v3576_v23 = vsel %vm3498_vm3, %v4443_v62, 0.0  ;;  %4448 = vpow2.f32 %v3523_v42 }
 0x447   : > { %3577 = vadd.xlane.f32.xlu0 %v3576_v23  ;;  %4450 = vpow2.f32 %v3521_v61 }
 0x448   : > { %4452 = vpow2.f32 %v3519_v25 }
 0x44a   : > { %v4445_v52 = vpop.eup %4444 }
 0x44b   : > { %4030 = vmatmul.msk.f32.vlgmr.msrb.gmra.mxu1 %vm3498_vm3, %v4445_v52  ;;  %v3570_v27 = vsel %vm3498_vm3, %v4445_v52, 0.0  ;;  %v4447_v38 = vpop.eup %4446 }
 0x44c   : > { %3571 = vadd.xlane.f32.xlu1 %v3570_v27  ;;  %v4449_v46 = vpop.eup %4448  ;;  %v3566_v53 = vmul.f32 %v4447_v38, %v3562_v36 }
 0x44d   : > { %v4451_v17 = vpop.eup %4450  ;;  %v3565_v45 = vmul.f32 %v4449_v46, %v3561_v19 }
 0x44e   : > { %v3564_v56 = vmul.f32 %v4451_v17, %v3560_v51  ;;  %v4453_v63 = vpop.eup %4452 }
 0x44f   : > { %v3563_v33 = vmul.f32 %v4453_v63, %v3559_v22 }
 0x454   : > { %3568 = vadd.xlane.f32.xlu1 %v3567_v14 }
 0x45b   : > { %3609 = vperm.xlu0 %4435, %v4447_v38  }
 0x45c   : > { %3604 = vperm.xlu2 %4437, %v4449_v46  }
 0x46d   : > { %3599 = vperm.xlu1 %4436, %v4451_v17  }
 0x4af   : > { %v3744_v62 = vpop.f32.mrf.mxu0 }
 0x4b7   : > { %v3575_v24 = vpop.xlane.xlu2 %3574 }
 0x4b8   : > { %v3581_v39 = vadd.f32 %v3575_v24, %v3565_v45 }
 0x4ba   : > { %3586 = vst.msk [vmem:[#allocation3 + $0x10] sm:$0xff] %vm341_vm2, %v3581_v39  ;;  %v3578_v31 = vpop.xlane.xlu0 %3577 }
 0x4bb   : > { %v3582_v37 = vadd.f32 %v3578_v31, %v3566_v53 }
 0x4bd   : > { %3587 = vst.msk [vmem:[#allocation3 + $0x18] sm:$0xff] %vm341_vm2, %v3582_v37 }
 0x4bf   : > { %v3572_v34 = vpop.xlane.xlu1 %3571  ;;  %v3605_v50 = vpop.permute.xlu2 %3604 }
 0x4c0   : > { %v3580_v6 = vadd.f32 %v3572_v34, %v3564_v56  ;;  %v3614_v15 = vmul.f32 %v3605_v50, %v3590_v12 }
 0x4c1   : > { %v3833_v58 = vld [vmem:[#allocation3 + $0x10] sm:$0xff] }
 0x4c2   : > { %3585 = vst.msk [vmem:[#allocation3 + $0x8] sm:$0xff] %vm341_vm2, %v3580_v6  ;;  %4454 = vrcp.f32 %v3833_v58 }
 0x4c4   : > { %v3834_v48 = vld [vmem:[#allocation3 + $0x18] sm:$0xff] }
 0x4c5   : > { %4456 = vrcp.f32 %v3834_v48 }
 0x4c6   : > { %v3790_v41 = vpop.f32.mrf.mxu2 }
 0x4c7   : > { %v3818_v5 = vadd.f32 %v3790_v41, %v3614_v15  ;;  %v3569_v49 = vpop.xlane.xlu1 %3568 }
 0x4c8   : > { %v4455_v16 = vpop.eup %4454  ;;  %v3579_v47 = vadd.f32 %v3569_v49, %v3563_v33  ;;  %v3767_v8 = vpop.f32.mrf.mxu1 }
 0x4c9   : > { %3822 = vst.msk [vmem:[#allocation4 + $0x10] sm:$0xff] %vm350_vm1, %v3818_v5  ;;  %3858 = vperm.xlu2 %4437, %v4455_v16   ;;  %v3832_v20 = vld [vmem:[#allocation3 + $0x8] sm:$0xff]  ;;  %v3813_v29 = vpop.f32.mrf.mxu3 }
 0x4ca   : > { %3584 = vst.msk [vmem:[#allocation3] sm:$0xff] %vm341_vm2, %v3579_v47  ;;  %4458 = vrcp.f32 %v3832_v20 }
 0x4cb   : > { %v4457_v59 = vpop.eup %4456 }
 0x4cc   : > { %3866 = vperm.xlu0 %4435, %v4457_v59  }
 0x4cd   : > { %v3610_v60 = vpop.permute.xlu0 %3609 }
 0x4ce   : > { %v3615_v28 = vmul.f32 %v3610_v60, %v3591_v10 }
 0x4d0   : > { %v4459_v32 = vpop.eup %4458  ;;  %v3819_v57 = vadd.f32 %v3813_v29, %v3615_v28  ;;  %v3855_v44 = vld [vmem:[#allocation4 + $0x10] sm:$0xff] }
 0x4d1   : > { %3850 = vperm.xlu1 %4436, %v4459_v32   ;;  %v3831_v21 = vld [vmem:[#allocation3] sm:$0xff] }
 0x4d2   : > { %3823 = vst.msk [vmem:[#allocation4 + $0x18] sm:$0xff] %vm350_vm1, %v3819_v57  ;;  %4460 = vrcp.f32 %v3831_v21 }
 0x4d8   : > { %v4461_v55 = vpop.eup %4460 }
 0x4d9   : > { %3594 = vperm.xlu1 %4436, %v4453_v63   ;;  %3842 = vperm.xlu2 %4437, %v4461_v55   ;;  %v3863_v1 = vld [vmem:[#allocation4 + $0x18] sm:$0xff] }
 0x4df   : > { %v3600_v26 = vpop.permute.xlu1 %3599 }
 0x4e0   : > { %v3613_v54 = vmul.f32 %v3600_v26, %v3589_v18 }
 0x4e2   : > { %v3817_v0 = vadd.f32 %v3767_v8, %v3613_v54 }
 0x4e4   : > { %3821 = vst.msk [vmem:[#allocation4 + $0x8] sm:$0xff] %vm350_vm1, %v3817_v0 }
 0x4eb   : > { %v3847_v2 = vld [vmem:[#allocation4 + $0x8] sm:$0xff] }
 0x523   : > { %v3859_v3 = vpop.permute.xlu2 %3858 }
 0x524   : > { %v3861_v9 = vmul.f32 %v3859_v3, %v3855_v44 }
 0x526   : > { %3875 = vrot.lane.b32.xlu1 %v3861_v9, %s4504_s24 }
 0x533   : > { %v3843_v52 = vpop.permute.xlu2 %3842 }
 0x53e   : > { %v3867_v43 = vpop.permute.xlu0 %3866 }
 0x53f   : > { %v3869_v7 = vmul.f32 %v3867_v43, %v3863_v1 }
 0x541   : > { %3879 = vrot.lane.b32.xlu2 %v3869_v7, %s4503_s23 }
 0x543   : > { %v3851_v13 = vpop.permute.xlu1 %3850 }
 0x544   : > { %v3853_v11 = vmul.f32 %v3851_v13, %v3847_v2 }
 0x546   : > { %3871 = vrot.lane.b32.xlu0 %v3853_v11, %s4502_s22 }
 0x54b   : > { %v3595_v40 = vpop.permute.xlu1 %3594 }
 0x54c   : > { %v3612_v35 = vmul.f32 %v3595_v40, %v3588_v30 }
 0x54e   : > { %v3816_v23 = vadd.f32 %v3744_v62, %v3612_v35 }
 0x550   : > { %3820 = vst.msk [vmem:[#allocation4] sm:$0xff] %vm350_vm1, %v3816_v23 }
 0x557   : > { %v3839_v27 = vld [vmem:[#allocation4] sm:$0xff] }
 0x558   : > { %v3845_v4 = vmul.f32 %v3843_v52, %v3839_v27 }
 0x598   : > { %v3876_v14 = vpop.permute.xlu1 %3875 }
 0x59b   : > { %v3880_v46 = vpop.permute.xlu2 %3879 }
 0x5b8   : > { %v3872_v42 = vpop.permute.xlu0 %3871 }
 0x5b9   : > { %v3882_v38 = vsel %vm350_vm1, %v3845_v4, %v3872_v42 }
 0x5ba   : > { %v3884_v61 = vsel %vm3883_vm4, %v3882_v38, %v3876_v14 }
 0x5bb   : > { %v3886_v17 = vsel %vm3885_vm5, %v3884_v61, %v3880_v46 }
 0x5bc   : > { %3887 = vst [vmem:[%s336_s28] sm:$0xff] %v3886_v17 }
 0x5bd PF: > { %s13_s16 = sadd.s32 1, %s4500_s16   ;;  %s6073_s12 = smov %s4488_s13 }
 0x5be   : > { %p10_p10 = scmp.ge.s32.totalorder %s13_s16, 4   ;;  %s6074_s13 = smov %s4569_s21 }
 0x5bf   : > { %s6075_s14 = smov %s4496_s15  ;;  %s6076_s15 = smov %s6078_s17 }
 0x5c0   :  { %12 = sbr.rel (!%p10_p10) target bundleno = 3 (0x3), region = 165 }

</bundles_post_ra>
